<compile_context>
chip_gen: v7x
topology: tpu7x:2x2x1
jax: 0.10.0
libtpu: 0.0.40
codegen_flags: <defaults>
</compile_context>

<pallas_src>
import functools
import math

import jax
import jax.numpy as jnp
from jax import lax
from jax.experimental import pallas as pl
from jax.experimental.pallas import tpu as pltpu


# ---------------------------------------------------------------------------
# In-kernel helpers (EUP-friendly).
# ---------------------------------------------------------------------------
def _l2n(x):
    """F.normalize(x, p=2, dim=1) using EUP rsqrt (in-kernel only)."""
    ssq = jnp.sum(x * x, axis=-1, keepdims=True)
    return x * lax.rsqrt(jnp.maximum(ssq, 1e-24))


def _row_softmax(x):
    """Numerically stable softmax over the last dim; denom via EUP reciprocal."""
    m = jnp.max(x, axis=-1, keepdims=True)
    e = jnp.exp(x - m)
    return e * pl.reciprocal(jnp.sum(e, axis=-1, keepdims=True), approx=True)


# ---------------------------------------------------------------------------
# Fused Teacher_Model.forward kernel (no grid: everything VMEM-resident).
# ---------------------------------------------------------------------------
def teacher_fused_kernel(ui_ref, iu_ref,
                         prompt_user_ref, prompt_item_ref, prompt_item_t_ref,
                         user_id_ref, item_id_ref,
                         image_feats_ref, text_feats_ref,
                         image_w_ref, image_b_ref, text_w_ref, text_b_ref,
                         u_g_ref, i_g_ref,
                         image_item_ref, text_item_ref,
                         image_user_ref, text_user_ref,
                         *, n_ui_layers, feat_rate, soft_rate, cat_rate):
    f32 = jnp.float32
    ui = ui_ref[...]                      # [U, I]
    iu = iu_ref[...]                      # [I, U]
    prompt_item = prompt_item_ref[...]    # [I, d]
    prompt_item_t = prompt_item_t_ref[...]  # [d, I] (pre-transposed in wrapper)
    d = prompt_item.shape[1]

    # ---- prompt-conditioned modality feature path (dropout = identity) ----
    def modality_hidden(feats, w, b):
        t = jnp.dot(prompt_item_t, feats, preferred_element_type=f32)   # [d, F]
        fp = jnp.dot(prompt_item, t, preferred_element_type=f32)        # [I, F]
        x = feats + feat_rate * _l2n(fp)
        return jnp.dot(x, w, preferred_element_type=f32) + b            # [I, d]

    h_img = modality_hidden(image_feats_ref[...], image_w_ref[...], image_b_ref[...])
    h_txt = modality_hidden(text_feats_ref[...], text_w_ref[...], text_b_ref[...])

    # ---- graph hops for both modalities in one N=2d pass (fills 256-wide MXU) ----
    # The PyTorch `for i in range(args.layers)` loop reuses an unchanged h each
    # iteration, so a single pass reproduces it exactly for any layers >= 1.
    h_cat = jnp.concatenate([h_img, h_txt], axis=-1)                    # [I, 2d]
    user_cat = jnp.dot(ui, h_cat, preferred_element_type=f32)           # [U, 2d]
    item_cat = jnp.dot(iu, user_cat, preferred_element_type=f32)        # [I, 2d]

    image_user = user_cat[:, :d]
    text_user = user_cat[:, d:]
    image_item = item_cat[:, :d]
    text_item = item_cat[:, d:]
    image_user_ref[...] = image_user
    text_user_ref[...] = text_user
    image_item_ref[...] = image_item
    text_item_ref[...] = text_item

    # ---- id-embedding + soft prompt tokens ----
    u = user_id_ref[...] + soft_rate * _l2n(prompt_user_ref[...])
    i = item_id_ref[...] + soft_rate * _l2n(prompt_item)
    acc_u = u
    acc_i = i

    # ---- n_ui_layers of bipartite propagation; softmax on final layer only ----
    for l in range(n_ui_layers):
        u = jnp.dot(ui, i, preferred_element_type=f32)
        if l == n_ui_layers - 1:
            u = _row_softmax(u)
            i = _row_softmax(jnp.dot(iu, u, preferred_element_type=f32))
        else:
            i = jnp.dot(iu, u, preferred_element_type=f32)
        acc_u = acc_u + u
        acc_i = acc_i + i

    # ---- mean over (L+1) layer outputs + normalized modality fusion (once) ----
    inv = f32(1.0 / (n_ui_layers + 1))
    u_g_ref[...] = (acc_u * inv
                    + cat_rate * _l2n(image_user)
                    + cat_rate * _l2n(text_user))
    i_g_ref[...] = (acc_i * inv
                    + cat_rate * _l2n(image_item)
                    + cat_rate * _l2n(text_item))


def teacher_forward(ui_graph, iu_graph, user_id_emb, item_id_emb,
                    image_feats, text_feats, image_w, image_b, text_w, text_b,
                    prompt_user, prompt_item, *, n_ui_layers,
                    feat_soft_token_rate, soft_token_rate, model_cat_rate):
    assert n_ui_layers >= 1, "n_ui_layers must be >= 1"
    ui_graph = ui_graph.astype(jnp.float32)
    iu_graph = iu_graph.astype(jnp.float32)
    n_users, n_items = ui_graph.shape
    d = user_id_emb.shape[1]
    f_img = image_feats.shape[1]
    f_txt = text_feats.shape[1]

    # Pre-transpose once in XLA so the in-kernel contraction needs no XLU vxpose.
    prompt_item_t = jnp.transpose(prompt_item)

    inputs = (ui_graph, iu_graph, prompt_user, prompt_item, prompt_item_t,
              user_id_emb, item_id_emb, image_feats, text_feats,
              image_w, image_b, text_w, text_b)

    out_shapes = (
        jax.ShapeDtypeStruct((n_users, d), jnp.float32),  # u_g
        jax.ShapeDtypeStruct((n_items, d), jnp.float32),  # i_g
        jax.ShapeDtypeStruct((n_items, d), jnp.float32),  # image_item_feats
        jax.ShapeDtypeStruct((n_items, d), jnp.float32),  # text_item_feats
        jax.ShapeDtypeStruct((n_users, d), jnp.float32),  # image_user_feats
        jax.ShapeDtypeStruct((n_users, d), jnp.float32),  # text_user_feats
    )

    # Resident VMEM footprint (single-buffered: one pallas_call, no grid).
    in_bytes = sum(int(x.size) * x.dtype.itemsize for x in inputs)
    out_bytes = sum(4 * math.prod(s.shape) for s in out_shapes)
    footprint = in_bytes + out_bytes
    # TODO(synk): switch to the K-tiled streamed variant above this budget.
    assert footprint <= 48 * 1024 * 1024, (
        "resident footprint exceeds v7x-safe VMEM budget; streamed variant needed")
    vmem_limit = int(min(2 * footprint + (16 << 20), 56 << 20))

    flops = (6 * n_items * d * (f_img + f_txt)            # prompt proj + linear
             + 8 * n_users * n_items * d                  # concatenated graph hops
             + 4 * n_ui_layers * n_users * n_items * d)   # ui propagation
    cost = pl.CostEstimate(
        flops=int(flops),
        transcendentals=int((n_users + n_items) * (d + 8)),  # softmax exp + rsqrt
        bytes_accessed=int(footprint),
    )

    kernel = functools.partial(
        teacher_fused_kernel,
        n_ui_layers=int(n_ui_layers),
        feat_rate=float(feat_soft_token_rate),
        soft_rate=float(soft_token_rate),
        cat_rate=float(model_cat_rate))

    (u_g, i_g, image_item_feats, text_item_feats,
     image_user_feats, text_user_feats) = pl.pallas_call(
        kernel,
        out_shape=out_shapes,
        compiler_params=pltpu.CompilerParams(vmem_limit_bytes=vmem_limit),
        cost_estimate=cost,
    )(*inputs)

    # Same 10-tuple the PyTorch module returns.
    return (u_g, i_g, image_item_feats, text_item_feats,
            image_user_feats, text_user_feats, u_g, i_g,
            prompt_user, prompt_item)


# ---------------------------------------------------------------------------
# Pure-JAX reference (mirrors the PyTorch forward), test harness.
# ---------------------------------------------------------------------------
def _l2_normalize_rows_ref(x, eps=1e-12):
    norm = jnp.sqrt(jnp.sum(x * x, axis=-1, keepdims=True))
    return x / jnp.maximum(norm, eps)


def reference_forward(ui, iu, user_id_emb, item_id_emb, image_feats, text_feats,
                      image_w, image_b, text_w, text_b, prompt_user, prompt_item,
                      *, n_ui_layers, layers, feat_soft_token_rate,
                      soft_token_rate, model_cat_rate):
    hp = jax.lax.Precision.HIGHEST
    mm = lambda a, b: jnp.dot(a, b, precision=hp)
    l2n = _l2_normalize_rows_ref

    fp_img = mm(prompt_item, mm(prompt_item.T, image_feats))
    fp_txt = mm(prompt_item, mm(prompt_item.T, text_feats))
    img = mm(image_feats + feat_soft_token_rate * l2n(fp_img), image_w) + image_b
    txt = mm(text_feats + feat_soft_token_rate * l2n(fp_txt), text_w) + text_b
    image_item_feats, text_item_feats = img, txt
    image_user_feats = text_user_feats = None
    for _ in range(layers):
        image_user_feats = mm(ui, img)
        image_item_feats = mm(iu, image_user_feats)
        text_user_feats = mm(ui, txt)
        text_item_feats = mm(iu, text_user_feats)

    u_g = user_id_emb + soft_token_rate * l2n(prompt_user)
    i_g = item_id_emb + soft_token_rate * l2n(prompt_item)
    u_list, i_list = [u_g], [i_g]
    for i in range(n_ui_layers):
        if i == n_ui_layers - 1:
            u_g = jax.nn.softmax(mm(ui, i_g), axis=-1)
            i_g = jax.nn.softmax(mm(iu, u_g), axis=-1)
        else:
            u_g = mm(ui, i_g)
            i_g = mm(iu, u_g)
        u_list.append(u_g)
        i_list.append(i_g)
    u_g = jnp.mean(jnp.stack(u_list), axis=0)
    i_g = jnp.mean(jnp.stack(i_list), axis=0)
    u_g = (u_g + model_cat_rate * l2n(image_user_feats)
           + model_cat_rate * l2n(text_user_feats))
    i_g = (i_g + model_cat_rate * l2n(image_item_feats)
           + model_cat_rate * l2n(text_item_feats))
    return (u_g, i_g, image_item_feats, text_item_feats,
            image_user_feats, text_user_feats)


def xavier_uniform(key, shape):
    fan_out, fan_in = shape
    bound = (6.0 / (fan_in + fan_out)) ** 0.5
    return jax.random.uniform(key, shape, jnp.float32, -bound, bound)


def build_norm_bipartite(key, n_users, n_items, density=0.1):
    """Dense stand-in for csr_norm(R) / csr_norm(R.T) of the interaction matrix."""
    r = (jax.random.uniform(key, (n_users, n_items)) < density).astype(jnp.float32)
    d_u = jnp.power(r.sum(axis=1) + 1e-8, -0.5)
    d_i = jnp.power(r.sum(axis=0) + 1e-8, -0.5)
    ui = d_u[:, None] * r * d_i[None, :]
    iu = d_i[:, None] * r.T * d_u[None, :]
    return ui, iu


if __name__ == "__main__":
    # Small but lane-dense shapes (embed_dim = 128 keeps every store unmasked).
    n_users, n_items = 128, 256
    embed_size = 128
    image_feat_dim, text_feat_dim = 256, 128
    n_ui_layers = 3           # len(weight_size)
    layers = 2                # args.layers (modality hop loop; idempotent)
    feat_soft_token_rate = 0.1
    soft_token_rate = 0.1
    model_cat_rate = 0.02

    key = jax.random.PRNGKey(0)
    ks = jax.random.split(key, 11)
    user_id_emb = xavier_uniform(ks[0], (n_users, embed_size))
    item_id_emb = xavier_uniform(ks[1], (n_items, embed_size))
    image_feats = jax.random.normal(ks[2], (n_items, image_feat_dim), jnp.float32) * 0.1
    text_feats = jax.random.normal(ks[3], (n_items, text_feat_dim), jnp.float32) * 0.1
    image_w = xavier_uniform(ks[4], (image_feat_dim, embed_size))   # x @ W layout
    text_w = xavier_uniform(ks[5], (text_feat_dim, embed_size))
    image_b = jax.random.uniform(ks[6], (1, embed_size), jnp.float32, -0.01, 0.01)
    text_b = jax.random.uniform(ks[7], (1, embed_size), jnp.float32, -0.01, 0.01)
    # Stand-in for prompt_module() outputs.
    prompt_user = xavier_uniform(ks[8], (n_users, embed_size))
    prompt_item = xavier_uniform(ks[9], (n_items, embed_size))
    ui_graph, iu_graph = build_norm_bipartite(ks[10], n_users, n_items)

    outs = teacher_forward(
        ui_graph, iu_graph, user_id_emb, item_id_emb,
        image_feats, text_feats, image_w, image_b, text_w, text_b,
        prompt_user, prompt_item,
        n_ui_layers=n_ui_layers,
        feat_soft_token_rate=feat_soft_token_rate,
        soft_token_rate=soft_token_rate,
        model_cat_rate=model_cat_rate)
    outs = jax.block_until_ready(outs)

    refs = reference_forward(
        ui_graph, iu_graph, user_id_emb, item_id_emb,
        image_feats, text_feats, image_w, image_b, text_w, text_b,
        prompt_user, prompt_item,
        n_ui_layers=n_ui_layers, layers=layers,
        feat_soft_token_rate=feat_soft_token_rate,
        soft_token_rate=soft_token_rate,
        model_cat_rate=model_cat_rate)

    names = ["u_g", "i_g", "image_item_feats", "text_item_feats",
             "image_user_feats", "text_user_feats"]
    # Tolerance 1e-3: MXU f32 vs HIGHEST-precision reference plus the EUP
    # approximate reciprocal in the final-layer softmax.
    for name, got, want in zip(names, outs[:6], refs):
        assert got.shape == want.shape, (name, got.shape, want.shape)
        assert jnp.allclose(got, want, atol=1e-3, rtol=1e-3), name
    print("KERNEL_OK")
</pallas_src>

<mosaic_0001>
module attributes {stable_mosaic.version = 11 : i64} {
  func.func @teacher_fused_kernel(%arg0: memref<128x256xf32, #tpu.memory_space<vmem>>, %arg1: memref<256x128xf32, #tpu.memory_space<vmem>>, %arg2: memref<128x128xf32, #tpu.memory_space<vmem>>, %arg3: memref<256x128xf32, #tpu.memory_space<vmem>>, %arg4: memref<128x256xf32, #tpu.memory_space<vmem>>, %arg5: memref<128x128xf32, #tpu.memory_space<vmem>>, %arg6: memref<256x128xf32, #tpu.memory_space<vmem>>, %arg7: memref<256x256xf32, #tpu.memory_space<vmem>>, %arg8: memref<256x128xf32, #tpu.memory_space<vmem>>, %arg9: memref<256x128xf32, #tpu.memory_space<vmem>>, %arg10: memref<1x128xf32, #tpu.memory_space<vmem>>, %arg11: memref<128x128xf32, #tpu.memory_space<vmem>>, %arg12: memref<1x128xf32, #tpu.memory_space<vmem>>, %arg13: memref<128x128xf32, #tpu.memory_space<vmem>>, %arg14: memref<256x128xf32, #tpu.memory_space<vmem>>, %arg15: memref<256x128xf32, #tpu.memory_space<vmem>>, %arg16: memref<256x128xf32, #tpu.memory_space<vmem>>, %arg17: memref<128x128xf32, #tpu.memory_space<vmem>>, %arg18: memref<128x128xf32, #tpu.memory_space<vmem>>) attributes {dimension_semantics = [], scalar_prefetch = 0 : i64, scratch_operands = 0 : i64, tpu.core_type = #tpu.core_type<tc>} {
    %c0 = arith.constant 0 : index
    %c0_0 = arith.constant 0 : index
    %0 = vector.load %arg0[%c0, %c0_0] : memref<128x256xf32, #tpu.memory_space<vmem>>, vector<128x256xf32>
    %c0_1 = arith.constant 0 : index
    %c0_2 = arith.constant 0 : index
    %1 = vector.load %arg1[%c0_1, %c0_2] : memref<256x128xf32, #tpu.memory_space<vmem>>, vector<256x128xf32>
    %c0_3 = arith.constant 0 : index
    %c0_4 = arith.constant 0 : index
    %2 = vector.load %arg3[%c0_3, %c0_4] : memref<256x128xf32, #tpu.memory_space<vmem>>, vector<256x128xf32>
    %c0_5 = arith.constant 0 : index
    %c0_6 = arith.constant 0 : index
    %3 = vector.load %arg4[%c0_5, %c0_6] : memref<128x256xf32, #tpu.memory_space<vmem>>, vector<128x256xf32>
    %c0_7 = arith.constant 0 : index
    %c0_8 = arith.constant 0 : index
    %4 = vector.load %arg7[%c0_7, %c0_8] : memref<256x256xf32, #tpu.memory_space<vmem>>, vector<256x256xf32>
    %c0_9 = arith.constant 0 : index
    %c0_10 = arith.constant 0 : index
    %5 = vector.load %arg9[%c0_9, %c0_10] : memref<256x128xf32, #tpu.memory_space<vmem>>, vector<256x128xf32>
    %c0_11 = arith.constant 0 : index
    %c0_12 = arith.constant 0 : index
    %6 = vector.load %arg10[%c0_11, %c0_12] : memref<1x128xf32, #tpu.memory_space<vmem>>, vector<1x128xf32>
    %cst = arith.constant dense<0.000000e+00> : vector<128x256xf32>
    %7 = tpu.matmul %3, %4, %cst {dimension_numbers = #tpu.dot_dimension_numbers<[1], [0], [0], [1], [0, 0, 1, 1], [], []>} : vector<128x256xf32>, vector<256x256xf32>, vector<128x256xf32> -> vector<128x256xf32>
    %cst_13 = arith.constant dense<0.000000e+00> : vector<256x256xf32>
    %8 = tpu.matmul %2, %7, %cst_13 {dimension_numbers = #tpu.dot_dimension_numbers<[1], [0], [0], [1], [0, 0, 1, 1], [], []>} : vector<256x128xf32>, vector<128x256xf32>, vector<256x256xf32> -> vector<256x256xf32>
    %9 = arith.mulf %8, %8 : vector<256x256xf32>
    %cst_14 = arith.constant dense<0.000000e+00> : vector<256xf32>
    %10 = vector.multi_reduction <add>, %9, %cst_14 [1] : vector<256x256xf32> to vector<256xf32>
    %11 = vector.shape_cast %10 : vector<256xf32> to vector<256x1xf32>
    %cst_15 = arith.constant 1.000000e-24 : f32
    %12 = vector.broadcast %cst_15 : f32 to vector<256x1xf32>
    %13 = arith.maximumf %11, %12 : vector<256x1xf32>
    %14 = math.rsqrt %13 : vector<256x1xf32>
    %15 = vector.broadcast %14 : vector<256x1xf32> to vector<256x256xf32>
    %16 = arith.mulf %8, %15 : vector<256x256xf32>
    %cst_16 = arith.constant 1.000000e-01 : f32
    %17 = vector.broadcast %cst_16 : f32 to vector<256x256xf32>
    %18 = arith.mulf %17, %16 : vector<256x256xf32>
    %19 = arith.addf %4, %18 : vector<256x256xf32>
    %cst_17 = arith.constant dense<0.000000e+00> : vector<256x128xf32>
    %20 = tpu.matmul %19, %5, %cst_17 {dimension_numbers = #tpu.dot_dimension_numbers<[1], [0], [0], [1], [0, 0, 1, 1], [], []>} : vector<256x256xf32>, vector<256x128xf32>, vector<256x128xf32> -> vector<256x128xf32>
    %21 = vector.broadcast %6 : vector<1x128xf32> to vector<256x128xf32>
    %22 = arith.addf %20, %21 : vector<256x128xf32>
    %c0_18 = arith.constant 0 : index
    %c0_19 = arith.constant 0 : index
    %23 = vector.load %arg8[%c0_18, %c0_19] : memref<256x128xf32, #tpu.memory_space<vmem>>, vector<256x128xf32>
    %c0_20 = arith.constant 0 : index
    %c0_21 = arith.constant 0 : index
    %24 = vector.load %arg11[%c0_20, %c0_21] : memref<128x128xf32, #tpu.memory_space<vmem>>, vector<128x128xf32>
    %c0_22 = arith.constant 0 : index
    %c0_23 = arith.constant 0 : index
    %25 = vector.load %arg12[%c0_22, %c0_23] : memref<1x128xf32, #tpu.memory_space<vmem>>, vector<1x128xf32>
    %cst_24 = arith.constant dense<0.000000e+00> : vector<128x128xf32>
    %26 = tpu.matmul %3, %23, %cst_24 {dimension_numbers = #tpu.dot_dimension_numbers<[1], [0], [0], [1], [0, 0, 1, 1], [], []>} : vector<128x256xf32>, vector<256x128xf32>, vector<128x128xf32> -> vector<128x128xf32>
    %cst_25 = arith.constant dense<0.000000e+00> : vector<256x128xf32>
    %27 = tpu.matmul %2, %26, %cst_25 {dimension_numbers = #tpu.dot_dimension_numbers<[1], [0], [0], [1], [0, 0, 1, 1], [], []>} : vector<256x128xf32>, vector<128x128xf32>, vector<256x128xf32> -> vector<256x128xf32>
    %28 = arith.mulf %27, %27 : vector<256x128xf32>
    %cst_26 = arith.constant dense<0.000000e+00> : vector<256xf32>
    %29 = vector.multi_reduction <add>, %28, %cst_26 [1] : vector<256x128xf32> to vector<256xf32>
    %30 = vector.shape_cast %29 : vector<256xf32> to vector<256x1xf32>
    %cst_27 = arith.constant 1.000000e-24 : f32
    %31 = vector.broadcast %cst_27 : f32 to vector<256x1xf32>
    %32 = arith.maximumf %30, %31 : vector<256x1xf32>
    %33 = math.rsqrt %32 : vector<256x1xf32>
    %34 = vector.broadcast %33 : vector<256x1xf32> to vector<256x128xf32>
    %35 = arith.mulf %27, %34 : vector<256x128xf32>
    %cst_28 = arith.constant 1.000000e-01 : f32
    %36 = vector.broadcast %cst_28 : f32 to vector<256x128xf32>
    %37 = arith.mulf %36, %35 : vector<256x128xf32>
    %38 = arith.addf %23, %37 : vector<256x128xf32>
    %cst_29 = arith.constant dense<0.000000e+00> : vector<256x128xf32>
    %39 = tpu.matmul %38, %24, %cst_29 {dimension_numbers = #tpu.dot_dimension_numbers<[1], [0], [0], [1], [0, 0, 1, 1], [], []>} : vector<256x128xf32>, vector<128x128xf32>, vector<256x128xf32> -> vector<256x128xf32>
    %40 = vector.broadcast %25 : vector<1x128xf32> to vector<256x128xf32>
    %41 = arith.addf %39, %40 : vector<256x128xf32>
    %42 = tpu.concatenate %22, %41 in 1 : vector<256x128xf32>, vector<256x128xf32> -> vector<256x256xf32>
    %cst_30 = arith.constant dense<0.000000e+00> : vector<128x256xf32>
    %43 = tpu.matmul %0, %42, %cst_30 {dimension_numbers = #tpu.dot_dimension_numbers<[1], [0], [0], [1], [0, 0, 1, 1], [], []>} : vector<128x256xf32>, vector<256x256xf32>, vector<128x256xf32> -> vector<128x256xf32>
    %cst_31 = arith.constant dense<0.000000e+00> : vector<256x256xf32>
    %44 = tpu.matmul %1, %43, %cst_31 {dimension_numbers = #tpu.dot_dimension_numbers<[1], [0], [0], [1], [0, 0, 1, 1], [], []>} : vector<256x128xf32>, vector<128x256xf32>, vector<256x256xf32> -> vector<256x256xf32>
    %45 = vector.extract_strided_slice %43 {offsets = [0, 0], sizes = [128, 128], strides = [1, 1]} : vector<128x256xf32> to vector<128x128xf32>
    %46 = vector.extract_strided_slice %43 {offsets = [0, 128], sizes = [128, 128], strides = [1, 1]} : vector<128x256xf32> to vector<128x128xf32>
    %47 = vector.extract_strided_slice %44 {offsets = [0, 0], sizes = [256, 128], strides = [1, 1]} : vector<256x256xf32> to vector<256x128xf32>
    %48 = vector.extract_strided_slice %44 {offsets = [0, 128], sizes = [256, 128], strides = [1, 1]} : vector<256x256xf32> to vector<256x128xf32>
    %c0_32 = arith.constant 0 : index
    %c0_33 = arith.constant 0 : index
    %49 = vector.load %arg17[%c0_32, %c0_33] : memref<128x128xf32, #tpu.memory_space<vmem>>, vector<128x128xf32>
    tpu.vector_store %arg17[%c0_32, %c0_33], %45 {strides = array<i32>} : memref<128x128xf32, #tpu.memory_space<vmem>>, vector<128x128xf32>,
    %c0_34 = arith.constant 0 : index
    %c0_35 = arith.constant 0 : index
    %50 = vector.load %arg18[%c0_34, %c0_35] : memref<128x128xf32, #tpu.memory_space<vmem>>, vector<128x128xf32>
    tpu.vector_store %arg18[%c0_34, %c0_35], %46 {strides = array<i32>} : memref<128x128xf32, #tpu.memory_space<vmem>>, vector<128x128xf32>,
    %c0_36 = arith.constant 0 : index
    %c0_37 = arith.constant 0 : index
    %51 = vector.load %arg15[%c0_36, %c0_37] : memref<256x128xf32, #tpu.memory_space<vmem>>, vector<256x128xf32>
    tpu.vector_store %arg15[%c0_36, %c0_37], %47 {strides = array<i32>} : memref<256x128xf32, #tpu.memory_space<vmem>>, vector<256x128xf32>,
    %c0_38 = arith.constant 0 : index
    %c0_39 = arith.constant 0 : index
    %52 = vector.load %arg16[%c0_38, %c0_39] : memref<256x128xf32, #tpu.memory_space<vmem>>, vector<256x128xf32>
    tpu.vector_store %arg16[%c0_38, %c0_39], %48 {strides = array<i32>} : memref<256x128xf32, #tpu.memory_space<vmem>>, vector<256x128xf32>,
    %c0_40 = arith.constant 0 : index
    %c0_41 = arith.constant 0 : index
    %53 = vector.load %arg5[%c0_40, %c0_41] : memref<128x128xf32, #tpu.memory_space<vmem>>, vector<128x128xf32>
    %c0_42 = arith.constant 0 : index
    %c0_43 = arith.constant 0 : index
    %54 = vector.load %arg2[%c0_42, %c0_43] : memref<128x128xf32, #tpu.memory_space<vmem>>, vector<128x128xf32>
    %55 = arith.mulf %54, %54 : vector<128x128xf32>
    %cst_44 = arith.constant dense<0.000000e+00> : vector<128xf32>
    %56 = vector.multi_reduction <add>, %55, %cst_44 [1] : vector<128x128xf32> to vector<128xf32>
    %57 = vector.shape_cast %56 : vector<128xf32> to vector<128x1xf32>
    %cst_45 = arith.constant 1.000000e-24 : f32
    %58 = vector.broadcast %cst_45 : f32 to vector<128x1xf32>
    %59 = arith.maximumf %57, %58 : vector<128x1xf32>
    %60 = math.rsqrt %59 : vector<128x1xf32>
    %61 = vector.broadcast %60 : vector<128x1xf32> to vector<128x128xf32>
    %62 = arith.mulf %54, %61 : vector<128x128xf32>
    %cst_46 = arith.constant 1.000000e-01 : f32
    %63 = vector.broadcast %cst_46 : f32 to vector<128x128xf32>
    %64 = arith.mulf %63, %62 : vector<128x128xf32>
    %65 = arith.addf %53, %64 : vector<128x128xf32>
    %c0_47 = arith.constant 0 : index
    %c0_48 = arith.constant 0 : index
    %66 = vector.load %arg6[%c0_47, %c0_48] : memref<256x128xf32, #tpu.memory_space<vmem>>, vector<256x128xf32>
    %67 = arith.mulf %2, %2 : vector<256x128xf32>
    %cst_49 = arith.constant dense<0.000000e+00> : vector<256xf32>
    %68 = vector.multi_reduction <add>, %67, %cst_49 [1] : vector<256x128xf32> to vector<256xf32>
    %69 = vector.shape_cast %68 : vector<256xf32> to vector<256x1xf32>
    %cst_50 = arith.constant 1.000000e-24 : f32
    %70 = vector.broadcast %cst_50 : f32 to vector<256x1xf32>
    %71 = arith.maximumf %69, %70 : vector<256x1xf32>
    %72 = math.rsqrt %71 : vector<256x1xf32>
    %73 = vector.broadcast %72 : vector<256x1xf32> to vector<256x128xf32>
    %74 = arith.mulf %2, %73 : vector<256x128xf32>
    %cst_51 = arith.constant 1.000000e-01 : f32
    %75 = vector.broadcast %cst_51 : f32 to vector<256x128xf32>
    %76 = arith.mulf %75, %74 : vector<256x128xf32>
    %77 = arith.addf %66, %76 : vector<256x128xf32>
    %cst_52 = arith.constant dense<0.000000e+00> : vector<128x128xf32>
    %78 = tpu.matmul %0, %77, %cst_52 {dimension_numbers = #tpu.dot_dimension_numbers<[1], [0], [0], [1], [0, 0, 1, 1], [], []>} : vector<128x256xf32>, vector<256x128xf32>, vector<128x128xf32> -> vector<128x128xf32>
    %cst_53 = arith.constant dense<0.000000e+00> : vector<256x128xf32>
    %79 = tpu.matmul %1, %78, %cst_53 {dimension_numbers = #tpu.dot_dimension_numbers<[1], [0], [0], [1], [0, 0, 1, 1], [], []>} : vector<256x128xf32>, vector<128x128xf32>, vector<256x128xf32> -> vector<256x128xf32>
    %80 = arith.addf %65, %78 : vector<128x128xf32>
    %81 = arith.addf %77, %79 : vector<256x128xf32>
    %cst_54 = arith.constant dense<0.000000e+00> : vector<128x128xf32>
    %82 = tpu.matmul %0, %79, %cst_54 {dimension_numbers = #tpu.dot_dimension_numbers<[1], [0], [0], [1], [0, 0, 1, 1], [], []>} : vector<128x256xf32>, vector<256x128xf32>, vector<128x128xf32> -> vector<128x128xf32>
    %cst_55 = arith.constant dense<0.000000e+00> : vector<256x128xf32>
    %83 = tpu.matmul %1, %82, %cst_55 {dimension_numbers = #tpu.dot_dimension_numbers<[1], [0], [0], [1], [0, 0, 1, 1], [], []>} : vector<256x128xf32>, vector<128x128xf32>, vector<256x128xf32> -> vector<256x128xf32>
    %84 = arith.addf %80, %82 : vector<128x128xf32>
    %85 = arith.addf %81, %83 : vector<256x128xf32>
    %cst_56 = arith.constant dense<0.000000e+00> : vector<128x128xf32>
    %86 = tpu.matmul %0, %83, %cst_56 {dimension_numbers = #tpu.dot_dimension_numbers<[1], [0], [0], [1], [0, 0, 1, 1], [], []>} : vector<128x256xf32>, vector<256x128xf32>, vector<128x128xf32> -> vector<128x128xf32>
    %cst_57 = arith.constant dense<0xFF800000> : vector<128xf32>
    %87 = vector.multi_reduction <maximumf>, %86, %cst_57 [1] : vector<128x128xf32> to vector<128xf32>
    %88 = vector.shape_cast %87 : vector<128xf32> to vector<128x1xf32>
    %89 = vector.broadcast %88 : vector<128x1xf32> to vector<128x128xf32>
    %90 = arith.subf %86, %89 : vector<128x128xf32>
    %91 = math.exp %90 : vector<128x128xf32>
    %cst_58 = arith.constant dense<0.000000e+00> : vector<128xf32>
    %92 = vector.multi_reduction <add>, %91, %cst_58 [1] : vector<128x128xf32> to vector<128xf32>
    %93 = vector.shape_cast %92 : vector<128xf32> to vector<128x1xf32>
    %94 = tpu.reciprocal %93 {approx = true} : vector<128x1xf32> -> vector<128x1xf32>
    %95 = vector.broadcast %94 : vector<128x1xf32> to vector<128x128xf32>
    %96 = arith.mulf %91, %95 : vector<128x128xf32>
    %cst_59 = arith.constant dense<0.000000e+00> : vector<256x128xf32>
    %97 = tpu.matmul %1, %96, %cst_59 {dimension_numbers = #tpu.dot_dimension_numbers<[1], [0], [0], [1], [0, 0, 1, 1], [], []>} : vector<256x128xf32>, vector<128x128xf32>, vector<256x128xf32> -> vector<256x128xf32>
    %cst_60 = arith.constant dense<0xFF800000> : vector<256xf32>
    %98 = vector.multi_reduction <maximumf>, %97, %cst_60 [1] : vector<256x128xf32> to vector<256xf32>
    %99 = vector.shape_cast %98 : vector<256xf32> to vector<256x1xf32>
    %100 = vector.broadcast %99 : vector<256x1xf32> to vector<256x128xf32>
    %101 = arith.subf %97, %100 : vector<256x128xf32>
    %102 = math.exp %101 : vector<256x128xf32>
    %cst_61 = arith.constant dense<0.000000e+00> : vector<256xf32>
    %103 = vector.multi_reduction <add>, %102, %cst_61 [1] : vector<256x128xf32> to vector<256xf32>
    %104 = vector.shape_cast %103 : vector<256xf32> to vector<256x1xf32>
    %105 = tpu.reciprocal %104 {approx = true} : vector<256x1xf32> -> vector<256x1xf32>
    %106 = vector.broadcast %105 : vector<256x1xf32> to vector<256x128xf32>
    %107 = arith.mulf %102, %106 : vector<256x128xf32>
    %108 = arith.addf %84, %96 : vector<128x128xf32>
    %109 = arith.addf %85, %107 : vector<256x128xf32>
    %cst_62 = arith.constant 2.500000e-01 : f32
    %110 = vector.broadcast %cst_62 : f32 to vector<128x128xf32>
    %111 = arith.mulf %108, %110 : vector<128x128xf32>
    %112 = arith.mulf %45, %45 : vector<128x128xf32>
    %cst_63 = arith.constant dense<0.000000e+00> : vector<128xf32>
    %113 = vector.multi_reduction <add>, %112, %cst_63 [1] : vector<128x128xf32> to vector<128xf32>
    %114 = vector.shape_cast %113 : vector<128xf32> to vector<128x1xf32>
    %cst_64 = arith.constant 1.000000e-24 : f32
    %115 = vector.broadcast %cst_64 : f32 to vector<128x1xf32>
    %116 = arith.maximumf %114, %115 : vector<128x1xf32>
    %117 = math.rsqrt %116 : vector<128x1xf32>
    %118 = vector.broadcast %117 : vector<128x1xf32> to vector<128x128xf32>
    %119 = arith.mulf %45, %118 : vector<128x128xf32>
    %cst_65 = arith.constant 2.000000e-02 : f32
    %120 = vector.broadcast %cst_65 : f32 to vector<128x128xf32>
    %121 = arith.mulf %120, %119 : vector<128x128xf32>
    %122 = arith.addf %111, %121 : vector<128x128xf32>
    %123 = arith.mulf %46, %46 : vector<128x128xf32>
    %cst_66 = arith.constant dense<0.000000e+00> : vector<128xf32>
    %124 = vector.multi_reduction <add>, %123, %cst_66 [1] : vector<128x128xf32> to vector<128xf32>
    %125 = vector.shape_cast %124 : vector<128xf32> to vector<128x1xf32>
    %cst_67 = arith.constant 1.000000e-24 : f32
    %126 = vector.broadcast %cst_67 : f32 to vector<128x1xf32>
    %127 = arith.maximumf %125, %126 : vector<128x1xf32>
    %128 = math.rsqrt %127 : vector<128x1xf32>
    %129 = vector.broadcast %128 : vector<128x1xf32> to vector<128x128xf32>
    %130 = arith.mulf %46, %129 : vector<128x128xf32>
    %cst_68 = arith.constant 2.000000e-02 : f32
    %131 = vector.broadcast %cst_68 : f32 to vector<128x128xf32>
    %132 = arith.mulf %131, %130 : vector<128x128xf32>
    %133 = arith.addf %122, %132 : vector<128x128xf32>
    %c0_69 = arith.constant 0 : index
    %c0_70 = arith.constant 0 : index
    %134 = vector.load %arg13[%c0_69, %c0_70] : memref<128x128xf32, #tpu.memory_space<vmem>>, vector<128x128xf32>
    tpu.vector_store %arg13[%c0_69, %c0_70], %133 {strides = array<i32>} : memref<128x128xf32, #tpu.memory_space<vmem>>, vector<128x128xf32>,
    %cst_71 = arith.constant 2.500000e-01 : f32
    %135 = vector.broadcast %cst_71 : f32 to vector<256x128xf32>
    %136 = arith.mulf %109, %135 : vector<256x128xf32>
    %137 = arith.mulf %47, %47 : vector<256x128xf32>
    %cst_72 = arith.constant dense<0.000000e+00> : vector<256xf32>
    %138 = vector.multi_reduction <add>, %137, %cst_72 [1] : vector<256x128xf32> to vector<256xf32>
    %139 = vector.shape_cast %138 : vector<256xf32> to vector<256x1xf32>
    %cst_73 = arith.constant 1.000000e-24 : f32
    %140 = vector.broadcast %cst_73 : f32 to vector<256x1xf32>
    %141 = arith.maximumf %139, %140 : vector<256x1xf32>
    %142 = math.rsqrt %141 : vector<256x1xf32>
    %143 = vector.broadcast %142 : vector<256x1xf32> to vector<256x128xf32>
    %144 = arith.mulf %47, %143 : vector<256x128xf32>
    %cst_74 = arith.constant 2.000000e-02 : f32
    %145 = vector.broadcast %cst_74 : f32 to vector<256x128xf32>
    %146 = arith.mulf %145, %144 : vector<256x128xf32>
    %147 = arith.addf %136, %146 : vector<256x128xf32>
    %148 = arith.mulf %48, %48 : vector<256x128xf32>
    %cst_75 = arith.constant dense<0.000000e+00> : vector<256xf32>
    %149 = vector.multi_reduction <add>, %148, %cst_75 [1] : vector<256x128xf32> to vector<256xf32>
    %150 = vector.shape_cast %149 : vector<256xf32> to vector<256x1xf32>
    %cst_76 = arith.constant 1.000000e-24 : f32
    %151 = vector.broadcast %cst_76 : f32 to vector<256x1xf32>
    %152 = arith.maximumf %150, %151 : vector<256x1xf32>
    %153 = math.rsqrt %152 : vector<256x1xf32>
    %154 = vector.broadcast %153 : vector<256x1xf32> to vector<256x128xf32>
    %155 = arith.mulf %48, %154 : vector<256x128xf32>
    %cst_77 = arith.constant 2.000000e-02 : f32
    %156 = vector.broadcast %cst_77 : f32 to vector<256x128xf32>
    %157 = arith.mulf %156, %155 : vector<256x128xf32>
    %158 = arith.addf %147, %157 : vector<256x128xf32>
    %c0_78 = arith.constant 0 : index
    %c0_79 = arith.constant 0 : index
    %159 = vector.load %arg14[%c0_78, %c0_79] : memref<256x128xf32, #tpu.memory_space<vmem>>, vector<256x128xf32>
    tpu.vector_store %arg14[%c0_78, %c0_79], %158 {strides = array<i32>} : memref<256x128xf32, #tpu.memory_space<vmem>>, vector<256x128xf32>,
    return
  }
}

</mosaic_0001>

<bundles_post_ra>
// kernel: tpu_custom_call.1
= control target key start
LH: loop header
LB: loop body
LE: loop exit
PB: predicated region body
PF: predicated region fallthrough
CT: control target
= control target key end

     0   :  { %s12463_s0 = inlined_call_operand.hbm [shape: f32[128,256], index: 0, kind: input, shape index: {}]   ;;  %s12464_s1 = inlined_call_operand.hbm [shape: f32[256,128], index: 1, kind: input, shape index: {}]   ;;  %s12465_s2 = inlined_call_operand.hbm [shape: f32[128,128], index: 2, kind: input, shape index: {}]   ;;  %s12466_s3 = inlined_call_operand.hbm [shape: f32[256,128], index: 3, kind: input, shape index: {}]   ;;  %s12467_s4 = inlined_call_operand.hbm [shape: f32[128,256], index: 4, kind: input, shape index: {}]   ;;  %s12468_s5 = inlined_call_operand.hbm [shape: f32[128,128], index: 5, kind: input, shape index: {}]   ;;  %s12469_s6 = inlined_call_operand.hbm [shape: f32[256,128], index: 6, kind: input, shape index: {}]   ;;  %s12470_s7 = inlined_call_operand.hbm [shape: f32[256,256], index: 7, kind: input, shape index: {}]   ;;  %s12471_s8 = inlined_call_operand.hbm [shape: f32[256,128], index: 8, kind: input, shape index: {}]   ;;  %s12472_s9 = inlined_call_operand.hbm [shape: f32[256,128], index: 9, kind: input, shape index: {}]   ;;  %s12473_s10 = inlined_call_operand.vmem [shape: f32[1,128], index: 10, kind: input, shape index: {}]   ;;  %s12474_s11 = inlined_call_operand.hbm [shape: f32[128,128], index: 11, kind: input, shape index: {}]   ;;  %s12475_s12 = inlined_call_operand.vmem [shape: f32[1,128], index: 12, kind: input, shape index: {}]   ;;  %s12476_s13 = inlined_call_operand.hbm [shape: f32[128,128], index: 13, kind: output, shape index: {0}]   ;;  %s12477_s14 = inlined_call_operand.hbm [shape: f32[256,128], index: 14, kind: output, shape index: {1}]   ;;  %s12478_s15 = inlined_call_operand.hbm [shape: f32[256,128], index: 15, kind: output, shape index: {2}]   ;;  %s12479_s16 = inlined_call_operand.hbm [shape: f32[256,128], index: 16, kind: output, shape index: {3}]   ;;  %s12480_s17 = inlined_call_operand.hbm [shape: f32[128,128], index: 17, kind: output, shape index: {4}]   ;;  %s12481_s18 = inlined_call_operand.hbm [shape: f32[128,128], index: 18, kind: output, shape index: {5}]  }
   0x1   :  { %12687 = sst [smem:[#allocation147_spill]] %s12463_s0 }
   0x2   :  { %12688 = sst [smem:[#allocation148_spill]] %s12464_s1 }
   0x3   :  { %12689 = sst [smem:[#allocation149_spill]] %s12465_s2 }
   0x4   :  { %12690 = sst [smem:[#allocation150_spill]] %s12477_s14 }
   0x5   :  { %12691 = sst [smem:[#allocation151_spill]] %s12478_s15 }
   0x6   :  { %24 = vsyncpa [#allocation3], 0 }
   0x7   :  { %25 = vsyncpa [#allocation6], 0 }
   0x8   :  { %26 = vsyncpa [#allocation9], 0 }
   0x9   :  { %27 = vsyncpa [#allocation12], 0 }
   0xa   :  { %28 = vsyncpa [#allocation15], 0 }
   0xb   :  { %29 = vsyncpa [#allocation18], 0 }
   0xc   :  { %30 = vsyncpa [#allocation4], 0 }
   0xd   :  { %31 = vsyncpa [#allocation22], 0 }
   0xe   :  { %32 = vsyncpa [#allocation25], 0 }
   0xf   :  { %33 = vsyncpa [#allocation28], 0  ;;  %s8941_s27 = smov [#allocation5]   ;;  %s12692_s0 = sld [smem:[#allocation148_spill]] }
  0x10   :  { %s51_s28 = sshll.u32 %s8941_s27, 4  ;;  %s52_s28 = int_to_ptr.vmem [resolvable:$true] %s51_s28 }
  0x15   :  { %s8547_s19 = scalar_lea.hbm %s12692_s0, 4096 }
  0x16   :  { %p8548_p0 = scmp.ne.s32.totalorder %s12692_s0, %s8547_s19  ;;  %p8551_p1 = scmp.lt.u32.totalorder %s8547_s19, %s12692_s0 }
  0x18   :  { %p8553_p2 = pnand %p8551_p1, %p8548_p0 }
  0x1a   :  { %8556 = shalt.err (!%p8553_p2)
}
  0x1b   :  { %s8557_s2 = scalar_lea.vmem %s52_s28, 4096  ;;  %p8562_p4 = scmp.lt.s32.totalorder %s52_s28, %s52_s28 }
  0x1c   :  { %p8558_p3 = scmp.ne.s32.totalorder %s52_s28, %s8557_s2  ;;  %p8563_p5 = scmp.lt.s32.totalorder %s8557_s2, %s8557_s2 }
  0x1e   :  { %p8564_p6 = por %p8563_p5, %p8562_p4 }
  0x20   :  { %p8565_p7 = pnand %p8564_p6, %p8558_p3 }
  0x22   :  { %8568 = shalt.err (!%p8565_p7)
}
  0x23   :  { %s8942_s23 = smov 128   ;;  %s8943_s24 = smov 8  }
  0x24   :  { %57 = dma.hbm_to_vmem [thread:$0]  %s12692_s0, 4096, %s52_s28, [#allocation6], %s8942_s23, %s8942_s23, %s8943_s24  }
  0x25   :  { %s8944_s27 = smov [#allocation8]   ;;  %s8945_s30 = smov [#allocation11]  }
  0x26   :  { %s75_s29 = sshll.u32 %s8944_s27, 4  ;;  %s99_s19 = sshll.u32 %s8945_s30, 4  ;;  %s76_s29 = int_to_ptr.vmem [resolvable:$true] %s75_s29  ;;  %s100_s19 = int_to_ptr.vmem [resolvable:$true] %s99_s19 }
  0x27   :  { %s8569_s21 = scalar_lea.hbm %s12466_s3, 4096 }
  0x28   :  { %p8570_p8 = scmp.ne.s32.totalorder %s12466_s3, %s8569_s21  ;;  %p8573_p9 = scmp.lt.u32.totalorder %s8569_s21, %s12466_s3 }
  0x2a   :  { %p8575_p10 = pnand %p8573_p9, %p8570_p8 }
  0x2c   :  { %8578 = shalt.err (!%p8575_p10)
}
  0x2d   :  { %s8579_s28 = scalar_lea.vmem %s76_s29, 4096  ;;  %p8584_p12 = scmp.lt.s32.totalorder %s76_s29, %s76_s29 }
  0x2e   :  { %p8580_p11 = scmp.ne.s32.totalorder %s76_s29, %s8579_s28  ;;  %p8585_p13 = scmp.lt.s32.totalorder %s8579_s28, %s8579_s28 }
  0x30   :  { %p8586_p0 = por %p8585_p13, %p8584_p12 }
  0x32   :  { %p8587_p1 = pnand %p8586_p0, %p8580_p11 }
  0x34   :  { %8590 = shalt.err (!%p8587_p1)
}
  0x35   :  { %81 = dma.hbm_to_vmem [thread:$0]  %s12466_s3, 4096, %s76_s29, [#allocation9], %s8942_s23, %s8942_s23, %s8943_s24  }
  0x36   :  { %s8591_s15 = scalar_lea.hbm %s12468_s5, 2048 }
  0x37   :  { %p8592_p2 = scmp.ne.s32.totalorder %s12468_s5, %s8591_s15  ;;  %p8595_p3 = scmp.lt.u32.totalorder %s8591_s15, %s12468_s5 }
  0x39   :  { %p8597_p4 = pnand %p8595_p3, %p8592_p2 }
  0x3b   :  { %8600 = shalt.err (!%p8597_p4)
}
  0x3c   :  { %s8601_s21 = scalar_lea.vmem %s100_s19, 2048  ;;  %p8606_p6 = scmp.lt.s32.totalorder %s100_s19, %s100_s19 }
  0x3d   :  { %p8602_p5 = scmp.ne.s32.totalorder %s100_s19, %s8601_s21  ;;  %p8607_p7 = scmp.lt.s32.totalorder %s8601_s21, %s8601_s21 }
  0x3f   :  { %p8608_p8 = por %p8607_p7, %p8606_p6 }
  0x41   :  { %p8609_p9 = pnand %p8608_p8, %p8602_p5 }
  0x43   :  { %8612 = shalt.err (!%p8609_p9)
}
  0x44   :  { %105 = dma.hbm_to_vmem [thread:$0]  %s12468_s5, 2048, %s100_s19, [#allocation12], %s8942_s23, %s8942_s23, %s8943_s24  }
  0x45   :  { %s8946_s22 = smov [#allocation14]   ;;  %s8947_s28 = smov [#allocation17]  }
  0x46   :  { %s123_s2 = sshll.u32 %s8946_s22, 4  ;;  %s147_s0 = sshll.u32 %s8947_s28, 4  ;;  %s124_s2 = int_to_ptr.vmem [resolvable:$true] %s123_s2  ;;  %s148_s0 = int_to_ptr.vmem [resolvable:$true] %s147_s0 }
  0x47   :  { %s8613_s14 = scalar_lea.hbm %s12470_s7, 8192 }
  0x48   :  { %p8614_p10 = scmp.ne.s32.totalorder %s12470_s7, %s8613_s14  ;;  %p8617_p11 = scmp.lt.u32.totalorder %s8613_s14, %s12470_s7 }
  0x4a   :  { %p8619_p12 = pnand %p8617_p11, %p8614_p10 }
  0x4c   :  { %8622 = shalt.err (!%p8619_p12)
}
  0x4d   :  { %s8623_s5 = scalar_lea.vmem %s124_s2, 8192  ;;  %p8628_p0 = scmp.lt.s32.totalorder %s124_s2, %s124_s2 }
  0x4e   :  { %p8624_p13 = scmp.ne.s32.totalorder %s124_s2, %s8623_s5  ;;  %p8629_p1 = scmp.lt.s32.totalorder %s8623_s5, %s8623_s5 }
  0x50   :  { %p8630_p2 = por %p8629_p1, %p8628_p0 }
  0x52   :  { %p8631_p3 = pnand %p8630_p2, %p8624_p13 }
  0x54   :  { %8634 = shalt.err (!%p8631_p3)
}
  0x55   :  { %s8948_s19 = smov 256   ;;  %s8949_s20 = smov 16  }
  0x56   :  { %129 = dma.hbm_to_vmem [thread:$0]  %s12470_s7, 8192, %s124_s2, [#allocation15], %s8948_s19, %s8948_s19, %s8949_s20  }
  0x57   :  { %s8635_s28 = scalar_lea.hbm %s12472_s9, 4096 }
  0x58   :  { %p8636_p4 = scmp.ne.s32.totalorder %s12472_s9, %s8635_s28  ;;  %p8639_p5 = scmp.lt.u32.totalorder %s8635_s28, %s12472_s9 }
  0x5a   :  { %p8641_p6 = pnand %p8639_p5, %p8636_p4 }
  0x5c   :  { %8644 = shalt.err (!%p8641_p6)
}
  0x5d   :  { %s8645_s27 = scalar_lea.vmem %s148_s0, 4096  ;;  %p8650_p8 = scmp.lt.s32.totalorder %s148_s0, %s148_s0 }
  0x5e   :  { %p8646_p7 = scmp.ne.s32.totalorder %s148_s0, %s8645_s27  ;;  %p8651_p9 = scmp.lt.s32.totalorder %s8645_s27, %s8645_s27 }
  0x60   :  { %p8652_p10 = por %p8651_p9, %p8650_p8 }
  0x62   :  { %p8653_p11 = pnand %p8652_p10, %p8646_p7 }
  0x64   :  { %8656 = shalt.err (!%p8653_p11)
}
  0x65   :  { %153 = dma.hbm_to_vmem [thread:$0]  %s12472_s9, 4096, %s148_s0, [#allocation18], %s8942_s23, %s8942_s23, %s8943_s24  }
  0x66   :  { %s8950_s30 = smov [#allocation2]   ;;  %s8951_s5 = smov [#allocation7]  }
  0x67   :  { %s39_s1 = sshll.u32 %s8950_s30, 4  ;;  %s63_s21 = sshll.u32 %s8951_s5, 4  ;;  %s40_s1 = int_to_ptr.vmem [resolvable:$true] %s39_s1  ;;  %s64_s21 = int_to_ptr.vmem [resolvable:$true] %s63_s21 }
  0x68   :  { %s12693_s22 = sld [smem:[#allocation147_spill]] }
  0x6e   :  { %s8657_s28 = scalar_lea.hbm %s12693_s22, 4096 }
  0x6f   :  { %p8658_p12 = scmp.ne.s32.totalorder %s12693_s22, %s8657_s28  ;;  %p8661_p13 = scmp.lt.u32.totalorder %s8657_s28, %s12693_s22 }
  0x71   :  { %p8663_p0 = pnand %p8661_p13, %p8658_p12 }
  0x73   :  { %8666 = shalt.err (!%p8663_p0)
}
  0x74   :  { %s8667_s9 = scalar_lea.vmem %s40_s1, 4096  ;;  %p8672_p2 = scmp.lt.s32.totalorder %s40_s1, %s40_s1 }
  0x75   :  { %p8668_p1 = scmp.ne.s32.totalorder %s40_s1, %s8667_s9  ;;  %p8673_p3 = scmp.lt.s32.totalorder %s8667_s9, %s8667_s9 }
  0x77   :  { %p8674_p4 = por %p8673_p3, %p8672_p2 }
  0x79   :  { %p8675_p5 = pnand %p8674_p4, %p8668_p1 }
  0x7b   :  { %8678 = shalt.err (!%p8675_p5)
}
  0x7c   :  { %45 = dma.hbm_to_vmem [thread:$0]  %s12693_s22, 4096, %s40_s1, [#allocation3], %s8948_s19, %s8948_s19, %s8949_s20  }
  0x7d   :  { %s12694_s30 = sld [smem:[#allocation149_spill]] }
  0x83   :  { %s8679_s5 = scalar_lea.hbm %s12694_s30, 2048 }
  0x84   :  { %p8680_p6 = scmp.ne.s32.totalorder %s12694_s30, %s8679_s5  ;;  %p8683_p7 = scmp.lt.u32.totalorder %s8679_s5, %s12694_s30 }
  0x86   :  { %p8685_p8 = pnand %p8683_p7, %p8680_p6 }
  0x88   :  { %8688 = shalt.err (!%p8685_p8)
}
  0x89   :  { %s8689_s26 = scalar_lea.vmem %s64_s21, 2048  ;;  %p8694_p10 = scmp.lt.s32.totalorder %s64_s21, %s64_s21 }
  0x8a   :  { %p8690_p9 = scmp.ne.s32.totalorder %s64_s21, %s8689_s26  ;;  %p8695_p11 = scmp.lt.s32.totalorder %s8689_s26, %s8689_s26 }
  0x8c   :  { %p8696_p12 = por %p8695_p11, %p8694_p10 }
  0x8e   :  { %p8697_p13 = pnand %p8696_p12, %p8690_p9 }
  0x90   :  { %8700 = shalt.err (!%p8697_p13)
}
  0x91   :  { %69 = dma.hbm_to_vmem [thread:$0]  %s12694_s30, 2048, %s64_s21, [#allocation6], %s8942_s23, %s8942_s23, %s8943_s24  }
  0x92   :  { %s8952_s14 = smov [#allocation10]   ;;  %s8953_s9 = smov [#allocation13]  }
  0x93   :  { %s87_s15 = sshll.u32 %s8952_s14, 4  ;;  %s111_s0 = sshll.u32 %s8953_s9, 4  ;;  %s88_s15 = int_to_ptr.vmem [resolvable:$true] %s87_s15  ;;  %s112_s0 = int_to_ptr.vmem [resolvable:$true] %s111_s0 }
  0x94   :  { %s8701_s2 = scalar_lea.hbm %s12467_s4, 4096 }
  0x95   :  { %p8702_p0 = scmp.ne.s32.totalorder %s12467_s4, %s8701_s2  ;;  %p8705_p1 = scmp.lt.u32.totalorder %s8701_s2, %s12467_s4 }
  0x97   :  { %p8707_p2 = pnand %p8705_p1, %p8702_p0 }
  0x99   :  { %8710 = shalt.err (!%p8707_p2)
}
  0x9a   :  { %s8711_s21 = scalar_lea.vmem %s88_s15, 4096  ;;  %p8716_p4 = scmp.lt.s32.totalorder %s88_s15, %s88_s15 }
  0x9b   :  { %p8712_p3 = scmp.ne.s32.totalorder %s88_s15, %s8711_s21  ;;  %p8717_p5 = scmp.lt.s32.totalorder %s8711_s21, %s8711_s21 }
  0x9d   :  { %p8718_p6 = por %p8717_p5, %p8716_p4 }
  0x9f   :  { %p8719_p7 = pnand %p8718_p6, %p8712_p3 }
  0xa1   :  { %8722 = shalt.err (!%p8719_p7)
}
  0xa2   :  { %93 = dma.hbm_to_vmem [thread:$0]  %s12467_s4, 4096, %s88_s15, [#allocation9], %s8948_s19, %s8948_s19, %s8949_s20  }
  0xa3   :  { %s8723_s22 = scalar_lea.hbm %s12469_s6, 4096 }
  0xa4   :  { %p8724_p8 = scmp.ne.s32.totalorder %s12469_s6, %s8723_s22  ;;  %p8727_p9 = scmp.lt.u32.totalorder %s8723_s22, %s12469_s6 }
  0xa6   :  { %p8729_p10 = pnand %p8727_p9, %p8724_p8 }
  0xa8   :  { %8732 = shalt.err (!%p8729_p10)
}
  0xa9   :  { %s8733_s2 = scalar_lea.vmem %s112_s0, 4096  ;;  %p8738_p12 = scmp.lt.s32.totalorder %s112_s0, %s112_s0 }
  0xaa   :  { %p8734_p11 = scmp.ne.s32.totalorder %s112_s0, %s8733_s2  ;;  %p8739_p13 = scmp.lt.s32.totalorder %s8733_s2, %s8733_s2 }
  0xac   :  { %p8740_p0 = por %p8739_p13, %p8738_p12 }
  0xae   :  { %p8741_p1 = pnand %p8740_p0, %p8734_p11 }
  0xb0   :  { %8744 = shalt.err (!%p8741_p1)
}
  0xb1   :  { %117 = dma.hbm_to_vmem [thread:$0]  %s12469_s6, 4096, %s112_s0, [#allocation12], %s8942_s23, %s8942_s23, %s8943_s24  }
  0xb2   :  { %s8954_s20 = smov [#allocation16]   ;;  %s8955_s5 = smov [#allocation19]  }
  0xb3   :  { %s135_s15 = sshll.u32 %s8954_s20, 4  ;;  %s161_s3 = sshll.u32 %s8955_s5, 4  ;;  %s136_s15 = int_to_ptr.vmem [resolvable:$true] %s135_s15  ;;  %s162_s3 = int_to_ptr.vmem [resolvable:$true] %s161_s3 }
  0xb4   :  { %s8745_s21 = scalar_lea.hbm %s12471_s8, 4096 }
  0xb5   :  { %p8746_p2 = scmp.ne.s32.totalorder %s12471_s8, %s8745_s21  ;;  %p8749_p3 = scmp.lt.u32.totalorder %s8745_s21, %s12471_s8 }
  0xb7   :  { %p8751_p4 = pnand %p8749_p3, %p8746_p2 }
  0xb9   :  { %8754 = shalt.err (!%p8751_p4)
}
  0xba   :  { %s8755_s6 = scalar_lea.vmem %s136_s15, 4096  ;;  %p8760_p6 = scmp.lt.s32.totalorder %s136_s15, %s136_s15 }
  0xbb   :  { %p8756_p5 = scmp.ne.s32.totalorder %s136_s15, %s8755_s6  ;;  %p8761_p7 = scmp.lt.s32.totalorder %s8755_s6, %s8755_s6 }
  0xbd   :  { %p8762_p8 = por %p8761_p7, %p8760_p6 }
  0xbf   :  { %p8763_p9 = pnand %p8762_p8, %p8756_p5 }
  0xc1   :  { %8766 = shalt.err (!%p8763_p9)
}
  0xc2   :  { %141 = dma.hbm_to_vmem [thread:$0]  %s12471_s8, 4096, %s136_s15, [#allocation15], %s8942_s23, %s8942_s23, %s8943_s24  }
  0xc3   :  { %s8767_s27 = scalar_lea.hbm %s12474_s11, 2048 }
  0xc4   :  { %p8768_p10 = scmp.ne.s32.totalorder %s12474_s11, %s8767_s27  ;;  %p8771_p11 = scmp.lt.u32.totalorder %s8767_s27, %s12474_s11 }
  0xc6   :  { %p8773_p12 = pnand %p8771_p11, %p8768_p10 }
  0xc8   :  { %8776 = shalt.err (!%p8773_p12)
}
  0xc9   :  { %s8777_s20 = scalar_lea.vmem %s162_s3, 2048  ;;  %p8782_p0 = scmp.lt.s32.totalorder %s162_s3, %s162_s3 }
  0xca   :  { %p8778_p13 = scmp.ne.s32.totalorder %s162_s3, %s8777_s20  ;;  %p8783_p1 = scmp.lt.s32.totalorder %s8777_s20, %s8777_s20 }
  0xcc   :  { %p8784_p2 = por %p8783_p1, %p8782_p0 }
  0xce   :  { %p8785_p3 = pnand %p8784_p2, %p8778_p13 }
  0xd0   :  { %8788 = shalt.err (!%p8785_p3)
}
  0xd1   :  { %167 = dma.hbm_to_vmem [thread:$0]  %s12474_s11, 2048, %s162_s3, [#allocation18], %s8942_s23, %s8942_s23, %s8943_s24  }
  0xd2   :  { %8921 = dma.done.wait [#allocation3], 4096  }
  0xd3   :  { %8922 = vsyncadd [#allocation3], 4294963200 }
  0xd4   :  { %8923 = dma.done.wait [#allocation6], 6144  }
  0xd5   :  { %8924 = vsyncadd [#allocation6], 4294961152 }
  0xd6   :  { %8925 = dma.done.wait [#allocation9], 8192  }
  0xd7   :  { %8926 = vsyncadd [#allocation9], 4294959104 }
  0xd8   :  { %8927 = dma.done.wait [#allocation12], 6144  }
  0xd9   :  { %8928 = vsyncadd [#allocation12], 4294961152 }
  0xda   :  { %8929 = dma.done.wait [#allocation15], 12288  }
  0xdb   :  { %8930 = vsyncadd [#allocation15], 4294955008 }
  0xdc   :  { %8931 = dma.done.wait [#allocation18], 6144  }
  0xdd   :  { %8932 = vsyncadd [#allocation18], 4294961152  ;;  %v332_v0 = vld [vmem:[#allocation14 + $0x8] sm:$0xff]  ;;  %v334_v1 = vld [vmem:[#allocation14 + $0x18] sm:$0xff] }
  0xde   :  { %v331_v2 = vld [vmem:[#allocation14] sm:$0xff]  ;;  %v6973_v3 = vpack.c.bf16 %v334_v1, %v332_v0  ;;  %v333_v4 = vld [vmem:[#allocation14 + $0x10] sm:$0xff]  ;;  %v336_v5 = vld [vmem:[#allocation14 + $0x28] sm:$0xff] }
  0xdf   :  { %v338_v6 = vld [vmem:[#allocation14 + $0x38] sm:$0xff]  ;;  %v6975_v7 = vpack.c.bf16 %v333_v4, %v331_v2  ;;  %v335_v9 = vld [vmem:[#allocation14 + $0x20] sm:$0xff]  ;;  %v337_v10 = vld [vmem:[#allocation14 + $0x30] sm:$0xff] }
  0xe0   :  { %v6977_v8 = vpack.c.bf16 %v338_v6, %v336_v5  ;;  %v340_v11 = vld [vmem:[#allocation14 + $0x48] sm:$0xff]  ;;  %6974 = vmatprep.subr.bf16.mxu0 %v6973_v3  ;;  %v342_v12 = vld [vmem:[#allocation14 + $0x58] sm:$0xff]  ;;  %v6979_v13 = vpack.c.bf16 %v337_v10, %v335_v9  ;;  %v339_v15 = vld [vmem:[#allocation14 + $0x40] sm:$0xff] }
  0xe1   :  { %6976 = vmatpush1.bf16.msra.mxu0 %v6975_v7  ;;  %v6981_v14 = vpack.c.bf16 %v342_v12, %v340_v11  ;;  %v341_v16 = vld [vmem:[#allocation14 + $0x50] sm:$0xff]  ;;  %v344_v17 = vld [vmem:[#allocation14 + $0x68] sm:$0xff]  ;;  %v346_v18 = vld [vmem:[#allocation14 + $0x78] sm:$0xff] }
  0xe2   :  { %6978 = vmatprep.subr.bf16.mxu0 %v6977_v8  ;;  %v6983_v19 = vpack.c.bf16 %v341_v16, %v339_v15  ;;  %v6985_v20 = vpack.c.bf16 %v346_v18, %v344_v17  ;;  %v343_v21 = vld [vmem:[#allocation14 + $0x60] sm:$0xff]  ;;  %v345_v22 = vld [vmem:[#allocation14 + $0x70] sm:$0xff]  ;;  %v348_v23 = vld [vmem:[#allocation14 + $0x88] sm:$0xff] }
  0xe3   :  { %v350_v24 = vld [vmem:[#allocation14 + $0x98] sm:$0xff]  ;;  %v6987_v25 = vpack.c.bf16 %v345_v22, %v343_v21  ;;  %v347_v27 = vld [vmem:[#allocation14 + $0x80] sm:$0xff]  ;;  %v349_v28 = vld [vmem:[#allocation14 + $0x90] sm:$0xff] }
  0xe4   :  { %v6989_v26 = vpack.c.bf16 %v350_v24, %v348_v23  ;;  %v352_v29 = vld [vmem:[#allocation14 + $0xa8] sm:$0xff]  ;;  %v354_v30 = vld [vmem:[#allocation14 + $0xb8] sm:$0xff]  ;;  %v6991_v31 = vpack.c.bf16 %v349_v28, %v347_v27  ;;  %v351_v33 = vld [vmem:[#allocation14 + $0xa0] sm:$0xff] }
  0xe5   :  { %6980 = vmatpush1.bf16.msra.mxu0 %v6979_v13  ;;  %v6993_v32 = vpack.c.bf16 %v354_v30, %v352_v29  ;;  %v353_v34 = vld [vmem:[#allocation14 + $0xb0] sm:$0xff]  ;;  %v356_v35 = vld [vmem:[#allocation14 + $0xc8] sm:$0xff]  ;;  %v358_v36 = vld [vmem:[#allocation14 + $0xd8] sm:$0xff] }
  0xe6   :  { %6982 = vmatprep.subr.bf16.mxu0 %v6981_v14  ;;  %v6995_v37 = vpack.c.bf16 %v353_v34, %v351_v33  ;;  %v6997_v38 = vpack.c.bf16 %v358_v36, %v356_v35  ;;  %v355_v39 = vld [vmem:[#allocation14 + $0xc0] sm:$0xff]  ;;  %v357_v40 = vld [vmem:[#allocation14 + $0xd0] sm:$0xff]  ;;  %v9224_v41 = vld [vmem:[#allocation10 + $0x8] sm:$0xff] }
  0xe7   :  { %v360_v42 = vld [vmem:[#allocation14 + $0xe8] sm:$0xff]  ;;  %v362_v43 = vld [vmem:[#allocation14 + $0xf8] sm:$0xff]  ;;  %492 = vmatprep.mubr.f32.mxu0 %v9224_v41  ;;  %v6999_v44 = vpack.c.bf16 %v357_v40, %v355_v39  ;;  %v359_v46 = vld [vmem:[#allocation14 + $0xe0] sm:$0xff] }
  0xe8   :  { %v7001_v45 = vpack.c.bf16 %v362_v43, %v360_v42  ;;  %v361_v47 = vld [vmem:[#allocation14 + $0xf0] sm:$0xff]  ;;  %v364_v48 = vld [vmem:[#allocation14 + $0x108] sm:$0xff]  ;;  %v366_v49 = vld [vmem:[#allocation14 + $0x118] sm:$0xff] }
  0xe9   :  { %6984 = vmatpush1.bf16.msra.mxu0 %v6983_v19  ;;  %v7003_v50 = vpack.c.bf16 %v361_v47, %v359_v46  ;;  %v7005_v51 = vpack.c.bf16 %v366_v49, %v364_v48  ;;  %v363_v52 = vld [vmem:[#allocation14 + $0x100] sm:$0xff]  ;;  %v365_v53 = vld [vmem:[#allocation14 + $0x110] sm:$0xff]  ;;  %v368_v54 = vld [vmem:[#allocation14 + $0x128] sm:$0xff] }
  0xea   :  { %6986 = vmatprep.subr.bf16.mxu0 %v6985_v20  ;;  %v370_v55 = vld [vmem:[#allocation14 + $0x138] sm:$0xff]  ;;  %v7007_v56 = vpack.c.bf16 %v365_v53, %v363_v52  ;;  %v367_v58 = vld [vmem:[#allocation14 + $0x120] sm:$0xff]  ;;  %v369_v59 = vld [vmem:[#allocation14 + $0x130] sm:$0xff] }
  0xeb   :  { %v7009_v57 = vpack.c.bf16 %v370_v55, %v368_v54  ;;  %v372_v60 = vld [vmem:[#allocation14 + $0x148] sm:$0xff]  ;;  %v374_v61 = vld [vmem:[#allocation14 + $0x158] sm:$0xff]  ;;  %v7011_v62 = vpack.c.bf16 %v369_v59, %v367_v58  ;;  %v371_v0 = vld [vmem:[#allocation14 + $0x140] sm:$0xff] }
  0xec   :  { %v7013_v63 = vpack.c.bf16 %v374_v61, %v372_v60  ;;  %v373_v1 = vld [vmem:[#allocation14 + $0x150] sm:$0xff]  ;;  %v376_v2 = vld [vmem:[#allocation14 + $0x168] sm:$0xff]  ;;  %v378_v3 = vld [vmem:[#allocation14 + $0x178] sm:$0xff] }
  0xed   :  { %6988 = vmatpush1.bf16.msra.mxu0 %v6987_v25  ;;  %v7015_v4 = vpack.c.bf16 %v373_v1, %v371_v0  ;;  %v7017_v5 = vpack.c.bf16 %v378_v3, %v376_v2  ;;  %v375_v6 = vld [vmem:[#allocation14 + $0x160] sm:$0xff]  ;;  %v377_v7 = vld [vmem:[#allocation14 + $0x170] sm:$0xff]  ;;  %v380_v8 = vld [vmem:[#allocation14 + $0x188] sm:$0xff]  ;;  %v12487_v1 = vmov 0.0  }
  0xee   :  { %6990 = vmatprep.subr.bf16.mxu0 %v6989_v26  ;;  %v382_v9 = vld [vmem:[#allocation14 + $0x198] sm:$0xff]  ;;  %v7019_v10 = vpack.c.bf16 %v377_v7, %v375_v6  ;;  %v379_v12 = vld [vmem:[#allocation14 + $0x180] sm:$0xff]  ;;  %v381_v13 = vld [vmem:[#allocation14 + $0x190] sm:$0xff]  ;;  %653 = vmatprep.mubr.f32.mxu1 %v12487_v1 }
  0xef   :  { %v7021_v11 = vpack.c.bf16 %v382_v9, %v380_v8  ;;  %v384_v14 = vld [vmem:[#allocation14 + $0x1a8] sm:$0xff]  ;;  %v386_v15 = vld [vmem:[#allocation14 + $0x1b8] sm:$0xff]  ;;  %v7023_v16 = vpack.c.bf16 %v381_v13, %v379_v12  ;;  %v383_v18 = vld [vmem:[#allocation14 + $0x1a0] sm:$0xff] }
  0xf0   :  { %v7025_v17 = vpack.c.bf16 %v386_v15, %v384_v14  ;;  %v385_v19 = vld [vmem:[#allocation14 + $0x1b0] sm:$0xff]  ;;  %v388_v20 = vld [vmem:[#allocation14 + $0x1c8] sm:$0xff]  ;;  %v390_v21 = vld [vmem:[#allocation14 + $0x1d8] sm:$0xff] }
  0xf1   :  { %6992 = vmatpush1.bf16.msra.mxu0 %v6991_v31  ;;  %v7027_v22 = vpack.c.bf16 %v385_v19, %v383_v18  ;;  %v7029_v23 = vpack.c.bf16 %v390_v21, %v388_v20  ;;  %v387_v24 = vld [vmem:[#allocation14 + $0x1c0] sm:$0xff]  ;;  %v389_v25 = vld [vmem:[#allocation14 + $0x1d0] sm:$0xff]  ;;  %v392_v26 = vld [vmem:[#allocation14 + $0x1e8] sm:$0xff] }
  0xf2   :  { %6994 = vmatprep.subr.bf16.mxu0 %v6993_v32  ;;  %v394_v27 = vld [vmem:[#allocation14 + $0x1f8] sm:$0xff]  ;;  %v7031_v28 = vpack.c.bf16 %v389_v25, %v387_v24  ;;  %v391_v30 = vld [vmem:[#allocation14 + $0x1e0] sm:$0xff]  ;;  %v393_v31 = vld [vmem:[#allocation14 + $0x1f0] sm:$0xff] }
  0xf3   :  { %v7033_v29 = vpack.c.bf16 %v394_v27, %v392_v26  ;;  %v7035_v32 = vpack.c.bf16 %v393_v31, %v391_v30  ;;  %v9227_v33 = vld [vmem:[#allocation10] sm:$0xff]  ;;  %v9229_v34 = vld [vmem:[#allocation10 + $0x18] sm:$0xff]  ;;  %v9233_v35 = vld [vmem:[#allocation10 + $0x10] sm:$0xff] }
  0xf4   :  { %v9235_v36 = vld [vmem:[#allocation10 + $0x28] sm:$0xff]  ;;  %v9245_v39 = vld [vmem:[#allocation10 + $0x30] sm:$0xff]  ;;  %v9251_v42 = vld [vmem:[#allocation10 + $0x40] sm:$0xff] }
  0xf5   :  { %6996 = vmatpush1.bf16.msra.mxu0 %v6995_v37  ;;  %v9239_v37 = vld [vmem:[#allocation10 + $0x20] sm:$0xff]  ;;  %v9247_v40 = vld [vmem:[#allocation10 + $0x48] sm:$0xff]  ;;  %v9253_v43 = vld [vmem:[#allocation10 + $0x58] sm:$0xff] }
  0xf6   :  { %6998 = vmatprep.subr.bf16.mxu0 %v6997_v38  ;;  %v9241_v38 = vld [vmem:[#allocation10 + $0x38] sm:$0xff]  ;;  %v9263_v46 = vld [vmem:[#allocation10 + $0x60] sm:$0xff]  ;;  %v9269_v48 = vld [vmem:[#allocation10 + $0x70] sm:$0xff] }
  0xf7   :  { %v9265_v47 = vld [vmem:[#allocation10 + $0x78] sm:$0xff]  ;;  %v9271_v49 = vld [vmem:[#allocation10 + $0x88] sm:$0xff]  ;;  %v9281_v52 = vld [vmem:[#allocation10 + $0x90] sm:$0xff] }
  0xf8   :  { %v9283_v53 = vld [vmem:[#allocation10 + $0xa8] sm:$0xff]  ;;  %v9287_v54 = vld [vmem:[#allocation10 + $0xa0] sm:$0xff]  ;;  %v9289_v55 = vld [vmem:[#allocation10 + $0xb8] sm:$0xff] }
  0xf9   :  { %7000 = vmatpush1.bf16.msra.mxu0 %v6999_v44  ;;  %v9257_v44 = vld [vmem:[#allocation10 + $0x50] sm:$0xff]  ;;  %v9299_v58 = vld [vmem:[#allocation10 + $0xc0] sm:$0xff]  ;;  %v9301_v59 = vld [vmem:[#allocation10 + $0xd8] sm:$0xff] }
  0xfa   :  { %7002 = vmatprep.subr.bf16.mxu0 %v7001_v45  ;;  %v9259_v45 = vld [vmem:[#allocation10 + $0x68] sm:$0xff]  ;;  %v9305_v60 = vld [vmem:[#allocation10 + $0xd0] sm:$0xff] }
  0xfb   :  { %v9307_v61 = vld [vmem:[#allocation10 + $0xe8] sm:$0xff]  ;;  %v9317_v0 = vld [vmem:[#allocation10 + $0xf0] sm:$0xff] }
  0xfd   :  { %7004 = vmatpush1.bf16.msra.mxu0 %v7003_v50  ;;  %v9275_v50 = vld [vmem:[#allocation10 + $0x80] sm:$0xff] }
  0xfe   :  { %7006 = vmatprep.subr.bf16.mxu0 %v7005_v51  ;;  %v9277_v51 = vld [vmem:[#allocation10 + $0x98] sm:$0xff] }
 0x101   :  { %7008 = vmatpush1.bf16.msra.mxu0 %v7007_v56  ;;  %v9293_v56 = vld [vmem:[#allocation10 + $0xb0] sm:$0xff] }
 0x102   :  { %7010 = vmatprep.subr.bf16.mxu0 %v7009_v57  ;;  %v9295_v57 = vld [vmem:[#allocation10 + $0xc8] sm:$0xff] }
 0x105   :  { %7012 = vmatpush1.bf16.msra.mxu0 %v7011_v62  ;;  %v9311_v62 = vld [vmem:[#allocation10 + $0xe0] sm:$0xff] }
 0x106   :  { %7014 = vmatprep.subr.bf16.mxu0 %v7013_v63  ;;  %v9313_v63 = vld [vmem:[#allocation10 + $0xf8] sm:$0xff] }
 0x109   :  { %7016 = vmatpush1.bf16.msra.mxu0 %v7015_v4 }
 0x10a   :  { %7018 = vmatprep.subr.bf16.mxu0 %v7017_v5 }
 0x10d   :  { %7020 = vmatpush1.bf16.msra.mxu0 %v7019_v10 }
 0x10e   :  { %7022 = vmatprep.subr.bf16.mxu0 %v7021_v11 }
 0x111   :  { %7024 = vmatpush1.bf16.msra.mxu0 %v7023_v16 }
 0x112   :  { %7026 = vmatprep.subr.bf16.mxu0 %v7025_v17 }
 0x115   :  { %7028 = vmatpush1.bf16.msra.mxu0 %v7027_v22 }
 0x116   :  { %7030 = vmatprep.subr.bf16.mxu0 %v7029_v23 }
 0x119   :  { %7032 = vmatpush1.bf16.msra.mxu0 %v7031_v28 }
 0x11a   :  { %7034 = vmatprep.subr.bf16.mxu0 %v7033_v29 }
 0x11d   :  { %7036 = vmatpush1.bf16.msra.mxu0 %v7035_v32 }
 0x120   :  { %493 = vmatmul.mubr.f32.vlgmr.msra.gmra.mrb[0].mxu0 %v9227_v33 }
 0x121   :  { %498 = vmatprep.mubr.f32.mxu0 %v9229_v34 }
 0x124   :  { %499 = vmatmul.mubr.f32.gmra.mrb[2].mxu0 %v9233_v35 }
 0x125   :  { %504 = vmatprep.mubr.f32.mxu0 %v9235_v36 }
 0x128   :  { %505 = vmatmul.mubr.f32.gmra.mrb[4].mxu0 %v9239_v37 }
 0x129   :  { %510 = vmatprep.mubr.f32.mxu0 %v9241_v38 }
 0x12c   :  { %511 = vmatmul.mubr.f32.gmra.mrb[6].mxu0 %v9245_v39 }
 0x12d   :  { %516 = vmatprep.mubr.f32.mxu0 %v9247_v40 }
 0x130   :  { %517 = vmatmul.mubr.f32.gmra.mrb[8].mxu0 %v9251_v42 }
 0x131   :  { %522 = vmatprep.mubr.f32.mxu0 %v9253_v43 }
 0x134   :  { %523 = vmatmul.mubr.f32.gmra.mrb[10].mxu0 %v9257_v44 }
 0x135   :  { %528 = vmatprep.mubr.f32.mxu0 %v9259_v45 }
 0x138   :  { %529 = vmatmul.mubr.f32.gmra.mrb[12].mxu0 %v9263_v46 }
 0x139   :  { %534 = vmatprep.mubr.f32.mxu0 %v9265_v47 }
 0x13c   :  { %535 = vmatmul.mubr.f32.gmra.mrb[14].mxu0 %v9269_v48 }
 0x13d   :  { %540 = vmatprep.mubr.f32.mxu0 %v9271_v49 }
 0x140   :  { %541 = vmatmul.mubr.f32.gmra.mrb[16].mxu0 %v9275_v50 }
 0x141   :  { %546 = vmatprep.mubr.f32.mxu0 %v9277_v51 }
 0x144   :  { %547 = vmatmul.mubr.f32.gmra.mrb[18].mxu0 %v9281_v52 }
 0x145   :  { %552 = vmatprep.mubr.f32.mxu0 %v9283_v53 }
 0x148   :  { %553 = vmatmul.mubr.f32.gmra.mrb[20].mxu0 %v9287_v54 }
 0x149   :  { %558 = vmatprep.mubr.f32.mxu0 %v9289_v55 }
 0x14c   :  { %559 = vmatmul.mubr.f32.gmra.mrb[22].mxu0 %v9293_v56 }
 0x14d   :  { %564 = vmatprep.mubr.f32.mxu0 %v9295_v57 }
 0x150   :  { %565 = vmatmul.mubr.f32.gmra.mrb[24].mxu0 %v9299_v58 }
 0x151   :  { %570 = vmatprep.mubr.f32.mxu0 %v9301_v59 }
 0x154   :  { %571 = vmatmul.mubr.f32.gmra.mrb[26].mxu0 %v9305_v60 }
 0x155   :  { %576 = vmatprep.mubr.f32.mxu0 %v9307_v61 }
 0x158   :  { %577 = vmatmul.mubr.f32.gmra.mrb[28].mxu0 %v9311_v62 }
 0x159   :  { %582 = vmatprep.mubr.f32.mxu0 %v9313_v63 }
 0x15c   :  { %583 = vmatmul.mubr.f32.gmra.mrb[30].mxu0 %v9317_v0 }
 0x1f3   :  { %v494_v2 = vpop.f32.mrb[0].mxu0 }
 0x1f4   :  { %v496_v3 = vpop.f32.mrb[1].mxu0 }
 0x1f7   :  { %v500_v4 = vpop.f32.mrb[2].mxu0 }
 0x1f8   :  { %v502_v5 = vpop.f32.mrb[3].mxu0  ;;  %v7039_v6 = vpack.c.bf16 %v500_v4, %v494_v2 }
 0x1f9   :  { %v7037_v7 = vpack.c.bf16 %v502_v5, %v496_v3 }
 0x1fb   :  { %v506_v8 = vpop.f32.mrb[4].mxu0  ;;  %7038 = vmatprep.subr.bf16.mxu1 %v7037_v7 }
 0x1fc   :  { %v508_v9 = vpop.f32.mrb[5].mxu0  ;;  %7040 = vmatpush1.bf16.msra.mxu1 %v7039_v6 }
 0x1ff   :  { %v512_v10 = vpop.f32.mrb[6].mxu0 }
 0x200   :  { %v7043_v11 = vpack.c.bf16 %v512_v10, %v506_v8  ;;  %v514_v12 = vpop.f32.mrb[7].mxu0 }
 0x201   :  { %v7041_v13 = vpack.c.bf16 %v514_v12, %v508_v9 }
 0x203   :  { %v518_v14 = vpop.f32.mrb[8].mxu0  ;;  %7042 = vmatprep.subr.bf16.mxu1 %v7041_v13 }
 0x204   :  { %v520_v15 = vpop.f32.mrb[9].mxu0  ;;  %7044 = vmatpush1.bf16.msra.mxu1 %v7043_v11 }
 0x207   :  { %v524_v16 = vpop.f32.mrb[10].mxu0 }
 0x208   :  { %v7047_v17 = vpack.c.bf16 %v524_v16, %v518_v14  ;;  %v526_v18 = vpop.f32.mrb[11].mxu0  ;;  %v1510_v16 = vld [vmem:[#allocation16 + $0x88] sm:$0xff] }
 0x209   :  { %v7045_v19 = vpack.c.bf16 %v526_v18, %v520_v15  ;;  %v1509_v15 = vld [vmem:[#allocation16 + $0x80] sm:$0xff] }
 0x20b   :  { %v530_v20 = vpop.f32.mrb[12].mxu0  ;;  %7046 = vmatprep.subr.bf16.mxu1 %v7045_v19 }
 0x20c   :  { %v532_v21 = vpop.f32.mrb[13].mxu0  ;;  %7048 = vmatpush1.bf16.msra.mxu1 %v7047_v17 }
 0x20f   :  { %v536_v22 = vpop.f32.mrb[14].mxu0 }
 0x210   :  { %v7051_v23 = vpack.c.bf16 %v536_v22, %v530_v20  ;;  %v538_v24 = vpop.f32.mrb[15].mxu0  ;;  %v1493_v22 = vld [vmem:[#allocation16] sm:$0xff] }
 0x211   :  { %v7049_v25 = vpack.c.bf16 %v538_v24, %v532_v21  ;;  %v7117_v21 = vpack.c.bf16 %v1510_v16, %v1509_v15  ;;  %v1511_v24 = vld [vmem:[#allocation16 + $0x90] sm:$0xff]  ;;  %v1518_v15 = vld [vmem:[#allocation16 + $0xc8] sm:$0xff]  ;;  %v270_v16 = vld [vmem:[#allocation8 + $0x18] sm:$0xff] }
 0x213   :  { %v542_v26 = vpop.f32.mrb[16].mxu0  ;;  %7050 = vmatprep.subr.bf16.mxu1 %v7049_v25  ;;  %v1512_v25 = vld [vmem:[#allocation16 + $0x98] sm:$0xff] }
 0x214   :  { %v544_v27 = vpop.f32.mrb[17].mxu0  ;;  %7052 = vmatpush1.bf16.msra.mxu1 %v7051_v23  ;;  %v1494_v23 = vld [vmem:[#allocation16 + $0x8] sm:$0xff] }
 0x217   :  { %v548_v28 = vpop.f32.mrb[18].mxu0 }
 0x218   :  { %v7055_v29 = vpack.c.bf16 %v548_v28, %v542_v26  ;;  %v550_v30 = vpop.f32.mrb[19].mxu0  ;;  %v9321_v26 = vld [vmem:[#allocation8] sm:$0xff]  ;;  %v7121_v28 = vpack.c.bf16 %v1512_v25, %v1511_v24 }
 0x219   :  { %v7053_v31 = vpack.c.bf16 %v550_v30, %v544_v27  ;;  %v7119_v27 = vpack.c.bf16 %v1494_v23, %v1493_v22  ;;  %v1496_v30 = vld [vmem:[#allocation16 + $0x18] sm:$0xff]  ;;  %v271_v23 = vld [vmem:[#allocation8 + $0x20] sm:$0xff] }
 0x21a   :  { %v1520_v22 = vld [vmem:[#allocation16 + $0xd8] sm:$0xff] }
 0x21b   :  { %v554_v32 = vpop.f32.mrb[20].mxu0  ;;  %7054 = vmatprep.subr.bf16.mxu1 %v7053_v31  ;;  %v1513_v31 = vld [vmem:[#allocation16 + $0xa0] sm:$0xff] }
 0x21c   :  { %v556_v2 = vpop.f32.mrb[21].mxu0  ;;  %7056 = vmatpush1.bf16.msra.mxu1 %v7055_v29  ;;  %v1495_v29 = vld [vmem:[#allocation16 + $0x10] sm:$0xff] }
 0x21f   :  { %v560_v3 = vpop.f32.mrb[22].mxu0 }
 0x220   :  { %v7059_v4 = vpack.c.bf16 %v560_v3, %v554_v32  ;;  %v562_v5 = vpop.f32.mrb[23].mxu0  ;;  %v1514_v32 = vld [vmem:[#allocation16 + $0xa8] sm:$0xff]  ;;  %v7123_v3 = vpack.c.bf16 %v1496_v30, %v1495_v29  ;;  %v1521_v29 = vld [vmem:[#allocation16 + $0xe0] sm:$0xff] }
 0x221   :  { %v7057_v6 = vpack.c.bf16 %v562_v5, %v556_v2  ;;  %v268_v2 = vld [vmem:[#allocation8 + $0x8] sm:$0xff]  ;;  %v1497_v5 = vld [vmem:[#allocation16 + $0x20] sm:$0xff] }
 0x222   :  { %v1522_v30 = vld [vmem:[#allocation16 + $0xe8] sm:$0xff] }
 0x223   :  { %v566_v7 = vpop.f32.mrb[24].mxu0  ;;  %7058 = vmatprep.subr.bf16.mxu1 %v7057_v6  ;;  %v1498_v6 = vld [vmem:[#allocation16 + $0x28] sm:$0xff] }
 0x224   :  { %v568_v8 = vpop.f32.mrb[25].mxu0  ;;  %7060 = vmatpush1.bf16.msra.mxu1 %v7059_v4  ;;  %v7125_v4 = vpack.c.bf16 %v1514_v32, %v1513_v31  ;;  %v272_v31 = vld [vmem:[#allocation8 + $0x28] sm:$0xff] }
 0x227   :  { %v572_v9 = vpop.f32.mrb[26].mxu0 }
 0x228   :  { %v7063_v10 = vpack.c.bf16 %v572_v9, %v566_v7  ;;  %v574_v11 = vpop.f32.mrb[27].mxu0  ;;  %v1515_v7 = vld [vmem:[#allocation16 + $0xb0] sm:$0xff] }
 0x229   :  { %v7061_v12 = vpack.c.bf16 %v574_v11, %v568_v8  ;;  %v1516_v8 = vld [vmem:[#allocation16 + $0xb8] sm:$0xff]  ;;  %v269_v9 = vld [vmem:[#allocation8 + $0x10] sm:$0xff] }
 0x22a   :  { %v7129_v11 = vpack.c.bf16 %v1516_v8, %v1515_v7  ;;  %v273_v7 = vld [vmem:[#allocation8 + $0x30] sm:$0xff] }
 0x22b   :  { %v578_v13 = vpop.f32.mrb[28].mxu0  ;;  %7062 = vmatprep.subr.bf16.mxu1 %v7061_v12  ;;  %v1499_v12 = vld [vmem:[#allocation16 + $0x30] sm:$0xff] }
 0x22c   :  { %v580_v14 = vpop.f32.mrb[29].mxu0  ;;  %7064 = vmatpush1.bf16.msra.mxu1 %v7063_v10  ;;  %v7127_v10 = vpack.c.bf16 %v1498_v6, %v1497_v5  ;;  %v1523_v5 = vld [vmem:[#allocation16 + $0xf0] sm:$0xff]  ;;  %v1524_v6 = vld [vmem:[#allocation16 + $0xf8] sm:$0xff] }
 0x22f   :  { %v584_v17 = vpop.f32.mrb[30].mxu0 }
 0x230   :  { %v7067_v18 = vpack.c.bf16 %v584_v17, %v578_v13  ;;  %v586_v19 = vpop.f32.mrb[31].mxu0  ;;  %v1500_v13 = vld [vmem:[#allocation16 + $0x38] sm:$0xff] }
 0x231   :  { %v7065_v20 = vpack.c.bf16 %v586_v19, %v580_v14  ;;  %v1517_v14 = vld [vmem:[#allocation16 + $0xc0] sm:$0xff]  ;;  %v7131_v17 = vpack.c.bf16 %v1500_v13, %v1499_v12  ;;  %v274_v12 = vld [vmem:[#allocation8 + $0x38] sm:$0xff] }
 0x232   :  { %v1501_v19 = vld [vmem:[#allocation16 + $0x40] sm:$0xff] }
 0x233   :  { %7066 = vmatprep.subr.bf16.mxu1 %v7065_v20  ;;  %v1502_v20 = vld [vmem:[#allocation16 + $0x48] sm:$0xff] }
 0x234   :  { %7068 = vmatpush1.bf16.msra.mxu1 %v7067_v18  ;;  %v7133_v18 = vpack.c.bf16 %v1518_v15, %v1517_v14  ;;  %v7135_v24 = vpack.c.bf16 %v1502_v20, %v1501_v19  ;;  %v275_v14 = vld [vmem:[#allocation8 + $0x40] sm:$0xff]  ;;  %v276_v15 = vld [vmem:[#allocation8 + $0x48] sm:$0xff]  ;;  %v281_v20 = vld [vmem:[#allocation8 + $0x70] sm:$0xff] }
 0x235   :  { %7118 = vmatprep.subr.bf16.mxu1 %v7117_v21  ;;  %v1519_v21 = vld [vmem:[#allocation16 + $0xd0] sm:$0xff]  ;;  %v280_v19 = vld [vmem:[#allocation8 + $0x68] sm:$0xff] }
 0x236   :  { %v7137_v25 = vpack.c.bf16 %v1520_v22, %v1519_v21  ;;  %v282_v21 = vld [vmem:[#allocation8 + $0x78] sm:$0xff]  ;;  %v283_v22 = vld [vmem:[#allocation8 + $0x80] sm:$0xff] }
 0x237   :  { %654 = vmatmul.mubr.f32.vlgmr.msra.gmra.mrb[0].mxu1 %v9321_v26 }
 0x238   :  { %659 = vmatprep.mubr.f32.mxu1 %v12487_v1  ;;  %7120 = vmatpush3.bf16.msra.mxu1 %v7119_v27  ;;  %v1503_v27 = vld [vmem:[#allocation16 + $0x50] sm:$0xff] }
 0x239   :  { %7122 = vmatprep.subr.bf16.mxu1 %v7121_v28  ;;  %v1504_v28 = vld [vmem:[#allocation16 + $0x58] sm:$0xff] }
 0x23a   :  { %v7139_v32 = vpack.c.bf16 %v1504_v28, %v1503_v27  ;;  %v287_v27 = vld [vmem:[#allocation8 + $0xa0] sm:$0xff]  ;;  %v288_v28 = vld [vmem:[#allocation8 + $0xa8] sm:$0xff] }
 0x23b   :  { %660 = vmatmul.mubr.f32.gmra.mrb[2].mxu1 %v268_v2  ;;  %v7141_v2 = vpack.c.bf16 %v1522_v30, %v1521_v29  ;;  %v289_v29 = vld [vmem:[#allocation8 + $0xb0] sm:$0xff]  ;;  %v290_v30 = vld [vmem:[#allocation8 + $0xb8] sm:$0xff] }
 0x23c   :  { %665 = vmatprep.mubr.f32.mxu1 %v12487_v1  ;;  %7124 = vmatpush3.bf16.msra.mxu1 %v7123_v3  ;;  %v1505_v3 = vld [vmem:[#allocation16 + $0x60] sm:$0xff] }
 0x23d   :  { %7126 = vmatprep.subr.bf16.mxu1 %v7125_v4  ;;  %v1506_v4 = vld [vmem:[#allocation16 + $0x68] sm:$0xff] }
 0x23e   :  { %v7143_v8 = vpack.c.bf16 %v1506_v4, %v1505_v3  ;;  %v294_v3 = vld [vmem:[#allocation8 + $0xd8] sm:$0xff]  ;;  %v295_v4 = vld [vmem:[#allocation8 + $0xe0] sm:$0xff] }
 0x23f   :  { %666 = vmatmul.mubr.f32.gmra.mrb[4].mxu1 %v269_v9  ;;  %v7145_v9 = vpack.c.bf16 %v1524_v6, %v1523_v5  ;;  %v296_v5 = vld [vmem:[#allocation8 + $0xe8] sm:$0xff]  ;;  %v297_v6 = vld [vmem:[#allocation8 + $0xf0] sm:$0xff] }
 0x240   :  { %671 = vmatprep.mubr.f32.mxu1 %v12487_v1  ;;  %7128 = vmatpush3.bf16.msra.mxu1 %v7127_v10  ;;  %v1507_v10 = vld [vmem:[#allocation16 + $0x70] sm:$0xff] }
 0x241   :  { %7130 = vmatprep.subr.bf16.mxu1 %v7129_v11  ;;  %v1508_v11 = vld [vmem:[#allocation16 + $0x78] sm:$0xff] }
 0x242   :  { %v7147_v13 = vpack.c.bf16 %v1508_v11, %v1507_v10  ;;  %v412_v10 = vld [vmem:[#allocation17 + $0x88] sm:$0xff] }
 0x243   :  { %672 = vmatmul.mubr.f32.gmra.mrb[6].mxu1 %v270_v16  ;;  %v277_v16 = vld [vmem:[#allocation8 + $0x50] sm:$0xff] }
 0x244   :  { %677 = vmatprep.mubr.f32.mxu1 %v12487_v1  ;;  %7132 = vmatpush3.bf16.msra.mxu1 %v7131_v17  ;;  %v278_v17 = vld [vmem:[#allocation8 + $0x58] sm:$0xff] }
 0x245   :  { %7134 = vmatprep.subr.bf16.mxu1 %v7133_v18  ;;  %v279_v18 = vld [vmem:[#allocation8 + $0x60] sm:$0xff] }
 0x247   :  { %678 = vmatmul.mubr.f32.gmra.mrb[8].mxu1 %v271_v23  ;;  %v284_v23 = vld [vmem:[#allocation8 + $0x88] sm:$0xff] }
 0x248   :  { %683 = vmatprep.mubr.f32.mxu1 %v12487_v1  ;;  %7136 = vmatpush3.bf16.msra.mxu1 %v7135_v24  ;;  %v285_v24 = vld [vmem:[#allocation8 + $0x90] sm:$0xff] }
 0x249   :  { %7138 = vmatprep.subr.bf16.mxu1 %v7137_v25  ;;  %v286_v25 = vld [vmem:[#allocation8 + $0x98] sm:$0xff] }
 0x24b   :  { %684 = vmatmul.mubr.f32.gmra.mrb[10].mxu1 %v272_v31  ;;  %v291_v31 = vld [vmem:[#allocation8 + $0xc0] sm:$0xff] }
 0x24c   :  { %689 = vmatprep.mubr.f32.mxu1 %v12487_v1  ;;  %7140 = vmatpush3.bf16.msra.mxu1 %v7139_v32  ;;  %v292_v32 = vld [vmem:[#allocation8 + $0xc8] sm:$0xff] }
 0x24d   :  { %7142 = vmatprep.subr.bf16.mxu1 %v7141_v2  ;;  %v293_v2 = vld [vmem:[#allocation8 + $0xd0] sm:$0xff] }
 0x24f   :  { %690 = vmatmul.mubr.f32.gmra.mrb[12].mxu1 %v273_v7  ;;  %v298_v7 = vld [vmem:[#allocation8 + $0xf8] sm:$0xff] }
 0x250   :  { %695 = vmatprep.mubr.f32.mxu1 %v12487_v1  ;;  %7144 = vmatpush3.bf16.msra.mxu1 %v7143_v8 }
 0x251   :  { %7146 = vmatprep.subr.bf16.mxu1 %v7145_v9  ;;  %v411_v9 = vld [vmem:[#allocation17 + $0x80] sm:$0xff] }
 0x252   :  { %v7094_v11 = vpack.c.bf16 %v412_v10, %v411_v9 }
 0x253   :  { %696 = vmatmul.mubr.f32.gmra.mrb[14].mxu1 %v274_v12 }
 0x254   :  { %701 = vmatprep.mubr.f32.mxu1 %v12487_v1  ;;  %7148 = vmatpush3.bf16.msra.mxu1 %v7147_v13 }
 0x257   :  { %702 = vmatmul.mubr.f32.gmra.mrb[16].mxu1 %v275_v14 }
 0x258   :  { %707 = vmatprep.mubr.f32.mxu1 %v12487_v1 }
 0x25b   :  { %708 = vmatmul.mubr.f32.gmra.mrb[18].mxu1 %v276_v15 }
 0x25c   :  { %713 = vmatprep.mubr.f32.mxu1 %v12487_v1 }
 0x25f   :  { %714 = vmatmul.mubr.f32.gmra.mrb[20].mxu1 %v277_v16 }
 0x260   :  { %719 = vmatprep.mubr.f32.mxu1 %v12487_v1 }
 0x263   :  { %720 = vmatmul.mubr.f32.gmra.mrb[22].mxu1 %v278_v17  ;;  %v413_v17 = vld [vmem:[#allocation17 + $0x90] sm:$0xff] }
 0x264   :  { %725 = vmatprep.mubr.f32.mxu1 %v12487_v1 }
 0x267   :  { %726 = vmatmul.mubr.f32.gmra.mrb[24].mxu1 %v279_v18  ;;  %v414_v18 = vld [vmem:[#allocation17 + $0x98] sm:$0xff] }
 0x268   :  { %731 = vmatprep.mubr.f32.mxu1 %v12487_v1 }
 0x26b   :  { %732 = vmatmul.mubr.f32.gmra.mrb[26].mxu1 %v280_v19  ;;  %v7097_v19 = vpack.c.bf16 %v414_v18, %v413_v17 }
 0x26c   :  { %737 = vmatprep.mubr.f32.mxu1 %v12487_v1 }
 0x26f   :  { %738 = vmatmul.mubr.f32.gmra.mrb[28].mxu1 %v281_v20 }
 0x270   :  { %743 = vmatprep.mubr.f32.mxu1 %v12487_v1 }
 0x273   :  { %744 = vmatmul.mubr.f32.gmra.mrb[30].mxu1 %v282_v21 }
 0x274   :  { %749 = vmatprep.mubr.f32.mxu1 %v12487_v1 }
 0x277   :  { %750 = vmatmul.mubr.f32.gmra.mrb[32].mxu1 %v283_v22 }
 0x278   :  { %755 = vmatprep.mubr.f32.mxu1 %v12487_v1 }
 0x27b   :  { %756 = vmatmul.mubr.f32.gmra.mrb[34].mxu1 %v284_v23 }
 0x27c   :  { %761 = vmatprep.mubr.f32.mxu1 %v12487_v1 }
 0x27f   :  { %762 = vmatmul.mubr.f32.gmra.mrb[36].mxu1 %v285_v24 }
 0x280   :  { %767 = vmatprep.mubr.f32.mxu1 %v12487_v1 }
 0x283   :  { %768 = vmatmul.mubr.f32.gmra.mrb[38].mxu1 %v286_v25  ;;  %v415_v25 = vld [vmem:[#allocation17 + $0xa0] sm:$0xff] }
 0x284   :  { %773 = vmatprep.mubr.f32.mxu1 %v12487_v1 }
 0x287   :  { %774 = vmatmul.mubr.f32.gmra.mrb[40].mxu1 %v287_v27  ;;  %v416_v27 = vld [vmem:[#allocation17 + $0xa8] sm:$0xff] }
 0x288   :  { %779 = vmatprep.mubr.f32.mxu1 %v12487_v1 }
 0x28b   :  { %780 = vmatmul.mubr.f32.gmra.mrb[42].mxu1 %v288_v28  ;;  %v7100_v28 = vpack.c.bf16 %v416_v27, %v415_v25 }
 0x28c   :  { %785 = vmatprep.mubr.f32.mxu1 %v12487_v1 }
 0x28f   :  { %786 = vmatmul.mubr.f32.gmra.mrb[44].mxu1 %v289_v29 }
 0x290   :  { %791 = vmatprep.mubr.f32.mxu1 %v12487_v1 }
 0x293   :  { %792 = vmatmul.mubr.f32.gmra.mrb[46].mxu1 %v290_v30 }
 0x294   :  { %797 = vmatprep.mubr.f32.mxu1 %v12487_v1 }
 0x297   :  { %798 = vmatmul.mubr.f32.gmra.mrb[48].mxu1 %v291_v31 }
 0x298   :  { %803 = vmatprep.mubr.f32.mxu1 %v12487_v1 }
 0x29b   :  { %804 = vmatmul.mubr.f32.gmra.mrb[50].mxu1 %v292_v32 }
 0x29c   :  { %809 = vmatprep.mubr.f32.mxu1 %v12487_v1 }
 0x29f   :  { %810 = vmatmul.mubr.f32.gmra.mrb[52].mxu1 %v293_v2 }
 0x2a0   :  { %815 = vmatprep.mubr.f32.mxu1 %v12487_v1 }
 0x2a3   :  { %816 = vmatmul.mubr.f32.gmra.mrb[54].mxu1 %v294_v3  ;;  %v417_v3 = vld [vmem:[#allocation17 + $0xb0] sm:$0xff] }
 0x2a4   :  { %821 = vmatprep.mubr.f32.mxu1 %v12487_v1 }
 0x2a7   :  { %822 = vmatmul.mubr.f32.gmra.mrb[56].mxu1 %v295_v4  ;;  %v418_v4 = vld [vmem:[#allocation17 + $0xb8] sm:$0xff] }
 0x2a8   :  { %827 = vmatprep.mubr.f32.mxu1 %v12487_v1 }
 0x2ab   :  { %828 = vmatmul.mubr.f32.gmra.mrb[58].mxu1 %v296_v5  ;;  %v7103_v5 = vpack.c.bf16 %v418_v4, %v417_v3 }
 0x2ac   :  { %833 = vmatprep.mubr.f32.mxu1 %v12487_v1 }
 0x2af   :  { %834 = vmatmul.mubr.f32.gmra.mrb[60].mxu1 %v297_v6 }
 0x2b0   :  { %839 = vmatprep.mubr.f32.mxu1 %v12487_v1 }
 0x2b3   :  { %840 = vmatmul.mubr.f32.gmra.mrb[62].mxu1 %v298_v7 }
 0x2b4   :  { %1606 = vmatprep.mubr.f32.mxu1 %v9224_v41  ;;  %v395_v41 = vld [vmem:[#allocation17] sm:$0xff] }
 0x2b7   :  { %1607 = vmatmul.mubr.f32.vlgmr.msra.gmra.mrb[64].mxu1 %v9227_v33  ;;  %v396_v33 = vld [vmem:[#allocation17 + $0x8] sm:$0xff] }
 0x2b8   :  { %1611 = vmatprep.mubr.f32.mxu1 %v9229_v34  ;;  %v7070_v34 = vpack.c.bf16 %v396_v33, %v395_v41 }
 0x2bb   :  { %1612 = vmatmul.mubr.f32.gmra.mrb[66].mxu1 %v9233_v35  ;;  %v8957_v35 = vmov 0.0|0.0  }
 0x2bc   :  { %1616 = vmatprep.mubr.f32.mxu1 %v9235_v36  ;;  %7069 = vmatprep.subr.bf16.mxu0 %v8957_v35  ;;  %v397_v36 = vld [vmem:[#allocation17 + $0x10] sm:$0xff] }
 0x2bd   :  { %7071 = vmatpush1.bf16.msra.mxu0 %v7070_v34 }
 0x2be   :  { %7072 = vmatprep.subr.bf16.mxu0 %v8957_v35 }
 0x2bf   :  { %1617 = vmatmul.mubr.f32.gmra.mrb[68].mxu1 %v9239_v37  ;;  %v398_v37 = vld [vmem:[#allocation17 + $0x18] sm:$0xff] }
 0x2c0   :  { %1621 = vmatprep.mubr.f32.mxu1 %v9241_v38  ;;  %v7073_v38 = vpack.c.bf16 %v398_v37, %v397_v36  ;;  %v419_v36 = vld [vmem:[#allocation17 + $0xc0] sm:$0xff]  ;;  %v420_v37 = vld [vmem:[#allocation17 + $0xc8] sm:$0xff] }
 0x2c2   :  { %7074 = vmatpush1.bf16.msra.mxu0 %v7073_v38  ;;  %v7106_v38 = vpack.c.bf16 %v420_v37, %v419_v36 }
 0x2c3   :  { %1622 = vmatmul.mubr.f32.gmra.mrb[70].mxu1 %v9245_v39  ;;  %7075 = vmatprep.subr.bf16.mxu0 %v8957_v35  ;;  %v399_v39 = vld [vmem:[#allocation17 + $0x20] sm:$0xff] }
 0x2c4   :  { %1626 = vmatprep.mubr.f32.mxu1 %v9247_v40  ;;  %v400_v40 = vld [vmem:[#allocation17 + $0x28] sm:$0xff] }
 0x2c7   :  { %1627 = vmatmul.mubr.f32.gmra.mrb[72].mxu1 %v9251_v42  ;;  %v7076_v42 = vpack.c.bf16 %v400_v40, %v399_v39 }
 0x2c8   :  { %1631 = vmatprep.mubr.f32.mxu1 %v9253_v43  ;;  %v401_v43 = vld [vmem:[#allocation17 + $0x30] sm:$0xff] }
 0x2c9   :  { %7077 = vmatpush1.bf16.msra.mxu0 %v7076_v42 }
 0x2ca   :  { %7078 = vmatprep.subr.bf16.mxu0 %v8957_v35 }
 0x2cb   :  { %1632 = vmatmul.mubr.f32.gmra.mrb[74].mxu1 %v9257_v44  ;;  %v402_v44 = vld [vmem:[#allocation17 + $0x38] sm:$0xff] }
 0x2cc   :  { %1636 = vmatprep.mubr.f32.mxu1 %v9259_v45  ;;  %v7079_v45 = vpack.c.bf16 %v402_v44, %v401_v43 }
 0x2ce   :  { %7080 = vmatpush1.bf16.msra.mxu0 %v7079_v45  ;;  %v421_v45 = vld [vmem:[#allocation17 + $0xd0] sm:$0xff] }
 0x2cf   :  { %1637 = vmatmul.mubr.f32.gmra.mrb[76].mxu1 %v9263_v46  ;;  %7081 = vmatprep.subr.bf16.mxu0 %v8957_v35  ;;  %v403_v46 = vld [vmem:[#allocation17 + $0x40] sm:$0xff] }
 0x2d0   :  { %1641 = vmatprep.mubr.f32.mxu1 %v9265_v47  ;;  %v404_v47 = vld [vmem:[#allocation17 + $0x48] sm:$0xff] }
 0x2d3   :  { %1642 = vmatmul.mubr.f32.gmra.mrb[78].mxu1 %v9269_v48  ;;  %v7082_v48 = vpack.c.bf16 %v404_v47, %v403_v46  ;;  %v422_v46 = vld [vmem:[#allocation17 + $0xd8] sm:$0xff] }
 0x2d4   :  { %1646 = vmatprep.mubr.f32.mxu1 %v9271_v49  ;;  %v405_v49 = vld [vmem:[#allocation17 + $0x50] sm:$0xff]  ;;  %v7109_v47 = vpack.c.bf16 %v422_v46, %v421_v45 }
 0x2d5   :  { %7083 = vmatpush1.bf16.msra.mxu0 %v7082_v48 }
 0x2d6   :  { %7084 = vmatprep.subr.bf16.mxu0 %v8957_v35 }
 0x2d7   :  { %1647 = vmatmul.mubr.f32.gmra.mrb[80].mxu1 %v9275_v50  ;;  %v406_v50 = vld [vmem:[#allocation17 + $0x58] sm:$0xff] }
 0x2d8   :  { %1651 = vmatprep.mubr.f32.mxu1 %v9277_v51  ;;  %v7085_v51 = vpack.c.bf16 %v406_v50, %v405_v49 }
 0x2da   :  { %7086 = vmatpush1.bf16.msra.mxu0 %v7085_v51 }
 0x2db   :  { %1652 = vmatmul.mubr.f32.gmra.mrb[82].mxu1 %v9281_v52  ;;  %7087 = vmatprep.subr.bf16.mxu0 %v8957_v35  ;;  %v407_v52 = vld [vmem:[#allocation17 + $0x60] sm:$0xff] }
 0x2dc   :  { %1656 = vmatprep.mubr.f32.mxu1 %v9283_v53  ;;  %v408_v53 = vld [vmem:[#allocation17 + $0x68] sm:$0xff] }
 0x2df   :  { %1657 = vmatmul.mubr.f32.gmra.mrb[84].mxu1 %v9287_v54  ;;  %v7088_v54 = vpack.c.bf16 %v408_v53, %v407_v52  ;;  %v423_v53 = vld [vmem:[#allocation17 + $0xe0] sm:$0xff] }
 0x2e0   :  { %1661 = vmatprep.mubr.f32.mxu1 %v9289_v55 }
 0x2e1   :  { %7089 = vmatpush1.bf16.msra.mxu0 %v7088_v54  ;;  %v424_v54 = vld [vmem:[#allocation17 + $0xe8] sm:$0xff] }
 0x2e2   :  { %7090 = vmatprep.subr.bf16.mxu0 %v8957_v35 }
 0x2e3   :  { %1662 = vmatmul.mubr.f32.gmra.mrb[86].mxu1 %v9293_v56 }
 0x2e4   :  { %1666 = vmatprep.mubr.f32.mxu1 %v9295_v57 }
 0x2e7   :  { %1667 = vmatmul.mubr.f32.gmra.mrb[88].mxu1 %v9299_v58 }
 0x2e8   :  { %1671 = vmatprep.mubr.f32.mxu1 %v9301_v59  ;;  %v409_v59 = vld [vmem:[#allocation17 + $0x70] sm:$0xff] }
 0x2eb   :  { %1672 = vmatmul.mubr.f32.gmra.mrb[90].mxu1 %v9305_v60  ;;  %v410_v60 = vld [vmem:[#allocation17 + $0x78] sm:$0xff] }
 0x2ec   :  { %1676 = vmatprep.mubr.f32.mxu1 %v9307_v61  ;;  %v7091_v61 = vpack.c.bf16 %v410_v60, %v409_v59 }
 0x2ee   :  { %7092 = vmatpush1.bf16.msra.mxu0 %v7091_v61 }
 0x2ef   :  { %1677 = vmatmul.mubr.f32.gmra.mrb[92].mxu1 %v9311_v62  ;;  %7093 = vmatprep.subr.bf16.mxu0 %v8957_v35 }
 0x2f0   :  { %1681 = vmatprep.mubr.f32.mxu1 %v9313_v63 }
 0x2f2   :  { %7095 = vmatpush1.bf16.msra.mxu0 %v7094_v11 }
 0x2f3   :  { %1682 = vmatmul.mubr.f32.gmra.mrb[94].mxu1 %v9317_v0  ;;  %7096 = vmatprep.subr.bf16.mxu0 %v8957_v35 }
 0x2f4   :  { %6605 = vmatprep.mubr.f32.mxu1 %v9321_v26 }
 0x2f6   :  { %7098 = vmatpush1.bf16.msra.mxu0 %v7097_v19 }
 0x2f7   :  { %7099 = vmatprep.subr.bf16.mxu0 %v8957_v35 }
 0x2fa   :  { %7101 = vmatpush1.bf16.msra.mxu0 %v7100_v28 }
 0x2fb   :  { %7102 = vmatprep.subr.bf16.mxu0 %v8957_v35 }
 0x2fe   :  { %7104 = vmatpush1.bf16.msra.mxu0 %v7103_v5 }
 0x2ff   :  { %7105 = vmatprep.subr.bf16.mxu0 %v8957_v35 }
 0x302   :  { %7107 = vmatpush1.bf16.msra.mxu0 %v7106_v38 }
 0x303   :  { %7108 = vmatprep.subr.bf16.mxu0 %v8957_v35 }
 0x306   :  { %7110 = vmatpush1.bf16.msra.mxu0 %v7109_v47 }
 0x307   :  { %7111 = vmatprep.subr.bf16.mxu0 %v8957_v35 }
 0x30a   :  { %v9395_v55 = vpop.f32.mrb[0].mxu1 }
 0x30b   :  { %v9397_v56 = vpop.f32.mrb[1].mxu1  ;;  %v846_v57 = vmul.f32 %v9395_v55, %v9395_v55 }
 0x30c   :  { %v847_v58 = vmul.f32 %v9397_v56, %v9397_v56 }
 0x30e   :  { %v9404_v62 = vpop.f32.mrb[2].mxu1  ;;  %v910_v63 = vadd.f32 %v847_v58, %v846_v57  ;;  %v7112_v57 = vpack.c.bf16 %v424_v54, %v423_v53 }
 0x30f   :  { %v9406_v0 = vpop.f32.mrb[3].mxu1  ;;  %v848_v26 = vmul.f32 %v9404_v62, %v9404_v62 }
 0x310   :  { %911 = vadd.xlane.f32.xlu0 %v910_v63  ;;  %v849_v8 = vmul.f32 %v9406_v0, %v9406_v0  ;;  %7113 = vmatpush1.bf16.msra.mxu0 %v7112_v57 }
 0x311   :  { %7114 = vmatprep.subr.bf16.mxu0 %v8957_v35 }
 0x312   :  { %v9413_v12 = vpop.f32.mrb[4].mxu1  ;;  %v913_v13 = vadd.f32 %v849_v8, %v848_v26  ;;  %v425_v26 = vld [vmem:[#allocation17 + $0xf0] sm:$0xff]  ;;  %v426_v8 = vld [vmem:[#allocation17 + $0xf8] sm:$0xff] }
 0x313   :  { %v9415_v14 = vpop.f32.mrb[5].mxu1  ;;  %v850_v15 = vmul.f32 %v9413_v12, %v9413_v12  ;;  %v7115_v9 = vpack.c.bf16 %v426_v8, %v425_v26 }
 0x314   :  { %914 = vadd.xlane.f32.xlu0 %v913_v13  ;;  %v851_v16 = vmul.f32 %v9415_v14, %v9415_v14 }
 0x315   :  { %7116 = vmatpush1.bf16.msra.mxu0 %v7115_v9 }
 0x316   :  { %v9422_v20 = vpop.f32.mrb[6].mxu1  ;;  %v916_v21 = vadd.f32 %v851_v16, %v850_v15 }
 0x317   :  { %v9424_v22 = vpop.f32.mrb[7].mxu1  ;;  %v852_v23 = vmul.f32 %v9422_v20, %v9422_v20 }
 0x318   :  { %917 = vadd.xlane.f32.xlu1 %v916_v21  ;;  %v853_v24 = vmul.f32 %v9424_v22, %v9424_v22 }
 0x31a   :  { %v9431_v29 = vpop.f32.mrb[8].mxu1  ;;  %v919_v30 = vadd.f32 %v853_v24, %v852_v23 }
 0x31b   :  { %v9433_v31 = vpop.f32.mrb[9].mxu1  ;;  %v854_v32 = vmul.f32 %v9431_v29, %v9431_v29 }
 0x31c   :  { %920 = vadd.xlane.f32.xlu1 %v919_v30  ;;  %v855_v2 = vmul.f32 %v9433_v31, %v9433_v31 }
 0x31e   :  { %v9440_v6 = vpop.f32.mrb[10].mxu1  ;;  %v922_v7 = vadd.f32 %v855_v2, %v854_v32 }
 0x31f   :  { %v9442_v41 = vpop.f32.mrb[11].mxu1  ;;  %v856_v33 = vmul.f32 %v9440_v6, %v9440_v6 }
 0x320   :  { %923 = vadd.xlane.f32.xlu0 %v922_v7  ;;  %v857_v34 = vmul.f32 %v9442_v41, %v9442_v41 }
 0x322   :  { %v9449_v39 = vpop.f32.mrb[12].mxu1  ;;  %v925_v40 = vadd.f32 %v857_v34, %v856_v33 }
 0x323   :  { %v9451_v42 = vpop.f32.mrb[13].mxu1  ;;  %v858_v43 = vmul.f32 %v9449_v39, %v9449_v39 }
 0x324   :  { %926 = vadd.xlane.f32.xlu1 %v925_v40  ;;  %v859_v44 = vmul.f32 %v9451_v42, %v9451_v42 }
 0x326   :  { %v9458_v48 = vpop.f32.mrb[14].mxu1  ;;  %v928_v49 = vadd.f32 %v859_v44, %v858_v43 }
 0x327   :  { %v9460_v50 = vpop.f32.mrb[15].mxu1  ;;  %v860_v51 = vmul.f32 %v9458_v48, %v9458_v48 }
 0x328   :  { %929 = vadd.xlane.f32.xlu0 %v928_v49  ;;  %v861_v52 = vmul.f32 %v9460_v50, %v9460_v50 }
 0x32a   :  { %v9467_v58 = vpop.f32.mrb[16].mxu1  ;;  %v931_v59 = vadd.f32 %v861_v52, %v860_v51 }
 0x32b   :  { %v9469_v60 = vpop.f32.mrb[17].mxu1  ;;  %v862_v61 = vmul.f32 %v9467_v58, %v9467_v58 }
 0x32c   :  { %932 = vadd.xlane.f32.xlu1 %v931_v59  ;;  %v863_v63 = vmul.f32 %v9469_v60, %v9469_v60 }
 0x32e   :  { %v9476_v10 = vpop.f32.mrb[18].mxu1  ;;  %v934_v11 = vadd.f32 %v863_v63, %v862_v61 }
 0x32f   :  { %v9478_v13 = vpop.f32.mrb[19].mxu1  ;;  %v864_v15 = vmul.f32 %v9476_v10, %v9476_v10 }
 0x330   :  { %935 = vadd.xlane.f32.xlu0 %v934_v11  ;;  %v865_v16 = vmul.f32 %v9478_v13, %v9478_v13 }
 0x332   :  { %v9484_v17 = vpop.f32.mrb[20].mxu1  ;;  %v937_v18 = vadd.f32 %v865_v16, %v864_v15 }
 0x333   :  { %v9486_v35 = vpop.f32.mrb[21].mxu1  ;;  %v866_v19 = vmul.f32 %v9484_v17, %v9484_v17 }
 0x334   :  { %938 = vadd.xlane.f32.xlu1 %v937_v18  ;;  %v867_v21 = vmul.f32 %v9486_v35, %v9486_v35 }
 0x336   :  { %v9492_v23 = vpop.f32.mrb[22].mxu1  ;;  %v940_v24 = vadd.f32 %v867_v21, %v866_v19 }
 0x337   :  { %v9494_v25 = vpop.f32.mrb[23].mxu1  ;;  %v868_v27 = vmul.f32 %v9492_v23, %v9492_v23 }
 0x338   :  { %941 = vadd.xlane.f32.xlu0 %v940_v24  ;;  %v869_v28 = vmul.f32 %v9494_v25, %v9494_v25 }
 0x33a   :  { %v9500_v30 = vpop.f32.mrb[24].mxu1  ;;  %v943_v32 = vadd.f32 %v869_v28, %v868_v27 }
 0x33b   :  { %v870_v2 = vmul.f32 %v9500_v30, %v9500_v30  ;;  %v9504_v3 = vpop.f32.mrb[25].mxu1 }
 0x33c   :  { %v871_v4 = vmul.f32 %v9504_v3, %v9504_v3  ;;  %944 = vadd.xlane.f32.xlu1 %v943_v32 }
 0x33e   :  { %v9508_v5 = vpop.f32.mrb[26].mxu1  ;;  %v946_v7 = vadd.f32 %v871_v4, %v870_v2 }
 0x33f   :  { %v872_v33 = vmul.f32 %v9508_v5, %v9508_v5  ;;  %v9512_v34 = vpop.f32.mrb[27].mxu1 }
 0x340   :  { %v873_v36 = vmul.f32 %v9512_v34, %v9512_v34  ;;  %947 = vadd.xlane.f32.xlu0 %v946_v7 }
 0x342   :  { %v9516_v37 = vpop.f32.mrb[28].mxu1  ;;  %v949_v38 = vadd.f32 %v873_v36, %v872_v33 }
 0x343   :  { %v874_v40 = vmul.f32 %v9516_v37, %v9516_v37  ;;  %v9520_v43 = vpop.f32.mrb[29].mxu1 }
 0x344   :  { %v875_v44 = vmul.f32 %v9520_v43, %v9520_v43  ;;  %950 = vadd.xlane.f32.xlu1 %v949_v38 }
 0x346   :  { %v9524_v45 = vpop.f32.mrb[30].mxu1  ;;  %v952_v46 = vadd.f32 %v875_v44, %v874_v40 }
 0x347   :  { %v876_v47 = vmul.f32 %v9524_v45, %v9524_v45  ;;  %v9528_v49 = vpop.f32.mrb[31].mxu1 }
 0x348   :  { %v877_v51 = vmul.f32 %v9528_v49, %v9528_v49  ;;  %953 = vadd.xlane.f32.xlu0 %v952_v46 }
 0x34a   :  { %v9532_v52 = vpop.f32.mrb[32].mxu1  ;;  %v955_v53 = vadd.f32 %v877_v51, %v876_v47 }
 0x34b   :  { %v878_v54 = vmul.f32 %v9532_v52, %v9532_v52  ;;  %v9536_v57 = vpop.f32.mrb[33].mxu1 }
 0x34c   :  { %v879_v59 = vmul.f32 %v9536_v57, %v9536_v57  ;;  %956 = vadd.xlane.f32.xlu1 %v955_v53 }
 0x34e   :  { %v9540_v61 = vpop.f32.mrb[34].mxu1  ;;  %v958_v63 = vadd.f32 %v879_v59, %v878_v54 }
 0x34f   :  { %v880_v26 = vmul.f32 %v9540_v61, %v9540_v61  ;;  %v9544_v8 = vpop.f32.mrb[35].mxu1 }
 0x350   :  { %v881_v9 = vmul.f32 %v9544_v8, %v9544_v8  ;;  %959 = vadd.xlane.f32.xlu0 %v958_v63 }
 0x352   :  { %v9548_v11 = vpop.f32.mrb[36].mxu1  ;;  %v961_v15 = vadd.f32 %v881_v9, %v880_v26 }
 0x353   :  { %v882_v16 = vmul.f32 %v9548_v11, %v9548_v11  ;;  %v9552_v18 = vpop.f32.mrb[37].mxu1 }
 0x354   :  { %v883_v19 = vmul.f32 %v9552_v18, %v9552_v18  ;;  %962 = vadd.xlane.f32.xlu1 %v961_v15 }
 0x356   :  { %v9556_v21 = vpop.f32.mrb[38].mxu1  ;;  %v964_v24 = vadd.f32 %v883_v19, %v882_v16 }
 0x357   :  { %v884_v27 = vmul.f32 %v9556_v21, %v9556_v21  ;;  %v9560_v28 = vpop.f32.mrb[39].mxu1 }
 0x358   :  { %v885_v32 = vmul.f32 %v9560_v28, %v9560_v28  ;;  %965 = vadd.xlane.f32.xlu0 %v964_v24 }
 0x35a   :  { %v9564_v2 = vpop.f32.mrb[40].mxu1  ;;  %v967_v4 = vadd.f32 %v885_v32, %v884_v27 }
 0x35b   :  { %v886_v7 = vmul.f32 %v9564_v2, %v9564_v2  ;;  %v9568_v33 = vpop.f32.mrb[41].mxu1 }
 0x35c   :  { %v887_v36 = vmul.f32 %v9568_v33, %v9568_v33  ;;  %968 = vadd.xlane.f32.xlu1 %v967_v4 }
 0x35e   :  { %v9572_v38 = vpop.f32.mrb[42].mxu1  ;;  %v970_v40 = vadd.f32 %v887_v36, %v886_v7 }
 0x35f   :  { %12695 = vst [vmem:[#allocation39_spill] sm:$0xff] %v9572_v38  ;;  %v888_v44 = vmul.f32 %v9572_v38, %v9572_v38  ;;  %v9576_v46 = vpop.f32.mrb[43].mxu1  ;;  %v8150_v38 = vld [vmem:[#allocation14 + $0x18] sm:$0xff] }
 0x360   :  { %v889_v47 = vmul.f32 %v9576_v46, %v9576_v46  ;;  %971 = vadd.xlane.f32.xlu0 %v970_v40 }
 0x362   :  { %v9580_v51 = vpop.f32.mrb[44].mxu1  ;;  %v973_v53 = vadd.f32 %v889_v47, %v888_v44 }
 0x363   :  { %12696 = vst [vmem:[#allocation40_spill] sm:$0xff] %v9580_v51  ;;  %v890_v54 = vmul.f32 %v9580_v51, %v9580_v51  ;;  %v9584_v59 = vpop.f32.mrb[45].mxu1 }
 0x364   :  { %12697 = vst [vmem:[#allocation41_spill] sm:$0xff] %v9584_v59  ;;  %v891_v63 = vmul.f32 %v9584_v59, %v9584_v59  ;;  %974 = vadd.xlane.f32.xlu1 %v973_v53 }
 0x366   :  { %v9588_v26 = vpop.f32.mrb[46].mxu1  ;;  %v976_v9 = vadd.f32 %v891_v63, %v890_v54 }
 0x367   :  { %12698 = vst [vmem:[#allocation42_spill] sm:$0xff] %v9588_v26  ;;  %v892_v15 = vmul.f32 %v9588_v26, %v9588_v26  ;;  %v9592_v16 = vpop.f32.mrb[47].mxu1 }
 0x368   :  { %12699 = vst [vmem:[#allocation43_spill] sm:$0xff] %v9592_v16  ;;  %v893_v19 = vmul.f32 %v9592_v16, %v9592_v16  ;;  %977 = vadd.xlane.f32.xlu0 %v976_v9 }
 0x36a   :  { %v9596_v24 = vpop.f32.mrb[48].mxu1  ;;  %v979_v27 = vadd.f32 %v893_v19, %v892_v15 }
 0x36b   :  { %12700 = vst [vmem:[#allocation44_spill] sm:$0xff] %v9596_v24  ;;  %v894_v32 = vmul.f32 %v9596_v24, %v9596_v24  ;;  %v9600_v4 = vpop.f32.mrb[49].mxu1 }
 0x36c   :  { %12701 = vst [vmem:[#allocation45_spill] sm:$0xff] %v9600_v4  ;;  %v895_v7 = vmul.f32 %v9600_v4, %v9600_v4  ;;  %980 = vadd.xlane.f32.xlu1 %v979_v27 }
 0x36e   :  { %v9604_v36 = vpop.f32.mrb[50].mxu1  ;;  %v982_v40 = vadd.f32 %v895_v7, %v894_v32 }
 0x36f   :  { %12702 = vst [vmem:[#allocation46_spill] sm:$0xff] %v9604_v36  ;;  %v896_v44 = vmul.f32 %v9604_v36, %v9604_v36  ;;  %v9608_v47 = vpop.f32.mrb[51].mxu1 }
 0x370   :  { %12703 = vst [vmem:[#allocation47_spill] sm:$0xff] %v9608_v47  ;;  %v897_v53 = vmul.f32 %v9608_v47, %v9608_v47  ;;  %983 = vadd.xlane.f32.xlu0 %v982_v40 }
 0x372   :  { %v9612_v54 = vpop.f32.mrb[52].mxu1  ;;  %v985_v63 = vadd.f32 %v897_v53, %v896_v44 }
 0x373   :  { %12704 = vst [vmem:[#allocation48_spill] sm:$0xff] %v9612_v54  ;;  %v898_v9 = vmul.f32 %v9612_v54, %v9612_v54  ;;  %v9616_v15 = vpop.f32.mrb[53].mxu1 }
 0x374   :  { %12705 = vst [vmem:[#allocation49_spill] sm:$0xff] %v9616_v15  ;;  %v899_v19 = vmul.f32 %v9616_v15, %v9616_v15  ;;  %986 = vadd.xlane.f32.xlu1 %v985_v63 }
 0x376   :  { %v9620_v27 = vpop.f32.mrb[54].mxu1  ;;  %v988_v32 = vadd.f32 %v899_v19, %v898_v9 }
 0x377   :  { %12706 = vst [vmem:[#allocation50_spill] sm:$0xff] %v9620_v27  ;;  %v900_v7 = vmul.f32 %v9620_v27, %v9620_v27  ;;  %v9624_v1 = vpop.f32.mrb[55].mxu1 }
 0x378   :  { %12707 = vst [vmem:[#allocation51_spill] sm:$0xff] %v9624_v1  ;;  %v901_v40 = vmul.f32 %v9624_v1, %v9624_v1  ;;  %989 = vadd.xlane.f32.xlu0 %v988_v32 }
 0x37a   :  { %v9628_v44 = vpop.f32.mrb[56].mxu1  ;;  %v991_v53 = vadd.f32 %v901_v40, %v900_v7 }
 0x37b   :  { %12708 = vst [vmem:[#allocation52_spill] sm:$0xff] %v9628_v44  ;;  %v902_v54 = vmul.f32 %v9628_v44, %v9628_v44  ;;  %v9632_v15 = vpop.f32.mrb[57].mxu1 }
 0x37c   :  { %12709 = vst [vmem:[#allocation53_spill] sm:$0xff] %v9632_v15  ;;  %v903_v63 = vmul.f32 %v9632_v15, %v9632_v15  ;;  %992 = vadd.xlane.f32.xlu1 %v991_v53 }
 0x37e   :  { %v9636_v9 = vpop.f32.mrb[58].mxu1  ;;  %v994_v19 = vadd.f32 %v903_v63, %v902_v54 }
 0x37f   :  { %12710 = vst [vmem:[#allocation54_spill] sm:$0xff] %v9636_v9  ;;  %v904_v27 = vmul.f32 %v9636_v9, %v9636_v9  ;;  %v9640_v1 = vpop.f32.mrb[59].mxu1 }
 0x380   :  { %12711 = vst [vmem:[#allocation55_spill] sm:$0xff] %v9640_v1  ;;  %v905_v32 = vmul.f32 %v9640_v1, %v9640_v1  ;;  %995 = vadd.xlane.f32.xlu0 %v994_v19 }
 0x382   :  { %v9644_v7 = vpop.f32.mrb[60].mxu1  ;;  %v997_v40 = vadd.f32 %v905_v32, %v904_v27 }
 0x383   :  { %12712 = vst [vmem:[#allocation56_spill] sm:$0xff] %v9644_v7  ;;  %v906_v44 = vmul.f32 %v9644_v7, %v9644_v7  ;;  %v9648_v15 = vpop.f32.mrb[61].mxu1 }
 0x384   :  { %12713 = vst [vmem:[#allocation57_spill] sm:$0xff] %v9648_v15  ;;  %v907_v54 = vmul.f32 %v9648_v15, %v9648_v15  ;;  %998 = vadd.xlane.f32.xlu1 %v997_v40 }
 0x386   :  { %v9652_v53 = vpop.f32.mrb[62].mxu1  ;;  %v1000_v63 = vadd.f32 %v907_v54, %v906_v44 }
 0x387   :  { %12714 = vst [vmem:[#allocation58_spill] sm:$0xff] %v9652_v53  ;;  %v908_v9 = vmul.f32 %v9652_v53, %v9652_v53  ;;  %v9656_v1 = vpop.f32.mrb[63].mxu1 }
 0x388   :  { %12715 = vst [vmem:[#allocation59_spill] sm:$0xff] %v9656_v1  ;;  %v909_v27 = vmul.f32 %v9656_v1, %v9656_v1  ;;  %1001 = vadd.xlane.f32.xlu0 %v1000_v63 }
 0x38a   :  { %v6045_v19 = vpop.f32.mrb[64].mxu1  ;;  %v1003_v32 = vadd.f32 %v909_v27, %v908_v9 }
 0x38b   :  { %v6046_v7 = vpop.f32.mrb[65].mxu1 }
 0x38c   :  { %v6047_v36 = vadd.f32 %v6046_v7, %v6045_v19  ;;  %1004 = vadd.xlane.f32.xlu1 %v1003_v32 }
 0x38e   :  { %v6048_v47 = vpop.f32.mrb[66].mxu1 }
 0x38f   :  { %v6049_v15 = vpop.f32.mrb[67].mxu1 }
 0x390   :  { %v6050_v40 = vadd.f32 %v6049_v15, %v6048_v47 }
 0x392   :  { %v7149_v24 = vpack.c.bf16 %v6050_v40, %v6047_v36  ;;  %v6051_v4 = vpop.f32.mrb[68].mxu1 }
 0x393   :  { %v6052_v44 = vpop.f32.mrb[69].mxu1 }
 0x394   :  { %v6053_v54 = vadd.f32 %v6052_v44, %v6051_v4  ;;  %7150 = vmatprep.subr.bf16.mxu1 %v7149_v24 }
 0x395   :  { %7152 = vmatpush3.bf16.msra.mxu1 %v7149_v24 }
 0x396   :  { %v6054_v53 = vpop.f32.mrb[70].mxu1 }
 0x397   :  { %v6055_v26 = vpop.f32.mrb[71].mxu1 }
 0x398   :  { %v6056_v16 = vadd.f32 %v6055_v26, %v6054_v53 }
 0x39a   :  { %v7153_v51 = vpack.c.bf16 %v6056_v16, %v6053_v54  ;;  %v6057_v1 = vpop.f32.mrb[72].mxu1 }
 0x39b   :  { %v6058_v63 = vpop.f32.mrb[73].mxu1 }
 0x39c   :  { %v6059_v59 = vadd.f32 %v6058_v63, %v6057_v1  ;;  %7154 = vmatprep.subr.bf16.mxu1 %v7153_v51 }
 0x39d   :  { %v912_v9 = vpop.xlane.xlu0 %911  ;;  %7156 = vmatpush3.bf16.msra.mxu1 %v7153_v51 }
 0x39e   :  { %v1006_v7 = vmax.f32 %v912_v9, 1e-24  ;;  %v6060_v27 = vpop.f32.mrb[74].mxu1 }
 0x39f   :  { %v6061_v19 = vpop.f32.mrb[75].mxu1 }
 0x3a0   :  { %7540 = vrsqrt.f32 %v1006_v7  ;;  %v6062_v36 = vadd.f32 %v6061_v19, %v6060_v27 }
 0x3a1   :  { %v915_v47 = vpop.xlane.xlu0 %914 }
 0x3a2   :  { %v7157_v15 = vpack.c.bf16 %v6062_v36, %v6059_v59  ;;  %v1007_v4 = vmax.f32 %v915_v47, 1e-24  ;;  %v6063_v32 = vpop.f32.mrb[76].mxu1 }
 0x3a3   :  { %v6064_v24 = vpop.f32.mrb[77].mxu1 }
 0x3a4   :  { %7542 = vrsqrt.f32 %v1007_v4  ;;  %v6065_v40 = vadd.f32 %v6064_v24, %v6063_v32  ;;  %7158 = vmatprep.subr.bf16.mxu1 %v7157_v15 }
 0x3a5   :  { %v918_v26 = vpop.xlane.xlu1 %917  ;;  %7160 = vmatpush3.bf16.msra.mxu1 %v7157_v15 }
 0x3a6   :  { %v1008_v16 = vmax.f32 %v918_v26, 1e-24  ;;  %v6066_v1 = vpop.f32.mrb[78].mxu1 }
 0x3a7   :  { %v6067_v53 = vpop.f32.mrb[79].mxu1 }
 0x3a8   :  { %7544 = vrsqrt.f32 %v1008_v16  ;;  %v6068_v51 = vadd.f32 %v6067_v53, %v6066_v1  ;;  %v8148_v1 = vld [vmem:[#allocation14 + $0x8] sm:$0xff]  ;;  %v8149_v53 = vld [vmem:[#allocation14] sm:$0xff] }
 0x3a9   :  { %v921_v44 = vpop.xlane.xlu1 %920 }
 0x3aa   :  { %v7541_v54 = vpop.eup %7540  ;;  %v7161_v63 = vpack.c.bf16 %v6068_v51, %v6065_v40  ;;  %v1009_v9 = vmax.f32 %v921_v44, 1e-24  ;;  %v6069_v7 = vpop.f32.mrb[80].mxu1 }
 0x3ab   :  { %v1070_v59 = vmul.f32 %v7541_v54, %v9395_v55  ;;  %v6070_v27 = vpop.f32.mrb[81].mxu1  ;;  %v1071_v19 = vmul.f32 %v7541_v54, %v9397_v56 }
 0x3ac   :  { %7546 = vrsqrt.f32 %v1009_v9  ;;  %v6071_v36 = vadd.f32 %v6070_v27, %v6069_v7  ;;  %7162 = vmatprep.subr.bf16.mxu1 %v7161_v63 }
 0x3ad   :  { %v1134_v47 = vmul.f32 0.1, %v1070_v59  ;;  %v924_v15 = vpop.xlane.xlu0 %923  ;;  %7164 = vmatpush3.bf16.msra.mxu1 %v7161_v63  ;;  %v1135_v4 = vmul.f32 0.1, %v1071_v19 }
 0x3ae   :  { %v7543_v32 = vpop.eup %7542  ;;  %v1010_v24 = vmax.f32 %v924_v15, 1e-24  ;;  %v6072_v26 = vpop.f32.mrb[82].mxu1 }
 0x3af   :  { %v6073_v16 = vpop.f32.mrb[83].mxu1  ;;  %v1199_v40 = vadd.f32 %v8148_v1, %v1135_v4  ;;  %v1198_v51 = vadd.f32 %v8149_v53, %v1134_v47  ;;  %v1073_v55 = vmul.f32 %v7543_v32, %v9406_v0  ;;  %v1072_v44 = vmul.f32 %v7543_v32, %v9404_v62  ;;  %v8151_v1 = vld [vmem:[#allocation14 + $0x10] sm:$0xff] }
 0x3b0   :  { %7548 = vrsqrt.f32 %v1010_v24  ;;  %v6074_v56 = vadd.f32 %v6073_v16, %v6072_v26 }
 0x3b1   :  { %1332 = vmatprep.mubr.f32.mxu0 %v1199_v40  ;;  %v927_v54 = vpop.xlane.xlu1 %926  ;;  %v1137_v9 = vmul.f32 0.1, %v1073_v55  ;;  %v1136_v7 = vmul.f32 0.1, %v1072_v44  ;;  %v8153_v44 = vld [vmem:[#allocation14 + $0x20] sm:$0xff] }
 0x3b2   :  { %v7545_v63 = vpop.eup %7544  ;;  %v7165_v59 = vpack.c.bf16 %v6074_v56, %v6071_v36  ;;  %v1011_v27 = vmax.f32 %v927_v54, 1e-24  ;;  %1333 = vmatmul.mubr.f32.vlgmr.msra.gmra.mrb[32].mxu0 %v1198_v51  ;;  %v6075_v19 = vpop.f32.mrb[84].mxu1 }
 0x3b3   :  { %v6076_v15 = vpop.f32.mrb[85].mxu1  ;;  %v1201_v4 = vadd.f32 %v8150_v38, %v1137_v9  ;;  %v1200_v47 = vadd.f32 %v8151_v1, %v1136_v7  ;;  %v1075_v0 = vmul.f32 %v7545_v63, %v9415_v14  ;;  %v1074_v62 = vmul.f32 %v7545_v63, %v9413_v12  ;;  %v8152_v38 = vld [vmem:[#allocation14 + $0x28] sm:$0xff]  ;;  %v8154_v1 = vld [vmem:[#allocation14 + $0x38] sm:$0xff] }
 0x3b4   :  { %7550 = vrsqrt.f32 %v1011_v27  ;;  %v6077_v32 = vadd.f32 %v6076_v15, %v6075_v19  ;;  %7166 = vmatprep.subr.bf16.mxu1 %v7165_v59 }
 0x3b5   :  { %1337 = vmatprep.mubr.f32.mxu0 %v1201_v4  ;;  %v930_v24 = vpop.xlane.xlu0 %929  ;;  %7168 = vmatpush3.bf16.msra.mxu1 %v7165_v59  ;;  %v1139_v26 = vmul.f32 0.1, %v1075_v0  ;;  %v1138_v36 = vmul.f32 0.1, %v1074_v62  ;;  %v8155_v0 = vld [vmem:[#allocation14 + $0x30] sm:$0xff] }
 0x3b6   :  { %v7547_v16 = vpop.eup %7546  ;;  %v1012_v40 = vmax.f32 %v930_v24, 1e-24  ;;  %1338 = vmatmul.mubr.f32.gmra.mrb[34].mxu0 %v1200_v47  ;;  %v6078_v53 = vpop.f32.mrb[86].mxu1 }
 0x3b7   :  { %v6079_v51 = vpop.f32.mrb[87].mxu1  ;;  %v1203_v55 = vadd.f32 %v8152_v38, %v1139_v26  ;;  %v1202_v56 = vadd.f32 %v8153_v44, %v1138_v36  ;;  %v1077_v14 = vmul.f32 %v7547_v16, %v9424_v22  ;;  %v1076_v12 = vmul.f32 %v7547_v16, %v9422_v20  ;;  %v8156_v38 = vld [vmem:[#allocation14 + $0x48] sm:$0xff]  ;;  %v8157_v44 = vld [vmem:[#allocation14 + $0x40] sm:$0xff] }
 0x3b8   :  { %7552 = vrsqrt.f32 %v1012_v40  ;;  %v6080_v54 = vadd.f32 %v6079_v51, %v6078_v53 }
 0x3b9   :  { %1342 = vmatprep.mubr.f32.mxu0 %v1203_v55  ;;  %v933_v9 = vpop.xlane.xlu1 %932  ;;  %v1141_v7 = vmul.f32 0.1, %v1077_v14  ;;  %v1140_v63 = vmul.f32 0.1, %v1076_v12 }
 0x3ba   :  { %v7549_v59 = vpop.eup %7548  ;;  %v7169_v27 = vpack.c.bf16 %v6080_v54, %v6077_v32  ;;  %v1013_v19 = vmax.f32 %v933_v9, 1e-24  ;;  %1343 = vmatmul.mubr.f32.gmra.mrb[36].mxu0 %v1202_v56  ;;  %v6081_v15 = vpop.f32.mrb[88].mxu1 }
 0x3bb   :  { %v6082_v4 = vpop.f32.mrb[89].mxu1  ;;  %v1205_v47 = vadd.f32 %v8154_v1, %v1141_v7  ;;  %v1204_v62 = vadd.f32 %v8155_v0, %v1140_v63  ;;  %v1079_v22 = vmul.f32 %v7549_v59, %v9433_v31  ;;  %v1078_v20 = vmul.f32 %v7549_v59, %v9431_v29  ;;  %v8159_v1 = vld [vmem:[#allocation14 + $0x50] sm:$0xff] }
 0x3bc   :  { %7554 = vrsqrt.f32 %v1013_v19  ;;  %v6083_v24 = vadd.f32 %v6082_v4, %v6081_v15  ;;  %7170 = vmatprep.subr.bf16.mxu1 %v7169_v27  ;;  %v8158_v15 = vld [vmem:[#allocation14 + $0x58] sm:$0xff] }
 0x3bd   :  { %1347 = vmatprep.mubr.f32.mxu0 %v1205_v47  ;;  %v936_v26 = vpop.xlane.xlu0 %935  ;;  %7172 = vmatpush3.bf16.msra.mxu1 %v7169_v27  ;;  %v1143_v36 = vmul.f32 0.1, %v1079_v22  ;;  %v1142_v32 = vmul.f32 0.1, %v1078_v20 }
 0x3be   :  { %v7551_v16 = vpop.eup %7550  ;;  %v1014_v40 = vmax.f32 %v936_v26, 1e-24  ;;  %1348 = vmatmul.mubr.f32.gmra.mrb[38].mxu0 %v1204_v62  ;;  %v6084_v53 = vpop.f32.mrb[90].mxu1 }
 0x3bf   :  { %v6085_v51 = vpop.f32.mrb[91].mxu1  ;;  %v1207_v55 = vadd.f32 %v8156_v38, %v1143_v36  ;;  %v1206_v56 = vadd.f32 %v8157_v44, %v1142_v32  ;;  %v1081_v31 = vmul.f32 %v7551_v16, %v9442_v41  ;;  %v1080_v29 = vmul.f32 %v7551_v16, %v9440_v6  ;;  %v8160_v16 = vld [vmem:[#allocation14 + $0x68] sm:$0xff] }
 0x3c0   :  { %7556 = vrsqrt.f32 %v1014_v40  ;;  %v6086_v14 = vadd.f32 %v6085_v51, %v6084_v53  ;;  %v8161_v53 = vld [vmem:[#allocation14 + $0x60] sm:$0xff] }
 0x3c1   :  { %1352 = vmatprep.mubr.f32.mxu0 %v1207_v55  ;;  %v939_v12 = vpop.xlane.xlu1 %938  ;;  %v1145_v54 = vmul.f32 0.1, %v1081_v31  ;;  %v1144_v9 = vmul.f32 0.1, %v1080_v29 }
 0x3c2   :  { %v7553_v7 = vpop.eup %7552  ;;  %v7173_v63 = vpack.c.bf16 %v6086_v14, %v6083_v24  ;;  %v1015_v59 = vmax.f32 %v939_v12, 1e-24  ;;  %1353 = vmatmul.mubr.f32.gmra.mrb[40].mxu0 %v1206_v56  ;;  %v6087_v27 = vpop.f32.mrb[92].mxu1  ;;  %v8162_v12 = vld [vmem:[#allocation14 + $0x78] sm:$0xff] }
 0x3c3   :  { %v6088_v19 = vpop.f32.mrb[93].mxu1  ;;  %v1209_v4 = vadd.f32 %v8158_v15, %v1145_v54  ;;  %v1208_v47 = vadd.f32 %v8159_v1, %v1144_v9  ;;  %v1083_v41 = vmul.f32 %v7553_v7, %v9451_v42  ;;  %v1082_v6 = vmul.f32 %v7553_v7, %v9449_v39  ;;  %v8163_v9 = vld [vmem:[#allocation14 + $0x70] sm:$0xff] }
 0x3c4   :  { %7558 = vrsqrt.f32 %v1015_v59  ;;  %v6089_v0 = vadd.f32 %v6088_v19, %v6087_v27  ;;  %7174 = vmatprep.subr.bf16.mxu1 %v7173_v63 }
 0x3c5   :  { %1357 = vmatprep.mubr.f32.mxu0 %v1209_v4  ;;  %v942_v62 = vpop.xlane.xlu0 %941  ;;  %7176 = vmatpush3.bf16.msra.mxu1 %v7173_v63  ;;  %v1147_v22 = vmul.f32 0.1, %v1083_v41  ;;  %v1146_v20 = vmul.f32 0.1, %v1082_v6  ;;  %v8164_v4 = vld [vmem:[#allocation14 + $0x88] sm:$0xff] }
 0x3c6   :  { %v7555_v24 = vpop.eup %7554  ;;  %v1016_v26 = vmax.f32 %v942_v62, 1e-24  ;;  %1358 = vmatmul.mubr.f32.gmra.mrb[42].mxu0 %v1208_v47  ;;  %v6090_v36 = vpop.f32.mrb[94].mxu1  ;;  %v8165_v47 = vld [vmem:[#allocation14 + $0x80] sm:$0xff]  ;;  %v8167_v62 = vld [vmem:[#allocation8 + $0x10] sm:$0xff] }
 0x3c7   :  { %v6091_v32 = vpop.f32.mrb[95].mxu1  ;;  %v1211_v40 = vadd.f32 %v8160_v16, %v1147_v22  ;;  %v1210_v51 = vadd.f32 %v8161_v53, %v1146_v20  ;;  %v1085_v42 = vmul.f32 %v7555_v24, %v9460_v50  ;;  %v1084_v39 = vmul.f32 %v7555_v24, %v9458_v48  ;;  %v8169_v16 = vld [vmem:[#allocation14 + $0x90] sm:$0xff]  ;;  %v8170_v53 = vld [vmem:[#allocation8 + $0x18] sm:$0xff] }
 0x3c8   :  { %7560 = vrsqrt.f32 %v1016_v26  ;;  %v6092_v38 = vadd.f32 %v6091_v32, %v6090_v36  ;;  %v8168_v36 = vld [vmem:[#allocation14 + $0x98] sm:$0xff] }
 0x3c9   :  { %1362 = vmatprep.mubr.f32.mxu0 %v1211_v40  ;;  %v945_v55 = vpop.xlane.xlu1 %944  ;;  %v1149_v44 = vmul.f32 0.1, %v1085_v42  ;;  %v1148_v56 = vmul.f32 0.1, %v1084_v39  ;;  %v8171_v42 = vld [vmem:[#allocation8 + $0x20] sm:$0xff] }
 0x3ca   :  { %v7557_v31 = vpop.eup %7556  ;;  %v7177_v29 = vpack.c.bf16 %v6092_v38, %v6089_v0  ;;  %v1017_v14 = vmax.f32 %v945_v55, 1e-24  ;;  %1363 = vmatmul.mubr.f32.gmra.mrb[44].mxu0 %v1210_v51 }
 0x3cb   :  { %v1213_v54 = vadd.f32 %v8162_v12, %v1149_v44  ;;  %v1212_v7 = vadd.f32 %v8163_v9, %v1148_v56  ;;  %v1087_v63 = vmul.f32 %v7557_v31, %v9469_v60  ;;  %v1086_v50 = vmul.f32 %v7557_v31, %v9467_v58  ;;  %v8166_v58 = vld [vmem:[#allocation8 + $0x8] sm:$0xff]  ;;  %v8175_v9 = vld [vmem:[#allocation8 + $0x30] sm:$0xff] }
 0x3cc   :  { %7562 = vrsqrt.f32 %v1017_v14  ;;  %7178 = vmatprep.subr.bf16.mxu1 %v7177_v29  ;;  %v8172_v56 = vld [vmem:[#allocation14 + $0xa8] sm:$0xff] }
 0x3cd   :  { %1367 = vmatprep.mubr.f32.mxu0 %v1213_v54  ;;  %v948_v48 = vpop.xlane.xlu0 %947  ;;  %7180 = vmatpush3.bf16.msra.mxu1 %v7177_v29  ;;  %v1151_v59 = vmul.f32 0.1, %v1087_v63  ;;  %v1150_v27 = vmul.f32 0.1, %v1086_v50  ;;  %v8173_v29 = vld [vmem:[#allocation14 + $0xa0] sm:$0xff]  ;;  %v8174_v12 = vld [vmem:[#allocation8 + $0x28] sm:$0xff] }
 0x3ce   :  { %v7559_v19 = vpop.eup %7558  ;;  %v1018_v15 = vmax.f32 %v948_v48, 1e-24  ;;  %1368 = vmatmul.mubr.f32.gmra.mrb[46].mxu0 %v1212_v7 }
 0x3cf   :  { %v1215_v1 = vadd.f32 %v8164_v4, %v1151_v59  ;;  %v1214_v41 = vadd.f32 %v8165_v47, %v1150_v27  ;;  %v1089_v6 = vmul.f32 %v7559_v19, %v9478_v13  ;;  %v1088_v60 = vmul.f32 %v7559_v19, %v9476_v10  ;;  %v8176_v59 = vld [vmem:[#allocation14 + $0xb8] sm:$0xff]  ;;  %v8177_v19 = vld [vmem:[#allocation14 + $0xb0] sm:$0xff]  ;;  %v8179_v47 = vld [vmem:[#allocation8 + $0x40] sm:$0xff] }
 0x3d0   :  { %7564 = vrsqrt.f32 %v1018_v15  ;;  %6606 = vmatmul.mubr.f32.vlgmr.msra.gmra.mrb[96].mxu1 %v8166_v58  ;;  %v8178_v4 = vld [vmem:[#allocation8 + $0x38] sm:$0xff] }
 0x3d1   :  { %1372 = vmatprep.mubr.f32.mxu0 %v1215_v1  ;;  %v951_v0 = vpop.xlane.xlu1 %950  ;;  %6608 = vmatprep.mubr.f32.mxu1 %v8167_v62  ;;  %v1153_v22 = vmul.f32 0.1, %v1089_v6  ;;  %v1152_v20 = vmul.f32 0.1, %v1088_v60 }
 0x3d2   :  { %v7561_v24 = vpop.eup %7560  ;;  %v1019_v26 = vmax.f32 %v951_v0, 1e-24  ;;  %1373 = vmatmul.mubr.f32.gmra.mrb[48].mxu0 %v1214_v41  ;;  %v8180_v0 = vld [vmem:[#allocation14 + $0xc8] sm:$0xff] }
 0x3d3   :  { %v1217_v32 = vadd.f32 %v8168_v36, %v1153_v22  ;;  %v1216_v40 = vadd.f32 %v8169_v16, %v1152_v20  ;;  %v1091_v13 = vmul.f32 %v7561_v24, %v9486_v35  ;;  %v1090_v10 = vmul.f32 %v7561_v24, %v9484_v17  ;;  %v8181_v22 = vld [vmem:[#allocation14 + $0xc0] sm:$0xff]  ;;  %v8182_v24 = vld [vmem:[#allocation8 + $0x48] sm:$0xff]  ;;  %v8183_v36 = vld [vmem:[#allocation8 + $0x50] sm:$0xff] }
 0x3d4   :  { %7566 = vrsqrt.f32 %v1019_v26  ;;  %6609 = vmatmul.mubr.f32.gmra.mrb[98].mxu1 %v8170_v53 }
 0x3d5   :  { %1377 = vmatprep.mubr.f32.mxu0 %v1217_v32  ;;  %v954_v51 = vpop.xlane.xlu0 %953  ;;  %6611 = vmatprep.mubr.f32.mxu1 %v8171_v42  ;;  %v1155_v39 = vmul.f32 0.1, %v1091_v13  ;;  %v1154_v38 = vmul.f32 0.1, %v1090_v10  ;;  %v8184_v10 = vld [vmem:[#allocation14 + $0xd8] sm:$0xff] }
 0x3d6   :  { %v7563_v55 = vpop.eup %7562  ;;  %v1020_v44 = vmax.f32 %v954_v51, 1e-24  ;;  %1378 = vmatmul.mubr.f32.gmra.mrb[50].mxu0 %v1216_v40  ;;  %v8185_v51 = vld [vmem:[#allocation14 + $0xd0] sm:$0xff] }
 0x3d7   :  { %v1219_v31 = vadd.f32 %v8172_v56, %v1155_v39  ;;  %v1218_v14 = vadd.f32 %v8173_v29, %v1154_v38  ;;  %v1093_v35 = vmul.f32 %v7563_v55, %v9494_v25  ;;  %v1092_v17 = vmul.f32 %v7563_v55, %v9492_v23  ;;  %v8186_v39 = vld [vmem:[#allocation8 + $0x58] sm:$0xff]  ;;  %v8187_v55 = vld [vmem:[#allocation8 + $0x60] sm:$0xff] }
 0x3d8   :  { %7568 = vrsqrt.f32 %v1020_v44  ;;  %6612 = vmatmul.mubr.f32.gmra.mrb[100].mxu1 %v8174_v12 }
 0x3d9   :  { %1382 = vmatprep.mubr.f32.mxu0 %v1219_v31  ;;  %v957_v54 = vpop.xlane.xlu1 %956  ;;  %6614 = vmatprep.mubr.f32.mxu1 %v8175_v9  ;;  %v1157_v7 = vmul.f32 0.1, %v1093_v35  ;;  %v1156_v63 = vmul.f32 0.1, %v1092_v17  ;;  %v8189_v17 = vld [vmem:[#allocation14 + $0xe0] sm:$0xff] }
 0x3da   :  { %v7565_v50 = vpop.eup %7564  ;;  %v1021_v48 = vmax.f32 %v957_v54, 1e-24  ;;  %1383 = vmatmul.mubr.f32.gmra.mrb[52].mxu0 %v1218_v14  ;;  %v8188_v14 = vld [vmem:[#allocation14 + $0xe8] sm:$0xff] }
 0x3db   :  { %v1221_v27 = vadd.f32 %v8176_v59, %v1157_v7  ;;  %v1220_v15 = vadd.f32 %v8177_v19, %v1156_v63  ;;  %v1095_v25 = vmul.f32 %v7565_v50, %v9504_v3  ;;  %v1094_v23 = vmul.f32 %v7565_v50, %v9500_v30  ;;  %v8190_v54 = vld [vmem:[#allocation8 + $0x68] sm:$0xff]  ;;  %v8191_v7 = vld [vmem:[#allocation8 + $0x70] sm:$0xff] }
 0x3dc   :  { %7570 = vrsqrt.f32 %v1021_v48  ;;  %6615 = vmatmul.mubr.f32.gmra.mrb[102].mxu1 %v8178_v4 }
 0x3dd   :  { %1387 = vmatprep.mubr.f32.mxu0 %v1221_v27  ;;  %v960_v1 = vpop.xlane.xlu0 %959  ;;  %6617 = vmatprep.mubr.f32.mxu1 %v8179_v47  ;;  %v1159_v41 = vmul.f32 0.1, %v1095_v25  ;;  %v1158_v6 = vmul.f32 0.1, %v1094_v23  ;;  %v8192_v27 = vld [vmem:[#allocation14 + $0xf8] sm:$0xff] }
 0x3de   :  { %v7567_v60 = vpop.eup %7566  ;;  %v1022_v58 = vmax.f32 %v960_v1, 1e-24  ;;  %1388 = vmatmul.mubr.f32.gmra.mrb[54].mxu0 %v1220_v15  ;;  %v8193_v15 = vld [vmem:[#allocation14 + $0xf0] sm:$0xff]  ;;  %v8194_v23 = vld [vmem:[#allocation8 + $0x78] sm:$0xff]  ;;  %v9694_v1 = vld [vmem:[#allocation8 + $0x80] sm:$0xff] }
 0x3df   :  { %v1223_v62 = vadd.f32 %v8180_v0, %v1159_v41  ;;  %v1222_v20 = vadd.f32 %v8181_v22, %v1158_v6  ;;  %v1097_v3 = vmul.f32 %v7567_v60, %v9512_v34  ;;  %v1096_v30 = vmul.f32 %v7567_v60, %v9508_v5 }
 0x3e0   :  { %7572 = vrsqrt.f32 %v1022_v58  ;;  %6618 = vmatmul.mubr.f32.gmra.mrb[104].mxu1 %v8182_v24  ;;  %v8196_v58 = vld [vmem:[#allocation14 + $0x108] sm:$0xff] }
 0x3e1   :  { %1392 = vmatprep.mubr.f32.mxu0 %v1223_v62  ;;  %v963_v26 = vpop.xlane.xlu1 %962  ;;  %6620 = vmatprep.mubr.f32.mxu1 %v8183_v36  ;;  %v1161_v32 = vmul.f32 0.1, %v1097_v3  ;;  %v1160_v16 = vmul.f32 0.1, %v1096_v30  ;;  %v8197_v62 = vld [vmem:[#allocation14 + $0x100] sm:$0xff]  ;;  %v9702_v30 = vld [vmem:[#allocation8 + $0x90] sm:$0xff] }
 0x3e2   :  { %v7569_v40 = vpop.eup %7568  ;;  %v1023_v13 = vmax.f32 %v963_v26, 1e-24  ;;  %1393 = vmatmul.mubr.f32.gmra.mrb[56].mxu0 %v1222_v20  ;;  %v9699_v20 = vld [vmem:[#allocation8 + $0x88] sm:$0xff] }
 0x3e3   :  { %v1225_v53 = vadd.f32 %v8184_v10, %v1161_v32  ;;  %v1224_v42 = vadd.f32 %v8185_v51, %v1160_v16  ;;  %v1099_v34 = vmul.f32 %v7569_v40, %v9520_v43  ;;  %v1098_v5 = vmul.f32 %v7569_v40, %v9516_v37  ;;  %v8200_v16 = vld [vmem:[#allocation14 + $0x118] sm:$0xff]  ;;  %v8201_v40 = vld [vmem:[#allocation14 + $0x110] sm:$0xff] }
 0x3e4   :  { %7574 = vrsqrt.f32 %v1023_v13  ;;  %6621 = vmatmul.mubr.f32.gmra.mrb[106].mxu1 %v8186_v39 }
 0x3e5   :  { %1397 = vmatprep.mubr.f32.mxu0 %v1225_v53  ;;  %v966_v38 = vpop.xlane.xlu0 %965  ;;  %6623 = vmatprep.mubr.f32.mxu1 %v8187_v55  ;;  %v1163_v44 = vmul.f32 0.1, %v1099_v34  ;;  %v1162_v56 = vmul.f32 0.1, %v1098_v5  ;;  %v9707_v53 = vld [vmem:[#allocation8 + $0x98] sm:$0xff]  ;;  %v8204_v55 = vld [vmem:[#allocation14 + $0x128] sm:$0xff] }
 0x3e6   :  { %v7571_v31 = vpop.eup %7570  ;;  %v1024_v29 = vmax.f32 %v966_v38, 1e-24  ;;  %1398 = vmatmul.mubr.f32.gmra.mrb[58].mxu0 %v1224_v42  ;;  %v9710_v42 = vld [vmem:[#allocation8 + $0xa0] sm:$0xff] }
 0x3e7   :  { %v1227_v35 = vadd.f32 %v8188_v14, %v1163_v44  ;;  %v1226_v12 = vadd.f32 %v8189_v17, %v1162_v56  ;;  %v1101_v43 = vmul.f32 %v7571_v31, %v9528_v49  ;;  %v1100_v37 = vmul.f32 %v7571_v31, %v9524_v45  ;;  %v8205_v44 = vld [vmem:[#allocation14 + $0x120] sm:$0xff] }
 0x3e8   :  { %7576 = vrsqrt.f32 %v1024_v29  ;;  %6624 = vmatmul.mubr.f32.gmra.mrb[108].mxu1 %v8190_v54  ;;  %v9715_v29 = vld [vmem:[#allocation8 + $0xa8] sm:$0xff]  ;;  %v8208_v54 = vld [vmem:[#allocation14 + $0x138] sm:$0xff] }
 0x3e9   :  { %1402 = vmatprep.mubr.f32.mxu0 %v1227_v35  ;;  %v969_v9 = vpop.xlane.xlu1 %968  ;;  %6626 = vmatprep.mubr.f32.mxu1 %v8191_v7  ;;  %v1165_v63 = vmul.f32 0.1, %v1101_v43  ;;  %v1164_v50 = vmul.f32 0.1, %v1100_v37  ;;  %v9718_v35 = vld [vmem:[#allocation8 + $0xb0] sm:$0xff] }
 0x3ea   :  { %v7573_v48 = vpop.eup %7572  ;;  %v1025_v59 = vmax.f32 %v969_v9, 1e-24  ;;  %1403 = vmatmul.mubr.f32.gmra.mrb[60].mxu0 %v1226_v12  ;;  %v8209_v9 = vld [vmem:[#allocation14 + $0x130] sm:$0xff] }
 0x3eb   :  { %v1229_v19 = vadd.f32 %v8192_v27, %v1165_v63  ;;  %v1228_v25 = vadd.f32 %v8193_v15, %v1164_v50  ;;  %v1103_v49 = vmul.f32 %v7573_v48, %v9536_v57  ;;  %v1102_v45 = vmul.f32 %v7573_v48, %v9532_v52  ;;  %v9723_v50 = vld [vmem:[#allocation8 + $0xb8] sm:$0xff] }
 0x3ec   :  { %7578 = vrsqrt.f32 %v1025_v59  ;;  %6627 = vmatmul.mubr.f32.gmra.mrb[110].mxu1 %v8194_v23  ;;  %v9726_v59 = vld [vmem:[#allocation8 + $0xc0] sm:$0xff] }
 0x3ed   :  { %1407 = vmatprep.mubr.f32.mxu0 %v1229_v19  ;;  %v972_v4 = vpop.xlane.xlu0 %971  ;;  %6629 = vmatprep.mubr.f32.mxu1 %v9694_v1  ;;  %v1167_v47 = vmul.f32 0.1, %v1103_v49  ;;  %v1166_v41 = vmul.f32 0.1, %v1102_v45  ;;  %v8212_v49 = vld [vmem:[#allocation14 + $0x148] sm:$0xff]  ;;  %v8213_v45 = vld [vmem:[#allocation14 + $0x140] sm:$0xff] }
 0x3ee   :  { %v7575_v6 = vpop.eup %7574  ;;  %v1026_v60 = vmax.f32 %v972_v4, 1e-24  ;;  %1408 = vmatmul.mubr.f32.gmra.mrb[62].mxu0 %v1228_v25  ;;  %v12716_v4 = vld [vmem:[#allocation39_spill] sm:$0xff] }
 0x3ef   :  { %v1231_v0 = vadd.f32 %v8196_v58, %v1167_v47  ;;  %v1230_v57 = vadd.f32 %v8197_v62, %v1166_v41  ;;  %v1105_v52 = vmul.f32 %v7575_v6, %v9544_v8  ;;  %v1104_v22 = vmul.f32 %v7575_v6, %v9540_v61  ;;  %v9731_v41 = vld [vmem:[#allocation8 + $0xc8] sm:$0xff] }
 0x3f0   :  { %7580 = vrsqrt.f32 %v1026_v60  ;;  %6630 = vmatmul.mubr.f32.gmra.mrb[112].mxu1 %v9699_v20  ;;  %v9734_v60 = vld [vmem:[#allocation8 + $0xd0] sm:$0xff] }
 0x3f1   :  { %1412 = vmatprep.mubr.f32.mxu0 %v1231_v0  ;;  %v975_v3 = vpop.xlane.xlu1 %974  ;;  %6632 = vmatprep.mubr.f32.mxu1 %v9702_v30  ;;  %v1169_v24 = vmul.f32 0.1, %v1105_v52  ;;  %v1168_v26 = vmul.f32 0.1, %v1104_v22  ;;  %v8216_v52 = vld [vmem:[#allocation14 + $0x158] sm:$0xff]  ;;  %v8217_v22 = vld [vmem:[#allocation14 + $0x150] sm:$0xff] }
 0x3f2   :  { %v7577_v36 = vpop.eup %7576  ;;  %v1027_v32 = vmax.f32 %v975_v3, 1e-24  ;;  %1413 = vmatmul.mubr.f32.gmra.mrb[64].mxu0 %v1230_v57 }
 0x3f3   :  { %v1233_v8 = vadd.f32 %v8200_v16, %v1169_v24  ;;  %v1232_v61 = vadd.f32 %v8201_v40, %v1168_v26  ;;  %v1107_v13 = vmul.f32 %v7577_v36, %v9552_v18  ;;  %v1106_v10 = vmul.f32 %v7577_v36, %v9548_v11  ;;  %v12717_v24 = vld [vmem:[#allocation41_spill] sm:$0xff]  ;;  %v12718_v36 = vld [vmem:[#allocation40_spill] sm:$0xff]  ;;  %v9739_v16 = vld [vmem:[#allocation8 + $0xd8] sm:$0xff] }
 0x3f4   :  { %7582 = vrsqrt.f32 %v1027_v32  ;;  %6633 = vmatmul.mubr.f32.gmra.mrb[114].mxu1 %v9707_v53  ;;  %v9742_v40 = vld [vmem:[#allocation8 + $0xe0] sm:$0xff] }
 0x3f5   :  { %1417 = vmatprep.mubr.f32.mxu0 %v1233_v8  ;;  %v978_v51 = vpop.xlane.xlu0 %977  ;;  %6635 = vmatprep.mubr.f32.mxu1 %v9710_v42  ;;  %v1171_v34 = vmul.f32 0.1, %v1107_v13  ;;  %v1170_v5 = vmul.f32 0.1, %v1106_v10 }
 0x3f6   :  { %v7579_v39 = vpop.eup %7578  ;;  %v1028_v38 = vmax.f32 %v978_v51, 1e-24  ;;  %1418 = vmatmul.mubr.f32.gmra.mrb[66].mxu0 %v1232_v61 }
 0x3f7   :  { %v1235_v18 = vadd.f32 %v8204_v55, %v1171_v34  ;;  %v1234_v11 = vadd.f32 %v8205_v44, %v1170_v5  ;;  %v1109_v56 = vmul.f32 %v7579_v39, %v9560_v28  ;;  %v1108_v31 = vmul.f32 %v7579_v39, %v9556_v21  ;;  %v8220_v34 = vld [vmem:[#allocation14 + $0x168] sm:$0xff]  ;;  %v8221_v39 = vld [vmem:[#allocation14 + $0x160] sm:$0xff]  ;;  %v12720_v44 = vld [vmem:[#allocation42_spill] sm:$0xff] }
 0x3f8   :  { %7584 = vrsqrt.f32 %v1028_v38  ;;  %6636 = vmatmul.mubr.f32.gmra.mrb[116].mxu1 %v9715_v29  ;;  %v12719_v55 = vld [vmem:[#allocation43_spill] sm:$0xff] }
 0x3f9   :  { %1422 = vmatprep.mubr.f32.mxu0 %v1235_v18  ;;  %v981_v14 = vpop.xlane.xlu1 %980  ;;  %6638 = vmatprep.mubr.f32.mxu1 %v9718_v35  ;;  %v1173_v17 = vmul.f32 0.1, %v1109_v56  ;;  %v1172_v12 = vmul.f32 0.1, %v1108_v31  ;;  %v9747_v56 = vld [vmem:[#allocation8 + $0xe8] sm:$0xff] }
 0x3fa   :  { %v7581_v43 = vpop.eup %7580  ;;  %v1029_v37 = vmax.f32 %v981_v14, 1e-24  ;;  %1423 = vmatmul.mubr.f32.gmra.mrb[68].mxu0 %v1234_v11  ;;  %v9750_v14 = vld [vmem:[#allocation8 + $0xf0] sm:$0xff] }
 0x3fb   :  { %v1237_v28 = vadd.f32 %v8208_v54, %v1173_v17  ;;  %v1236_v21 = vadd.f32 %v8209_v9, %v1172_v12  ;;  %v1111_v7 = vmul.f32 %v7581_v43, %v9568_v33  ;;  %v1110_v63 = vmul.f32 %v7581_v43, %v9564_v2  ;;  %v8224_v54 = vld [vmem:[#allocation14 + $0x178] sm:$0xff]  ;;  %v8225_v9 = vld [vmem:[#allocation14 + $0x170] sm:$0xff] }
 0x3fc   :  { %7586 = vrsqrt.f32 %v1029_v37  ;;  %6639 = vmatmul.mubr.f32.gmra.mrb[118].mxu1 %v9723_v50 }
 0x3fd   :  { %1427 = vmatprep.mubr.f32.mxu0 %v1237_v28  ;;  %v984_v48 = vpop.xlane.xlu0 %983  ;;  %6641 = vmatprep.mubr.f32.mxu1 %v9726_v59  ;;  %v1175_v27 = vmul.f32 0.1, %v1111_v7  ;;  %v1174_v19 = vmul.f32 0.1, %v1110_v63  ;;  %v12721_v7 = vld [vmem:[#allocation45_spill] sm:$0xff] }
 0x3fe   :  { %v7583_v15 = vpop.eup %7582  ;;  %v1030_v25 = vmax.f32 %v984_v48, 1e-24  ;;  %1428 = vmatmul.mubr.f32.gmra.mrb[70].mxu0 %v1236_v21  ;;  %v12722_v48 = vld [vmem:[#allocation44_spill] sm:$0xff] }
 0x3ff   :  { %v1239_v33 = vadd.f32 %v8212_v49, %v1175_v27  ;;  %v1238_v2 = vadd.f32 %v8213_v45, %v1174_v19  ;;  %v1113_v23 = vmul.f32 %v7583_v15, %v9576_v46  ;;  %v1112_v47 = vmul.f32 %v7583_v15, %v12716_v4  ;;  %v9755_v19 = vld [vmem:[#allocation8 + $0xf8] sm:$0xff]  ;;  %v8228_v4 = vld [vmem:[#allocation14 + $0x180] sm:$0xff] }
 0x400   :  { %7588 = vrsqrt.f32 %v1030_v25  ;;  %6642 = vmatmul.mubr.f32.gmra.mrb[120].mxu1 %v9731_v41 }
 0x401   :  { %1432 = vmatprep.mubr.f32.mxu0 %v1239_v33  ;;  %v987_v6 = vpop.xlane.xlu1 %986  ;;  %6644 = vmatprep.mubr.f32.mxu1 %v9734_v60  ;;  %v1177_v58 = vmul.f32 0.1, %v1113_v23  ;;  %v1176_v0 = vmul.f32 0.1, %v1112_v47 }
 0x402   :  { %v7585_v62 = vpop.eup %7584  ;;  %v1031_v57 = vmax.f32 %v987_v6, 1e-24  ;;  %1433 = vmatmul.mubr.f32.gmra.mrb[72].mxu0 %v1238_v2  ;;  %v8227_v2 = vld [vmem:[#allocation14 + $0x188] sm:$0xff]  ;;  %v12723_v6 = vld [vmem:[#allocation47_spill] sm:$0xff] }
 0x403   :  { %v1241_v46 = vadd.f32 %v8216_v52, %v1177_v58  ;;  %v1240_v3 = vadd.f32 %v8217_v22, %v1176_v0  ;;  %v1115_v26 = vmul.f32 %v7585_v62, %v12717_v24  ;;  %v1114_v32 = vmul.f32 %v7585_v62, %v12718_v36  ;;  %v12724_v0 = vld [vmem:[#allocation46_spill] sm:$0xff]  ;;  %v8230_v36 = vld [vmem:[#allocation14 + $0x190] sm:$0xff] }
 0x404   :  { %7590 = vrsqrt.f32 %v1031_v57  ;;  %6645 = vmatmul.mubr.f32.gmra.mrb[122].mxu1 %v9739_v16  ;;  %v8229_v24 = vld [vmem:[#allocation14 + $0x198] sm:$0xff] }
 0x405   :  { %1437 = vmatprep.mubr.f32.mxu0 %v1241_v46  ;;  %v990_v8 = vpop.xlane.xlu0 %989  ;;  %6647 = vmatprep.mubr.f32.mxu1 %v9742_v40  ;;  %v1179_v61 = vmul.f32 0.1, %v1115_v26  ;;  %v1178_v13 = vmul.f32 0.1, %v1114_v32 }
 0x406   :  { %v7587_v10 = vpop.eup %7586  ;;  %v1032_v51 = vmax.f32 %v990_v8, 1e-24  ;;  %1438 = vmatmul.mubr.f32.gmra.mrb[74].mxu0 %v1240_v3  ;;  %v12725_v8 = vld [vmem:[#allocation49_spill] sm:$0xff] }
 0x407   :  { %v1243_v5 = vadd.f32 %v8220_v34, %v1179_v61  ;;  %v1242_v38 = vadd.f32 %v8221_v39, %v1178_v13  ;;  %v1117_v18 = vmul.f32 %v7587_v10, %v12719_v55  ;;  %v1116_v11 = vmul.f32 %v7587_v10, %v12720_v44  ;;  %v12726_v13 = vld [vmem:[#allocation48_spill] sm:$0xff]  ;;  %v8232_v44 = vld [vmem:[#allocation14 + $0x1a0] sm:$0xff] }
 0x408   :  { %7592 = vrsqrt.f32 %v1032_v51  ;;  %6648 = vmatmul.mubr.f32.gmra.mrb[124].mxu1 %v9747_v56  ;;  %v8231_v55 = vld [vmem:[#allocation14 + $0x1a8] sm:$0xff] }
 0x409   :  { %1442 = vmatprep.mubr.f32.mxu0 %v1243_v5  ;;  %v993_v31 = vpop.xlane.xlu1 %992  ;;  %6650 = vmatprep.mubr.f32.mxu1 %v9750_v14  ;;  %v1181_v17 = vmul.f32 0.1, %v1117_v18  ;;  %v1180_v12 = vmul.f32 0.1, %v1116_v11 }
 0x40a   :  { %v7589_v43 = vpop.eup %7588  ;;  %v1033_v37 = vmax.f32 %v993_v31, 1e-24  ;;  %1443 = vmatmul.mubr.f32.gmra.mrb[76].mxu0 %v1242_v38  ;;  %v12727_v31 = vld [vmem:[#allocation51_spill] sm:$0xff] }
 0x40b   :  { %v1245_v28 = vadd.f32 %v8224_v54, %v1181_v17  ;;  %v1244_v21 = vadd.f32 %v8225_v9, %v1180_v12  ;;  %v1119_v63 = vmul.f32 %v7589_v43, %v12721_v7  ;;  %v1118_v27 = vmul.f32 %v7589_v43, %v12722_v48  ;;  %v12728_v12 = vld [vmem:[#allocation50_spill] sm:$0xff]  ;;  %v8234_v48 = vld [vmem:[#allocation14 + $0x1b0] sm:$0xff] }
 0x40c   :  { %7594 = vrsqrt.f32 %v1033_v37  ;;  %6651 = vmatmul.mubr.f32.gmra.mrb[126].mxu1 %v9755_v19  ;;  %v8233_v7 = vld [vmem:[#allocation14 + $0x1b8] sm:$0xff] }
 0x40d   :  { %1447 = vmatprep.mubr.f32.mxu0 %v1245_v28  ;;  %v996_v15 = vpop.xlane.xlu0 %995  ;;  %v1183_v25 = vmul.f32 0.1, %v1119_v63  ;;  %v1182_v49 = vmul.f32 0.1, %v1118_v27 }
 0x40e   :  { %v7591_v33 = vpop.eup %7590  ;;  %v1034_v45 = vmax.f32 %v996_v15, 1e-24  ;;  %1448 = vmatmul.mubr.f32.gmra.mrb[78].mxu0 %v1244_v21  ;;  %v12729_v15 = vld [vmem:[#allocation53_spill] sm:$0xff] }
 0x40f   :  { %v1247_v23 = vadd.f32 %v8227_v2, %v1183_v25  ;;  %v1246_v47 = vadd.f32 %v8228_v4, %v1182_v49  ;;  %v1121_v58 = vmul.f32 %v7591_v33, %v12723_v6  ;;  %v1120_v62 = vmul.f32 %v7591_v33, %v12724_v0  ;;  %v12730_v49 = vld [vmem:[#allocation52_spill] sm:$0xff]  ;;  %v8236_v6 = vld [vmem:[#allocation14 + $0x1c0] sm:$0xff] }
 0x410   :  { %7596 = vrsqrt.f32 %v1034_v45  ;;  %v8235_v4 = vld [vmem:[#allocation14 + $0x1c8] sm:$0xff]  ;;  %v12731_v0 = vld [vmem:[#allocation55_spill] sm:$0xff] }
 0x411   :  { %1452 = vmatprep.mubr.f32.mxu0 %v1247_v23  ;;  %v999_v57 = vpop.xlane.xlu1 %998  ;;  %v1185_v52 = vmul.f32 0.1, %v1121_v58  ;;  %v1184_v46 = vmul.f32 0.1, %v1120_v62 }
 0x412   :  { %v7593_v22 = vpop.eup %7592  ;;  %v1035_v3 = vmax.f32 %v999_v57, 1e-24  ;;  %1453 = vmatmul.mubr.f32.gmra.mrb[80].mxu0 %v1246_v47  ;;  %v12732_v57 = vld [vmem:[#allocation54_spill] sm:$0xff] }
 0x413   :  { %v1249_v26 = vadd.f32 %v8229_v24, %v1185_v52  ;;  %v1248_v32 = vadd.f32 %v8230_v36, %v1184_v46  ;;  %v1123_v61 = vmul.f32 %v7593_v22, %v12725_v8  ;;  %v1122_v10 = vmul.f32 %v7593_v22, %v12726_v13  ;;  %v8237_v24 = vld [vmem:[#allocation14 + $0x1d8] sm:$0xff]  ;;  %v8238_v36 = vld [vmem:[#allocation14 + $0x1d0] sm:$0xff]  ;;  %v12734_v13 = vld [vmem:[#allocation56_spill] sm:$0xff] }
 0x414   :  { %7598 = vrsqrt.f32 %v1035_v3  ;;  %v12733_v8 = vld [vmem:[#allocation57_spill] sm:$0xff] }
 0x415   :  { %1457 = vmatprep.mubr.f32.mxu0 %v1249_v26  ;;  %v1002_v51 = vpop.xlane.xlu0 %1001  ;;  %v1187_v34 = vmul.f32 0.1, %v1123_v61  ;;  %v1186_v5 = vmul.f32 0.1, %v1122_v10 }
 0x416   :  { %v7595_v39 = vpop.eup %7594  ;;  %v1036_v38 = vmax.f32 %v1002_v51, 1e-24  ;;  %1458 = vmatmul.mubr.f32.gmra.mrb[82].mxu0 %v1248_v32 }
 0x417   :  { %v1251_v18 = vadd.f32 %v8231_v55, %v1187_v34  ;;  %v1250_v11 = vadd.f32 %v8232_v44, %v1186_v5  ;;  %v1125_v17 = vmul.f32 %v7595_v39, %v12727_v31  ;;  %v1124_v43 = vmul.f32 %v7595_v39, %v12728_v12  ;;  %v8239_v39 = vld [vmem:[#allocation14 + $0x1e8] sm:$0xff]  ;;  %v8240_v55 = vld [vmem:[#allocation14 + $0x1e0] sm:$0xff]  ;;  %v12736_v31 = vld [vmem:[#allocation58_spill] sm:$0xff] }
 0x418   :  { %7600 = vrsqrt.f32 %v1036_v38  ;;  %v12735_v44 = vld [vmem:[#allocation59_spill] sm:$0xff] }
 0x419   :  { %1462 = vmatprep.mubr.f32.mxu0 %v1251_v18  ;;  %v1005_v37 = vpop.xlane.xlu1 %1004  ;;  %v1189_v54 = vmul.f32 0.1, %v1125_v17  ;;  %v1188_v28 = vmul.f32 0.1, %v1124_v43 }
 0x41a   :  { %v7597_v9 = vpop.eup %7596  ;;  %v1037_v21 = vmax.f32 %v1005_v37, 1e-24  ;;  %1463 = vmatmul.mubr.f32.gmra.mrb[84].mxu0 %v1250_v11  ;;  %v8241_v37 = vld [vmem:[#allocation14 + $0x1f8] sm:$0xff] }
 0x41b   :  { %v1253_v63 = vadd.f32 %v8233_v7, %v1189_v54  ;;  %v1252_v27 = vadd.f32 %v8234_v48, %v1188_v28  ;;  %v1127_v25 = vmul.f32 %v7597_v9, %v12729_v15  ;;  %v1126_v33 = vmul.f32 %v7597_v9, %v12730_v49  ;;  %v8242_v28 = vld [vmem:[#allocation14 + $0x1f0] sm:$0xff]  ;;  %v1526_v7 = vld [vmem:[#allocation19 + $0x8] sm:$0xff]  ;;  %v1528_v15 = vld [vmem:[#allocation19 + $0x18] sm:$0xff] }
 0x41c   :  { %7602 = vrsqrt.f32 %v1037_v21  ;;  %v1525_v21 = vld [vmem:[#allocation19] sm:$0xff] }
 0x41d   :  { %1467 = vmatprep.mubr.f32.mxu0 %v1253_v63  ;;  %v1191_v45 = vmul.f32 0.1, %v1127_v25  ;;  %v1190_v2 = vmul.f32 0.1, %v1126_v33  ;;  %v1527_v63 = vld [vmem:[#allocation19 + $0x10] sm:$0xff]  ;;  %v1529_v33 = vld [vmem:[#allocation19 + $0x20] sm:$0xff] }
 0x41e   :  { %v7599_v23 = vpop.eup %7598  ;;  %1468 = vmatmul.mubr.f32.gmra.mrb[86].mxu0 %v1252_v27  ;;  %v7181_v27 = vpack.c.bf16 %v1526_v7, %v1525_v21  ;;  %v7185_v49 = vpack.c.bf16 %v1528_v15, %v1527_v63 }
 0x41f   :  { %v1255_v47 = vadd.f32 %v8235_v4, %v1191_v45  ;;  %v1254_v58 = vadd.f32 %v8236_v6, %v1190_v2  ;;  %v1129_v62 = vmul.f32 %v7599_v23, %v12731_v0  ;;  %v1128_v52 = vmul.f32 %v7599_v23, %v12732_v57  ;;  %v1530_v45 = vld [vmem:[#allocation19 + $0x28] sm:$0xff]  ;;  %v9775_v2 = vld [vmem:[%s12473_s10] ss:$0 sm:$0xff] }
 0x420   :  { %7182 = vmatprep.subr.bf16.mxu0 %v7181_v27  ;;  %v7189_v4 = vpack.c.bf16 %v1530_v45, %v1529_v33 }
 0x421   :  { %1472 = vmatprep.mubr.f32.mxu0 %v1255_v47  ;;  %v1193_v46 = vmul.f32 0.1, %v1129_v62  ;;  %v1192_v22 = vmul.f32 0.1, %v1128_v52  ;;  %7184 = vmatpush3.bf16.msra.mxu0 %v7181_v27 }
 0x422   :  { %v7601_v3 = vpop.eup %7600  ;;  %1473 = vmatmul.mubr.f32.gmra.mrb[88].mxu0 %v1254_v58  ;;  %7186 = vmatprep.subr.bf16.mxu0 %v7185_v49 }
 0x423   :  { %v1257_v26 = vadd.f32 %v8237_v24, %v1193_v46  ;;  %v1256_v32 = vadd.f32 %v8238_v36, %v1192_v22  ;;  %v1131_v61 = vmul.f32 %v7601_v3, %v12733_v8  ;;  %v1130_v10 = vmul.f32 %v7601_v3, %v12734_v13 }
 0x425   :  { %1477 = vmatprep.mubr.f32.mxu0 %v1257_v26  ;;  %v1195_v51 = vmul.f32 0.1, %v1131_v61  ;;  %v1194_v34 = vmul.f32 0.1, %v1130_v10  ;;  %7188 = vmatpush3.bf16.msra.mxu0 %v7185_v49 }
 0x426   :  { %v7603_v5 = vpop.eup %7602  ;;  %1478 = vmatmul.mubr.f32.gmra.mrb[90].mxu0 %v1256_v32  ;;  %7190 = vmatprep.subr.bf16.mxu0 %v7189_v4 }
 0x427   :  { %v1259_v38 = vadd.f32 %v8239_v39, %v1195_v51  ;;  %v1258_v18 = vadd.f32 %v8240_v55, %v1194_v34  ;;  %v1133_v11 = vmul.f32 %v7603_v5, %v12735_v44  ;;  %v1132_v17 = vmul.f32 %v7603_v5, %v12736_v31 }
 0x429   :  { %1482 = vmatprep.mubr.f32.mxu0 %v1259_v38  ;;  %v1197_v12 = vmul.f32 0.1, %v1133_v11  ;;  %v1196_v43 = vmul.f32 0.1, %v1132_v17  ;;  %7192 = vmatpush3.bf16.msra.mxu0 %v7189_v4 }
 0x42a   :  { %1483 = vmatmul.mubr.f32.gmra.mrb[92].mxu0 %v1258_v18 }
 0x42b   :  { %v1261_v54 = vadd.f32 %v8241_v37, %v1197_v12  ;;  %v1260_v9 = vadd.f32 %v8242_v28, %v1196_v43 }
 0x42d   :  { %1487 = vmatprep.mubr.f32.mxu0 %v1261_v54 }
 0x42e   :  { %1488 = vmatmul.mubr.f32.gmra.mrb[94].mxu0 %v1260_v9 }
 0x485   :  { %v1334_v48 = vpop.f32.mrb[32].mxu0 }
 0x486   :  { %v1336_v25 = vpop.f32.mrb[33].mxu0  ;;  %v9778_v47 = vadd.f32 %v9775_v2, %v1334_v48 }
 0x488   :  { %12737 = vst [vmem:[#allocation39_spill] sm:$0xff] %v9778_v47 }
 0x489   :  { %v1339_v23 = vpop.f32.mrb[34].mxu0 }
 0x48a   :  { %v9781_v6 = vadd.f32 %v9775_v2, %v1339_v23  ;;  %v1341_v58 = vpop.f32.mrb[35].mxu0 }
 0x48d   :  { %v1344_v62 = vpop.f32.mrb[36].mxu0 }
 0x48e   :  { %v1346_v57 = vpop.f32.mrb[37].mxu0  ;;  %v9786_v46 = vadd.f32 %v9775_v2, %v1344_v62 }
 0x490   :  { %12738 = vst [vmem:[#allocation41_spill] sm:$0xff] %v9786_v46 }
 0x491   :  { %v1349_v52 = vpop.f32.mrb[38].mxu0 }
 0x492   :  { %v9789_v22 = vadd.f32 %v9775_v2, %v1349_v52  ;;  %v1351_v3 = vpop.f32.mrb[39].mxu0 }
 0x494   :  { %12739 = vst [vmem:[#allocation40_spill] sm:$0xff] %v9789_v22 }
 0x495   :  { %v1354_v26 = vpop.f32.mrb[40].mxu0 }
 0x496   :  { %v1356_v36 = vpop.f32.mrb[41].mxu0  ;;  %v9794_v8 = vadd.f32 %v9775_v2, %v1354_v26 }
 0x498   :  { %12740 = vst [vmem:[#allocation43_spill] sm:$0xff] %v9794_v8 }
 0x499   :  { %v1359_v32 = vpop.f32.mrb[42].mxu0 }
 0x49a   :  { %v9797_v61 = vadd.f32 %v9775_v2, %v1359_v32  ;;  %v1361_v13 = vpop.f32.mrb[43].mxu0  ;;  %v1531_v32 = vld [vmem:[#allocation19 + $0x30] sm:$0xff] }
 0x49b   :  { %v1532_v13 = vld [vmem:[#allocation19 + $0x38] sm:$0xff] }
 0x49c   :  { %12741 = vst [vmem:[#allocation42_spill] sm:$0xff] %v9797_v61 }
 0x49d   :  { %v1364_v51 = vpop.f32.mrb[44].mxu0 }
 0x49e   :  { %v1366_v34 = vpop.f32.mrb[45].mxu0  ;;  %v9802_v39 = vadd.f32 %v9775_v2, %v1364_v51 }
 0x49f   :  { %v7193_v34 = vpack.c.bf16 %v1532_v13, %v1531_v32  ;;  %v1536_v32 = vld [vmem:[#allocation19 + $0x58] sm:$0xff] }
 0x4a0   :  { %12742 = vst [vmem:[#allocation45_spill] sm:$0xff] %v9802_v39 }
 0x4a1   :  { %v1369_v5 = vpop.f32.mrb[46].mxu0  ;;  %7194 = vmatprep.subr.bf16.mxu0 %v7193_v34 }
 0x4a2   :  { %v9805_v38 = vadd.f32 %v9775_v2, %v1369_v5  ;;  %v1371_v55 = vpop.f32.mrb[47].mxu0  ;;  %7196 = vmatpush3.bf16.msra.mxu0 %v7193_v34 }
 0x4a3   :  { %v9807_v18 = vpop.f32.mrb[96].mxu1 }
 0x4a4   :  { %12743 = vst [vmem:[#allocation44_spill] sm:$0xff] %v9805_v38  ;;  %v9811_v11 = vpop.f32.mrb[97].mxu1  ;;  %v1913_v31 = vmul.f32 %v9807_v18, %v9807_v18 }
 0x4a5   :  { %v1374_v17 = vpop.f32.mrb[48].mxu0  ;;  %v1912_v12 = vmul.f32 %v9811_v11, %v9811_v11 }
 0x4a6   :  { %v1376_v43 = vpop.f32.mrb[49].mxu0  ;;  %1946 = vadd.xlane.f32.xlu1 %v1913_v31  ;;  %v9826_v7 = vadd.f32 %v9775_v2, %v1374_v17 }
 0x4a7   :  { %1944 = vadd.xlane.f32.xlu0 %v1912_v12  ;;  %v9817_v37 = vpop.f32.mrb[98].mxu1 }
 0x4a8   :  { %v9819_v54 = vpop.f32.mrb[99].mxu1  ;;  %v1915_v28 = vmul.f32 %v9817_v37, %v9817_v37  ;;  %12744 = vst [vmem:[#allocation47_spill] sm:$0xff] %v9826_v7 }
 0x4a9   :  { %v1379_v9 = vpop.f32.mrb[50].mxu0  ;;  %v1914_v21 = vmul.f32 %v9819_v54, %v9819_v54 }
 0x4aa   :  { %v9829_v63 = vadd.f32 %v9775_v2, %v1379_v9  ;;  %v1381_v48 = vpop.f32.mrb[51].mxu0  ;;  %1950 = vadd.xlane.f32.xlu1 %v1915_v28  ;;  %v1533_v28 = vld [vmem:[#allocation19 + $0x40] sm:$0xff]  ;;  %v1534_v9 = vld [vmem:[#allocation19 + $0x48] sm:$0xff] }
 0x4ab   :  { %1948 = vadd.xlane.f32.xlu0 %v1914_v21  ;;  %v9831_v27 = vpop.f32.mrb[100].mxu1  ;;  %v7197_v48 = vpack.c.bf16 %v1534_v9, %v1533_v28 }
 0x4ac   :  { %12745 = vst [vmem:[#allocation46_spill] sm:$0xff] %v9829_v63  ;;  %v9835_v25 = vpop.f32.mrb[101].mxu1  ;;  %v1917_v49 = vmul.f32 %v9831_v27, %v9831_v27 }
 0x4ad   :  { %v1384_v33 = vpop.f32.mrb[52].mxu0  ;;  %v1916_v45 = vmul.f32 %v9835_v25, %v9835_v25  ;;  %7198 = vmatprep.subr.bf16.mxu0 %v7197_v48 }
 0x4ae   :  { %v1386_v23 = vpop.f32.mrb[53].mxu0  ;;  %1954 = vadd.xlane.f32.xlu1 %v1917_v49  ;;  %v9850_v3 = vadd.f32 %v9775_v2, %v1384_v33  ;;  %7200 = vmatpush3.bf16.msra.mxu0 %v7197_v48  ;;  %v1537_v48 = vld [vmem:[#allocation19 + $0x60] sm:$0xff] }
 0x4af   :  { %1952 = vadd.xlane.f32.xlu0 %v1916_v45  ;;  %v9841_v4 = vpop.f32.mrb[102].mxu1 }
 0x4b0   :  { %v9843_v58 = vpop.f32.mrb[103].mxu1  ;;  %v1919_v62 = vmul.f32 %v9841_v4, %v9841_v4  ;;  %12746 = vst [vmem:[#allocation49_spill] sm:$0xff] %v9850_v3 }
 0x4b1   :  { %v1389_v57 = vpop.f32.mrb[54].mxu0  ;;  %v1918_v52 = vmul.f32 %v9843_v58, %v9843_v58 }
 0x4b2   :  { %v9853_v26 = vadd.f32 %v9775_v2, %v1389_v57  ;;  %v1391_v36 = vpop.f32.mrb[55].mxu0  ;;  %1958 = vadd.xlane.f32.xlu1 %v1919_v62 }
 0x4b3   :  { %1956 = vadd.xlane.f32.xlu0 %v1918_v52  ;;  %v9855_v51 = vpop.f32.mrb[104].mxu1  ;;  %v1535_v36 = vld [vmem:[#allocation19 + $0x50] sm:$0xff] }
 0x4b4   :  { %12747 = vst [vmem:[#allocation48_spill] sm:$0xff] %v9853_v26  ;;  %v9859_v55 = vpop.f32.mrb[105].mxu1  ;;  %v1921_v31 = vmul.f32 %v9855_v51, %v9855_v51  ;;  %v7201_v34 = vpack.c.bf16 %v1536_v32, %v1535_v36 }
 0x4b5   :  { %v1394_v17 = vpop.f32.mrb[56].mxu0  ;;  %v1920_v12 = vmul.f32 %v9859_v55, %v9859_v55 }
 0x4b6   :  { %v1396_v43 = vpop.f32.mrb[57].mxu0  ;;  %1962 = vadd.xlane.f32.xlu1 %v1921_v31  ;;  %v9874_v62 = vadd.f32 %v9775_v2, %v1394_v17  ;;  %7202 = vmatprep.subr.bf16.mxu0 %v7201_v34 }
 0x4b7   :  { %1960 = vadd.xlane.f32.xlu0 %v1920_v12  ;;  %v9865_v21 = vpop.f32.mrb[106].mxu1  ;;  %7204 = vmatpush3.bf16.msra.mxu0 %v7201_v34 }
 0x4b8   :  { %v9867_v49 = vpop.f32.mrb[107].mxu1  ;;  %v1923_v33 = vmul.f32 %v9865_v21, %v9865_v21  ;;  %12748 = vst [vmem:[#allocation51_spill] sm:$0xff] %v9874_v62 }
 0x4b9   :  { %v1399_v45 = vpop.f32.mrb[58].mxu0  ;;  %v1922_v23 = vmul.f32 %v9867_v49, %v9867_v49 }
 0x4ba   :  { %v9877_v57 = vadd.f32 %v9775_v2, %v1399_v45  ;;  %v1401_v52 = vpop.f32.mrb[59].mxu0  ;;  %1966 = vadd.xlane.f32.xlu1 %v1923_v33  ;;  %v1538_v33 = vld [vmem:[#allocation19 + $0x68] sm:$0xff] }
 0x4bb   :  { %1964 = vadd.xlane.f32.xlu0 %v1922_v23  ;;  %v9879_v13 = vpop.f32.mrb[108].mxu1  ;;  %v7205_v23 = vpack.c.bf16 %v1538_v33, %v1537_v48  ;;  %v1540_v48 = vld [vmem:[#allocation19 + $0x78] sm:$0xff] }
 0x4bc   :  { %12749 = vst [vmem:[#allocation50_spill] sm:$0xff] %v9877_v57  ;;  %v9883_v12 = vpop.f32.mrb[109].mxu1  ;;  %v1925_v17 = vmul.f32 %v9879_v13, %v9879_v13 }
 0x4bd   :  { %v1404_v43 = vpop.f32.mrb[60].mxu0  ;;  %v1924_v28 = vmul.f32 %v9883_v12, %v9883_v12  ;;  %7206 = vmatprep.subr.bf16.mxu0 %v7205_v23 }
 0x4be   :  { %v1406_v9 = vpop.f32.mrb[61].mxu0  ;;  %1970 = vadd.xlane.f32.xlu1 %v1925_v17  ;;  %7208 = vmatpush3.bf16.msra.mxu0 %v7205_v23 }
 0x4bf   :  { %1968 = vadd.xlane.f32.xlu0 %v1924_v28  ;;  %v9889_v45 = vpop.f32.mrb[110].mxu1  ;;  %v9898_v9 = vadd.f32 %v9775_v2, %v1404_v43  ;;  %v1539_v28 = vld [vmem:[#allocation19 + $0x70] sm:$0xff] }
 0x4c0   :  { %v9891_v52 = vpop.f32.mrb[111].mxu1  ;;  %v1927_v36 = vmul.f32 %v9889_v45, %v9889_v45  ;;  %v7209_v5 = vpack.c.bf16 %v1540_v48, %v1539_v28 }
 0x4c1   :  { %v1409_v32 = vpop.f32.mrb[62].mxu0  ;;  %v1926_v31 = vmul.f32 %v9891_v52, %v9891_v52  ;;  %12750 = vst [vmem:[#allocation53_spill] sm:$0xff] %v9898_v9 }
 0x4c2   :  { %v9901_v34 = vadd.f32 %v9775_v2, %v1409_v32  ;;  %v1411_v17 = vpop.f32.mrb[63].mxu0  ;;  %1974 = vadd.xlane.f32.xlu1 %v1927_v36  ;;  %7210 = vmatprep.subr.bf16.mxu0 %v7209_v5 }
 0x4c3   :  { %1972 = vadd.xlane.f32.xlu0 %v1926_v31  ;;  %v9903_v33 = vpop.f32.mrb[112].mxu1  ;;  %7212 = vmatpush3.bf16.msra.mxu0 %v7209_v5 }
 0x4c4   :  { %12751 = vst [vmem:[#allocation52_spill] sm:$0xff] %v9901_v34  ;;  %v9907_v44 = vpop.f32.mrb[113].mxu1  ;;  %v1929_v43 = vmul.f32 %v9903_v33, %v9903_v33 }
 0x4c5   :  { %v1414_v10 = vpop.f32.mrb[64].mxu0  ;;  %v1928_v32 = vmul.f32 %v9907_v44, %v9907_v44 }
 0x4c6   :  { %v1416_v23 = vpop.f32.mrb[65].mxu0  ;;  %1978 = vadd.xlane.f32.xlu1 %v1929_v43  ;;  %v9922_v15 = vadd.f32 %v9775_v2, %v1414_v10 }
 0x4c7   :  { %1976 = vadd.xlane.f32.xlu0 %v1928_v32  ;;  %v9913_v31 = vpop.f32.mrb[114].mxu1 }
 0x4c8   :  { %v9915_v36 = vpop.f32.mrb[115].mxu1  ;;  %v1931_v17 = vmul.f32 %v9913_v31, %v9913_v31  ;;  %12752 = vst [vmem:[#allocation55_spill] sm:$0xff] %v9922_v15 }
 0x4c9   :  { %v1419_v28 = vpop.f32.mrb[66].mxu0  ;;  %v1930_v48 = vmul.f32 %v9915_v36, %v9915_v36 }
 0x4ca   :  { %v9925_v24 = vadd.f32 %v9775_v2, %v1419_v28  ;;  %v1421_v43 = vpop.f32.mrb[67].mxu0  ;;  %1982 = vadd.xlane.f32.xlu1 %v1931_v17 }
 0x4cb   :  { %1980 = vadd.xlane.f32.xlu0 %v1930_v48  ;;  %v9927_v5 = vpop.f32.mrb[116].mxu1 }
 0x4cc   :  { %12753 = vst [vmem:[#allocation54_spill] sm:$0xff] %v9925_v24  ;;  %v9931_v23 = vpop.f32.mrb[117].mxu1  ;;  %v1933_v0 = vmul.f32 %v9927_v5, %v9927_v5 }
 0x4cd   :  { %v1424_v9 = vpop.f32.mrb[68].mxu0  ;;  %v1932_v10 = vmul.f32 %v9931_v23, %v9931_v23 }
 0x4ce   :  { %v1426_v34 = vpop.f32.mrb[69].mxu0  ;;  %1986 = vadd.xlane.f32.xlu1 %v1933_v0  ;;  %v9946_v15 = vadd.f32 %v9775_v2, %v1424_v9 }
 0x4cf   :  { %1984 = vadd.xlane.f32.xlu0 %v1932_v10  ;;  %v9937_v28 = vpop.f32.mrb[118].mxu1 }
 0x4d0   :  { %v9939_v17 = vpop.f32.mrb[119].mxu1  ;;  %v1935_v48 = vmul.f32 %v9937_v28, %v9937_v28  ;;  %12754 = vst [vmem:[#allocation57_spill] sm:$0xff] %v9946_v15 }
 0x4d1   :  { %v1429_v43 = vpop.f32.mrb[70].mxu0  ;;  %v1934_v32 = vmul.f32 %v9939_v17, %v9939_v17 }
 0x4d2   :  { %v9949_v24 = vadd.f32 %v9775_v2, %v1429_v43  ;;  %v1431_v34 = vpop.f32.mrb[71].mxu0  ;;  %1990 = vadd.xlane.f32.xlu1 %v1935_v48 }
 0x4d3   :  { %1988 = vadd.xlane.f32.xlu0 %v1934_v32  ;;  %v9951_v0 = vpop.f32.mrb[120].mxu1 }
 0x4d4   :  { %12755 = vst [vmem:[#allocation56_spill] sm:$0xff] %v9949_v24  ;;  %v9955_v62 = vpop.f32.mrb[121].mxu1  ;;  %v1937_v57 = vmul.f32 %v9951_v0, %v9951_v0 }
 0x4d5   :  { %v1434_v3 = vpop.f32.mrb[72].mxu0  ;;  %v1936_v9 = vmul.f32 %v9955_v62, %v9955_v62 }
 0x4d6   :  { %v1436_v26 = vpop.f32.mrb[73].mxu0  ;;  %1994 = vadd.xlane.f32.xlu1 %v1937_v57  ;;  %v9970_v15 = vadd.f32 %v9775_v2, %v1434_v3 }
 0x4d7   :  { %1992 = vadd.xlane.f32.xlu0 %v1936_v9  ;;  %v9961_v43 = vpop.f32.mrb[122].mxu1 }
 0x4d8   :  { %v9963_v32 = vpop.f32.mrb[123].mxu1  ;;  %v1939_v48 = vmul.f32 %v9961_v43, %v9961_v43  ;;  %12756 = vst [vmem:[#allocation59_spill] sm:$0xff] %v9970_v15 }
 0x4d9   :  { %v1439_v34 = vpop.f32.mrb[74].mxu0  ;;  %v1938_v10 = vmul.f32 %v9963_v32, %v9963_v32 }
 0x4da   :  { %v9973_v24 = vadd.f32 %v9775_v2, %v1439_v34  ;;  %v1441_v26 = vpop.f32.mrb[75].mxu0  ;;  %1998 = vadd.xlane.f32.xlu1 %v1939_v48 }
 0x4db   :  { %1996 = vadd.xlane.f32.xlu0 %v1938_v10  ;;  %v9975_v57 = vpop.f32.mrb[124].mxu1 }
 0x4dc   :  { %12757 = vst [vmem:[#allocation58_spill] sm:$0xff] %v9973_v24  ;;  %v9979_v7 = vpop.f32.mrb[125].mxu1  ;;  %v1941_v63 = vmul.f32 %v9975_v57, %v9975_v57 }
 0x4dd   :  { %v1444_v39 = vpop.f32.mrb[76].mxu0  ;;  %v1940_v3 = vmul.f32 %v9979_v7, %v9979_v7 }
 0x4de   :  { %v1446_v38 = vpop.f32.mrb[77].mxu0  ;;  %2002 = vadd.xlane.f32.xlu1 %v1941_v63  ;;  %v9994_v15 = vadd.f32 %v9775_v2, %v1444_v39 }
 0x4df   :  { %2000 = vadd.xlane.f32.xlu0 %v1940_v3  ;;  %v9985_v34 = vpop.f32.mrb[126].mxu1 }
 0x4e0   :  { %v9987_v10 = vpop.f32.mrb[127].mxu1  ;;  %v1943_v48 = vmul.f32 %v9985_v34, %v9985_v34  ;;  %12758 = vst [vmem:[#allocation60_spill] sm:$0xff] %v9994_v15 }
 0x4e1   :  { %v1449_v26 = vpop.f32.mrb[78].mxu0  ;;  %v1942_v9 = vmul.f32 %v9987_v10, %v9987_v10 }
 0x4e2   :  { %v9997_v24 = vadd.f32 %v9775_v2, %v1449_v26  ;;  %v1451_v38 = vpop.f32.mrb[79].mxu0  ;;  %2006 = vadd.xlane.f32.xlu1 %v1943_v48 }
 0x4e3   :  { %2004 = vadd.xlane.f32.xlu0 %v1942_v9 }
 0x4e4   :  { %12759 = vst [vmem:[#allocation61_spill] sm:$0xff] %v9997_v24 }
 0x4e5   :  { %v1454_v3 = vpop.f32.mrb[80].mxu0 }
 0x4e6   :  { %v1456_v8 = vpop.f32.mrb[81].mxu0  ;;  %v10002_v46 = vadd.f32 %v9775_v2, %v1454_v3 }
 0x4e8   :  { %12760 = vst [vmem:[#allocation62_spill] sm:$0xff] %v10002_v46 }
 0x4e9   :  { %v1459_v61 = vpop.f32.mrb[82].mxu0 }
 0x4ea   :  { %v10005_v22 = vadd.f32 %v9775_v2, %v1459_v61  ;;  %v1461_v39 = vpop.f32.mrb[83].mxu0 }
 0x4ec   :  { %12761 = vst [vmem:[#allocation63_spill] sm:$0xff] %v10005_v22 }
 0x4ed   :  { %v1464_v47 = vpop.f32.mrb[84].mxu0 }
 0x4ee   :  { %v1466_v38 = vpop.f32.mrb[85].mxu0  ;;  %v10010_v9 = vadd.f32 %v9775_v2, %v1464_v47  ;;  %v10041_v47 = vld [vmem:[#allocation8 + $0x8] sm:$0xff] }
 0x4f1   :  { %v1469_v48 = vpop.f32.mrb[86].mxu0 }
 0x4f2   :  { %v10013_v63 = vadd.f32 %v9775_v2, %v1469_v48  ;;  %v1471_v8 = vpop.f32.mrb[87].mxu0 }
 0x4f5   :  { %v1474_v15 = vpop.f32.mrb[88].mxu0 }
 0x4f6   :  { %v1476_v61 = vpop.f32.mrb[89].mxu0  ;;  %v10018_v39 = vadd.f32 %v9775_v2, %v1474_v15  ;;  %v3127_v15 = vmul.f32 %v9718_v35, %v9718_v35  ;;  %v8251_v35 = vld [vmem:[#allocation8 + $0x40] sm:$0xff] }
 0x4f9   :  { %v1479_v24 = vpop.f32.mrb[90].mxu0 }
 0x4fa   :  { %v10021_v26 = vadd.f32 %v9775_v2, %v1479_v24  ;;  %v1481_v38 = vpop.f32.mrb[91].mxu0  ;;  %v3121_v24 = vmul.f32 %v9694_v1, %v9694_v1  ;;  %v3123_v1 = vmul.f32 %v9702_v30, %v9702_v30  ;;  %v3125_v30 = vmul.f32 %v9710_v42, %v9710_v42  ;;  %v8249_v42 = vld [vmem:[#allocation8 + $0x30] sm:$0xff] }
 0x4fb   :  { %v3122_v38 = vmul.f32 %v9699_v20, %v9699_v20  ;;  %v3124_v20 = vmul.f32 %v9707_v53, %v9707_v53  ;;  %v3126_v53 = vmul.f32 %v9715_v29, %v9715_v29 }
 0x4fc   :  { %3169 = vadd.xlane.f32.xlu0 %v3121_v24  ;;  %v10053_v24 = vld [vmem:[#allocation8 + $0x18] sm:$0xff] }
 0x4fd   :  { %v1484_v46 = vpop.f32.mrb[92].mxu0  ;;  %3171 = vadd.xlane.f32.xlu1 %v3122_v38  ;;  %v3108_v38 = vmul.f32 %v10053_v24, %v10053_v24 }
 0x4fe   :  { %v1486_v48 = vpop.f32.mrb[93].mxu0  ;;  %v10026_v8 = vadd.f32 %v9775_v2, %v1484_v46 }
 0x4ff   :  { %v10037_v48 = vld [vmem:[#allocation8] sm:$0xff] }
 0x500   :  { %12762 = vst [vmem:[#allocation64_spill] sm:$0xff] %v10026_v8  ;;  %v3105_v46 = vmul.f32 %v10037_v48, %v10037_v48  ;;  %v8250_v8 = vld [vmem:[#allocation8 + $0x38] sm:$0xff] }
 0x501   :  { %v1489_v22 = vpop.f32.mrb[94].mxu0  ;;  %v3112_v29 = vmul.f32 %v8250_v8, %v8250_v8  ;;  %v3132_v8 = vmul.f32 %v9739_v16, %v9739_v16 }
 0x502   :  { %v10029_v3 = vadd.f32 %v9775_v2, %v1489_v22  ;;  %v1491_v61 = vpop.f32.mrb[95].mxu0  ;;  %v3106_v2 = vmul.f32 %v10041_v47, %v10041_v47  ;;  %3137 = vadd.xlane.f32.xlu0 %v3105_v46  ;;  %v10049_v22 = vld [vmem:[#allocation8 + $0x10] sm:$0xff]  ;;  %v8247_v46 = vld [vmem:[#allocation8 + $0x20] sm:$0xff] }
 0x503   :  { %v3107_v61 = vmul.f32 %v10049_v22, %v10049_v22 }
 0x504   :  { %3139 = vadd.xlane.f32.xlu1 %v3106_v2  ;;  %v3109_v2 = vmul.f32 %v8247_v46, %v8247_v46  ;;  %v3113_v46 = vmul.f32 %v8251_v35, %v8251_v35 }
 0x506   :  { %3173 = vadd.xlane.f32.xlu0 %v3123_v1  ;;  %v8248_v1 = vld [vmem:[#allocation8 + $0x28] sm:$0xff] }
 0x508   :  { %3175 = vadd.xlane.f32.xlu1 %v3124_v20  ;;  %v3110_v20 = vmul.f32 %v8248_v1, %v8248_v1 }
 0x50a   :  { %3141 = vadd.xlane.f32.xlu0 %v3107_v61  ;;  %v3128_v61 = vmul.f32 %v9723_v50, %v9723_v50 }
 0x50c   :  { %3143 = vadd.xlane.f32.xlu1 %v3108_v38  ;;  %v3111_v38 = vmul.f32 %v8249_v42, %v8249_v42  ;;  %v3133_v42 = vmul.f32 %v9742_v40, %v9742_v40 }
 0x50e   :  { %3177 = vadd.xlane.f32.xlu0 %v3125_v30  ;;  %v3129_v30 = vmul.f32 %v9726_v59, %v9726_v59  ;;  %v8253_v59 = vld [vmem:[#allocation8 + $0x50] sm:$0xff] }
 0x50f   :  { %v3115_v1 = vmul.f32 %v8253_v59, %v8253_v59  ;;  %v3136_v59 = vmul.f32 %v9755_v19, %v9755_v19 }
 0x510   :  { %3179 = vadd.xlane.f32.xlu1 %v3126_v53  ;;  %v3130_v53 = vmul.f32 %v9731_v41, %v9731_v41 }
 0x512   :  { %3145 = vadd.xlane.f32.xlu0 %v3109_v2  ;;  %v8252_v2 = vld [vmem:[#allocation8 + $0x48] sm:$0xff] }
 0x513   :  { %v3114_v50 = vmul.f32 %v8252_v2, %v8252_v2 }
 0x514   :  { %3147 = vadd.xlane.f32.xlu1 %v3110_v20  ;;  %v8254_v20 = vld [vmem:[#allocation8 + $0x58] sm:$0xff] }
 0x515   :  { %v3116_v41 = vmul.f32 %v8254_v20, %v8254_v20 }
 0x516   :  { %3181 = vadd.xlane.f32.xlu0 %v3127_v15  ;;  %v3131_v15 = vmul.f32 %v9734_v60, %v9734_v60 }
 0x518   :  { %3183 = vadd.xlane.f32.xlu1 %v3128_v61 }
 0x51a   :  { %3149 = vadd.xlane.f32.xlu0 %v3111_v38  ;;  %v3134_v38 = vmul.f32 %v9747_v56, %v9747_v56  ;;  %v3135_v56 = vmul.f32 %v9750_v14, %v9750_v14 }
 0x51c   :  { %3151 = vadd.xlane.f32.xlu1 %v3112_v29 }
 0x51e   :  { %3185 = vadd.xlane.f32.xlu0 %v3129_v30 }
 0x520   :  { %3187 = vadd.xlane.f32.xlu1 %v3130_v53  ;;  %v8255_v53 = vld [vmem:[#allocation8 + $0x60] sm:$0xff] }
 0x521   :  { %v3117_v35 = vmul.f32 %v8255_v53, %v8255_v53 }
 0x522   :  { %3153 = vadd.xlane.f32.xlu0 %v3113_v46  ;;  %v8256_v46 = vld [vmem:[#allocation8 + $0x68] sm:$0xff] }
 0x523   :  { %v3118_v2 = vmul.f32 %v8256_v46, %v8256_v46 }
 0x524   :  { %3155 = vadd.xlane.f32.xlu1 %v3114_v50 }
 0x526   :  { %3189 = vadd.xlane.f32.xlu0 %v3131_v15 }
 0x528   :  { %3191 = vadd.xlane.f32.xlu1 %v3132_v8 }
 0x52a   :  { %3157 = vadd.xlane.f32.xlu0 %v3115_v1 }
 0x52c   :  { %3159 = vadd.xlane.f32.xlu1 %v3116_v41 }
 0x52e   :  { %3193 = vadd.xlane.f32.xlu0 %v3133_v42  ;;  %v8257_v42 = vld [vmem:[#allocation8 + $0x70] sm:$0xff] }
 0x530   :  { %3195 = vadd.xlane.f32.xlu1 %v3134_v38  ;;  %v3119_v38 = vmul.f32 %v8257_v42, %v8257_v42  ;;  %v8260_v42 = vld [vmem:[#allocation16 + $0x8] sm:$0xff] }
 0x532   :  { %3161 = vadd.xlane.f32.xlu0 %v3117_v35 }
 0x533   :  { %v1947_v61 = vpop.xlane.xlu1 %1946 }
 0x534   :  { %v2009_v29 = vmax.f32 %v1947_v61, 1e-24  ;;  %v1945_v60 = vpop.xlane.xlu0 %1944  ;;  %3163 = vadd.xlane.f32.xlu1 %v3118_v2 }
 0x535   :  { %v2008_v30 = vmax.f32 %v1945_v60, 1e-24 }
 0x536   :  { %7604 = vrsqrt.f32 %v2009_v29  ;;  %3197 = vadd.xlane.f32.xlu0 %v3135_v56  ;;  %v8258_v29 = vld [vmem:[#allocation8 + $0x78] sm:$0xff] }
 0x537   :  { %7606 = vrsqrt.f32 %v2008_v30  ;;  %v1951_v16 = vpop.xlane.xlu1 %1950  ;;  %v3120_v60 = vmul.f32 %v8258_v29, %v8258_v29 }
 0x538   :  { %v2011_v50 = vmax.f32 %v1951_v16, 1e-24  ;;  %v1949_v15 = vpop.xlane.xlu0 %1948  ;;  %3199 = vadd.xlane.f32.xlu1 %v3136_v59 }
 0x539   :  { %v2010_v8 = vmax.f32 %v1949_v15, 1e-24 }
 0x53a   :  { %7608 = vrsqrt.f32 %v2011_v50  ;;  %3165 = vadd.xlane.f32.xlu0 %v3119_v38 }
 0x53b   :  { %7610 = vrsqrt.f32 %v2010_v8  ;;  %v1955_v40 = vpop.xlane.xlu1 %1954 }
 0x53c   :  { %v2013_v1 = vmax.f32 %v1955_v40, 1e-24  ;;  %v1953_v20 = vpop.xlane.xlu0 %1952  ;;  %3167 = vadd.xlane.f32.xlu1 %v3120_v60 }
 0x53d   :  { %v2012_v41 = vmax.f32 %v1953_v20, 1e-24 }
 0x53e   :  { %7612 = vrsqrt.f32 %v2013_v1 }
 0x53f   :  { %7614 = vrsqrt.f32 %v2012_v41  ;;  %v1959_v61 = vpop.xlane.xlu1 %1958  ;;  %v8259_v41 = vld [vmem:[#allocation16] sm:$0xff] }
 0x540   :  { %v7605_v30 = vpop.eup %7604  ;;  %v2015_v16 = vmax.f32 %v1959_v61, 1e-24  ;;  %v1957_v53 = vpop.xlane.xlu0 %1956 }
 0x541   :  { %v7607_v35 = vpop.eup %7606  ;;  %v2073_v14 = vmul.f32 %v7605_v30, %v9807_v18  ;;  %v2014_v46 = vmax.f32 %v1957_v53, 1e-24 }
 0x542   :  { %7616 = vrsqrt.f32 %v2015_v16  ;;  %v2072_v19 = vmul.f32 %v7607_v35, %v9811_v11 }
 0x543   :  { %v2105_v2 = vmul.f32 0.1, %v2073_v14  ;;  %7618 = vrsqrt.f32 %v2014_v46  ;;  %v1963_v50 = vpop.xlane.xlu1 %1962  ;;  %v8261_v46 = vld [vmem:[#allocation16 + $0x10] sm:$0xff] }
 0x544   :  { %v7609_v15 = vpop.eup %7608  ;;  %v2017_v8 = vmax.f32 %v1963_v50, 1e-24  ;;  %v1961_v40 = vpop.xlane.xlu0 %1960  ;;  %v2104_v56 = vmul.f32 0.1, %v2072_v19 }
 0x545   :  { %v7611_v59 = vpop.eup %7610  ;;  %v2016_v1 = vmax.f32 %v1961_v40, 1e-24  ;;  %v2075_v20 = vmul.f32 %v7609_v15, %v9817_v37  ;;  %v2137_v29 = vadd.f32 %v8260_v42, %v2105_v2  ;;  %v8262_v15 = vld [vmem:[#allocation16 + $0x18] sm:$0xff]  ;;  %v8264_v42 = vld [vmem:[#allocation16 + $0x28] sm:$0xff] }
 0x546   :  { %7620 = vrsqrt.f32 %v2017_v8  ;;  %v2136_v18 = vadd.f32 %v8259_v41, %v2104_v56  ;;  %v2074_v61 = vmul.f32 %v7611_v59, %v9819_v54 }
 0x547   :  { %7622 = vrsqrt.f32 %v2016_v1  ;;  %v1967_v11 = vpop.xlane.xlu1 %1966  ;;  %v2107_v30 = vmul.f32 0.1, %v2075_v20 }
 0x548   :  { %v7613_v38 = vpop.eup %7612  ;;  %v2019_v60 = vmax.f32 %v1967_v11, 1e-24  ;;  %v1965_v16 = vpop.xlane.xlu0 %1964  ;;  %6685 = vmatprep.mubr.f32.mxu0 %v2136_v18  ;;  %v2106_v53 = vmul.f32 0.1, %v2074_v61  ;;  %v8263_v18 = vld [vmem:[#allocation16 + $0x20] sm:$0xff] }
 0x549   :  { %v7615_v35 = vpop.eup %7614  ;;  %v2018_v14 = vmax.f32 %v1965_v16, 1e-24  ;;  %6686 = vmatmul.mubr.f32.vlgmr.msra.gmra.mrb[96].mxu0 %v2137_v29  ;;  %v2077_v37 = vmul.f32 %v7613_v38, %v9831_v27  ;;  %v2139_v2 = vadd.f32 %v8262_v15, %v2107_v30 }
 0x54a   :  { %7624 = vrsqrt.f32 %v2019_v60  ;;  %v2138_v19 = vadd.f32 %v8261_v46, %v2106_v53  ;;  %v2076_v54 = vmul.f32 %v7615_v35, %v9835_v25 }
 0x54b   :  { %7626 = vrsqrt.f32 %v2018_v14  ;;  %v1971_v50 = vpop.xlane.xlu1 %1970  ;;  %v2109_v8 = vmul.f32 0.1, %v2077_v37  ;;  %v8265_v37 = vld [vmem:[#allocation16 + $0x30] sm:$0xff] }
 0x54c   :  { %v7617_v40 = vpop.eup %7616  ;;  %v2021_v56 = vmax.f32 %v1971_v50, 1e-24  ;;  %v1969_v59 = vpop.xlane.xlu0 %1968  ;;  %6688 = vmatprep.mubr.f32.mxu0 %v2138_v19  ;;  %v2108_v1 = vmul.f32 0.1, %v2076_v54  ;;  %v8266_v54 = vld [vmem:[#allocation16 + $0x38] sm:$0xff] }
 0x54d   :  { %v7619_v20 = vpop.eup %7618  ;;  %v2020_v41 = vmax.f32 %v1969_v59, 1e-24  ;;  %6689 = vmatmul.mubr.f32.gmra.mrb[98].mxu0 %v2139_v2  ;;  %v2079_v27 = vmul.f32 %v7617_v40, %v9841_v4  ;;  %v2141_v29 = vadd.f32 %v8264_v42, %v2109_v8 }
 0x54e   :  { %7628 = vrsqrt.f32 %v2021_v56  ;;  %v2140_v61 = vadd.f32 %v8263_v18, %v2108_v1  ;;  %v2078_v25 = vmul.f32 %v7619_v20, %v9843_v58  ;;  %v8267_v20 = vld [vmem:[#allocation16 + $0x40] sm:$0xff]  ;;  %v8268_v18 = vld [vmem:[#allocation16 + $0x48] sm:$0xff] }
 0x54f   :  { %7630 = vrsqrt.f32 %v2020_v41  ;;  %v1975_v11 = vpop.xlane.xlu1 %1974  ;;  %v2111_v30 = vmul.f32 0.1, %v2079_v27 }
 0x550   :  { %v7621_v38 = vpop.eup %7620  ;;  %v2023_v60 = vmax.f32 %v1975_v11, 1e-24  ;;  %v1973_v16 = vpop.xlane.xlu0 %1972  ;;  %6691 = vmatprep.mubr.f32.mxu0 %v2140_v61  ;;  %v2110_v53 = vmul.f32 0.1, %v2078_v25 }
 0x551   :  { %v7623_v35 = vpop.eup %7622  ;;  %v2022_v14 = vmax.f32 %v1973_v16, 1e-24  ;;  %6692 = vmatmul.mubr.f32.gmra.mrb[100].mxu0 %v2141_v29  ;;  %v2081_v4 = vmul.f32 %v7621_v38, %v9855_v51  ;;  %v2143_v50 = vadd.f32 %v8266_v54, %v2111_v30  ;;  %v8269_v16 = vld [vmem:[#allocation16 + $0x50] sm:$0xff] }
 0x552   :  { %7632 = vrsqrt.f32 %v2023_v60  ;;  %v2142_v46 = vadd.f32 %v8265_v37, %v2110_v53  ;;  %v2080_v58 = vmul.f32 %v7623_v35, %v9859_v55 }
 0x553   :  { %7634 = vrsqrt.f32 %v2022_v14  ;;  %v1979_v19 = vpop.xlane.xlu1 %1978  ;;  %v2113_v15 = vmul.f32 0.1, %v2081_v4  ;;  %v8270_v14 = vld [vmem:[#allocation16 + $0x58] sm:$0xff] }
 0x554   :  { %v7625_v2 = vpop.eup %7624  ;;  %v2025_v8 = vmax.f32 %v1979_v19, 1e-24  ;;  %v1977_v40 = vpop.xlane.xlu0 %1976  ;;  %6694 = vmatprep.mubr.f32.mxu0 %v2142_v46  ;;  %v2112_v56 = vmul.f32 0.1, %v2080_v58 }
 0x555   :  { %v7627_v59 = vpop.eup %7626  ;;  %v2024_v1 = vmax.f32 %v1977_v40, 1e-24  ;;  %6695 = vmatmul.mubr.f32.gmra.mrb[102].mxu0 %v2143_v50  ;;  %v2083_v51 = vmul.f32 %v7625_v2, %v9865_v21  ;;  %v2145_v61 = vadd.f32 %v8268_v18, %v2113_v15  ;;  %v8271_v2 = vld [vmem:[#allocation16 + $0x60] sm:$0xff] }
 0x556   :  { %7636 = vrsqrt.f32 %v2025_v8  ;;  %v2144_v41 = vadd.f32 %v8267_v20, %v2112_v56  ;;  %v2082_v55 = vmul.f32 %v7627_v59, %v9867_v49  ;;  %v8272_v56 = vld [vmem:[#allocation16 + $0x68] sm:$0xff] }
 0x557   :  { %7638 = vrsqrt.f32 %v2024_v1  ;;  %v1983_v27 = vpop.xlane.xlu1 %1982  ;;  %v2115_v25 = vmul.f32 0.1, %v2083_v51 }
 0x558   :  { %v7629_v11 = vpop.eup %7628  ;;  %v2027_v42 = vmax.f32 %v1983_v27, 1e-24  ;;  %v1981_v29 = vpop.xlane.xlu0 %1980  ;;  %6697 = vmatprep.mubr.f32.mxu0 %v2144_v41  ;;  %v2114_v30 = vmul.f32 0.1, %v2082_v55 }
 0x559   :  { %v7631_v38 = vpop.eup %7630  ;;  %v2026_v60 = vmax.f32 %v1981_v29, 1e-24  ;;  %6698 = vmatmul.mubr.f32.gmra.mrb[104].mxu0 %v2145_v61  ;;  %v2085_v21 = vmul.f32 %v7629_v11, %v9879_v13  ;;  %v2147_v4 = vadd.f32 %v8270_v14, %v2115_v25  ;;  %v8273_v61 = vld [vmem:[#allocation16 + $0x70] sm:$0xff] }
 0x55a   :  { %7640 = vrsqrt.f32 %v2027_v42  ;;  %v2146_v53 = vadd.f32 %v8269_v16, %v2114_v30  ;;  %v2084_v49 = vmul.f32 %v7631_v38, %v9883_v12  ;;  %v8274_v42 = vld [vmem:[#allocation16 + $0x78] sm:$0xff] }
 0x55b   :  { %7642 = vrsqrt.f32 %v2026_v60  ;;  %v1987_v35 = vpop.xlane.xlu1 %1986  ;;  %v2117_v37 = vmul.f32 0.1, %v2085_v21 }
 0x55c   :  { %v7633_v46 = vpop.eup %7632  ;;  %v2029_v58 = vmax.f32 %v1987_v35, 1e-24  ;;  %v1985_v19 = vpop.xlane.xlu0 %1984  ;;  %6700 = vmatprep.mubr.f32.mxu0 %v2146_v53  ;;  %v2116_v54 = vmul.f32 0.1, %v2084_v49  ;;  %v8275_v35 = vld [vmem:[#allocation16 + $0x80] sm:$0xff] }
 0x55d   :  { %v7635_v50 = vpop.eup %7634  ;;  %v2028_v15 = vmax.f32 %v1985_v19, 1e-24  ;;  %6701 = vmatmul.mubr.f32.gmra.mrb[106].mxu0 %v2147_v4  ;;  %v2087_v13 = vmul.f32 %v7633_v46, %v9889_v45  ;;  %v2149_v59 = vadd.f32 %v8272_v56, %v2117_v37  ;;  %v8276_v37 = vld [vmem:[#allocation16 + $0x88] sm:$0xff]  ;;  %v8278_v56 = vld [vmem:[#allocation16 + $0x98] sm:$0xff] }
 0x55e   :  { %7644 = vrsqrt.f32 %v2029_v58  ;;  %v2148_v8 = vadd.f32 %v8271_v2, %v2116_v54  ;;  %v2086_v12 = vmul.f32 %v7635_v50, %v9891_v52 }
 0x55f   :  { %7646 = vrsqrt.f32 %v2028_v15  ;;  %v1991_v40 = vpop.xlane.xlu1 %1990  ;;  %v2119_v1 = vmul.f32 0.1, %v2087_v13 }
 0x560   :  { %v7637_v51 = vpop.eup %7636  ;;  %v2031_v20 = vmax.f32 %v1991_v40, 1e-24  ;;  %v1989_v41 = vpop.xlane.xlu0 %1988  ;;  %6703 = vmatprep.mubr.f32.mxu0 %v2148_v8  ;;  %v2118_v55 = vmul.f32 0.1, %v2086_v12  ;;  %v8277_v8 = vld [vmem:[#allocation16 + $0x90] sm:$0xff] }
 0x561   :  { %v7639_v27 = vpop.eup %7638  ;;  %v2030_v18 = vmax.f32 %v1989_v41, 1e-24  ;;  %6704 = vmatmul.mubr.f32.gmra.mrb[108].mxu0 %v2149_v59  ;;  %v2089_v45 = vmul.f32 %v7637_v51, %v9903_v33  ;;  %v2151_v29 = vadd.f32 %v8274_v42, %v2119_v1 }
 0x562   :  { %7648 = vrsqrt.f32 %v2031_v20  ;;  %v2150_v25 = vadd.f32 %v8273_v61, %v2118_v55  ;;  %v2088_v52 = vmul.f32 %v7639_v27, %v9907_v44 }
 0x563   :  { %7650 = vrsqrt.f32 %v2030_v18  ;;  %v1995_v11 = vpop.xlane.xlu1 %1994  ;;  %v2121_v30 = vmul.f32 0.1, %v2089_v45  ;;  %v8279_v45 = vld [vmem:[#allocation16 + $0xa0] sm:$0xff] }
 0x564   :  { %v7641_v38 = vpop.eup %7640  ;;  %v2033_v60 = vmax.f32 %v1995_v11, 1e-24  ;;  %v1993_v21 = vpop.xlane.xlu0 %1992  ;;  %6706 = vmatprep.mubr.f32.mxu0 %v2150_v25  ;;  %v2120_v16 = vmul.f32 0.1, %v2088_v52  ;;  %v8280_v52 = vld [vmem:[#allocation16 + $0xa8] sm:$0xff] }
 0x565   :  { %v7643_v53 = vpop.eup %7642  ;;  %v2032_v49 = vmax.f32 %v1993_v21, 1e-24  ;;  %6707 = vmatmul.mubr.f32.gmra.mrb[110].mxu0 %v2151_v29  ;;  %v2091_v33 = vmul.f32 %v7641_v38, %v9913_v31  ;;  %v2153_v46 = vadd.f32 %v8276_v37, %v2121_v30 }
 0x566   :  { %7652 = vrsqrt.f32 %v2033_v60  ;;  %v2152_v14 = vadd.f32 %v8275_v35, %v2120_v16  ;;  %v2090_v44 = vmul.f32 %v7643_v53, %v9915_v36  ;;  %v8281_v53 = vld [vmem:[#allocation16 + $0xb0] sm:$0xff] }
 0x567   :  { %7654 = vrsqrt.f32 %v2032_v49  ;;  %v1999_v4 = vpop.xlane.xlu1 %1998  ;;  %v2123_v58 = vmul.f32 0.1, %v2091_v33  ;;  %v8282_v33 = vld [vmem:[#allocation16 + $0xb8] sm:$0xff] }
 0x568   :  { %v7645_v19 = vpop.eup %7644  ;;  %v2035_v54 = vmax.f32 %v1999_v4, 1e-24  ;;  %v1997_v50 = vpop.xlane.xlu0 %1996  ;;  %6709 = vmatprep.mubr.f32.mxu0 %v2152_v14  ;;  %v2122_v15 = vmul.f32 0.1, %v2090_v44 }
 0x569   :  { %v7647_v13 = vpop.eup %7646  ;;  %v2034_v2 = vmax.f32 %v1997_v50, 1e-24  ;;  %6710 = vmatmul.mubr.f32.gmra.mrb[112].mxu0 %v2153_v46  ;;  %v2093_v31 = vmul.f32 %v7645_v19, %v9927_v5  ;;  %v2155_v59 = vadd.f32 %v8278_v56, %v2123_v58  ;;  %v8283_v58 = vld [vmem:[#allocation16 + $0xc0] sm:$0xff] }
 0x56a   :  { %7656 = vrsqrt.f32 %v2035_v54  ;;  %v2154_v12 = vadd.f32 %v8277_v8, %v2122_v15  ;;  %v2092_v36 = vmul.f32 %v7647_v13, %v9931_v23  ;;  %v8284_v54 = vld [vmem:[#allocation16 + $0xc8] sm:$0xff]  ;;  %v8285_v8 = vld [vmem:[#allocation16 + $0xd0] sm:$0xff] }
 0x56b   :  { %7658 = vrsqrt.f32 %v2034_v2  ;;  %v2003_v40 = vpop.xlane.xlu1 %2002  ;;  %v2125_v1 = vmul.f32 0.1, %v2093_v31 }
 0x56c   :  { %v7649_v51 = vpop.eup %7648  ;;  %v2037_v20 = vmax.f32 %v2003_v40, 1e-24  ;;  %v2001_v41 = vpop.xlane.xlu0 %2000  ;;  %6712 = vmatprep.mubr.f32.mxu0 %v2154_v12  ;;  %v2124_v55 = vmul.f32 0.1, %v2092_v36  ;;  %v8286_v40 = vld [vmem:[#allocation16 + $0xd8] sm:$0xff] }
 0x56d   :  { %v7651_v27 = vpop.eup %7650  ;;  %v2036_v18 = vmax.f32 %v2001_v41, 1e-24  ;;  %6713 = vmatmul.mubr.f32.gmra.mrb[114].mxu0 %v2155_v59  ;;  %v2095_v5 = vmul.f32 %v7649_v51, %v9937_v28  ;;  %v2157_v11 = vadd.f32 %v8280_v52, %v2125_v1  ;;  %v10114_v52 = vld [vmem:[#allocation2 + $0x8] sm:$0xff] }
 0x56e   :  { %7660 = vrsqrt.f32 %v2037_v20  ;;  %v2156_v61 = vadd.f32 %v8279_v45, %v2124_v55  ;;  %v2094_v23 = vmul.f32 %v7651_v27, %v9939_v17  ;;  %v8287_v20 = vld [vmem:[#allocation16 + $0xe0] sm:$0xff]  ;;  %v8288_v27 = vld [vmem:[#allocation16 + $0xe8] sm:$0xff]  ;;  %2463 = vmatprep.mubr.f32.mxu1 %v10114_v52 }
 0x56f   :  { %7662 = vrsqrt.f32 %v2036_v18  ;;  %v2007_v25 = vpop.xlane.xlu1 %2006  ;;  %v2127_v42 = vmul.f32 0.1, %v2095_v5 }
 0x570   :  { %v7653_v29 = vpop.eup %7652  ;;  %v2039_v30 = vmax.f32 %v2007_v25, 1e-24  ;;  %v2005_v38 = vpop.xlane.xlu0 %2004  ;;  %6715 = vmatprep.mubr.f32.mxu0 %v2156_v61  ;;  %v2126_v60 = vmul.f32 0.1, %v2094_v23  ;;  %v8290_v61 = vld [vmem:[#allocation16 + $0xf8] sm:$0xff]  ;;  %v12763_v25 = vmov 0.0  }
 0x571   :  { %v7655_v21 = vpop.eup %7654  ;;  %v2038_v16 = vmax.f32 %v2005_v38, 1e-24  ;;  %6716 = vmatmul.mubr.f32.gmra.mrb[116].mxu0 %v2157_v11  ;;  %v2097_v28 = vmul.f32 %v7653_v29, %v9951_v0  ;;  %v2159_v35 = vadd.f32 %v8282_v33, %v2127_v42 }
 0x572   :  { %7664 = vrsqrt.f32 %v2039_v30  ;;  %v2158_v49 = vadd.f32 %v8281_v53, %v2126_v60  ;;  %v2096_v17 = vmul.f32 %v7655_v21, %v9955_v62 }
 0x573   :  { %7666 = vrsqrt.f32 %v2038_v16  ;;  %v2129_v14 = vmul.f32 0.1, %v2097_v28  ;;  %v10140_v28 = vld [vmem:[%s12475_s12] ss:$0 sm:$0xff]  ;;  %s8958_s12 = smov [#allocation24]  }
 0x574   :  { %v7657_v44 = vpop.eup %7656  ;;  %6718 = vmatprep.mubr.f32.mxu0 %v2158_v49  ;;  %v2128_v4 = vmul.f32 0.1, %v2096_v17  ;;  %s5952_s29 = sshll.u32 %s8958_s12, 4  ;;  %s5953_s29 = int_to_ptr.vmem [resolvable:$true] %s5952_s29 }
 0x575   :  { %v7659_v37 = vpop.eup %7658  ;;  %6719 = vmatmul.mubr.f32.gmra.mrb[118].mxu0 %v2159_v35  ;;  %v2099_v46 = vmul.f32 %v7657_v44, %v9961_v43  ;;  %v2161_v50 = vadd.f32 %v8284_v54, %v2129_v14  ;;  %s8789_s28 = scalar_lea.vmem %s5953_s29, 4096  ;;  %p8794_p5 = scmp.lt.s32.totalorder %s5953_s29, %s5953_s29 }
 0x576   :  { %v2160_v19 = vadd.f32 %v8283_v58, %v2128_v4  ;;  %v2098_v0 = vmul.f32 %v7659_v37, %v9963_v32  ;;  %p8790_p4 = scmp.ne.s32.totalorder %s5953_s29, %s8789_s28  ;;  %p8795_p6 = scmp.lt.s32.totalorder %s8789_s28, %s8789_s28 }
 0x577   :  { %v2131_v15 = vmul.f32 0.1, %v2099_v46 }
 0x578   :  { %v7661_v13 = vpop.eup %7660  ;;  %6721 = vmatprep.mubr.f32.mxu0 %v2160_v19  ;;  %v2130_v62 = vmul.f32 0.1, %v2098_v0  ;;  %v12764_v19 = vld [vmem:[#allocation39_spill] sm:$0xff]  ;;  %p8796_p7 = por %p8795_p6, %p8794_p5 }
 0x579   :  { %v7663_v2 = vpop.eup %7662  ;;  %6722 = vmatmul.mubr.f32.gmra.mrb[120].mxu0 %v2161_v50  ;;  %v2101_v31 = vmul.f32 %v7661_v13, %v9975_v57  ;;  %v2163_v43 = vadd.f32 %v8286_v40, %v2131_v15  ;;  %v12765_v0 = vpack.c.bf16 %v9781_v6, %v12764_v19 }
 0x57a   :  { %v2162_v12 = vadd.f32 %v8285_v8, %v2130_v62  ;;  %v2100_v36 = vmul.f32 %v7663_v2, %v9979_v7  ;;  %v8289_v7 = vld [vmem:[#allocation16 + $0xf0] sm:$0xff]  ;;  %v12766_v8 = vld [vmem:[#allocation40_spill] sm:$0xff]  ;;  %p8797_p8 = pnand %p8796_p7, %p8790_p4 }
 0x57b   :  { %v2133_v56 = vmul.f32 0.1, %v2101_v31 }
 0x57c   :  { %v7665_v59 = vpop.eup %7664  ;;  %6724 = vmatprep.mubr.f32.mxu0 %v2162_v12  ;;  %v2132_v32 = vmul.f32 0.1, %v2100_v36  ;;  %v12767_v12 = vld [vmem:[#allocation41_spill] sm:$0xff] }
 0x57d   :  { %v7667_v1 = vpop.eup %7666  ;;  %6725 = vmatmul.mubr.f32.gmra.mrb[122].mxu0 %v2163_v43  ;;  %v2103_v51 = vmul.f32 %v7665_v59, %v9985_v34  ;;  %v2165_v57 = vadd.f32 %v8288_v27, %v2133_v56  ;;  %v12768_v36 = vpack.c.bf16 %v12766_v8, %v12767_v12  ;;  %v12778_v12 = vld [vmem:[#allocation48_spill] sm:$0xff] }
 0x57e   :  { %v2164_v41 = vadd.f32 %v8287_v20, %v2132_v32  ;;  %v2102_v55 = vmul.f32 %v7667_v1, %v9987_v10  ;;  %v12769_v1 = vld [vmem:[#allocation42_spill] sm:$0xff] }
 0x57f   :  { %v2135_v18 = vmul.f32 0.1, %v2103_v51  ;;  %v12770_v51 = vld [vmem:[#allocation43_spill] sm:$0xff] }
 0x580   :  { %6727 = vmatprep.mubr.f32.mxu0 %v2164_v41  ;;  %v2134_v5 = vmul.f32 0.1, %v2102_v55  ;;  %v12771_v20 = vpack.c.bf16 %v12769_v1, %v12770_v51 }
 0x581   :  { %6728 = vmatmul.mubr.f32.gmra.mrb[124].mxu0 %v2165_v57  ;;  %v2167_v23 = vadd.f32 %v8290_v61, %v2135_v18 }
 0x582   :  { %v2166_v45 = vadd.f32 %v8289_v7, %v2134_v5  ;;  %v12772_v7 = vld [vmem:[#allocation44_spill] sm:$0xff] }
 0x584   :  { %6730 = vmatprep.mubr.f32.mxu0 %v2166_v45  ;;  %v12773_v45 = vld [vmem:[#allocation45_spill] sm:$0xff] }
 0x585   :  { %6731 = vmatmul.mubr.f32.gmra.mrb[126].mxu0 %v2167_v23  ;;  %v12774_v61 = vpack.c.bf16 %v12772_v7, %v12773_v45 }
 0x586   :  { %2624 = vmatprep.mubr.f32.mxu0 %v12763_v25 }
 0x589   :  { %v10117_v34 = vpop.xlane.xlu0 %3169 }
 0x58a   :  { %v10119_v10 = vpop.xlane.xlu1 %3171 }
 0x58f   :  { %v10121_v11 = vpop.xlane.xlu0 %3137 }
 0x591   :  { %v10123_v42 = vpop.xlane.xlu1 %3139 }
 0x593   :  { %v10125_v29 = vpop.xlane.xlu0 %3173 }
 0x594   :  { %v3219_v51 = vmax.f32 %v10125_v29, 1e-24 }
 0x595   :  { %v10127_v30 = vpop.xlane.xlu1 %3175 }
 0x597   :  { %v10129_v38 = vpop.xlane.xlu0 %3141 }
 0x599   :  { %v10131_v60 = vpop.xlane.xlu1 %3143 }
 0x59b   :  { %v10133_v21 = vpop.xlane.xlu0 %3177 }
 0x59d   :  { %v10135_v16 = vpop.xlane.xlu1 %3179 }
 0x59f   :  { %v10144_v35 = vpop.xlane.xlu0 %3145 }
 0x5a1   :  { %v10146_v14 = vpop.xlane.xlu1 %3147 }
 0x5a3   :  { %v10153_v15 = vpop.xlane.xlu0 %3181 }
 0x5a5   :  { %v10156_v2 = vpop.xlane.xlu1 %3183 }
 0x5a7   :  { %v10164_v32 = vpop.xlane.xlu0 %3149 }
 0x5a9   :  { %v10169_v41 = vpop.xlane.xlu1 %3151 }
 0x61c   :  { %v6687_v53 = vpop.f32.mrb[96].mxu0 }
 0x61d   :  { %v2246_v49 = vadd.f32 %v6687_v53, %v10140_v28  ;;  %v2240_v17 = vpop.f32.mrb[97].mxu0 }
 0x61e   :  { %v2241_v33 = vadd.f32 %v10140_v28, %v2240_v17 }
 0x620   :  { %v7213_v44 = vpack.c.bf16 %v2246_v49, %v2241_v33  ;;  %v6690_v4 = vpop.f32.mrb[98].mxu0  ;;  %v10176_v49 = vpop.xlane.xlu0 %3185 }
 0x621   :  { %v2256_v37 = vadd.f32 %v6690_v4, %v10140_v28  ;;  %v2250_v46 = vpop.f32.mrb[99].mxu0 }
 0x622   :  { %v2251_v58 = vadd.f32 %v10140_v28, %v2250_v46  ;;  %7214 = vmatprep.subr.bf16.mxu1 %v7213_v44  ;;  %v10179_v44 = vpop.xlane.xlu1 %3187  ;;  %v12775_v46 = vld [vmem:[#allocation46_spill] sm:$0xff] }
 0x623   :  { %7216 = vmatpush1.bf16.msra.mxu1 %v12765_v0 }
 0x624   :  { %v7217_v54 = vpack.c.bf16 %v2256_v37, %v2251_v58  ;;  %v6693_v50 = vpop.f32.mrb[100].mxu0  ;;  %v3217_v37 = vmax.f32 %v10117_v34, 1e-24  ;;  %v12776_v58 = vld [vmem:[#allocation47_spill] sm:$0xff]  ;;  %v10189_v8 = vpop.xlane.xlu0 %3153 }
 0x625   :  { %v2266_v13 = vadd.f32 %v6693_v50, %v10140_v28  ;;  %v2260_v62 = vpop.f32.mrb[101].mxu0  ;;  %v12777_v19 = vpack.c.bf16 %v12775_v46, %v12776_v58  ;;  %v3218_v50 = vmax.f32 %v10119_v10, 1e-24  ;;  %v3202_v10 = vmax.f32 %v10123_v42, 1e-24 }
 0x626   :  { %v2261_v31 = vadd.f32 %v10140_v28, %v2260_v62  ;;  %7218 = vmatprep.subr.bf16.mxu1 %v7217_v54  ;;  %7668 = vrsqrt.f32 %v3217_v37 }
 0x627   :  { %7220 = vmatpush1.bf16.msra.mxu1 %v12768_v36  ;;  %v12779_v36 = vld [vmem:[#allocation49_spill] sm:$0xff]  ;;  %7670 = vrsqrt.f32 %v3218_v50 }
 0x628   :  { %v7221_v40 = vpack.c.bf16 %v2266_v13, %v2261_v31  ;;  %v6696_v43 = vpop.f32.mrb[102].mxu0  ;;  %v12780_v34 = vpack.c.bf16 %v12778_v12, %v12779_v36  ;;  %v10205_v7 = vpop.xlane.xlu0 %3189  ;;  %v8291_v12 = vld [vmem:[#allocation8 + $0x80] sm:$0xff] }
 0x629   :  { %v2276_v6 = vadd.f32 %v6696_v43, %v10140_v28  ;;  %v2270_v56 = vpop.f32.mrb[103].mxu0  ;;  %v10195_v43 = vpop.xlane.xlu1 %3155 }
 0x62a   :  { %v2271_v59 = vadd.f32 %v10140_v28, %v2270_v56  ;;  %7222 = vmatprep.subr.bf16.mxu1 %v7221_v40  ;;  %v3201_v40 = vmax.f32 %v10121_v11, 1e-24 }
 0x62b   :  { %7224 = vmatpush1.bf16.msra.mxu1 %v12771_v20 }
 0x62c   :  { %v7225_v55 = vpack.c.bf16 %v2276_v6, %v2271_v59  ;;  %v6699_v27 = vpop.f32.mrb[104].mxu0  ;;  %7672 = vrsqrt.f32 %v3201_v40  ;;  %v10218_v50 = vpop.xlane.xlu0 %3157 }
 0x62d   :  { %v2286_v57 = vadd.f32 %v6699_v27, %v10140_v28  ;;  %v2280_v18 = vpop.f32.mrb[105].mxu0  ;;  %v12781_v27 = vld [vmem:[#allocation50_spill] sm:$0xff]  ;;  %7674 = vrsqrt.f32 %v3202_v10  ;;  %v10208_v29 = vpop.xlane.xlu1 %3191 }
 0x62e   :  { %v2281_v5 = vadd.f32 %v10140_v28, %v2280_v18  ;;  %7226 = vmatprep.subr.bf16.mxu1 %v7225_v55  ;;  %v3220_v55 = vmax.f32 %v10127_v30, 1e-24  ;;  %7676 = vrsqrt.f32 %v3219_v51  ;;  %v3203_v30 = vmax.f32 %v10129_v38, 1e-24  ;;  %v12787_v38 = vld [vmem:[#allocation54_spill] sm:$0xff] }
 0x62f   :  { %7228 = vmatpush1.bf16.msra.mxu1 %v12774_v61 }
 0x630   :  { %v7229_v23 = vpack.c.bf16 %v2286_v57, %v2281_v5  ;;  %v6702_v53 = vpop.f32.mrb[106].mxu0  ;;  %v12782_v57 = vld [vmem:[#allocation51_spill] sm:$0xff]  ;;  %7678 = vrsqrt.f32 %v3220_v55 }
 0x631   :  { %v2296_v17 = vadd.f32 %v6702_v53, %v10140_v28  ;;  %v2290_v33 = vpop.f32.mrb[107].mxu0  ;;  %v12783_v11 = vpack.c.bf16 %v12781_v27, %v12782_v57  ;;  %v12785_v53 = vld [vmem:[#allocation53_spill] sm:$0xff]  ;;  %7680 = vrsqrt.f32 %v3203_v30  ;;  %v12790_v57 = vld [vmem:[#allocation56_spill] sm:$0xff]  ;;  %v3089_v30 = vld [vmem:[#allocation13 + $0x80] sm:$0xff] }
 0x632   :  { %v2291_v4 = vadd.f32 %v10140_v28, %v2290_v33  ;;  %7230 = vmatprep.subr.bf16.mxu1 %v7229_v23  ;;  %v12784_v23 = vld [vmem:[#allocation52_spill] sm:$0xff]  ;;  %v7669_v33 = vpop.eup %7668 }
 0x633   :  { %7232 = vmatpush1.bf16.msra.mxu1 %v12777_v19  ;;  %v7671_v19 = vpop.eup %7670  ;;  %v3281_v36 = vmul.f32 %v8291_v12, %v7669_v33 }
 0x634   :  { %v7233_v0 = vpack.c.bf16 %v2296_v17, %v2291_v4  ;;  %v6705_v54 = vpop.f32.mrb[108].mxu0  ;;  %v12786_v17 = vpack.c.bf16 %v12784_v23, %v12785_v53  ;;  %v3223_v23 = vmax.f32 %v10153_v15, 1e-24  ;;  %v3207_v15 = vmax.f32 %v10164_v32, 1e-24 }
 0x635   :  { %v2306_v13 = vadd.f32 %v6705_v54, %v10140_v28  ;;  %v2300_v62 = vpop.f32.mrb[109].mxu0  ;;  %v3204_v54 = vmax.f32 %v10131_v60, 1e-24  ;;  %v3225_v32 = vmax.f32 %v10176_v49, 1e-24  ;;  %v12798_v49 = vld [vmem:[#allocation60_spill] sm:$0xff] }
 0x636   :  { %v2301_v31 = vadd.f32 %v10140_v28, %v2300_v62  ;;  %7234 = vmatprep.subr.bf16.mxu1 %v7233_v0  ;;  %v7673_v10 = vpop.eup %7672 }
 0x637   :  { %7236 = vmatpush1.bf16.msra.mxu1 %v12780_v34  ;;  %v10224_v34 = vpop.xlane.xlu1 %3159  ;;  %7682 = vrsqrt.f32 %v3204_v54  ;;  %v3265_v53 = vmul.f32 %v10037_v48, %v7673_v10  ;;  %v12794_v54 = vld [vmem:[#allocation59_spill] sm:$0xff]  ;;  %v3090_v10 = vld [vmem:[#allocation13 + $0x88] sm:$0xff] }
 0x638   :  { %v7237_v6 = vpack.c.bf16 %v2306_v13, %v2301_v31  ;;  %v6708_v56 = vpop.f32.mrb[110].mxu0  ;;  %v12788_v13 = vld [vmem:[#allocation55_spill] sm:$0xff]  ;;  %v3221_v31 = vmax.f32 %v10133_v21, 1e-24  ;;  %v3205_v21 = vmax.f32 %v10144_v35, 1e-24 }
 0x639   :  { %v2316_v59 = vadd.f32 %v6708_v56, %v10140_v28  ;;  %v2310_v1 = vpop.f32.mrb[111].mxu0  ;;  %v12789_v62 = vpack.c.bf16 %v12787_v38, %v12788_v13  ;;  %v3222_v56 = vmax.f32 %v10135_v16, 1e-24  ;;  %v3206_v16 = vmax.f32 %v10146_v14, 1e-24 }
 0x63a   :  { %v2311_v20 = vadd.f32 %v10140_v28, %v2310_v1  ;;  %7238 = vmatprep.subr.bf16.mxu1 %v7237_v6  ;;  %v8292_v1 = vld [vmem:[#allocation8 + $0x88] sm:$0xff]  ;;  %7684 = vrsqrt.f32 %v3221_v31 }
 0x63b   :  { %7240 = vmatpush1.bf16.msra.mxu1 %v12783_v11  ;;  %v3282_v51 = vmul.f32 %v8292_v1, %v7671_v19  ;;  %v12791_v11 = vld [vmem:[#allocation57_spill] sm:$0xff]  ;;  %7686 = vrsqrt.f32 %v3222_v56 }
 0x63c   :  { %v7241_v18 = vpack.c.bf16 %v2316_v59, %v2311_v20  ;;  %v6711_v5 = vpop.f32.mrb[112].mxu0  ;;  %v7675_v20 = vpop.eup %7674  ;;  %7688 = vrsqrt.f32 %v3205_v21  ;;  %v8293_v19 = vld [vmem:[#allocation8 + $0x90] sm:$0xff] }
 0x63d   :  { %v2326_v42 = vadd.f32 %v6711_v5, %v10140_v28  ;;  %v2320_v45 = vpop.f32.mrb[113].mxu0  ;;  %v7677_v27 = vpop.eup %7676  ;;  %v3313_v5 = vmul.f32 0.1, %v3281_v36  ;;  %v3266_v14 = vmul.f32 %v10041_v47, %v7675_v20  ;;  %7690 = vrsqrt.f32 %v3206_v16  ;;  %v8294_v47 = vld [vmem:[#allocation8 + $0x98] sm:$0xff]  ;;  %v12797_v21 = vld [vmem:[#allocation61_spill] sm:$0xff] }
 0x63e   :  { %v2321_v61 = vadd.f32 %v10140_v28, %v2320_v45  ;;  %7242 = vmatprep.subr.bf16.mxu1 %v7241_v18  ;;  %v12792_v18 = vpack.c.bf16 %v12790_v57, %v12791_v11  ;;  %v3283_v48 = vmul.f32 %v8293_v19, %v7677_v27  ;;  %7692 = vrsqrt.f32 %v3223_v23  ;;  %v3074_v57 = vld [vmem:[#allocation13 + $0x8] sm:$0xff]  ;;  %v3091_v11 = vld [vmem:[#allocation13 + $0x90] sm:$0xff] }
 0x63f   :  { %7244 = vmatpush1.bf16.msra.mxu1 %v12786_v17  ;;  %v10236_v17 = vpop.xlane.xlu0 %3193  ;;  %v10248_v13 = vadd.f32 %v3313_v5, %v3089_v30  ;;  %v3209_v20 = vmax.f32 %v10189_v8, 1e-24  ;;  %v12799_v27 = vpack.c.bf16 %v12797_v21, %v12798_v49  ;;  %v3210_v16 = vmax.f32 %v10195_v43, 1e-24  ;;  %v3092_v30 = vld [vmem:[#allocation13 + $0x98] sm:$0xff] }
 0x640   :  { %v7245_v4 = vpack.c.bf16 %v2326_v42, %v2321_v61  ;;  %v6714_v37 = vpop.f32.mrb[114].mxu0  ;;  %v7679_v42 = vpop.eup %7678  ;;  %v3227_v23 = vmax.f32 %v10205_v7, 1e-24  ;;  %v12803_v7 = vld [vmem:[#allocation62_spill] sm:$0xff]  ;;  %v12806_v21 = vpack.c.bf16 %v10013_v63, %v10010_v9 }
 0x641   :  { %v2336_v46 = vadd.f32 %v6714_v37, %v10140_v28  ;;  %v2330_v58 = vpop.f32.mrb[115].mxu0  ;;  %v3224_v37 = vmax.f32 %v10156_v2, 1e-24  ;;  %12796 = vst [vmem:[#allocation39_spill] sm:$0xff] %v10248_v13  ;;  %v3208_v2 = vmax.f32 %v10169_v41, 1e-24  ;;  %v7681_v31 = vpop.eup %7680 }
 0x642   :  { %v2331_v0 = vadd.f32 %v10140_v28, %v2330_v58  ;;  %7246 = vmatprep.subr.bf16.mxu1 %v7245_v4  ;;  %v3314_v4 = vmul.f32 0.1, %v3282_v51  ;;  %v3073_v41 = vld [vmem:[#allocation13] sm:$0xff]  ;;  %v3315_v51 = vmul.f32 0.1, %v3283_v48 }
 0x643   :  { %7248 = vmatpush1.bf16.msra.mxu1 %v12789_v62  ;;  %v3284_v62 = vmul.f32 %v8294_v47, %v7679_v42  ;;  %7694 = vrsqrt.f32 %v3224_v37  ;;  %v7683_v42 = vpop.eup %7682  ;;  %v3075_v47 = vld [vmem:[#allocation13 + $0x10] sm:$0xff] }
 0x644   :  { %v7249_v40 = vpack.c.bf16 %v2336_v46, %v2331_v0  ;;  %v6717_v6 = vpop.f32.mrb[116].mxu0  ;;  %v10241_v46 = vpop.xlane.xlu1 %3195  ;;  %v12793_v0 = vld [vmem:[#allocation58_spill] sm:$0xff]  ;;  %7696 = vrsqrt.f32 %v3207_v15  ;;  %v10265_v8 = vadd.f32 %v3314_v4, %v3090_v10  ;;  %v10275_v4 = vadd.f32 %v3315_v51, %v3091_v11  ;;  %v12802_v15 = vld [vmem:[#allocation63_spill] sm:$0xff] }
 0x645   :  { %v2346_v59 = vadd.f32 %v6717_v6, %v10140_v28  ;;  %v2340_v60 = vpop.f32.mrb[117].mxu0  ;;  %v12795_v38 = vpack.c.bf16 %v12793_v0, %v12794_v54  ;;  %7698 = vrsqrt.f32 %v3208_v2  ;;  %v12804_v19 = vpack.c.bf16 %v12802_v15, %v12803_v7  ;;  %v8298_v15 = vld [vmem:[#allocation8 + $0x28] sm:$0xff] }
 0x646   :  { %v2341_v55 = vadd.f32 %v10140_v28, %v2340_v60  ;;  %7250 = vmatprep.subr.bf16.mxu1 %v7249_v40  ;;  %v3297_v40 = vmul.f32 0.1, %v3265_v53  ;;  %v3226_v60 = vmax.f32 %v10179_v44, 1e-24  ;;  %v3267_v44 = vmul.f32 %v10049_v22, %v7681_v31  ;;  %12800 = vst [vmem:[#allocation40_spill] sm:$0xff] %v10265_v8  ;;  %v7685_v53 = vpop.eup %7684  ;;  %12801 = vst [vmem:[#allocation41_spill] sm:$0xff] %v10275_v4 }
 0x647   :  { %7252 = vmatpush1.bf16.msra.mxu1 %v12792_v18  ;;  %v3316_v18 = vmul.f32 0.1, %v3284_v62  ;;  %7700 = vrsqrt.f32 %v3225_v32  ;;  %v3228_v22 = vmax.f32 %v10208_v29, 1e-24  ;;  %v7687_v43 = vpop.eup %7686  ;;  %v3268_v0 = vmul.f32 %v10053_v24, %v7683_v42  ;;  %v8295_v62 = vld [vmem:[#allocation8 + $0xa0] sm:$0xff] }
 0x648   :  { %v7253_v45 = vpack.c.bf16 %v2346_v59, %v2341_v55  ;;  %v6720_v61 = vpop.f32.mrb[118].mxu0  ;;  %v3298_v59 = vmul.f32 0.1, %v3266_v14  ;;  %v10256_v55 = vpop.xlane.xlu0 %3161  ;;  %v10269_v37 = vadd.f32 %v3297_v40, %v3073_v41  ;;  %7702 = vrsqrt.f32 %v3226_v60 }
 0x649   :  { %v2356_v35 = vadd.f32 %v6720_v61, %v10140_v28  ;;  %v2350_v33 = vpop.f32.mrb[119].mxu0  ;;  %v10263_v5 = vpop.xlane.xlu1 %3163  ;;  %7704 = vrsqrt.f32 %v3209_v20  ;;  %v10280_v48 = vadd.f32 %v3316_v18, %v3092_v30  ;;  %v3299_v54 = vmul.f32 0.1, %v3267_v44 }
 0x64a   :  { %v2351_v58 = vadd.f32 %v10140_v28, %v2350_v33  ;;  %7254 = vmatprep.subr.bf16.mxu1 %v7253_v45  ;;  %7706 = vrsqrt.f32 %v3210_v16  ;;  %v7689_v29 = vpop.eup %7688  ;;  %v3285_v31 = vmul.f32 %v8295_v62, %v7685_v53  ;;  %v3212_v24 = vmax.f32 %v10224_v34, 1e-24  ;;  %v8297_v53 = vld [vmem:[#allocation8 + $0x20] sm:$0xff] }
 0x64b   :  { %7256 = vmatpush1.bf16.msra.mxu1 %v12795_v38  ;;  %12805 = vst [vmem:[#allocation42_spill] sm:$0xff] %v10280_v48  ;;  %7708 = vrsqrt.f32 %v3227_v23  ;;  %v7691_v40 = vpop.eup %7690  ;;  %v3229_v51 = vmax.f32 %v10236_v17, 1e-24  ;;  %v7313_v34 = vpack.c.bf16 %v10280_v48, %v10275_v4  ;;  %v3300_v49 = vmul.f32 0.1, %v3268_v0 }
 0x64c   :  { %v7257_v12 = vpack.c.bf16 %v2356_v35, %v2351_v58  ;;  %v6723_v36 = vpop.f32.mrb[120].mxu0  ;;  %v10273_v58 = vadd.f32 %v3298_v59, %v3074_v57  ;;  %7710 = vrsqrt.f32 %v3228_v22  ;;  %v7693_v60 = vpop.eup %7692  ;;  %v3230_v57 = vmax.f32 %v10241_v46, 1e-24  ;;  %v3076_v46 = vld [vmem:[#allocation13 + $0x18] sm:$0xff] }
 0x64d   :  { %v2366_v6 = vadd.f32 %v6723_v36, %v10140_v28  ;;  %v2360_v56 = vpop.f32.mrb[121].mxu0  ;;  %v10284_v36 = vpop.xlane.xlu0 %3197  ;;  %v3317_v16 = vmul.f32 0.1, %v3285_v31  ;;  %v3213_v17 = vmax.f32 %v10256_v55, 1e-24  ;;  %v3270_v7 = vmul.f32 %v8298_v15, %v7691_v40 }
 0x64e   :  { %v2361_v1 = vadd.f32 %v10140_v28, %v2360_v56  ;;  %7258 = vmatprep.subr.bf16.mxu1 %v7257_v12  ;;  %v3211_v12 = vmax.f32 %v10218_v50, 1e-24  ;;  %v8296_v56 = vld [vmem:[#allocation8 + $0xa8] sm:$0xff]  ;;  %v10288_v59 = vpop.xlane.xlu1 %3199  ;;  %v7309_v50 = vpack.c.bf16 %v10265_v8, %v10248_v13  ;;  %v7311_v41 = vpack.c.bf16 %v10273_v58, %v10269_v37  ;;  %v7695_v20 = vpop.eup %7694 }
 0x64f   :  { %7260 = vmatpush1.bf16.msra.mxu1 %v12799_v27  ;;  %v3286_v10 = vmul.f32 %v8296_v56, %v7687_v43  ;;  %v10301_v27 = vadd.f32 %v3299_v54, %v3075_v47  ;;  %v7697_v11 = vpop.eup %7696  ;;  %v12807_v43 = vpack.c.bf16 %v10021_v26, %v10018_v39  ;;  %v8301_v47 = vld [vmem:[#allocation8 + $0x30] sm:$0xff]  ;;  %v3094_v26 = vld [vmem:[#allocation13 + $0xa8] sm:$0xff]  ;;  %v8302_v39 = vld [vmem:[#allocation8 + $0x38] sm:$0xff] }
 0x650   :  { %v7261_v45 = vpack.c.bf16 %v2366_v6, %v2361_v1  ;;  %v6726_v61 = vpop.f32.mrb[122].mxu0  ;;  %7712 = vrsqrt.f32 %v3211_v12  ;;  %v7699_v42 = vpop.eup %7698  ;;  %v3271_v62 = vmul.f32 %v8301_v47, %v7697_v11  ;;  %v10313_v12 = vadd.f32 %v3300_v49, %v3076_v46 }
 0x651   :  { %v2376_v35 = vadd.f32 %v6726_v61, %v10140_v28  ;;  %v2370_v33 = vpop.f32.mrb[123].mxu0  ;;  %v3318_v9 = vmul.f32 0.1, %v3286_v10  ;;  %7714 = vrsqrt.f32 %v3212_v24  ;;  %v3214_v61 = vmax.f32 %v10263_v5, 1e-24  ;;  %v7701_v30 = vpop.eup %7700  ;;  %v8299_v5 = vld [vmem:[#allocation8 + $0xb0] sm:$0xff] }
 0x652   :  { %v2371_v14 = vadd.f32 %v10140_v28, %v2370_v33  ;;  %7262 = vmatprep.subr.bf16.mxu1 %v7261_v45  ;;  %7716 = vrsqrt.f32 %v3229_v51  ;;  %v3231_v33 = vmax.f32 %v10284_v36, 1e-24  ;;  %v3166_v22 = vpop.xlane.xlu0 %3165  ;;  %v7703_v55 = vpop.eup %7702  ;;  %v3272_v36 = vmul.f32 %v8302_v39, %v7699_v42  ;;  %v10322_v51 = vld [vmem:[#allocation2 + $0x18] sm:$0xff] }
 0x653   :  { %7264 = vmatpush1.bf16.msra.mxu1 %v12804_v19  ;;  %v3287_v19 = vmul.f32 %v8299_v5, %v7693_v60  ;;  %7718 = vrsqrt.f32 %v3230_v57  ;;  %v3168_v0 = vpop.xlane.xlu1 %3167  ;;  %v7705_v54 = vpop.eup %7704  ;;  %v3215_v40 = vmax.f32 %v3166_v22, 1e-24  ;;  %v12809_v60 = vld [vmem:[#allocation64_spill] sm:$0xff]  ;;  %v3302_v49 = vmul.f32 0.1, %v3270_v7  ;;  %v8303_v57 = vld [vmem:[#allocation8 + $0xc0] sm:$0xff] }
 0x654   :  { %v7265_v38 = vpack.c.bf16 %v2376_v35, %v2371_v14  ;;  %v6729_v2 = vpop.f32.mrb[124].mxu0  ;;  %v3269_v35 = vmul.f32 %v8297_v53, %v7689_v29  ;;  %v3093_v14 = vld [vmem:[#allocation13 + $0xa0] sm:$0xff]  ;;  %7720 = vrsqrt.f32 %v3213_v17  ;;  %v7707_v31 = vpop.eup %7706  ;;  %v3216_v24 = vmax.f32 %v3168_v0, 1e-24  ;;  %v8306_v53 = vld [vmem:[#allocation8 + $0x48] sm:$0xff]  ;;  %v8307_v22 = vld [vmem:[#allocation8 + $0xd0] sm:$0xff] }
 0x655   :  { %v2386_v32 = vadd.f32 %v6729_v2, %v10140_v28  ;;  %v2380_v6 = vpop.f32.mrb[125].mxu0  ;;  %7722 = vrsqrt.f32 %v3214_v61  ;;  %v10317_v56 = vadd.f32 %v3317_v16, %v3093_v14  ;;  %v3289_v11 = vmul.f32 %v8303_v57, %v7701_v30  ;;  %v10333_v7 = vld [vmem:[#allocation2 + $0x10] sm:$0xff]  ;;  %v10359_v57 = vld [vmem:[#allocation2 + $0x20] sm:$0xff] }
 0x656   :  { %v2381_v1 = vadd.f32 %v10140_v28, %v2380_v6  ;;  %7266 = vmatprep.subr.bf16.mxu1 %v7265_v38  ;;  %v8300_v38 = vld [vmem:[#allocation8 + $0xb8] sm:$0xff]  ;;  %v10315_v6 = vld [vmem:[#allocation2] sm:$0xff]  ;;  %v3301_v10 = vmul.f32 0.1, %v3269_v35  ;;  %7724 = vrsqrt.f32 %v3231_v33  ;;  %v10327_v16 = vadd.f32 %v3318_v9, %v3094_v26 }
 0x657   :  { %7268 = vmatpush1.bf16.msra.mxu1 %v12806_v21  ;;  %v3288_v2 = vmul.f32 %v8300_v38, %v7695_v20  ;;  %12808 = vst [vmem:[#allocation43_spill] sm:$0xff] %v10317_v56  ;;  %v3077_v20 = vld [vmem:[#allocation13 + $0x20] sm:$0xff]  ;;  %v3078_v21 = vld [vmem:[#allocation13 + $0x28] sm:$0xff]  ;;  %v3319_v17 = vmul.f32 0.1, %v3287_v19  ;;  %v3274_v35 = vmul.f32 %v8306_v53, %v7707_v31  ;;  %v7315_v33 = vpack.c.bf16 %v10313_v12, %v10301_v27  ;;  %v3080_v9 = vld [vmem:[#allocation13 + $0x38] sm:$0xff] }
 0x658   :  { %v7269_v18 = vpack.c.bf16 %v2386_v32, %v2381_v1  ;;  %v6732_v44 = vpop.f32.mrb[126].mxu0  ;;  %v7709_v32 = vpop.eup %7708  ;;  %v12810_v1 = vpack.c.bf16 %v10029_v3, %v12809_v60  ;;  %12811 = vst [vmem:[#allocation44_spill] sm:$0xff] %v10327_v16  ;;  %v3303_v3 = vmul.f32 0.1, %v3271_v62  ;;  %v3304_v61 = vmul.f32 0.1, %v3272_v36 }
 0x659   :  { %v2396_v45 = vadd.f32 %v6732_v44, %v10140_v28  ;;  %v2390_v63 = vpop.f32.mrb[127].mxu0  ;;  %v3320_v42 = vmul.f32 0.1, %v3288_v2  ;;  %v10338_v5 = vadd.f32 %v3301_v10, %v3077_v20  ;;  %v10340_v19 = vadd.f32 %v3302_v49, %v3078_v21  ;;  %v3098_v62 = vld [vmem:[#allocation13 + $0xc8] sm:$0xff]  ;;  %v8309_v60 = vld [vmem:[#allocation8 + $0x50] sm:$0xff]  ;;  %v8310_v20 = vld [vmem:[#allocation8 + $0x58] sm:$0xff] }
 0x65a   :  { %v2391_v23 = vadd.f32 %v10140_v28, %v2390_v63  ;;  %7270 = vmatprep.subr.bf16.mxu1 %v7269_v18  ;;  %v3232_v28 = vmax.f32 %v10288_v59, 1e-24  ;;  %v7711_v59 = vpop.eup %7710  ;;  %v8304_v18 = vld [vmem:[#allocation8 + $0xc8] sm:$0xff]  ;;  %v3096_v63 = vld [vmem:[#allocation13 + $0xb8] sm:$0xff]  ;;  %v7317_v38 = vpack.c.bf16 %v10327_v16, %v10317_v56  ;;  %v10355_v39 = vadd.f32 %v3304_v61, %v3080_v9  ;;  %v8311_v61 = vld [vmem:[#allocation8 + $0xe0] sm:$0xff] }
 0x65b   :  { %7272 = vmatpush1.bf16.msra.mxu1 %v12807_v43  ;;  %v3290_v44 = vmul.f32 %v8304_v18, %v7703_v55  ;;  %v7713_v30 = vpop.eup %7712  ;;  %v3291_v55 = vmul.f32 %v8307_v22, %v7709_v32  ;;  %v8308_v43 = vld [vmem:[#allocation8 + $0xd8] sm:$0xff]  ;;  %12812 = vst [vmem:[#allocation45_spill] sm:$0xff] %v10338_v5  ;;  %12813 = vst [vmem:[#allocation46_spill] sm:$0xff] %v10340_v19  ;;  %v10351_v47 = vadd.f32 %v3320_v42, %v3096_v63  ;;  %v3082_v10 = vld [vmem:[#allocation13 + $0x48] sm:$0xff] }
 0x65c   :  { %v7273_v29 = vpack.c.bf16 %v2396_v45, %v2391_v23  ;;  %7726 = vrsqrt.f32 %v3232_v28  ;;  %v3095_v45 = vld [vmem:[#allocation13 + $0xb0] sm:$0xff]  ;;  %v8305_v23 = vld [vmem:[#allocation8 + $0x40] sm:$0xff]  ;;  %v3292_v14 = vmul.f32 %v8308_v43, %v7711_v59  ;;  %v7715_v15 = vpop.eup %7714  ;;  %v3321_v28 = vmul.f32 0.1, %v3289_v11  ;;  %12817 = vst [vmem:[#allocation50_spill] sm:$0xff] %v10355_v39  ;;  %v3100_v42 = vld [vmem:[#allocation13 + $0xd8] sm:$0xff] }
 0x65d   :  { %v3273_v46 = vmul.f32 %v8305_v23, %v7705_v54  ;;  %7728 = vrsqrt.f32 %v3215_v40  ;;  %v3322_v0 = vmul.f32 0.1, %v3290_v44  ;;  %v7717_v54 = vpop.eup %7716  ;;  %v10349_v2 = vadd.f32 %v3319_v17, %v3095_v45  ;;  %12815 = vst [vmem:[#allocation48_spill] sm:$0xff] %v10351_v47  ;;  %v3099_v17 = vld [vmem:[#allocation13 + $0xd0] sm:$0xff]  ;;  %v10367_v45 = vld [vmem:[#allocation2 + $0x38] sm:$0xff] }
 0x65e   :  { %7274 = vmatprep.subr.bf16.mxu1 %v7273_v29  ;;  %7730 = vrsqrt.f32 %v3216_v24  ;;  %v10342_v29 = vld [vmem:[#allocation2 + $0x28] sm:$0xff]  ;;  %v7719_v31 = vpop.eup %7718  ;;  %v3306_v40 = vmul.f32 0.1, %v3274_v35  ;;  %v3323_v24 = vmul.f32 0.1, %v3291_v55  ;;  %v3276_v21 = vmul.f32 %v8310_v20, %v7715_v15  ;;  %v10383_v15 = vld [vmem:[#allocation2 + $0x30] sm:$0xff] }
 0x65f   :  { %7276 = vmatpush1.bf16.msra.mxu1 %v12810_v1  ;;  %12814 = vst [vmem:[#allocation47_spill] sm:$0xff] %v10349_v2  ;;  %v3305_v36 = vmul.f32 0.1, %v3273_v46  ;;  %v7721_v32 = vpop.eup %7720  ;;  %v3324_v59 = vmul.f32 0.1, %v3292_v14  ;;  %v3275_v1 = vmul.f32 %v8309_v60, %v7713_v30  ;;  %v7319_v11 = vpack.c.bf16 %v10340_v19, %v10338_v5  ;;  %v8312_v46 = vld [vmem:[#allocation8 + $0xe8] sm:$0xff] }
 0x660   :  { %7310 = vmatprep.subr.bf16.mxu1 %v7309_v50  ;;  %v3079_v50 = vld [vmem:[#allocation13 + $0x30] sm:$0xff]  ;;  %v7723_v49 = vpop.eup %7722  ;;  %v10365_v44 = vadd.f32 %v3322_v0, %v3098_v62  ;;  %v7321_v63 = vpack.c.bf16 %v10351_v47, %v10349_v2  ;;  %v3293_v23 = vmul.f32 %v8311_v61, %v7717_v54  ;;  %v3294_v53 = vmul.f32 %v8312_v46, %v7719_v31  ;;  %v3084_v54 = vld [vmem:[#allocation13 + $0x58] sm:$0xff]  ;;  %v8314_v62 = vld [vmem:[#allocation8 + $0x68] sm:$0xff] }
 0x661   :  { %v10353_v26 = vadd.f32 %v3303_v3, %v3079_v50  ;;  %v7725_v3 = vpop.eup %7724  ;;  %v10375_v50 = vadd.f32 %v3306_v40, %v3082_v10  ;;  %v10378_v9 = vadd.f32 %v3323_v24, %v3099_v17  ;;  %v10380_v22 = vadd.f32 %v3324_v59, %v3100_v42  ;;  %v3083_v0 = vld [vmem:[#allocation13 + $0x50] sm:$0xff]  ;;  %v10387_v40 = vld [vmem:[#allocation2 + $0x48] sm:$0xff]  ;;  %v8316_v60 = vld [vmem:[#allocation8 + $0xf8] sm:$0xff] }
 0x662   :  { %2464 = vmatmul.mubr.f32.vlgmr.msra.gmra.mrb[128].mxu1 %v10315_v6  ;;  %12819 = vst [vmem:[#allocation52_spill] sm:$0xff] %v10365_v44  ;;  %v3307_v55 = vmul.f32 0.1, %v3275_v1  ;;  %v3308_v43 = vmul.f32 0.1, %v3276_v21  ;;  %v3278_v31 = vmul.f32 %v8314_v62, %v7723_v49  ;;  %v8315_v24 = vld [vmem:[#allocation8 + $0xf0] sm:$0xff] }
 0x663   :  { %2469 = vmatprep.mubr.f32.mxu1 %v10322_v51  ;;  %7312 = vmatpush3.bf16.msra.mxu1 %v7311_v41  ;;  %v3097_v41 = vld [vmem:[#allocation13 + $0xc0] sm:$0xff]  ;;  %12816 = vst [vmem:[#allocation49_spill] sm:$0xff] %v10353_v26  ;;  %v7323_v30 = vpack.c.bf16 %v10355_v39, %v10353_v26  ;;  %12821 = vst [vmem:[#allocation54_spill] sm:$0xff] %v10375_v50  ;;  %v3326_v10 = vmul.f32 0.1, %v3294_v53  ;;  %v3295_v59 = vmul.f32 %v8315_v24, %v7725_v3  ;;  %v3102_v21 = vld [vmem:[#allocation13 + $0xe8] sm:$0xff] }
 0x664   :  { %7314 = vmatprep.subr.bf16.mxu1 %v7313_v34  ;;  %v3081_v34 = vld [vmem:[#allocation13 + $0x40] sm:$0xff]  ;;  %v10363_v18 = vadd.f32 %v3321_v28, %v3097_v41  ;;  %12822 = vst [vmem:[#allocation55_spill] sm:$0xff] %v10378_v9  ;;  %12823 = vst [vmem:[#allocation56_spill] sm:$0xff] %v10380_v22  ;;  %v10394_v49 = vadd.f32 %v3307_v55, %v3083_v0  ;;  %v10396_v17 = vadd.f32 %v3308_v43, %v3084_v54  ;;  %v10401_v3 = vld [vmem:[#allocation2 + $0x58] sm:$0xff] }
 0x665   :  { %v3101_v20 = vld [vmem:[#allocation13 + $0xe0] sm:$0xff]  ;;  %v3310_v61 = vmul.f32 0.1, %v3278_v31  ;;  %v8318_v53 = vld [vmem:[#allocation8 + $0x78] sm:$0xff]  ;;  %v10405_v55 = vadd.f32 %v3326_v10, %v3102_v21  ;;  %v3086_v0 = vld [vmem:[#allocation13 + $0x68] sm:$0xff] }
 0x666   :  { %2470 = vmatmul.mubr.f32.gmra.mrb[130].mxu1 %v10333_v7  ;;  %12818 = vst [vmem:[#allocation51_spill] sm:$0xff] %v10363_v18  ;;  %v7727_v35 = vpop.eup %7726  ;;  %v7325_v28 = vpack.c.bf16 %v10365_v44, %v10363_v18  ;;  %12824 = vst [vmem:[#allocation57_spill] sm:$0xff] %v10394_v49  ;;  %v10399_v42 = vld [vmem:[#allocation2 + $0x40] sm:$0xff]  ;;  %v3327_v54 = vmul.f32 0.1, %v3295_v59  ;;  %v3103_v24 = vld [vmem:[#allocation13 + $0xf0] sm:$0xff] }
 0x667   :  { %2475 = vmatprep.mubr.f32.mxu1 %v10342_v29  ;;  %7316 = vmatpush3.bf16.msra.mxu1 %v7315_v33  ;;  %v10373_v33 = vadd.f32 %v3305_v36, %v3081_v34  ;;  %v7729_v14 = vpop.eup %7728  ;;  %v3325_v34 = vmul.f32 0.1, %v3293_v23  ;;  %v3296_v1 = vmul.f32 %v8316_v60, %v7727_v35  ;;  %12825 = vst [vmem:[#allocation58_spill] sm:$0xff] %v10396_v17  ;;  %v8317_v23 = vld [vmem:[#allocation8 + $0x70] sm:$0xff]  ;;  %12827 = vst [vmem:[#allocation61_spill] sm:$0xff] %v10405_v55  ;;  %v3085_v43 = vld [vmem:[#allocation13 + $0x60] sm:$0xff] }
 0x668   :  { %7318 = vmatprep.subr.bf16.mxu1 %v7317_v38  ;;  %v8313_v38 = vld [vmem:[#allocation8 + $0x60] sm:$0xff]  ;;  %v7731_v36 = vpop.eup %7730  ;;  %v3279_v46 = vmul.f32 %v8317_v23, %v7729_v14  ;;  %v3104_v60 = vld [vmem:[#allocation13 + $0xf8] sm:$0xff]  ;;  %v10411_v14 = vld [vmem:[#allocation2 + $0x50] sm:$0xff]  ;;  %v10421_v59 = vadd.f32 %v3327_v54, %v3103_v24 }
 0x669   :  { %12820 = vst [vmem:[#allocation53_spill] sm:$0xff] %v10373_v33  ;;  %v3277_v41 = vmul.f32 %v8313_v38, %v7721_v32  ;;  %v7329_v32 = vpack.c.bf16 %v10380_v22, %v10378_v9  ;;  %v3280_v35 = vmul.f32 %v8318_v53, %v7731_v36  ;;  %v10403_v38 = vadd.f32 %v3325_v34, %v3101_v20  ;;  %v10417_v34 = vld [vmem:[#allocation2 + $0x68] sm:$0xff]  ;;  %v3087_v20 = vld [vmem:[#allocation13 + $0x70] sm:$0xff]  ;;  %v3088_v21 = vld [vmem:[#allocation13 + $0x78] sm:$0xff] }
 0x66a   :  { %2476 = vmatmul.mubr.f32.gmra.mrb[132].mxu1 %v10359_v57  ;;  %v3328_v62 = vmul.f32 0.1, %v3296_v1  ;;  %v3311_v31 = vmul.f32 0.1, %v3279_v46  ;;  %12830 = vst [vmem:[#allocation62_spill] sm:$0xff] %v10421_v59  ;;  %v218_v23 = vld [vmem:[#allocation2 + $0x78] sm:$0xff] }
 0x66b   :  { %2481 = vmatprep.mubr.f32.mxu1 %v10367_v45  ;;  %7320 = vmatpush3.bf16.msra.mxu1 %v7319_v11  ;;  %v7327_v11 = vpack.c.bf16 %v10375_v50, %v10373_v33  ;;  %12826 = vst [vmem:[#allocation59_spill] sm:$0xff] %v10403_v38  ;;  %v3312_v36 = vmul.f32 0.1, %v3280_v35  ;;  %v7333_v10 = vpack.c.bf16 %v10405_v55, %v10403_v38  ;;  %v217_v53 = vld [vmem:[#allocation2 + $0x70] sm:$0xff]  ;;  %v222_v54 = vld [vmem:[#allocation2 + $0x98] sm:$0xff]  ;;  %v224_v24 = vld [vmem:[#allocation2 + $0xa8] sm:$0xff] }
 0x66c   :  { %7322 = vmatprep.subr.bf16.mxu1 %v7321_v63  ;;  %v3309_v63 = vmul.f32 0.1, %v3277_v41  ;;  %v10415_v41 = vadd.f32 %v3310_v61, %v3086_v0  ;;  %v10423_v1 = vadd.f32 %v3328_v62, %v3104_v60  ;;  %v10429_v61 = vadd.f32 %v3311_v31, %v3087_v20  ;;  %v219_v0 = vld [vmem:[#allocation2 + $0x80] sm:$0xff]  ;;  %v221_v62 = vld [vmem:[#allocation2 + $0x90] sm:$0xff]  ;;  %v230_v20 = vld [vmem:[#allocation2 + $0xd8] sm:$0xff] }
 0x66d   :  { %v223_v60 = vld [vmem:[#allocation2 + $0xa0] sm:$0xff]  ;;  %v225_v31 = vld [vmem:[#allocation2 + $0xb0] sm:$0xff] }
 0x66e   :  { %2482 = vmatmul.mubr.f32.gmra.mrb[134].mxu1 %v10383_v15  ;;  %12829 = vst [vmem:[#allocation63_spill] sm:$0xff] %v10415_v41  ;;  %12831 = vst [vmem:[#allocation64_spill] sm:$0xff] %v10423_v1  ;;  %v7337_v46 = vpack.c.bf16 %v10423_v1, %v10421_v59  ;;  %v233_v59 = vld [vmem:[#allocation2 + $0xf0] sm:$0xff]  ;;  %v10656_v1 = vld [vmem:[#allocation2 + $0x8] sm:$0xff] }
 0x66f   :  { %2487 = vmatprep.mubr.f32.mxu1 %v10387_v40  ;;  %7324 = vmatpush3.bf16.msra.mxu1 %v7323_v30  ;;  %v7331_v30 = vpack.c.bf16 %v10396_v17, %v10394_v49  ;;  %12832 = vst [vmem:[#allocation65_spill] sm:$0xff] %v10429_v61 }
 0x670   :  { %7326 = vmatprep.subr.bf16.mxu1 %v7325_v28  ;;  %v10413_v28 = vadd.f32 %v3309_v63, %v3085_v43  ;;  %v220_v43 = vld [vmem:[#allocation2 + $0x88] sm:$0xff] }
 0x672   :  { %2488 = vmatmul.mubr.f32.gmra.mrb[136].mxu1 %v10399_v42  ;;  %12828 = vst [vmem:[#allocation60_spill] sm:$0xff] %v10413_v28  ;;  %v7335_v63 = vpack.c.bf16 %v10415_v41, %v10413_v28 }
 0x673   :  { %2493 = vmatprep.mubr.f32.mxu1 %v10401_v3  ;;  %7328 = vmatpush3.bf16.msra.mxu1 %v7327_v11  ;;  %v215_v11 = vld [vmem:[#allocation2 + $0x60] sm:$0xff] }
 0x674   :  { %7330 = vmatprep.subr.bf16.mxu1 %v7329_v32  ;;  %v10431_v32 = vadd.f32 %v3312_v36, %v3088_v21  ;;  %v228_v36 = vld [vmem:[#allocation2 + $0xc8] sm:$0xff]  ;;  %v229_v21 = vld [vmem:[#allocation2 + $0xd0] sm:$0xff] }
 0x676   :  { %2494 = vmatmul.mubr.f32.gmra.mrb[138].mxu1 %v10411_v14  ;;  %12833 = vst [vmem:[#allocation66_spill] sm:$0xff] %v10431_v32  ;;  %v7339_v35 = vpack.c.bf16 %v10431_v32, %v10429_v61 }
 0x677   :  { %2499 = vmatprep.mubr.f32.mxu1 %v10417_v34  ;;  %7332 = vmatpush3.bf16.msra.mxu1 %v7331_v30  ;;  %v226_v30 = vld [vmem:[#allocation2 + $0xb8] sm:$0xff] }
 0x678   :  { %7334 = vmatprep.subr.bf16.mxu1 %v7333_v10  ;;  %v227_v10 = vld [vmem:[#allocation2 + $0xc0] sm:$0xff] }
 0x67a   :  { %2500 = vmatmul.mubr.f32.gmra.mrb[140].mxu1 %v215_v11 }
 0x67b   :  { %2505 = vmatprep.mubr.f32.mxu1 %v218_v23  ;;  %7336 = vmatpush3.bf16.msra.mxu1 %v7335_v63  ;;  %v232_v63 = vld [vmem:[#allocation2 + $0xe8] sm:$0xff] }
 0x67c   :  { %7338 = vmatprep.subr.bf16.mxu1 %v7337_v46  ;;  %v231_v46 = vld [vmem:[#allocation2 + $0xe0] sm:$0xff] }
 0x67e   :  { %2506 = vmatmul.mubr.f32.gmra.mrb[142].mxu1 %v217_v53 }
 0x67f   :  { %2511 = vmatprep.mubr.f32.mxu1 %v220_v43  ;;  %7340 = vmatpush3.bf16.msra.mxu1 %v7339_v35  ;;  %v234_v35 = vld [vmem:[#allocation2 + $0xf8] sm:$0xff] }
 0x682   :  { %2512 = vmatmul.mubr.f32.gmra.mrb[144].mxu1 %v219_v0 }
 0x683   :  { %2517 = vmatprep.mubr.f32.mxu1 %v222_v54 }
 0x686   :  { %2518 = vmatmul.mubr.f32.gmra.mrb[146].mxu1 %v221_v62 }
 0x687   :  { %2523 = vmatprep.mubr.f32.mxu1 %v224_v24 }
 0x68a   :  { %2524 = vmatmul.mubr.f32.gmra.mrb[148].mxu1 %v223_v60 }
 0x68b   :  { %2529 = vmatprep.mubr.f32.mxu1 %v226_v30 }
 0x68e   :  { %2530 = vmatmul.mubr.f32.gmra.mrb[150].mxu1 %v225_v31 }
 0x68f   :  { %2535 = vmatprep.mubr.f32.mxu1 %v228_v36 }
 0x692   :  { %2536 = vmatmul.mubr.f32.gmra.mrb[152].mxu1 %v227_v10 }
 0x693   :  { %2541 = vmatprep.mubr.f32.mxu1 %v230_v20 }
 0x696   :  { %2542 = vmatmul.mubr.f32.gmra.mrb[154].mxu1 %v229_v21 }
 0x697   :  { %2547 = vmatprep.mubr.f32.mxu1 %v232_v63 }
 0x69a   :  { %2548 = vmatmul.mubr.f32.gmra.mrb[156].mxu1 %v231_v46 }
 0x69b   :  { %2553 = vmatprep.mubr.f32.mxu1 %v234_v35 }
 0x69e   :  { %2554 = vmatmul.mubr.f32.gmra.mrb[158].mxu1 %v233_v59 }
 0x69f   :  { %3425 = vmatprep.mubr.f32.mxu1 %v10114_v52 }
 0x6a2   :  { %3426 = vmatmul.mubr.f32.vlgmr.msra.gmra.mrb[160].mxu1 %v10315_v6 }
 0x6a3   :  { %3430 = vmatprep.mubr.f32.mxu1 %v10322_v51  ;;  %v10450_v51 = vld [vmem:[#allocation5] sm:$0xff] }
 0x6a6   :  { %3431 = vmatmul.mubr.f32.gmra.mrb[162].mxu1 %v10333_v7 }
 0x6a7   :  { %3435 = vmatprep.mubr.f32.mxu1 %v10342_v29 }
 0x6aa   :  { %3436 = vmatmul.mubr.f32.gmra.mrb[164].mxu1 %v10359_v57 }
 0x6ab   :  { %3440 = vmatprep.mubr.f32.mxu1 %v10367_v45 }
 0x6ae   :  { %3441 = vmatmul.mubr.f32.gmra.mrb[166].mxu1 %v10383_v15 }
 0x6af   :  { %3445 = vmatprep.mubr.f32.mxu1 %v10387_v40 }
 0x6b2   :  { %3446 = vmatmul.mubr.f32.gmra.mrb[168].mxu1 %v10399_v42 }
 0x6b3   :  { %3450 = vmatprep.mubr.f32.mxu1 %v10401_v3 }
 0x6b6   :  { %3451 = vmatmul.mubr.f32.gmra.mrb[170].mxu1 %v10411_v14 }
 0x6b7   :  { %3455 = vmatprep.mubr.f32.mxu1 %v10417_v34 }
 0x6ba   :  { %3456 = vmatmul.mubr.f32.gmra.mrb[172].mxu1 %v215_v11 }
 0x6bb   :  { %3460 = vmatprep.mubr.f32.mxu1 %v218_v23 }
 0x6be   :  { %3461 = vmatmul.mubr.f32.gmra.mrb[174].mxu1 %v217_v53 }
 0x6bf   :  { %3465 = vmatprep.mubr.f32.mxu1 %v220_v43 }
 0x6c2   :  { %3466 = vmatmul.mubr.f32.gmra.mrb[176].mxu1 %v219_v0 }
 0x6c3   :  { %3470 = vmatprep.mubr.f32.mxu1 %v222_v54 }
 0x6c6   :  { %3471 = vmatmul.mubr.f32.gmra.mrb[178].mxu1 %v221_v62 }
 0x6c7   :  { %3475 = vmatprep.mubr.f32.mxu1 %v224_v24 }
 0x6ca   :  { %3476 = vmatmul.mubr.f32.gmra.mrb[180].mxu1 %v223_v60 }
 0x6cb   :  { %3480 = vmatprep.mubr.f32.mxu1 %v226_v30 }
 0x6ce   :  { %3481 = vmatmul.mubr.f32.gmra.mrb[182].mxu1 %v225_v31 }
 0x6cf   :  { %3485 = vmatprep.mubr.f32.mxu1 %v228_v36 }
 0x6d2   :  { %3486 = vmatmul.mubr.f32.gmra.mrb[184].mxu1 %v227_v10 }
 0x6d3   :  { %3490 = vmatprep.mubr.f32.mxu1 %v230_v20 }
 0x6d6   :  { %3491 = vmatmul.mubr.f32.gmra.mrb[186].mxu1 %v229_v21 }
 0x6d7   :  { %3495 = vmatprep.mubr.f32.mxu1 %v232_v63 }
 0x6da   :  { %3496 = vmatmul.mubr.f32.gmra.mrb[188].mxu1 %v231_v46 }
 0x6db   :  { %3500 = vmatprep.mubr.f32.mxu1 %v234_v35 }
 0x6de   :  { %3501 = vmatmul.mubr.f32.gmra.mrb[190].mxu1 %v233_v59 }
 0x6df   :  { %6765 = vmatprep.mubr.f32.mxu1 %v10450_v51 }
 0x735   :  { %v2465_v52 = vpop.f32.mrb[128].mxu1 }
 0x736   :  { %2817 = vst [vmem:[#allocation26] sm:$0xff] %v2465_v52  ;;  %v2467_v6 = vpop.f32.mrb[129].mxu1 }
 0x737   :  { %2833 = vst [vmem:[#allocation27] sm:$0xff] %v2467_v6 }
 0x739   :  { %v2471_v7 = vpop.f32.mrb[130].mxu1 }
 0x73a   :  { %v7279_v29 = vpack.c.bf16 %v2471_v7, %v2465_v52  ;;  %2818 = vst [vmem:[#allocation26 + $0x8] sm:$0xff] %v2471_v7  ;;  %v2473_v57 = vpop.f32.mrb[131].mxu1 }
 0x73b   :  { %2834 = vst [vmem:[#allocation27 + $0x8] sm:$0xff] %v2473_v57  ;;  %v7277_v45 = vpack.c.bf16 %v2473_v57, %v2467_v6 }
 0x73d   :  { %v2477_v15 = vpop.f32.mrb[132].mxu1  ;;  %7278 = vmatprep.subr.bf16.mxu0 %v7277_v45 }
 0x73e   :  { %2819 = vst [vmem:[#allocation26 + $0x10] sm:$0xff] %v2477_v15  ;;  %v2479_v40 = vpop.f32.mrb[133].mxu1  ;;  %7280 = vmatpush1.bf16.msra.mxu0 %v7279_v29 }
 0x73f   :  { %2835 = vst [vmem:[#allocation27 + $0x10] sm:$0xff] %v2479_v40 }
 0x741   :  { %v2483_v42 = vpop.f32.mrb[134].mxu1 }
 0x742   :  { %v7283_v3 = vpack.c.bf16 %v2483_v42, %v2477_v15  ;;  %2820 = vst [vmem:[#allocation26 + $0x18] sm:$0xff] %v2483_v42  ;;  %v2485_v14 = vpop.f32.mrb[135].mxu1 }
 0x743   :  { %2836 = vst [vmem:[#allocation27 + $0x18] sm:$0xff] %v2485_v14  ;;  %v7281_v34 = vpack.c.bf16 %v2485_v14, %v2479_v40 }
 0x745   :  { %v2489_v59 = vpop.f32.mrb[136].mxu1  ;;  %7282 = vmatprep.subr.bf16.mxu0 %v7281_v34 }
 0x746   :  { %2821 = vst [vmem:[#allocation26 + $0x20] sm:$0xff] %v2489_v59  ;;  %v2491_v11 = vpop.f32.mrb[137].mxu1  ;;  %7284 = vmatpush1.bf16.msra.mxu0 %v7283_v3 }
 0x747   :  { %2837 = vst [vmem:[#allocation27 + $0x20] sm:$0xff] %v2491_v11 }
 0x749   :  { %v2495_v23 = vpop.f32.mrb[138].mxu1 }
 0x74a   :  { %v7287_v53 = vpack.c.bf16 %v2495_v23, %v2489_v59  ;;  %2822 = vst [vmem:[#allocation26 + $0x28] sm:$0xff] %v2495_v23  ;;  %v2497_v43 = vpop.f32.mrb[139].mxu1 }
 0x74b   :  { %2838 = vst [vmem:[#allocation27 + $0x28] sm:$0xff] %v2497_v43  ;;  %v7285_v0 = vpack.c.bf16 %v2497_v43, %v2491_v11 }
 0x74d   :  { %v2501_v54 = vpop.f32.mrb[140].mxu1  ;;  %7286 = vmatprep.subr.bf16.mxu0 %v7285_v0 }
 0x74e   :  { %2823 = vst [vmem:[#allocation26 + $0x30] sm:$0xff] %v2501_v54  ;;  %v2503_v62 = vpop.f32.mrb[141].mxu1  ;;  %7288 = vmatpush1.bf16.msra.mxu0 %v7287_v53 }
 0x74f   :  { %2839 = vst [vmem:[#allocation27 + $0x30] sm:$0xff] %v2503_v62 }
 0x751   :  { %v2507_v24 = vpop.f32.mrb[142].mxu1 }
 0x752   :  { %v7291_v60 = vpack.c.bf16 %v2507_v24, %v2501_v54  ;;  %2824 = vst [vmem:[#allocation26 + $0x38] sm:$0xff] %v2507_v24  ;;  %v2509_v30 = vpop.f32.mrb[143].mxu1 }
 0x753   :  { %2840 = vst [vmem:[#allocation27 + $0x38] sm:$0xff] %v2509_v30  ;;  %v7289_v31 = vpack.c.bf16 %v2509_v30, %v2503_v62 }
 0x755   :  { %v2513_v36 = vpop.f32.mrb[144].mxu1  ;;  %7290 = vmatprep.subr.bf16.mxu0 %v7289_v31  ;;  %v10459_v31 = vld [vmem:[#allocation5 + $0x8] sm:$0xff] }
 0x756   :  { %2825 = vst [vmem:[#allocation26 + $0x40] sm:$0xff] %v2513_v36  ;;  %v2515_v10 = vpop.f32.mrb[145].mxu1  ;;  %7292 = vmatpush1.bf16.msra.mxu0 %v7291_v60 }
 0x757   :  { %2841 = vst [vmem:[#allocation27 + $0x40] sm:$0xff] %v2515_v10 }
 0x759   :  { %v2519_v20 = vpop.f32.mrb[146].mxu1 }
 0x75a   :  { %v7295_v21 = vpack.c.bf16 %v2519_v20, %v2513_v36  ;;  %2826 = vst [vmem:[#allocation26 + $0x48] sm:$0xff] %v2519_v20  ;;  %v2521_v63 = vpop.f32.mrb[147].mxu1 }
 0x75b   :  { %2842 = vst [vmem:[#allocation27 + $0x48] sm:$0xff] %v2521_v63  ;;  %v7293_v46 = vpack.c.bf16 %v2521_v63, %v2515_v10  ;;  %v10467_v63 = vld [vmem:[#allocation5 + $0x10] sm:$0xff] }
 0x75d   :  { %v2525_v35 = vpop.f32.mrb[148].mxu1  ;;  %7294 = vmatprep.subr.bf16.mxu0 %v7293_v46 }
 0x75e   :  { %2827 = vst [vmem:[#allocation26 + $0x50] sm:$0xff] %v2525_v35  ;;  %v2527_v52 = vpop.f32.mrb[149].mxu1  ;;  %7296 = vmatpush1.bf16.msra.mxu0 %v7295_v21 }
 0x75f   :  { %2843 = vst [vmem:[#allocation27 + $0x50] sm:$0xff] %v2527_v52 }
 0x761   :  { %v2531_v6 = vpop.f32.mrb[150].mxu1 }
 0x762   :  { %v7299_v7 = vpack.c.bf16 %v2531_v6, %v2525_v35  ;;  %2828 = vst [vmem:[#allocation26 + $0x58] sm:$0xff] %v2531_v6  ;;  %v2533_v29 = vpop.f32.mrb[151].mxu1  ;;  %v10473_v6 = vld [vmem:[#allocation5 + $0x18] sm:$0xff] }
 0x763   :  { %2844 = vst [vmem:[#allocation27 + $0x58] sm:$0xff] %v2533_v29  ;;  %v7297_v57 = vpack.c.bf16 %v2533_v29, %v2527_v52 }
 0x765   :  { %v2537_v45 = vpop.f32.mrb[152].mxu1  ;;  %7298 = vmatprep.subr.bf16.mxu0 %v7297_v57 }
 0x766   :  { %2829 = vst [vmem:[#allocation26 + $0x60] sm:$0xff] %v2537_v45  ;;  %v2539_v15 = vpop.f32.mrb[153].mxu1  ;;  %7300 = vmatpush1.bf16.msra.mxu0 %v7299_v7 }
 0x767   :  { %2845 = vst [vmem:[#allocation27 + $0x60] sm:$0xff] %v2539_v15 }
 0x769   :  { %v2543_v40 = vpop.f32.mrb[154].mxu1 }
 0x76a   :  { %v7303_v42 = vpack.c.bf16 %v2543_v40, %v2537_v45  ;;  %2830 = vst [vmem:[#allocation26 + $0x68] sm:$0xff] %v2543_v40  ;;  %v2545_v3 = vpop.f32.mrb[155].mxu1 }
 0x76b   :  { %2846 = vst [vmem:[#allocation27 + $0x68] sm:$0xff] %v2545_v3  ;;  %v7301_v14 = vpack.c.bf16 %v2545_v3, %v2539_v15  ;;  %v10481_v15 = vld [vmem:[#allocation5 + $0x20] sm:$0xff] }
 0x76d   :  { %v2549_v34 = vpop.f32.mrb[156].mxu1  ;;  %7302 = vmatprep.subr.bf16.mxu0 %v7301_v14  ;;  %v10487_v14 = vld [vmem:[#allocation5 + $0x28] sm:$0xff] }
 0x76e   :  { %2831 = vst [vmem:[#allocation26 + $0x70] sm:$0xff] %v2549_v34  ;;  %v2551_v59 = vpop.f32.mrb[157].mxu1  ;;  %7304 = vmatpush1.bf16.msra.mxu0 %v7303_v42 }
 0x76f   :  { %2847 = vst [vmem:[#allocation27 + $0x70] sm:$0xff] %v2551_v59 }
 0x771   :  { %v2555_v11 = vpop.f32.mrb[158].mxu1 }
 0x772   :  { %v7307_v23 = vpack.c.bf16 %v2555_v11, %v2549_v34  ;;  %2832 = vst [vmem:[#allocation26 + $0x78] sm:$0xff] %v2555_v11  ;;  %v2557_v53 = vpop.f32.mrb[159].mxu1 }
 0x773   :  { %2848 = vst [vmem:[#allocation27 + $0x78] sm:$0xff] %v2557_v53  ;;  %v7305_v43 = vpack.c.bf16 %v2557_v53, %v2551_v59  ;;  %v10495_v53 = vld [vmem:[#allocation5 + $0x30] sm:$0xff] }
 0x775   :  { %7306 = vmatprep.subr.bf16.mxu0 %v7305_v43  ;;  %v6221_v0 = vpop.f32.mrb[160].mxu1 }
 0x776   :  { %7308 = vmatpush1.bf16.msra.mxu0 %v7307_v23  ;;  %v6222_v54 = vpop.f32.mrb[161].mxu1 }
 0x777   :  { %v10453_v62 = vadd.f32 %v6222_v54, %v6221_v0 }
 0x779   :  { %12834 = vst [vmem:[#allocation67_spill] sm:$0xff] %v10453_v62  ;;  %v6224_v24 = vpop.f32.mrb[162].mxu1  ;;  %2625 = vmatmul.mubr.f32.vlgmr.msra.gmra.mrb[128].mxu0 %v10450_v51 }
 0x77a   :  { %v6225_v60 = vpop.f32.mrb[163].mxu1  ;;  %2630 = vmatprep.mubr.f32.mxu0 %v12763_v25 }
 0x77b   :  { %v10457_v30 = vadd.f32 %v6225_v60, %v6224_v24  ;;  %v10501_v24 = vld [vmem:[#allocation5 + $0x38] sm:$0xff] }
 0x77d   :  { %12835 = vst [vmem:[#allocation68_spill] sm:$0xff] %v10457_v30  ;;  %v7341_v36 = vpack.c.bf16 %v10457_v30, %v10453_v62  ;;  %v6227_v10 = vpop.f32.mrb[164].mxu1  ;;  %2631 = vmatmul.mubr.f32.gmra.mrb[130].mxu0 %v10459_v31  ;;  %v10647_v30 = vld [vmem:[#allocation5 + $0xf0] sm:$0xff]  ;;  %v10653_v62 = vld [vmem:[#allocation5 + $0xf8] sm:$0xff] }
 0x77e   :  { %v6228_v20 = vpop.f32.mrb[165].mxu1  ;;  %2636 = vmatprep.mubr.f32.mxu0 %v12763_v25 }
 0x77f   :  { %v10465_v21 = vadd.f32 %v6228_v20, %v6227_v10  ;;  %7342 = vmatprep.subr.bf16.mxu1 %v7341_v36 }
 0x780   :  { %7344 = vmatpush3.bf16.msra.mxu1 %v7341_v36 }
 0x781   :  { %12836 = vst [vmem:[#allocation69_spill] sm:$0xff] %v10465_v21  ;;  %v6230_v46 = vpop.f32.mrb[166].mxu1  ;;  %2637 = vmatmul.mubr.f32.gmra.mrb[132].mxu0 %v10467_v63 }
 0x782   :  { %v6231_v35 = vpop.f32.mrb[167].mxu1  ;;  %2642 = vmatprep.mubr.f32.mxu0 %v12763_v25 }
 0x783   :  { %v10471_v52 = vadd.f32 %v6231_v35, %v6230_v46  ;;  %v10509_v46 = vld [vmem:[#allocation5 + $0x40] sm:$0xff] }
 0x785   :  { %12837 = vst [vmem:[#allocation70_spill] sm:$0xff] %v10471_v52  ;;  %v7345_v7 = vpack.c.bf16 %v10471_v52, %v10465_v21  ;;  %v6233_v29 = vpop.f32.mrb[168].mxu1  ;;  %2643 = vmatmul.mubr.f32.gmra.mrb[134].mxu0 %v10473_v6  ;;  %v10635_v52 = vld [vmem:[#allocation5 + $0xe0] sm:$0xff]  ;;  %v10641_v21 = vld [vmem:[#allocation5 + $0xe8] sm:$0xff] }
 0x786   :  { %v6234_v57 = vpop.f32.mrb[169].mxu1  ;;  %2648 = vmatprep.mubr.f32.mxu0 %v12763_v25 }
 0x787   :  { %v10479_v45 = vadd.f32 %v6234_v57, %v6233_v29  ;;  %7346 = vmatprep.subr.bf16.mxu1 %v7345_v7  ;;  %v10515_v57 = vld [vmem:[#allocation5 + $0x48] sm:$0xff] }
 0x788   :  { %7348 = vmatpush3.bf16.msra.mxu1 %v7345_v7 }
 0x789   :  { %12838 = vst [vmem:[#allocation71_spill] sm:$0xff] %v10479_v45  ;;  %v6236_v40 = vpop.f32.mrb[170].mxu1  ;;  %2649 = vmatmul.mubr.f32.gmra.mrb[136].mxu0 %v10481_v15 }
 0x78a   :  { %v6237_v42 = vpop.f32.mrb[171].mxu1  ;;  %2654 = vmatprep.mubr.f32.mxu0 %v12763_v25 }
 0x78b   :  { %v10485_v3 = vadd.f32 %v6237_v42, %v6236_v40 }
 0x78d   :  { %12839 = vst [vmem:[#allocation72_spill] sm:$0xff] %v10485_v3  ;;  %v7349_v34 = vpack.c.bf16 %v10485_v3, %v10479_v45  ;;  %v6239_v59 = vpop.f32.mrb[172].mxu1  ;;  %2655 = vmatmul.mubr.f32.gmra.mrb[138].mxu0 %v10487_v14  ;;  %v10623_v3 = vld [vmem:[#allocation5 + $0xd0] sm:$0xff]  ;;  %v10629_v45 = vld [vmem:[#allocation5 + $0xd8] sm:$0xff] }
 0x78e   :  { %v6240_v11 = vpop.f32.mrb[173].mxu1  ;;  %2660 = vmatprep.mubr.f32.mxu0 %v12763_v25 }
 0x78f   :  { %v10493_v23 = vadd.f32 %v6240_v11, %v6239_v59  ;;  %7350 = vmatprep.subr.bf16.mxu1 %v7349_v34  ;;  %v10523_v11 = vld [vmem:[#allocation5 + $0x50] sm:$0xff] }
 0x790   :  { %7352 = vmatpush3.bf16.msra.mxu1 %v7349_v34 }
 0x791   :  { %12840 = vst [vmem:[#allocation73_spill] sm:$0xff] %v10493_v23  ;;  %v6242_v43 = vpop.f32.mrb[174].mxu1  ;;  %2661 = vmatmul.mubr.f32.gmra.mrb[140].mxu0 %v10495_v53 }
 0x792   :  { %v6243_v0 = vpop.f32.mrb[175].mxu1  ;;  %2666 = vmatprep.mubr.f32.mxu0 %v12763_v25 }
 0x793   :  { %v10499_v54 = vadd.f32 %v6243_v0, %v6242_v43 }
 0x795   :  { %12841 = vst [vmem:[#allocation74_spill] sm:$0xff] %v10499_v54  ;;  %v7353_v60 = vpack.c.bf16 %v10499_v54, %v10493_v23  ;;  %v6245_v36 = vpop.f32.mrb[176].mxu1  ;;  %2667 = vmatmul.mubr.f32.gmra.mrb[142].mxu0 %v10501_v24  ;;  %v10611_v54 = vld [vmem:[#allocation5 + $0xc0] sm:$0xff]  ;;  %v10617_v23 = vld [vmem:[#allocation5 + $0xc8] sm:$0xff] }
 0x796   :  { %v6246_v10 = vpop.f32.mrb[177].mxu1  ;;  %2672 = vmatprep.mubr.f32.mxu0 %v12763_v25 }
 0x797   :  { %v10507_v20 = vadd.f32 %v6246_v10, %v6245_v36  ;;  %7354 = vmatprep.subr.bf16.mxu1 %v7353_v60  ;;  %v10529_v36 = vld [vmem:[#allocation5 + $0x58] sm:$0xff] }
 0x798   :  { %7356 = vmatpush3.bf16.msra.mxu1 %v7353_v60 }
 0x799   :  { %12842 = vst [vmem:[#allocation75_spill] sm:$0xff] %v10507_v20  ;;  %v6248_v35 = vpop.f32.mrb[178].mxu1  ;;  %2673 = vmatmul.mubr.f32.gmra.mrb[144].mxu0 %v10509_v46 }
 0x79a   :  { %v6249_v7 = vpop.f32.mrb[179].mxu1  ;;  %2678 = vmatprep.mubr.f32.mxu0 %v12763_v25 }
 0x79b   :  { %v10513_v29 = vadd.f32 %v6249_v7, %v6248_v35 }
 0x79d   :  { %12843 = vst [vmem:[#allocation76_spill] sm:$0xff] %v10513_v29  ;;  %v7357_v40 = vpack.c.bf16 %v10513_v29, %v10507_v20  ;;  %v6251_v42 = vpop.f32.mrb[180].mxu1  ;;  %2679 = vmatmul.mubr.f32.gmra.mrb[146].mxu0 %v10515_v57 }
 0x79e   :  { %v6252_v34 = vpop.f32.mrb[181].mxu1  ;;  %2684 = vmatprep.mubr.f32.mxu0 %v12763_v25 }
 0x79f   :  { %v10521_v59 = vadd.f32 %v6252_v34, %v6251_v42  ;;  %7358 = vmatprep.subr.bf16.mxu1 %v7357_v40  ;;  %v10537_v42 = vld [vmem:[#allocation5 + $0x60] sm:$0xff] }
 0x7a0   :  { %7360 = vmatpush3.bf16.msra.mxu1 %v7357_v40 }
 0x7a1   :  { %12844 = vst [vmem:[#allocation77_spill] sm:$0xff] %v10521_v59  ;;  %v6254_v43 = vpop.f32.mrb[182].mxu1  ;;  %2685 = vmatmul.mubr.f32.gmra.mrb[148].mxu0 %v10523_v11 }
 0x7a2   :  { %v6255_v0 = vpop.f32.mrb[183].mxu1  ;;  %2690 = vmatprep.mubr.f32.mxu0 %v12763_v25 }
 0x7a3   :  { %v10527_v60 = vadd.f32 %v6255_v0, %v6254_v43 }
 0x7a5   :  { %12845 = vst [vmem:[#allocation78_spill] sm:$0xff] %v10527_v60  ;;  %v7361_v10 = vpack.c.bf16 %v10527_v60, %v10521_v59  ;;  %v6257_v35 = vpop.f32.mrb[184].mxu1  ;;  %2691 = vmatmul.mubr.f32.gmra.mrb[150].mxu0 %v10529_v36  ;;  %v10543_v60 = vld [vmem:[#allocation5 + $0x68] sm:$0xff] }
 0x7a6   :  { %v6258_v7 = vpop.f32.mrb[185].mxu1  ;;  %2696 = vmatprep.mubr.f32.mxu0 %v12763_v25 }
 0x7a7   :  { %v10535_v40 = vadd.f32 %v6258_v7, %v6257_v35  ;;  %7362 = vmatprep.subr.bf16.mxu1 %v7361_v10  ;;  %v10551_v7 = vld [vmem:[#allocation5 + $0x70] sm:$0xff] }
 0x7a8   :  { %7364 = vmatpush3.bf16.msra.mxu1 %v7361_v10 }
 0x7a9   :  { %12846 = vst [vmem:[#allocation79_spill] sm:$0xff] %v10535_v40  ;;  %v6260_v34 = vpop.f32.mrb[186].mxu1  ;;  %2697 = vmatmul.mubr.f32.gmra.mrb[152].mxu0 %v10537_v42 }
 0x7aa   :  { %v6261_v43 = vpop.f32.mrb[187].mxu1  ;;  %2702 = vmatprep.mubr.f32.mxu0 %v12763_v25 }
 0x7ab   :  { %v10541_v0 = vadd.f32 %v6261_v43, %v6260_v34 }
 0x7ad   :  { %12847 = vst [vmem:[#allocation80_spill] sm:$0xff] %v10541_v0  ;;  %v7365_v59 = vpack.c.bf16 %v10541_v0, %v10535_v40  ;;  %v6263_v29 = vpop.f32.mrb[188].mxu1  ;;  %2703 = vmatmul.mubr.f32.gmra.mrb[154].mxu0 %v10543_v60  ;;  %v10557_v0 = vld [vmem:[#allocation5 + $0x78] sm:$0xff] }
 0x7ae   :  { %v6264_v35 = vpop.f32.mrb[189].mxu1  ;;  %2708 = vmatprep.mubr.f32.mxu0 %v12763_v25 }
 0x7af   :  { %v10549_v10 = vadd.f32 %v6264_v35, %v6263_v29  ;;  %7366 = vmatprep.subr.bf16.mxu1 %v7365_v59  ;;  %v10563_v29 = vld [vmem:[#allocation5 + $0x80] sm:$0xff] }
 0x7b0   :  { %7368 = vmatpush3.bf16.msra.mxu1 %v7365_v59  ;;  %v10575_v59 = vld [vmem:[#allocation5 + $0x90] sm:$0xff]  ;;  %v10587_v35 = vld [vmem:[#allocation5 + $0xa0] sm:$0xff] }
 0x7b1   :  { %12848 = vst [vmem:[#allocation81_spill] sm:$0xff] %v10549_v10  ;;  %v6266_v20 = vpop.f32.mrb[190].mxu1  ;;  %2709 = vmatmul.mubr.f32.gmra.mrb[156].mxu0 %v10551_v7 }
 0x7b2   :  { %v6267_v34 = vpop.f32.mrb[191].mxu1  ;;  %2714 = vmatprep.mubr.f32.mxu0 %v12763_v25 }
 0x7b3   :  { %v10555_v43 = vadd.f32 %v6267_v34, %v6266_v20  ;;  %v10569_v20 = vld [vmem:[#allocation5 + $0x88] sm:$0xff] }
 0x7b4   :  { %v10593_v34 = vld [vmem:[#allocation5 + $0xa8] sm:$0xff] }
 0x7b5   :  { %12849 = vst [vmem:[#allocation82_spill] sm:$0xff] %v10555_v43  ;;  %v7369_v40 = vpack.c.bf16 %v10555_v43, %v10549_v10  ;;  %2715 = vmatmul.mubr.f32.gmra.mrb[158].mxu0 %v10557_v0  ;;  %v10599_v43 = vld [vmem:[#allocation5 + $0xb0] sm:$0xff]  ;;  %v10605_v10 = vld [vmem:[#allocation5 + $0xb8] sm:$0xff] }
 0x7b6   :  { %2720 = vmatprep.mubr.f32.mxu0 %v12763_v25 }
 0x7b7   :  { %7370 = vmatprep.subr.bf16.mxu1 %v7369_v40 }
 0x7b8   :  { %7372 = vmatpush3.bf16.msra.mxu1 %v7369_v40  ;;  %v10581_v40 = vld [vmem:[#allocation5 + $0x98] sm:$0xff] }
 0x7b9   :  { %2721 = vmatmul.mubr.f32.gmra.mrb[160].mxu0 %v10563_v29 }
 0x7ba   :  { %2726 = vmatprep.mubr.f32.mxu0 %v12763_v25 }
 0x7bb   :  { %6766 = vmatmul.mubr.f32.vlgmr.msra.gmra.mrb[192].mxu1 %v10459_v31 }
 0x7bc   :  { %6768 = vmatprep.mubr.f32.mxu1 %v10467_v63 }
 0x7bd   :  { %2727 = vmatmul.mubr.f32.gmra.mrb[162].mxu0 %v10569_v20 }
 0x7be   :  { %2732 = vmatprep.mubr.f32.mxu0 %v12763_v25 }
 0x7bf   :  { %6769 = vmatmul.mubr.f32.gmra.mrb[194].mxu1 %v10473_v6 }
 0x7c0   :  { %6771 = vmatprep.mubr.f32.mxu1 %v10481_v15 }
 0x7c1   :  { %2733 = vmatmul.mubr.f32.gmra.mrb[164].mxu0 %v10575_v59 }
 0x7c2   :  { %2738 = vmatprep.mubr.f32.mxu0 %v12763_v25 }
 0x7c3   :  { %6772 = vmatmul.mubr.f32.gmra.mrb[196].mxu1 %v10487_v14 }
 0x7c4   :  { %6774 = vmatprep.mubr.f32.mxu1 %v10495_v53 }
 0x7c5   :  { %2739 = vmatmul.mubr.f32.gmra.mrb[166].mxu0 %v10581_v40 }
 0x7c6   :  { %2744 = vmatprep.mubr.f32.mxu0 %v12763_v25 }
 0x7c7   :  { %6775 = vmatmul.mubr.f32.gmra.mrb[198].mxu1 %v10501_v24 }
 0x7c8   :  { %6777 = vmatprep.mubr.f32.mxu1 %v10509_v46 }
 0x7c9   :  { %2745 = vmatmul.mubr.f32.gmra.mrb[168].mxu0 %v10587_v35 }
 0x7ca   :  { %2750 = vmatprep.mubr.f32.mxu0 %v12763_v25 }
 0x7cb   :  { %6778 = vmatmul.mubr.f32.gmra.mrb[200].mxu1 %v10515_v57 }
 0x7cc   :  { %6780 = vmatprep.mubr.f32.mxu1 %v10523_v11 }
 0x7cd   :  { %2751 = vmatmul.mubr.f32.gmra.mrb[170].mxu0 %v10593_v34 }
 0x7ce   :  { %2756 = vmatprep.mubr.f32.mxu0 %v12763_v25 }
 0x7cf   :  { %6781 = vmatmul.mubr.f32.gmra.mrb[202].mxu1 %v10529_v36 }
 0x7d0   :  { %6783 = vmatprep.mubr.f32.mxu1 %v10537_v42 }
 0x7d1   :  { %2757 = vmatmul.mubr.f32.gmra.mrb[172].mxu0 %v10599_v43 }
 0x7d2   :  { %2762 = vmatprep.mubr.f32.mxu0 %v12763_v25 }
 0x7d3   :  { %6784 = vmatmul.mubr.f32.gmra.mrb[204].mxu1 %v10543_v60 }
 0x7d4   :  { %6786 = vmatprep.mubr.f32.mxu1 %v10551_v7 }
 0x7d5   :  { %2763 = vmatmul.mubr.f32.gmra.mrb[174].mxu0 %v10605_v10 }
 0x7d6   :  { %2768 = vmatprep.mubr.f32.mxu0 %v12763_v25 }
 0x7d7   :  { %6787 = vmatmul.mubr.f32.gmra.mrb[206].mxu1 %v10557_v0 }
 0x7d8   :  { %6789 = vmatprep.mubr.f32.mxu1 %v10563_v29 }
 0x7d9   :  { %2769 = vmatmul.mubr.f32.gmra.mrb[176].mxu0 %v10611_v54 }
 0x7da   :  { %2774 = vmatprep.mubr.f32.mxu0 %v12763_v25 }
 0x7db   :  { %6790 = vmatmul.mubr.f32.gmra.mrb[208].mxu1 %v10569_v20 }
 0x7dc   :  { %6792 = vmatprep.mubr.f32.mxu1 %v10575_v59 }
 0x7dd   :  { %2775 = vmatmul.mubr.f32.gmra.mrb[178].mxu0 %v10617_v23 }
 0x7de   :  { %2780 = vmatprep.mubr.f32.mxu0 %v12763_v25 }
 0x7df   :  { %6793 = vmatmul.mubr.f32.gmra.mrb[210].mxu1 %v10581_v40 }
 0x7e0   :  { %6795 = vmatprep.mubr.f32.mxu1 %v10587_v35 }
 0x7e1   :  { %2781 = vmatmul.mubr.f32.gmra.mrb[180].mxu0 %v10623_v3 }
 0x7e2   :  { %2786 = vmatprep.mubr.f32.mxu0 %v12763_v25 }
 0x7e3   :  { %6796 = vmatmul.mubr.f32.gmra.mrb[212].mxu1 %v10593_v34 }
 0x7e4   :  { %6798 = vmatprep.mubr.f32.mxu1 %v10599_v43 }
 0x7e5   :  { %2787 = vmatmul.mubr.f32.gmra.mrb[182].mxu0 %v10629_v45 }
 0x7e6   :  { %2792 = vmatprep.mubr.f32.mxu0 %v12763_v25 }
 0x7e7   :  { %6799 = vmatmul.mubr.f32.gmra.mrb[214].mxu1 %v10605_v10 }
 0x7e8   :  { %6801 = vmatprep.mubr.f32.mxu1 %v10611_v54 }
 0x7e9   :  { %2793 = vmatmul.mubr.f32.gmra.mrb[184].mxu0 %v10635_v52 }
 0x7ea   :  { %2798 = vmatprep.mubr.f32.mxu0 %v12763_v25 }
 0x7eb   :  { %6802 = vmatmul.mubr.f32.gmra.mrb[216].mxu1 %v10617_v23 }
 0x7ec   :  { %6804 = vmatprep.mubr.f32.mxu1 %v10623_v3 }
 0x7ed   :  { %2799 = vmatmul.mubr.f32.gmra.mrb[186].mxu0 %v10641_v21 }
 0x7ee   :  { %2804 = vmatprep.mubr.f32.mxu0 %v12763_v25 }
 0x7ef   :  { %6805 = vmatmul.mubr.f32.gmra.mrb[218].mxu1 %v10629_v45 }
 0x7f0   :  { %6807 = vmatprep.mubr.f32.mxu1 %v10635_v52 }
 0x7f1   :  { %2805 = vmatmul.mubr.f32.gmra.mrb[188].mxu0 %v10647_v30 }
 0x7f2   :  { %2810 = vmatprep.mubr.f32.mxu0 %v12763_v25 }
 0x7f3   :  { %6808 = vmatmul.mubr.f32.gmra.mrb[220].mxu1 %v10641_v21 }
 0x7f4   :  { %6810 = vmatprep.mubr.f32.mxu1 %v10647_v30 }
 0x7f5   :  { %2811 = vmatmul.mubr.f32.gmra.mrb[190].mxu0 %v10653_v62 }
 0x7f6   :  { %3843 = vmatprep.mubr.f32.mxu0 %v10656_v1 }
 0x7f7   :  { %6811 = vmatmul.mubr.f32.gmra.mrb[222].mxu1 %v10653_v62 }
 0x7f8   :  { %6845 = vmatprep.mubr.f32.mxu1 %v10450_v51 }
 0x84c   :  { %v2626_v55 = vpop.f32.mrb[128].mxu0 }
 0x84d   :  { %2849 = vst [vmem:[#allocation23] sm:$0xff] %v2626_v55  ;;  %v2628_v9 = vpop.f32.mrb[129].mxu0 }
 0x84e   :  { %2881 = vst [vmem:[#allocation24] sm:$0xff] %v2628_v9 }
 0x850   :  { %v2632_v18 = vpop.f32.mrb[130].mxu0 }
 0x851   :  { %2850 = vst [vmem:[#allocation23 + $0x8] sm:$0xff] %v2632_v18  ;;  %v2634_v44 = vpop.f32.mrb[131].mxu0 }
 0x852   :  { %2882 = vst [vmem:[#allocation24 + $0x8] sm:$0xff] %v2634_v44 }
 0x854   :  { %v2638_v47 = vpop.f32.mrb[132].mxu0 }
 0x855   :  { %2851 = vst [vmem:[#allocation23 + $0x10] sm:$0xff] %v2638_v47  ;;  %v2640_v51 = vpop.f32.mrb[133].mxu0 }
 0x856   :  { %2883 = vst [vmem:[#allocation24 + $0x10] sm:$0xff] %v2640_v51 }
 0x858   :  { %v2644_v55 = vpop.f32.mrb[134].mxu0 }
 0x859   :  { %2852 = vst [vmem:[#allocation23 + $0x18] sm:$0xff] %v2644_v55  ;;  %v2646_v4 = vpop.f32.mrb[135].mxu0 }
 0x85a   :  { %2884 = vst [vmem:[#allocation24 + $0x18] sm:$0xff] %v2646_v4 }
 0x85c   :  { %v2650_v18 = vpop.f32.mrb[136].mxu0 }
 0x85d   :  { %2853 = vst [vmem:[#allocation23 + $0x20] sm:$0xff] %v2650_v18  ;;  %v2652_v44 = vpop.f32.mrb[137].mxu0 }
 0x85e   :  { %2885 = vst [vmem:[#allocation24 + $0x20] sm:$0xff] %v2652_v44 }
 0x860   :  { %v2656_v47 = vpop.f32.mrb[138].mxu0 }
 0x861   :  { %2854 = vst [vmem:[#allocation23 + $0x28] sm:$0xff] %v2656_v47  ;;  %v2658_v13 = vpop.f32.mrb[139].mxu0 }
 0x862   :  { %2886 = vst [vmem:[#allocation24 + $0x28] sm:$0xff] %v2658_v13 }
 0x864   :  { %v2662_v51 = vpop.f32.mrb[140].mxu0 }
 0x865   :  { %2855 = vst [vmem:[#allocation23 + $0x30] sm:$0xff] %v2662_v51  ;;  %v2664_v4 = vpop.f32.mrb[141].mxu0 }
 0x866   :  { %2887 = vst [vmem:[#allocation24 + $0x30] sm:$0xff] %v2664_v4 }
 0x868   :  { %v2668_v18 = vpop.f32.mrb[142].mxu0 }
 0x869   :  { %2856 = vst [vmem:[#allocation23 + $0x38] sm:$0xff] %v2668_v18  ;;  %v2670_v61 = vpop.f32.mrb[143].mxu0 }
 0x86a   :  { %2888 = vst [vmem:[#allocation24 + $0x38] sm:$0xff] %v2670_v61 }
 0x86c   :  { %v2674_v44 = vpop.f32.mrb[144].mxu0 }
 0x86d   :  { %2857 = vst [vmem:[#allocation23 + $0x40] sm:$0xff] %v2674_v44  ;;  %v2676_v13 = vpop.f32.mrb[145].mxu0 }
 0x86e   :  { %2889 = vst [vmem:[#allocation24 + $0x40] sm:$0xff] %v2676_v13 }
 0x870   :  { %v2680_v51 = vpop.f32.mrb[146].mxu0 }
 0x871   :  { %2858 = vst [vmem:[#allocation23 + $0x48] sm:$0xff] %v2680_v51  ;;  %v2682_v28 = vpop.f32.mrb[147].mxu0 }
 0x872   :  { %2890 = vst [vmem:[#allocation24 + $0x48] sm:$0xff] %v2682_v28 }
 0x874   :  { %v2686_v4 = vpop.f32.mrb[148].mxu0 }
 0x875   :  { %2859 = vst [vmem:[#allocation23 + $0x50] sm:$0xff] %v2686_v4  ;;  %v2688_v61 = vpop.f32.mrb[149].mxu0 }
 0x876   :  { %2891 = vst [vmem:[#allocation24 + $0x50] sm:$0xff] %v2688_v61 }
 0x878   :  { %v2692_v44 = vpop.f32.mrb[150].mxu0 }
 0x879   :  { %2860 = vst [vmem:[#allocation23 + $0x58] sm:$0xff] %v2692_v44  ;;  %v2694_v49 = vpop.f32.mrb[151].mxu0 }
 0x87a   :  { %2892 = vst [vmem:[#allocation24 + $0x58] sm:$0xff] %v2694_v49 }
 0x87c   :  { %v2698_v13 = vpop.f32.mrb[152].mxu0 }
 0x87d   :  { %2861 = vst [vmem:[#allocation23 + $0x60] sm:$0xff] %v2698_v13  ;;  %v2700_v28 = vpop.f32.mrb[153].mxu0 }
 0x87e   :  { %2893 = vst [vmem:[#allocation24 + $0x60] sm:$0xff] %v2700_v28 }
 0x880   :  { %v2704_v4 = vpop.f32.mrb[154].mxu0 }
 0x881   :  { %2862 = vst [vmem:[#allocation23 + $0x68] sm:$0xff] %v2704_v4  ;;  %v2706_v33 = vpop.f32.mrb[155].mxu0 }
 0x882   :  { %2894 = vst [vmem:[#allocation24 + $0x68] sm:$0xff] %v2706_v33 }
 0x884   :  { %v2710_v61 = vpop.f32.mrb[156].mxu0 }
 0x885   :  { %2863 = vst [vmem:[#allocation23 + $0x70] sm:$0xff] %v2710_v61  ;;  %v2712_v49 = vpop.f32.mrb[157].mxu0 }
 0x886   :  { %2895 = vst [vmem:[#allocation24 + $0x70] sm:$0xff] %v2712_v49 }
 0x888   :  { %v2716_v13 = vpop.f32.mrb[158].mxu0 }
 0x889   :  { %2864 = vst [vmem:[#allocation23 + $0x78] sm:$0xff] %v2716_v13  ;;  %v2718_v26 = vpop.f32.mrb[159].mxu0 }
 0x88a   :  { %2896 = vst [vmem:[#allocation24 + $0x78] sm:$0xff] %v2718_v26 }
 0x88c   :  { %v2722_v28 = vpop.f32.mrb[160].mxu0 }
 0x88d   :  { %2865 = vst [vmem:[#allocation23 + $0x80] sm:$0xff] %v2722_v28  ;;  %v2724_v33 = vpop.f32.mrb[161].mxu0 }
 0x88e   :  { %v10661_v38 = vpop.f32.mrb[192].mxu1  ;;  %2897 = vst [vmem:[#allocation24 + $0x80] sm:$0xff] %v2724_v33 }
 0x88f   :  { %v10663_v25 = vpop.f32.mrb[193].mxu1 }
 0x890   :  { %v2728_v61 = vpop.f32.mrb[162].mxu0  ;;  %v12855_v26 = vpack.c.bf16 %v10661_v38, %v10663_v25 }
 0x891   :  { %2866 = vst [vmem:[#allocation23 + $0x88] sm:$0xff] %v2728_v61  ;;  %v2730_v5 = vpop.f32.mrb[163].mxu0 }
 0x892   :  { %v10667_v2 = vpop.f32.mrb[194].mxu1  ;;  %2898 = vst [vmem:[#allocation24 + $0x88] sm:$0xff] %v2730_v5 }
 0x893   :  { %v10669_v56 = vpop.f32.mrb[195].mxu1 }
 0x894   :  { %v2734_v49 = vpop.f32.mrb[164].mxu0  ;;  %v12858_v19 = vpack.c.bf16 %v10667_v2, %v10669_v56 }
 0x895   :  { %2867 = vst [vmem:[#allocation23 + $0x90] sm:$0xff] %v2734_v49  ;;  %v2736_v28 = vpop.f32.mrb[165].mxu0 }
 0x896   :  { %v10673_v22 = vpop.f32.mrb[196].mxu1  ;;  %2899 = vst [vmem:[#allocation24 + $0x90] sm:$0xff] %v2736_v28 }
 0x897   :  { %v10675_v9 = vpop.f32.mrb[197].mxu1 }
 0x898   :  { %v2740_v33 = vpop.f32.mrb[166].mxu0 }
 0x899   :  { %2868 = vst [vmem:[#allocation23 + $0x98] sm:$0xff] %v2740_v33  ;;  %v2742_v61 = vpop.f32.mrb[167].mxu0 }
 0x89a   :  { %v10679_v16 = vpop.f32.mrb[198].mxu1  ;;  %2900 = vst [vmem:[#allocation24 + $0x98] sm:$0xff] %v2742_v61 }
 0x89b   :  { %v10681_v55 = vpop.f32.mrb[199].mxu1 }
 0x89c   :  { %v2746_v5 = vpop.f32.mrb[168].mxu0 }
 0x89d   :  { %2869 = vst [vmem:[#allocation23 + $0xa0] sm:$0xff] %v2746_v5  ;;  %v2748_v49 = vpop.f32.mrb[169].mxu0 }
 0x89e   :  { %v10685_v48 = vpop.f32.mrb[200].mxu1  ;;  %2901 = vst [vmem:[#allocation24 + $0xa0] sm:$0xff] %v2748_v49 }
 0x89f   :  { %v10687_v47 = vpop.f32.mrb[201].mxu1 }
 0x8a0   :  { %v2752_v28 = vpop.f32.mrb[170].mxu0 }
 0x8a1   :  { %2870 = vst [vmem:[#allocation23 + $0xa8] sm:$0xff] %v2752_v28  ;;  %v2754_v33 = vpop.f32.mrb[171].mxu0 }
 0x8a2   :  { %v10691_v8 = vpop.f32.mrb[202].mxu1  ;;  %2902 = vst [vmem:[#allocation24 + $0xa8] sm:$0xff] %v2754_v33 }
 0x8a3   :  { %v10693_v18 = vpop.f32.mrb[203].mxu1 }
 0x8a6   :  { %v10697_v32 = vpop.f32.mrb[204].mxu1 }
 0x8a7   :  { %v10699_v51 = vpop.f32.mrb[205].mxu1 }
 0x8aa   :  { %v10703_v41 = vpop.f32.mrb[206].mxu1 }
 0x8ab   :  { %v10705_v44 = vpop.f32.mrb[207].mxu1 }
 0x8ac   :  { %12850 = vst [vmem:[#allocation83_spill] sm:$0xff] %v10705_v44 }
 0x8ae   :  { %v10709_v17 = vpop.f32.mrb[208].mxu1 }
 0x8af   :  { %12851 = vst [vmem:[#allocation84_spill] sm:$0xff] %v10709_v17  ;;  %v10711_v4 = vpop.f32.mrb[209].mxu1 }
 0x8b0   :  { %12852 = vst [vmem:[#allocation85_spill] sm:$0xff] %v10711_v4  ;;  %v7373_v39 = vpack.c.bf16 %v10709_v17, %v10711_v4 }
 0x8b2   :  { %v10715_v50 = vpop.f32.mrb[210].mxu1  ;;  %7374 = vmatprep.subr.bf16.mxu0 %v7373_v39 }
 0x8b3   :  { %12853 = vst [vmem:[#allocation86_spill] sm:$0xff] %v10715_v50  ;;  %v10717_v13 = vpop.f32.mrb[211].mxu1  ;;  %7376 = vmatpush3.bf16.msra.mxu0 %v12855_v26 }
 0x8b4   :  { %12854 = vst [vmem:[#allocation87_spill] sm:$0xff] %v10717_v13  ;;  %v7377_v4 = vpack.c.bf16 %v10715_v50, %v10717_v13  ;;  %v12861_v50 = vpack.c.bf16 %v10673_v22, %v10675_v9 }
 0x8b6   :  { %v10724_v17 = vpop.f32.mrb[212].mxu1  ;;  %7378 = vmatprep.subr.bf16.mxu0 %v7377_v4  ;;  %v2758_v4 = vpop.f32.mrb[172].mxu0 }
 0x8b7   :  { %12856 = vst [vmem:[#allocation88_spill] sm:$0xff] %v10724_v17  ;;  %v10726_v39 = vpop.f32.mrb[213].mxu1  ;;  %7380 = vmatpush3.bf16.msra.mxu0 %v12858_v19  ;;  %2871 = vst [vmem:[#allocation23 + $0xb0] sm:$0xff] %v2758_v4  ;;  %v2760_v19 = vpop.f32.mrb[173].mxu0 }
 0x8b8   :  { %12857 = vst [vmem:[#allocation89_spill] sm:$0xff] %v10726_v39  ;;  %v7381_v26 = vpack.c.bf16 %v10724_v17, %v10726_v39  ;;  %2903 = vst [vmem:[#allocation24 + $0xb0] sm:$0xff] %v2760_v19  ;;  %v2764_v49 = vpop.f32.mrb[174].mxu0  ;;  %v12864_v17 = vpack.c.bf16 %v10679_v16, %v10681_v55 }
 0x8b9   :  { %2872 = vst [vmem:[#allocation23 + $0xb8] sm:$0xff] %v2764_v49  ;;  %v2766_v28 = vpop.f32.mrb[175].mxu0 }
 0x8ba   :  { %v10733_v13 = vpop.f32.mrb[214].mxu1  ;;  %7382 = vmatprep.subr.bf16.mxu0 %v7381_v26  ;;  %2904 = vst [vmem:[#allocation24 + $0xb8] sm:$0xff] %v2766_v28  ;;  %v2770_v26 = vpop.f32.mrb[176].mxu0 }
 0x8bb   :  { %12859 = vst [vmem:[#allocation90_spill] sm:$0xff] %v10733_v13  ;;  %v10735_v61 = vpop.f32.mrb[215].mxu1  ;;  %7384 = vmatpush3.bf16.msra.mxu0 %v12861_v50  ;;  %2873 = vst [vmem:[#allocation23 + $0xc0] sm:$0xff] %v2770_v26  ;;  %v2772_v50 = vpop.f32.mrb[177].mxu0 }
 0x8bc   :  { %12860 = vst [vmem:[#allocation91_spill] sm:$0xff] %v10735_v61  ;;  %v7385_v5 = vpack.c.bf16 %v10733_v13, %v10735_v61  ;;  %2905 = vst [vmem:[#allocation24 + $0xc0] sm:$0xff] %v2772_v50  ;;  %v2776_v19 = vpop.f32.mrb[178].mxu0  ;;  %v12867_v13 = vpack.c.bf16 %v10685_v48, %v10687_v47 }
 0x8bd   :  { %2874 = vst [vmem:[#allocation23 + $0xc8] sm:$0xff] %v2776_v19  ;;  %v2778_v49 = vpop.f32.mrb[179].mxu0 }
 0x8be   :  { %v10742_v39 = vpop.f32.mrb[216].mxu1  ;;  %7386 = vmatprep.subr.bf16.mxu0 %v7385_v5  ;;  %2906 = vst [vmem:[#allocation24 + $0xc8] sm:$0xff] %v2778_v49  ;;  %v2782_v5 = vpop.f32.mrb[180].mxu0 }
 0x8bf   :  { %12862 = vst [vmem:[#allocation92_spill] sm:$0xff] %v10742_v39  ;;  %v10744_v33 = vpop.f32.mrb[217].mxu1  ;;  %7388 = vmatpush3.bf16.msra.mxu0 %v12864_v17  ;;  %2875 = vst [vmem:[#allocation23 + $0xd0] sm:$0xff] %v2782_v5  ;;  %v2784_v17 = vpop.f32.mrb[181].mxu0 }
 0x8c0   :  { %12863 = vst [vmem:[#allocation93_spill] sm:$0xff] %v10744_v33  ;;  %v7389_v4 = vpack.c.bf16 %v10742_v39, %v10744_v33  ;;  %2907 = vst [vmem:[#allocation24 + $0xd0] sm:$0xff] %v2784_v17  ;;  %v2788_v50 = vpop.f32.mrb[182].mxu0  ;;  %v12870_v39 = vpack.c.bf16 %v10691_v8, %v10693_v18 }
 0x8c1   :  { %2876 = vst [vmem:[#allocation23 + $0xd8] sm:$0xff] %v2788_v50  ;;  %v2790_v19 = vpop.f32.mrb[183].mxu0 }
 0x8c2   :  { %v10751_v61 = vpop.f32.mrb[218].mxu1  ;;  %7390 = vmatprep.subr.bf16.mxu0 %v7389_v4  ;;  %2908 = vst [vmem:[#allocation24 + $0xd8] sm:$0xff] %v2790_v19  ;;  %v2794_v4 = vpop.f32.mrb[184].mxu0 }
 0x8c3   :  { %12865 = vst [vmem:[#allocation94_spill] sm:$0xff] %v10751_v61  ;;  %v10753_v28 = vpop.f32.mrb[219].mxu1  ;;  %7392 = vmatpush3.bf16.msra.mxu0 %v12867_v13  ;;  %2877 = vst [vmem:[#allocation23 + $0xe0] sm:$0xff] %v2794_v4  ;;  %v2796_v13 = vpop.f32.mrb[185].mxu0 }
 0x8c4   :  { %12866 = vst [vmem:[#allocation95_spill] sm:$0xff] %v10753_v28  ;;  %v7393_v26 = vpack.c.bf16 %v10751_v61, %v10753_v28  ;;  %2909 = vst [vmem:[#allocation24 + $0xe0] sm:$0xff] %v2796_v13  ;;  %v2800_v17 = vpop.f32.mrb[186].mxu0  ;;  %v12873_v61 = vpack.c.bf16 %v10697_v32, %v10699_v51 }
 0x8c5   :  { %2878 = vst [vmem:[#allocation23 + $0xe8] sm:$0xff] %v2800_v17  ;;  %v2802_v50 = vpop.f32.mrb[187].mxu0 }
 0x8c6   :  { %v10760_v33 = vpop.f32.mrb[220].mxu1  ;;  %7394 = vmatprep.subr.bf16.mxu0 %v7393_v26  ;;  %2910 = vst [vmem:[#allocation24 + $0xe8] sm:$0xff] %v2802_v50  ;;  %v2806_v26 = vpop.f32.mrb[188].mxu0  ;;  %v10781_v50 = vld [vmem:[#allocation2] sm:$0xff] }
 0x8c7   :  { %12868 = vst [vmem:[#allocation96_spill] sm:$0xff] %v10760_v33  ;;  %v10762_v49 = vpop.f32.mrb[221].mxu1  ;;  %7396 = vmatpush3.bf16.msra.mxu0 %v12870_v39  ;;  %2879 = vst [vmem:[#allocation23 + $0xf0] sm:$0xff] %v2806_v26  ;;  %v2808_v39 = vpop.f32.mrb[189].mxu0  ;;  %v10787_v26 = vld [vmem:[#allocation2 + $0x10] sm:$0xff] }
 0x8c8   :  { %12869 = vst [vmem:[#allocation97_spill] sm:$0xff] %v10762_v49  ;;  %v7397_v5 = vpack.c.bf16 %v10760_v33, %v10762_v49  ;;  %2911 = vst [vmem:[#allocation24 + $0xf0] sm:$0xff] %v2808_v39  ;;  %v2812_v13 = vpop.f32.mrb[190].mxu0  ;;  %v10790_v39 = vld [vmem:[#allocation2 + $0x28] sm:$0xff] }
 0x8c9   :  { %2880 = vst [vmem:[#allocation23 + $0xf8] sm:$0xff] %v2812_v13  ;;  %v2814_v17 = vpop.f32.mrb[191].mxu0  ;;  %12875 = vst [vmem:[#allocation100_spill] sm:$0xff] %v10781_v50  ;;  %v10796_v13 = vld [vmem:[#allocation2 + $0x38] sm:$0xff] }
 0x8ca   :  { %v10769_v28 = vpop.f32.mrb[222].mxu1  ;;  %7398 = vmatprep.subr.bf16.mxu0 %v7397_v5  ;;  %2912 = vst [vmem:[#allocation24 + $0xf8] sm:$0xff] %v2814_v17  ;;  %v12874_v5 = vpack.c.bf16 %v10703_v41, %v10705_v44  ;;  %12877 = vst [vmem:[#allocation102_spill] sm:$0xff] %v10787_v26  ;;  %v10799_v17 = vld [vmem:[#allocation2 + $0x30] sm:$0xff] }
 0x8cb   :  { %12871 = vst [vmem:[#allocation98_spill] sm:$0xff] %v10769_v28  ;;  %v10771_v19 = vpop.f32.mrb[223].mxu1  ;;  %7400 = vmatpush3.bf16.msra.mxu0 %v12873_v61  ;;  %v10784_v61 = vld [vmem:[#allocation2 + $0x18] sm:$0xff]  ;;  %12878 = vst [vmem:[#allocation103_spill] sm:$0xff] %v10790_v39 }
 0x8cc   :  { %12872 = vst [vmem:[#allocation99_spill] sm:$0xff] %v10771_v19  ;;  %v7401_v4 = vpack.c.bf16 %v10769_v28, %v10771_v19  ;;  %12876 = vst [vmem:[#allocation101_spill] sm:$0xff] %v10784_v61 }
 0x8cd   :  { %12880 = vst [vmem:[#allocation105_spill] sm:$0xff] %v10796_v13  ;;  %12881 = vst [vmem:[#allocation106_spill] sm:$0xff] %v10799_v17 }
 0x8ce   :  { %7402 = vmatprep.subr.bf16.mxu0 %v7401_v4  ;;  %v10793_v4 = vld [vmem:[#allocation2 + $0x20] sm:$0xff] }
 0x8cf   :  { %7404 = vmatpush3.bf16.msra.mxu0 %v12874_v5  ;;  %12879 = vst [vmem:[#allocation104_spill] sm:$0xff] %v10793_v4  ;;  %v10802_v5 = vld [vmem:[#allocation2 + $0x48] sm:$0xff] }
 0x8d0   :  { %12882 = vst [vmem:[#allocation107_spill] sm:$0xff] %v10802_v5 }
 0x8d2   :  { %3844 = vmatmul.mubr.f32.vlgmr.msra.gmra.mrb[192].mxu0 %v10781_v50 }
 0x8d3   :  { %3848 = vmatprep.mubr.f32.mxu0 %v10784_v61 }
 0x8d6   :  { %3849 = vmatmul.mubr.f32.gmra.mrb[194].mxu0 %v10787_v26  ;;  %v10805_v26 = vld [vmem:[#allocation2 + $0x40] sm:$0xff] }
 0x8d7   :  { %3853 = vmatprep.mubr.f32.mxu0 %v10790_v39  ;;  %12883 = vst [vmem:[#allocation108_spill] sm:$0xff] %v10805_v26  ;;  %v10808_v39 = vld [vmem:[#allocation2 + $0x58] sm:$0xff] }
 0x8d8   :  { %12884 = vst [vmem:[#allocation109_spill] sm:$0xff] %v10808_v39 }
 0x8da   :  { %3854 = vmatmul.mubr.f32.gmra.mrb[196].mxu0 %v10793_v4  ;;  %v10811_v4 = vld [vmem:[#allocation2 + $0x50] sm:$0xff] }
 0x8db   :  { %3858 = vmatprep.mubr.f32.mxu0 %v10796_v13  ;;  %12885 = vst [vmem:[#allocation110_spill] sm:$0xff] %v10811_v4  ;;  %v10814_v13 = vld [vmem:[#allocation2 + $0x68] sm:$0xff] }
 0x8dc   :  { %12886 = vst [vmem:[#allocation111_spill] sm:$0xff] %v10814_v13 }
 0x8de   :  { %3859 = vmatmul.mubr.f32.gmra.mrb[198].mxu0 %v10799_v17  ;;  %v10817_v17 = vld [vmem:[#allocation2 + $0x60] sm:$0xff] }
 0x8df   :  { %3863 = vmatprep.mubr.f32.mxu0 %v10802_v5  ;;  %12887 = vst [vmem:[#allocation112_spill] sm:$0xff] %v10817_v17  ;;  %v10820_v5 = vld [vmem:[#allocation2 + $0x78] sm:$0xff] }
 0x8e0   :  { %12888 = vst [vmem:[#allocation113_spill] sm:$0xff] %v10820_v5 }
 0x8e2   :  { %3864 = vmatmul.mubr.f32.gmra.mrb[200].mxu0 %v10805_v26  ;;  %v10823_v26 = vld [vmem:[#allocation2 + $0x70] sm:$0xff] }
 0x8e3   :  { %3868 = vmatprep.mubr.f32.mxu0 %v10808_v39  ;;  %12889 = vst [vmem:[#allocation114_spill] sm:$0xff] %v10823_v26  ;;  %v10826_v39 = vld [vmem:[#allocation2 + $0x88] sm:$0xff] }
 0x8e4   :  { %12890 = vst [vmem:[#allocation115_spill] sm:$0xff] %v10826_v39 }
 0x8e6   :  { %3869 = vmatmul.mubr.f32.gmra.mrb[202].mxu0 %v10811_v4  ;;  %v10829_v4 = vld [vmem:[#allocation2 + $0x80] sm:$0xff] }
 0x8e7   :  { %3873 = vmatprep.mubr.f32.mxu0 %v10814_v13  ;;  %12891 = vst [vmem:[#allocation116_spill] sm:$0xff] %v10829_v4  ;;  %v10832_v13 = vld [vmem:[#allocation2 + $0x98] sm:$0xff] }
 0x8e8   :  { %12892 = vst [vmem:[#allocation117_spill] sm:$0xff] %v10832_v13 }
 0x8ea   :  { %3874 = vmatmul.mubr.f32.gmra.mrb[204].mxu0 %v10817_v17  ;;  %v10835_v17 = vld [vmem:[#allocation2 + $0x90] sm:$0xff] }
 0x8eb   :  { %3878 = vmatprep.mubr.f32.mxu0 %v10820_v5  ;;  %12893 = vst [vmem:[#allocation118_spill] sm:$0xff] %v10835_v17  ;;  %v10838_v5 = vld [vmem:[#allocation2 + $0xa8] sm:$0xff] }
 0x8ec   :  { %12894 = vst [vmem:[#allocation119_spill] sm:$0xff] %v10838_v5 }
 0x8ee   :  { %3879 = vmatmul.mubr.f32.gmra.mrb[206].mxu0 %v10823_v26  ;;  %v10841_v26 = vld [vmem:[#allocation2 + $0xa0] sm:$0xff] }
 0x8ef   :  { %3883 = vmatprep.mubr.f32.mxu0 %v10826_v39  ;;  %12895 = vst [vmem:[#allocation120_spill] sm:$0xff] %v10841_v26  ;;  %v10844_v39 = vld [vmem:[#allocation2 + $0xb8] sm:$0xff] }
 0x8f0   :  { %12896 = vst [vmem:[#allocation121_spill] sm:$0xff] %v10844_v39 }
 0x8f2   :  { %3884 = vmatmul.mubr.f32.gmra.mrb[208].mxu0 %v10829_v4  ;;  %v10847_v4 = vld [vmem:[#allocation2 + $0xb0] sm:$0xff] }
 0x8f3   :  { %3888 = vmatprep.mubr.f32.mxu0 %v10832_v13  ;;  %12897 = vst [vmem:[#allocation122_spill] sm:$0xff] %v10847_v4  ;;  %v10850_v13 = vld [vmem:[#allocation2 + $0xc8] sm:$0xff] }
 0x8f4   :  { %12898 = vst [vmem:[#allocation123_spill] sm:$0xff] %v10850_v13 }
 0x8f6   :  { %3889 = vmatmul.mubr.f32.gmra.mrb[210].mxu0 %v10835_v17  ;;  %v10853_v17 = vld [vmem:[#allocation2 + $0xc0] sm:$0xff] }
 0x8f7   :  { %3893 = vmatprep.mubr.f32.mxu0 %v10838_v5  ;;  %12899 = vst [vmem:[#allocation124_spill] sm:$0xff] %v10853_v17  ;;  %v10856_v5 = vld [vmem:[#allocation2 + $0xd8] sm:$0xff] }
 0x8f8   :  { %12900 = vst [vmem:[#allocation125_spill] sm:$0xff] %v10856_v5 }
 0x8fa   :  { %3894 = vmatmul.mubr.f32.gmra.mrb[212].mxu0 %v10841_v26  ;;  %v10859_v26 = vld [vmem:[#allocation2 + $0xd0] sm:$0xff] }
 0x8fb   :  { %3898 = vmatprep.mubr.f32.mxu0 %v10844_v39  ;;  %12901 = vst [vmem:[#allocation126_spill] sm:$0xff] %v10859_v26  ;;  %v10862_v39 = vld [vmem:[#allocation2 + $0xe8] sm:$0xff] }
 0x8fc   :  { %12902 = vst [vmem:[#allocation127_spill] sm:$0xff] %v10862_v39 }
 0x8fe   :  { %3899 = vmatmul.mubr.f32.gmra.mrb[214].mxu0 %v10847_v4  ;;  %v10865_v4 = vld [vmem:[#allocation2 + $0xe0] sm:$0xff] }
 0x8ff   :  { %3903 = vmatprep.mubr.f32.mxu0 %v10850_v13  ;;  %12903 = vst [vmem:[#allocation128_spill] sm:$0xff] %v10865_v4  ;;  %v10868_v13 = vld [vmem:[#allocation2 + $0xf8] sm:$0xff] }
 0x900   :  { %12904 = vst [vmem:[#allocation129_spill] sm:$0xff] %v10868_v13 }
 0x902   :  { %3904 = vmatmul.mubr.f32.gmra.mrb[216].mxu0 %v10853_v17  ;;  %v10871_v17 = vld [vmem:[#allocation2 + $0xf0] sm:$0xff] }
 0x903   :  { %3908 = vmatprep.mubr.f32.mxu0 %v10856_v5  ;;  %12905 = vst [vmem:[#allocation130_spill] sm:$0xff] %v10871_v17 }
 0x906   :  { %3909 = vmatmul.mubr.f32.gmra.mrb[218].mxu0 %v10859_v26 }
 0x907   :  { %3913 = vmatprep.mubr.f32.mxu0 %v10862_v39 }
 0x90a   :  { %3914 = vmatmul.mubr.f32.gmra.mrb[220].mxu0 %v10865_v4 }
 0x90b   :  { %3918 = vmatprep.mubr.f32.mxu0 %v10868_v13 }
 0x90e   :  { %3919 = vmatmul.mubr.f32.gmra.mrb[222].mxu0 %v10871_v17 }
 0x90f   :  { %4261 = vmatprep.mubr.f32.mxu0 %v10656_v1 }
 0x9a5   :  { %v6349_v5 = vpop.f32.mrb[192].mxu0 }
 0x9a6   :  { %v6350_v26 = vpop.f32.mrb[193].mxu0 }
 0x9a7   :  { %v10875_v61 = vadd.f32 %v6350_v26, %v6349_v5 }
 0x9a9   :  { %12906 = vst [vmem:[#allocation131_spill] sm:$0xff] %v10875_v61  ;;  %v6352_v50 = vpop.f32.mrb[194].mxu0 }
 0x9aa   :  { %v6353_v39 = vpop.f32.mrb[195].mxu0 }
 0x9ab   :  { %v10877_v19 = vadd.f32 %v6353_v39, %v6352_v50 }
 0x9ad   :  { %12907 = vst [vmem:[#allocation132_spill] sm:$0xff] %v10877_v19  ;;  %v7405_v4 = vpack.c.bf16 %v10877_v19, %v10875_v61  ;;  %v6355_v28 = vpop.f32.mrb[196].mxu0 }
 0x9ae   :  { %v6356_v49 = vpop.f32.mrb[197].mxu0 }
 0x9af   :  { %v10881_v13 = vadd.f32 %v6356_v49, %v6355_v28  ;;  %7406 = vmatprep.subr.bf16.mxu1 %v7405_v4 }
 0x9b0   :  { %7408 = vmatpush3.bf16.msra.mxu1 %v7405_v4 }
 0x9b1   :  { %12908 = vst [vmem:[#allocation133_spill] sm:$0xff] %v10881_v13  ;;  %v6358_v17 = vpop.f32.mrb[198].mxu0 }
 0x9b2   :  { %v6359_v33 = vpop.f32.mrb[199].mxu0 }
 0x9b3   :  { %v10883_v1 = vadd.f32 %v6359_v33, %v6358_v17 }
 0x9b5   :  { %12909 = vst [vmem:[#allocation134_spill] sm:$0xff] %v10883_v1  ;;  %v7409_v26 = vpack.c.bf16 %v10883_v1, %v10881_v13  ;;  %v6361_v5 = vpop.f32.mrb[200].mxu0 }
 0x9b6   :  { %v6362_v44 = vpop.f32.mrb[201].mxu0 }
 0x9b7   :  { %v10887_v50 = vadd.f32 %v6362_v44, %v6361_v5  ;;  %7410 = vmatprep.subr.bf16.mxu1 %v7409_v26 }
 0x9b8   :  { %7412 = vmatpush3.bf16.msra.mxu1 %v7409_v26 }
 0x9b9   :  { %12910 = vst [vmem:[#allocation135_spill] sm:$0xff] %v10887_v50  ;;  %v6364_v39 = vpop.f32.mrb[202].mxu0 }
 0x9ba   :  { %v6365_v19 = vpop.f32.mrb[203].mxu0 }
 0x9bb   :  { %v10889_v61 = vadd.f32 %v6365_v19, %v6364_v39 }
 0x9bd   :  { %12911 = vst [vmem:[#allocation136_spill] sm:$0xff] %v10889_v61  ;;  %v7413_v28 = vpack.c.bf16 %v10889_v61, %v10887_v50  ;;  %v6367_v49 = vpop.f32.mrb[204].mxu0 }
 0x9be   :  { %v6368_v4 = vpop.f32.mrb[205].mxu0 }
 0x9bf   :  { %v10893_v33 = vadd.f32 %v6368_v4, %v6367_v49  ;;  %7414 = vmatprep.subr.bf16.mxu1 %v7413_v28 }
 0x9c0   :  { %7416 = vmatpush3.bf16.msra.mxu1 %v7413_v28 }
 0x9c1   :  { %12912 = vst [vmem:[#allocation137_spill] sm:$0xff] %v10893_v33  ;;  %v6370_v17 = vpop.f32.mrb[206].mxu0 }
 0x9c2   :  { %v6371_v1 = vpop.f32.mrb[207].mxu0 }
 0x9c3   :  { %v10895_v13 = vadd.f32 %v6371_v1, %v6370_v17 }
 0x9c5   :  { %12913 = vst [vmem:[#allocation138_spill] sm:$0xff] %v10895_v13  ;;  %v7417_v44 = vpack.c.bf16 %v10895_v13, %v10893_v33  ;;  %v6373_v26 = vpop.f32.mrb[208].mxu0 }
 0x9c6   :  { %v6374_v5 = vpop.f32.mrb[209].mxu0 }
 0x9c7   :  { %v10899_v19 = vadd.f32 %v6374_v5, %v6373_v26  ;;  %7418 = vmatprep.subr.bf16.mxu1 %v7417_v44 }
 0x9c8   :  { %7420 = vmatpush3.bf16.msra.mxu1 %v7417_v44 }
 0x9c9   :  { %12914 = vst [vmem:[#allocation139_spill] sm:$0xff] %v10899_v19  ;;  %v6376_v39 = vpop.f32.mrb[210].mxu0 }
 0x9ca   :  { %v6377_v61 = vpop.f32.mrb[211].mxu0 }
 0x9cb   :  { %v10901_v50 = vadd.f32 %v6377_v61, %v6376_v39 }
 0x9cd   :  { %12915 = vst [vmem:[#allocation140_spill] sm:$0xff] %v10901_v50  ;;  %v7421_v28 = vpack.c.bf16 %v10901_v50, %v10899_v19  ;;  %v6379_v49 = vpop.f32.mrb[212].mxu0 }
 0x9ce   :  { %v6380_v4 = vpop.f32.mrb[213].mxu0 }
 0x9cf   :  { %v10905_v1 = vadd.f32 %v6380_v4, %v6379_v49  ;;  %7422 = vmatprep.subr.bf16.mxu1 %v7421_v28 }
 0x9d0   :  { %7424 = vmatpush3.bf16.msra.mxu1 %v7421_v28 }
 0x9d1   :  { %12916 = vst [vmem:[#allocation141_spill] sm:$0xff] %v10905_v1  ;;  %v6382_v17 = vpop.f32.mrb[214].mxu0 }
 0x9d2   :  { %v6383_v13 = vpop.f32.mrb[215].mxu0 }
 0x9d3   :  { %v10907_v33 = vadd.f32 %v6383_v13, %v6382_v17 }
 0x9d5   :  { %12917 = vst [vmem:[#allocation142_spill] sm:$0xff] %v10907_v33  ;;  %v7425_v44 = vpack.c.bf16 %v10907_v33, %v10905_v1  ;;  %v6385_v26 = vpop.f32.mrb[216].mxu0 }
 0x9d6   :  { %v6386_v5 = vpop.f32.mrb[217].mxu0 }
 0x9d7   :  { %v10911_v61 = vadd.f32 %v6386_v5, %v6385_v26  ;;  %7426 = vmatprep.subr.bf16.mxu1 %v7425_v44 }
 0x9d8   :  { %7428 = vmatpush3.bf16.msra.mxu1 %v7425_v44 }
 0x9d9   :  { %v6388_v39 = vpop.f32.mrb[218].mxu0 }
 0x9da   :  { %v6389_v50 = vpop.f32.mrb[219].mxu0 }
 0x9db   :  { %v10913_v19 = vadd.f32 %v6389_v50, %v6388_v39 }
 0x9dd   :  { %v7429_v28 = vpack.c.bf16 %v10913_v19, %v10911_v61  ;;  %v6391_v49 = vpop.f32.mrb[220].mxu0 }
 0x9de   :  { %v6392_v4 = vpop.f32.mrb[221].mxu0 }
 0x9df   :  { %v10917_v13 = vadd.f32 %v6392_v4, %v6391_v49  ;;  %7430 = vmatprep.subr.bf16.mxu1 %v7429_v28 }
 0x9e0   :  { %7432 = vmatpush3.bf16.msra.mxu1 %v7429_v28  ;;  %v12938_v28 = vld [vmem:[#allocation63_spill] sm:$0xff] }
 0x9e1   :  { %v6394_v17 = vpop.f32.mrb[222].mxu0  ;;  %v3760_v49 = vadd.f32 %v10697_v32, %v12938_v28  ;;  %v12943_v32 = vld [vmem:[#allocation65_spill] sm:$0xff] }
 0x9e2   :  { %v6395_v33 = vpop.f32.mrb[223].mxu0 }
 0x9e3   :  { %v10919_v1 = vadd.f32 %v6395_v33, %v6394_v17 }
 0x9e5   :  { %v7433_v44 = vpack.c.bf16 %v10919_v1, %v10917_v13 }
 0x9e7   :  { %7434 = vmatprep.subr.bf16.mxu1 %v7433_v44 }
 0x9e8   :  { %7436 = vmatpush3.bf16.msra.mxu1 %v7433_v44 }
 0x9eb   :  { %6846 = vmatmul.mubr.f32.vlgmr.msra.gmra.mrb[224].mxu1 %v10459_v31  ;;  %v3748_v31 = vadd.f32 %v10661_v38, %v10273_v58  ;;  %v3749_v58 = vadd.f32 %v10669_v56, %v10301_v27 }
 0x9ec   :  { %6848 = vmatprep.mubr.f32.mxu1 %v10467_v63  ;;  %v3747_v63 = vadd.f32 %v10663_v25, %v10269_v37 }
 0x9ef   :  { %6849 = vmatmul.mubr.f32.gmra.mrb[226].mxu1 %v10473_v6 }
 0x9f0   :  { %6851 = vmatprep.mubr.f32.mxu1 %v10481_v15 }
 0x9f3   :  { %6852 = vmatmul.mubr.f32.gmra.mrb[228].mxu1 %v10487_v14 }
 0x9f4   :  { %6854 = vmatprep.mubr.f32.mxu1 %v10495_v53 }
 0x9f7   :  { %6855 = vmatmul.mubr.f32.gmra.mrb[230].mxu1 %v10501_v24 }
 0x9f8   :  { %6857 = vmatprep.mubr.f32.mxu1 %v10509_v46 }
 0x9fb   :  { %6858 = vmatmul.mubr.f32.gmra.mrb[232].mxu1 %v10515_v57  ;;  %v12926_v57 = vld [vmem:[#allocation50_spill] sm:$0xff] }
 0x9fc   :  { %6860 = vmatprep.mubr.f32.mxu1 %v10523_v11  ;;  %v3754_v11 = vadd.f32 %v10679_v16, %v12926_v57  ;;  %v12931_v16 = vld [vmem:[#allocation53_spill] sm:$0xff]  ;;  %v12947_v57 = vld [vmem:[#allocation40_spill] sm:$0xff] }
 0x9ff   :  { %6861 = vmatmul.mubr.f32.gmra.mrb[234].mxu1 %v10529_v36 }
 0xa00   :  { %6863 = vmatprep.mubr.f32.mxu1 %v10537_v42 }
 0xa03   :  { %6864 = vmatmul.mubr.f32.gmra.mrb[236].mxu1 %v10543_v60 }
 0xa04   :  { %6866 = vmatprep.mubr.f32.mxu1 %v10551_v7 }
 0xa07   :  { %6867 = vmatmul.mubr.f32.gmra.mrb[238].mxu1 %v10557_v0 }
 0xa08   :  { %6869 = vmatprep.mubr.f32.mxu1 %v10563_v29 }
 0xa0b   :  { %6870 = vmatmul.mubr.f32.gmra.mrb[240].mxu1 %v10569_v20  ;;  %v3755_v20 = vadd.f32 %v10687_v47, %v12931_v16 }
 0xa0c   :  { %6872 = vmatprep.mubr.f32.mxu1 %v10575_v59 }
 0xa0f   :  { %6873 = vmatmul.mubr.f32.gmra.mrb[242].mxu1 %v10581_v40 }
 0xa10   :  { %6875 = vmatprep.mubr.f32.mxu1 %v10587_v35 }
 0xa13   :  { %6876 = vmatmul.mubr.f32.gmra.mrb[244].mxu1 %v10593_v34 }
 0xa14   :  { %6878 = vmatprep.mubr.f32.mxu1 %v10599_v43  ;;  %v12930_v43 = vld [vmem:[#allocation54_spill] sm:$0xff] }
 0xa15   :  { %v3756_v29 = vadd.f32 %v10685_v48, %v12930_v43  ;;  %v12935_v48 = vld [vmem:[#allocation57_spill] sm:$0xff] }
 0xa16   :  { %v3757_v50 = vadd.f32 %v10693_v18, %v12935_v48  ;;  %v12953_v48 = vld [vmem:[#allocation42_spill] sm:$0xff] }
 0xa17   :  { %6879 = vmatmul.mubr.f32.gmra.mrb[246].mxu1 %v10605_v10 }
 0xa18   :  { %6881 = vmatprep.mubr.f32.mxu1 %v10611_v54 }
 0xa1b   :  { %6882 = vmatmul.mubr.f32.gmra.mrb[248].mxu1 %v10617_v23  ;;  %v12922_v23 = vld [vmem:[#allocation46_spill] sm:$0xff] }
 0xa1c   :  { %6884 = vmatprep.mubr.f32.mxu1 %v10623_v3  ;;  %v3752_v53 = vadd.f32 %v10673_v22, %v12922_v23  ;;  %v12927_v22 = vld [vmem:[#allocation49_spill] sm:$0xff] }
 0xa1d   :  { %v3753_v60 = vadd.f32 %v10681_v55, %v12927_v22 }
 0xa1f   :  { %6885 = vmatmul.mubr.f32.gmra.mrb[250].mxu1 %v10629_v45 }
 0xa20   :  { %6887 = vmatprep.mubr.f32.mxu1 %v10635_v52 }
 0xa23   :  { %6888 = vmatmul.mubr.f32.gmra.mrb[252].mxu1 %v10641_v21 }
 0xa24   :  { %6890 = vmatprep.mubr.f32.mxu1 %v10647_v30  ;;  %v3750_v30 = vadd.f32 %v10667_v2, %v10313_v12  ;;  %v12923_v12 = vld [vmem:[#allocation45_spill] sm:$0xff] }
 0xa25   :  { %v3751_v2 = vadd.f32 %v10675_v9, %v12923_v12  ;;  %v12934_v9 = vld [vmem:[#allocation58_spill] sm:$0xff] }
 0xa26   :  { %v3758_v55 = vadd.f32 %v10691_v8, %v12934_v9  ;;  %v12939_v8 = vld [vmem:[#allocation60_spill] sm:$0xff] }
 0xa27   :  { %6891 = vmatmul.mubr.f32.gmra.mrb[254].mxu1 %v10653_v62  ;;  %v3759_v4 = vadd.f32 %v10699_v51, %v12939_v8  ;;  %v12956_v8 = vld [vmem:[#allocation87_spill] sm:$0xff] }
 0xa28   :  { %6937 = vmatprep.mubr.f32.mxu1 %v10509_v46 }
 0xabe   :  { %v10959_v6 = vpop.f32.mrb[224].mxu1 }
 0xabf   :  { %v10962_v45 = vadd.f32 %v10959_v6, %v3748_v31  ;;  %v10964_v52 = vpop.f32.mrb[225].mxu1 }
 0xac0   :  { %v10967_v21 = vadd.f32 %v10964_v52, %v3747_v63  ;;  %v7439_v62 = vpack.c.bf16 %v10959_v6, %v10964_v52  ;;  %v12942_v6 = vld [vmem:[#allocation66_spill] sm:$0xff] }
 0xac1   :  { %12918 = vst [vmem:[#allocation143_spill] sm:$0xff] %v10962_v45  ;;  %v3762_v52 = vadd.f32 %v10703_v41, %v12942_v6  ;;  %v12949_v41 = vld [vmem:[#allocation39_spill] sm:$0xff]  ;;  %v13038_v45 = vld [vmem:[#allocation132_spill] sm:$0xff] }
 0xac2   :  { %12919 = vst [vmem:[#allocation144_spill] sm:$0xff] %v10967_v21  ;;  %v10975_v37 = vpop.f32.mrb[226].mxu1 }
 0xac3   :  { %v10978_v38 = vadd.f32 %v10975_v37, %v3750_v30  ;;  %v10980_v15 = vpop.f32.mrb[227].mxu1  ;;  %v12944_v30 = vld [vmem:[#allocation83_spill] sm:$0xff] }
 0xac4   :  { %v10983_v3 = vadd.f32 %v10980_v15, %v3749_v58  ;;  %v7443_v14 = vpack.c.bf16 %v10975_v37, %v10980_v15  ;;  %v3761_v58 = vadd.f32 %v12944_v30, %v12943_v32 }
 0xac5   :  { %12920 = vst [vmem:[#allocation145_spill] sm:$0xff] %v10978_v38 }
 0xac6   :  { %12921 = vst [vmem:[#allocation146_spill] sm:$0xff] %v10983_v3  ;;  %v10991_v27 = vpop.f32.mrb[228].mxu1 }
 0xac7   :  { %v10994_v56 = vadd.f32 %v10991_v27, %v3752_v53  ;;  %v10996_v54 = vpop.f32.mrb[229].mxu1 }
 0xac8   :  { %v10999_v24 = vadd.f32 %v10996_v54, %v3751_v2  ;;  %v7447_v46 = vpack.c.bf16 %v10991_v27, %v10996_v54 }
 0xac9   :  { %12924 = vst [vmem:[#allocation46_spill] sm:$0xff] %v10994_v56 }
 0xaca   :  { %12925 = vst [vmem:[#allocation45_spill] sm:$0xff] %v10999_v24  ;;  %v11007_v36 = vpop.f32.mrb[230].mxu1 }
 0xacb   :  { %v11010_v42 = vadd.f32 %v11007_v36, %v3754_v11  ;;  %v11012_v0 = vpop.f32.mrb[231].mxu1  ;;  %v12948_v11 = vld [vmem:[#allocation84_spill] sm:$0xff] }
 0xacc   :  { %v11015_v10 = vadd.f32 %v11012_v0, %v3753_v60  ;;  %v7451_v7 = vpack.c.bf16 %v11007_v36, %v11012_v0  ;;  %v3764_v22 = vadd.f32 %v12948_v11, %v12947_v57  ;;  %v12950_v60 = vld [vmem:[#allocation85_spill] sm:$0xff]  ;;  %v12959_v57 = vld [vmem:[#allocation44_spill] sm:$0xff] }
 0xacd   :  { %12928 = vst [vmem:[#allocation50_spill] sm:$0xff] %v11010_v42  ;;  %v3763_v43 = vadd.f32 %v12950_v60, %v12949_v41  ;;  %v12960_v11 = vld [vmem:[#allocation88_spill] sm:$0xff]  ;;  %v12961_v41 = vld [vmem:[#allocation43_spill] sm:$0xff]  ;;  %v12962_v60 = vld [vmem:[#allocation89_spill] sm:$0xff] }
 0xace   :  { %12929 = vst [vmem:[#allocation49_spill] sm:$0xff] %v11015_v10  ;;  %v11023_v59 = vpop.f32.mrb[232].mxu1  ;;  %v8364_v10 = vld [vmem:[#allocation26 + $0x60] sm:$0xff] }
 0xacf   :  { %v11026_v40 = vadd.f32 %v11023_v59, %v3756_v29  ;;  %v11028_v35 = vpop.f32.mrb[233].mxu1  ;;  %v5075_v42 = vmul.f32 %v8364_v10, %v8364_v10  ;;  %v8371_v10 = vld [vmem:[#allocation27 + $0x18] sm:$0xff] }
 0xad0   :  { %v11031_v34 = vadd.f32 %v11028_v35, %v3755_v20  ;;  %v7455_v25 = vpack.c.bf16 %v11023_v59, %v11028_v35 }
 0xad1   :  { %12932 = vst [vmem:[#allocation54_spill] sm:$0xff] %v11026_v40 }
 0xad2   :  { %12933 = vst [vmem:[#allocation53_spill] sm:$0xff] %v11031_v34  ;;  %v11039_v47 = vpop.f32.mrb[234].mxu1  ;;  %v8432_v34 = vld [vmem:[#allocation24 + $0x30] sm:$0xff] }
 0xad3   :  { %v11042_v33 = vadd.f32 %v11039_v47, %v3758_v55  ;;  %v11044_v26 = vpop.f32.mrb[235].mxu1 }
 0xad4   :  { %v11047_v5 = vadd.f32 %v11044_v26, %v3757_v50  ;;  %v7459_v39 = vpack.c.bf16 %v11039_v47, %v11044_v26  ;;  %v12954_v50 = vld [vmem:[#allocation86_spill] sm:$0xff] }
 0xad5   :  { %12936 = vst [vmem:[#allocation58_spill] sm:$0xff] %v11042_v33  ;;  %v3766_v28 = vadd.f32 %v12954_v50, %v12953_v48  ;;  %v12965_v50 = vld [vmem:[#allocation48_spill] sm:$0xff] }
 0xad6   :  { %12937 = vst [vmem:[#allocation57_spill] sm:$0xff] %v11047_v5  ;;  %v11055_v18 = vpop.f32.mrb[236].mxu1 }
 0xad7   :  { %v11058_v17 = vadd.f32 %v11055_v18, %v3760_v49  ;;  %v11060_v44 = vpop.f32.mrb[237].mxu1  ;;  %v12955_v49 = vld [vmem:[#allocation41_spill] sm:$0xff] }
 0xad8   :  { %v11063_v31 = vadd.f32 %v11060_v44, %v3759_v4  ;;  %v7463_v63 = vpack.c.bf16 %v11055_v18, %v11060_v44  ;;  %v3765_v4 = vadd.f32 %v12956_v8, %v12955_v49  ;;  %v12967_v8 = vld [vmem:[#allocation47_spill] sm:$0xff]  ;;  %v13000_v18 = vld [vmem:[#allocation105_spill] sm:$0xff]  ;;  %v13001_v44 = vld [vmem:[#allocation106_spill] sm:$0xff] }
 0xad9   :  { %12940 = vst [vmem:[#allocation63_spill] sm:$0xff] %v11058_v17 }
 0xada   :  { %12941 = vst [vmem:[#allocation60_spill] sm:$0xff] %v11063_v31  ;;  %v11071_v51 = vpop.f32.mrb[238].mxu1  ;;  %v8366_v31 = vld [vmem:[#allocation26 + $0x70] sm:$0xff] }
 0xadb   :  { %v11074_v23 = vadd.f32 %v11071_v51, %v3762_v52  ;;  %v11076_v53 = vpop.f32.mrb[239].mxu1 }
 0xadc   :  { %v11079_v12 = vadd.f32 %v11076_v53, %v3761_v58  ;;  %v7467_v2 = vpack.c.bf16 %v11071_v51, %v11076_v53  ;;  %v13004_v51 = vld [vmem:[#allocation109_spill] sm:$0xff]  ;;  %v13005_v53 = vld [vmem:[#allocation110_spill] sm:$0xff] }
 0xadd   :  { %12945 = vst [vmem:[#allocation66_spill] sm:$0xff] %v11074_v23  ;;  %v11379_v23 = vld [vmem:[#allocation26 + $0x30] sm:$0xff] }
 0xade   :  { %12946 = vst [vmem:[#allocation65_spill] sm:$0xff] %v11079_v12  ;;  %v6871_v29 = vpop.f32.mrb[240].mxu1 }
 0xadf   :  { %v11087_v16 = vadd.f32 %v6871_v29, %v3764_v22  ;;  %v4070_v20 = vpop.f32.mrb[241].mxu1  ;;  %v3768_v22 = vadd.f32 %v12960_v11, %v12959_v57  ;;  %v12972_v11 = vld [vmem:[#allocation92_spill] sm:$0xff] }
 0xae0   :  { %v11089_v9 = vadd.f32 %v4070_v20, %v3763_v43  ;;  %v7437_v55 = vpack.c.bf16 %v6871_v29, %v4070_v20  ;;  %v3767_v43 = vadd.f32 %v12962_v60, %v12961_v41  ;;  %v12973_v41 = vld [vmem:[#allocation51_spill] sm:$0xff]  ;;  %v12974_v60 = vld [vmem:[#allocation93_spill] sm:$0xff] }
 0xae1   :  { %12951 = vst [vmem:[#allocation83_spill] sm:$0xff] %v11087_v16  ;;  %v8357_v16 = vld [vmem:[#allocation26 + $0x28] sm:$0xff] }
 0xae2   :  { %12952 = vst [vmem:[#allocation40_spill] sm:$0xff] %v11089_v9  ;;  %v6874_v6 = vpop.f32.mrb[242].mxu1  ;;  %7438 = vmatprep.subr.bf16.mxu0 %v7437_v55  ;;  %v5068_v12 = vmul.f32 %v8357_v16, %v8357_v16  ;;  %v8363_v16 = vld [vmem:[#allocation26 + $0x58] sm:$0xff] }
 0xae3   :  { %v11095_v52 = vadd.f32 %v6874_v6, %v3766_v28  ;;  %v4080_v32 = vpop.f32.mrb[243].mxu1  ;;  %7440 = vmatpush3.bf16.msra.mxu0 %v7439_v62  ;;  %v12966_v28 = vld [vmem:[#allocation90_spill] sm:$0xff] }
 0xae4   :  { %v11097_v30 = vadd.f32 %v4080_v32, %v3765_v4  ;;  %v7441_v58 = vpack.c.bf16 %v6874_v6, %v4080_v32  ;;  %v3770_v49 = vadd.f32 %v12966_v28, %v12965_v50  ;;  %v12968_v4 = vld [vmem:[#allocation91_spill] sm:$0xff]  ;;  %v12978_v50 = vld [vmem:[#allocation94_spill] sm:$0xff] }
 0xae5   :  { %12957 = vst [vmem:[#allocation84_spill] sm:$0xff] %v11095_v52  ;;  %v3769_v6 = vadd.f32 %v12968_v4, %v12967_v8  ;;  %v12980_v8 = vld [vmem:[#allocation95_spill] sm:$0xff]  ;;  %v8355_v52 = vld [vmem:[#allocation26 + $0x18] sm:$0xff] }
 0xae6   :  { %12958 = vst [vmem:[#allocation39_spill] sm:$0xff] %v11097_v30  ;;  %v6877_v29 = vpop.f32.mrb[244].mxu1  ;;  %7442 = vmatprep.subr.bf16.mxu0 %v7441_v58  ;;  %v5066_v9 = vmul.f32 %v8355_v52, %v8355_v52  ;;  %v8361_v52 = vld [vmem:[#allocation26 + $0x48] sm:$0xff] }
 0xae7   :  { %v11103_v20 = vadd.f32 %v6877_v29, %v3768_v22  ;;  %v4090_v48 = vpop.f32.mrb[245].mxu1  ;;  %7444 = vmatpush3.bf16.msra.mxu0 %v7443_v14  ;;  %v12971_v14 = vld [vmem:[#allocation52_spill] sm:$0xff] }
 0xae8   :  { %v11108_v55 = vadd.f32 %v4090_v48, %v3767_v43  ;;  %v7445_v62 = vpack.c.bf16 %v6877_v29, %v4090_v48  ;;  %v3772_v22 = vadd.f32 %v12972_v11, %v12971_v14  ;;  %v3771_v43 = vadd.f32 %v12974_v60, %v12973_v41  ;;  %v12985_v11 = vld [vmem:[#allocation59_spill] sm:$0xff] }
 0xae9   :  { %12963 = vst [vmem:[#allocation85_spill] sm:$0xff] %v11103_v20  ;;  %v8354_v20 = vld [vmem:[#allocation26 + $0x10] sm:$0xff] }
 0xaea   :  { %12964 = vst [vmem:[#allocation42_spill] sm:$0xff] %v11108_v55  ;;  %v6880_v32 = vpop.f32.mrb[246].mxu1  ;;  %7446 = vmatprep.subr.bf16.mxu0 %v7445_v62  ;;  %v5065_v30 = vmul.f32 %v8354_v20, %v8354_v20  ;;  %v8360_v20 = vld [vmem:[#allocation26 + $0x40] sm:$0xff] }
 0xaeb   :  { %v11114_v57 = vadd.f32 %v6880_v32, %v3770_v49  ;;  %v4100_v58 = vpop.f32.mrb[247].mxu1  ;;  %7448 = vmatpush3.bf16.msra.mxu0 %v7447_v46  ;;  %v12977_v46 = vld [vmem:[#allocation56_spill] sm:$0xff]  ;;  %v12979_v49 = vld [vmem:[#allocation55_spill] sm:$0xff] }
 0xaec   :  { %v11119_v37 = vadd.f32 %v4100_v58, %v3769_v6  ;;  %v7449_v15 = vpack.c.bf16 %v6880_v32, %v4100_v58  ;;  %v3774_v28 = vadd.f32 %v12978_v50, %v12977_v46  ;;  %v3773_v4 = vadd.f32 %v12980_v8, %v12979_v49  ;;  %v12991_v46 = vld [vmem:[#allocation62_spill] sm:$0xff]  ;;  %v12992_v50 = vld [vmem:[#allocation99_spill] sm:$0xff] }
 0xaed   :  { %12969 = vst [vmem:[#allocation86_spill] sm:$0xff] %v11114_v57  ;;  %v11375_v57 = vld [vmem:[#allocation26] sm:$0xff] }
 0xaee   :  { %12970 = vst [vmem:[#allocation41_spill] sm:$0xff] %v11119_v37  ;;  %v6883_v29 = vpop.f32.mrb[248].mxu1  ;;  %7450 = vmatprep.subr.bf16.mxu0 %v7449_v15  ;;  %v12984_v15 = vld [vmem:[#allocation96_spill] sm:$0xff]  ;;  %v5063_v55 = vmul.f32 %v11375_v57, %v11375_v57 }
 0xaef   :  { %v11125_v48 = vadd.f32 %v6883_v29, %v3772_v22  ;;  %v4110_v62 = vpop.f32.mrb[249].mxu1  ;;  %7452 = vmatpush3.bf16.msra.mxu0 %v7451_v7  ;;  %v12983_v7 = vld [vmem:[#allocation61_spill] sm:$0xff] }
 0xaf0   :  { %v11130_v27 = vadd.f32 %v4110_v62, %v3771_v43  ;;  %v7453_v54 = vpack.c.bf16 %v6883_v29, %v4110_v62  ;;  %v3776_v14 = vadd.f32 %v12984_v15, %v12983_v7  ;;  %v12986_v22 = vld [vmem:[#allocation97_spill] sm:$0xff]  ;;  %v12990_v62 = vld [vmem:[#allocation98_spill] sm:$0xff]  ;;  %v12999_v7 = vld [vmem:[#allocation104_spill] sm:$0xff] }
 0xaf1   :  { %12975 = vst [vmem:[#allocation87_spill] sm:$0xff] %v11125_v48  ;;  %v3775_v41 = vadd.f32 %v12986_v22, %v12985_v11  ;;  %v13003_v15 = vld [vmem:[#allocation108_spill] sm:$0xff]  ;;  %v13008_v11 = vld [vmem:[#allocation113_spill] sm:$0xff]  ;;  %v13009_v22 = vld [vmem:[#allocation114_spill] sm:$0xff] }
 0xaf2   :  { %12976 = vst [vmem:[#allocation44_spill] sm:$0xff] %v11130_v27  ;;  %v6886_v6 = vpop.f32.mrb[250].mxu1  ;;  %7454 = vmatprep.subr.bf16.mxu0 %v7453_v54 }
 0xaf3   :  { %v11136_v32 = vadd.f32 %v6886_v6, %v3774_v28  ;;  %v4120_v58 = vpop.f32.mrb[251].mxu1  ;;  %7456 = vmatpush3.bf16.msra.mxu0 %v7455_v25  ;;  %v12989_v25 = vld [vmem:[#allocation64_spill] sm:$0xff]  ;;  %v3777_v28 = vadd.f32 %v12992_v50, %v12991_v46  ;;  %v13017_v46 = vld [vmem:[#allocation122_spill] sm:$0xff]  ;;  %v13018_v50 = vld [vmem:[#allocation123_spill] sm:$0xff] }
 0xaf4   :  { %v11141_v36 = vadd.f32 %v4120_v58, %v3773_v4  ;;  %v7457_v0 = vpack.c.bf16 %v6886_v6, %v4120_v58  ;;  %v3778_v54 = vadd.f32 %v12990_v62, %v12989_v25  ;;  %v12996_v6 = vld [vmem:[#allocation101_spill] sm:$0xff]  ;;  %v12997_v58 = vld [vmem:[#allocation102_spill] sm:$0xff]  ;;  %v13014_v25 = vld [vmem:[#allocation119_spill] sm:$0xff] }
 0xaf5   :  { %12981 = vst [vmem:[#allocation88_spill] sm:$0xff] %v11136_v32  ;;  %v13015_v62 = vld [vmem:[#allocation120_spill] sm:$0xff] }
 0xaf6   :  { %12982 = vst [vmem:[#allocation43_spill] sm:$0xff] %v11141_v36  ;;  %v6889_v60 = vpop.f32.mrb[252].mxu1  ;;  %7458 = vmatprep.subr.bf16.mxu0 %v7457_v0  ;;  %v12998_v0 = vld [vmem:[#allocation103_spill] sm:$0xff] }
 0xaf7   :  { %v11147_v43 = vadd.f32 %v6889_v60, %v3776_v14  ;;  %v4130_v29 = vpop.f32.mrb[253].mxu1  ;;  %7460 = vmatpush3.bf16.msra.mxu0 %v7459_v39  ;;  %v12995_v39 = vld [vmem:[#allocation100_spill] sm:$0xff] }
 0xaf8   :  { %v11152_v59 = vadd.f32 %v4130_v29, %v3775_v41  ;;  %v7461_v35 = vpack.c.bf16 %v6889_v60, %v4130_v29  ;;  %v13007_v14 = vld [vmem:[#allocation112_spill] sm:$0xff]  ;;  %v13010_v41 = vld [vmem:[#allocation115_spill] sm:$0xff]  ;;  %v13012_v29 = vld [vmem:[#allocation117_spill] sm:$0xff] }
 0xaf9   :  { %12987 = vst [vmem:[#allocation89_spill] sm:$0xff] %v11147_v43  ;;  %v13011_v60 = vld [vmem:[#allocation116_spill] sm:$0xff] }
 0xafa   :  { %12988 = vst [vmem:[#allocation48_spill] sm:$0xff] %v11152_v59  ;;  %v6892_v49 = vpop.f32.mrb[254].mxu1  ;;  %7462 = vmatprep.subr.bf16.mxu0 %v7461_v35  ;;  %v13013_v35 = vld [vmem:[#allocation118_spill] sm:$0xff] }
 0xafb   :  { %v11158_v8 = vadd.f32 %v6892_v49, %v3778_v54  ;;  %v4140_v4 = vpop.f32.mrb[255].mxu1  ;;  %7464 = vmatpush3.bf16.msra.mxu0 %v7463_v63  ;;  %v13002_v63 = vld [vmem:[#allocation107_spill] sm:$0xff]  ;;  %v13016_v54 = vld [vmem:[#allocation121_spill] sm:$0xff] }
 0xafc   :  { %v11163_v47 = vadd.f32 %v4140_v4, %v3777_v28  ;;  %v7465_v26 = vpack.c.bf16 %v6892_v49, %v4140_v4  ;;  %v13019_v28 = vld [vmem:[#allocation124_spill] sm:$0xff]  ;;  %v13020_v49 = vld [vmem:[#allocation125_spill] sm:$0xff]  ;;  %v13021_v4 = vld [vmem:[#allocation126_spill] sm:$0xff] }
 0xafd   :  { %12993 = vst [vmem:[#allocation90_spill] sm:$0xff] %v11158_v8 }
 0xafe   :  { %12994 = vst [vmem:[#allocation47_spill] sm:$0xff] %v11163_v47  ;;  %7466 = vmatprep.subr.bf16.mxu0 %v7465_v26  ;;  %v13022_v26 = vld [vmem:[#allocation127_spill] sm:$0xff] }
 0xaff   :  { %7468 = vmatpush3.bf16.msra.mxu0 %v7467_v2  ;;  %v13006_v2 = vld [vmem:[#allocation111_spill] sm:$0xff] }
 0xb02   :  { %4262 = vmatmul.mubr.f32.vlgmr.msra.gmra.mrb[224].mxu0 %v12995_v39  ;;  %v13023_v39 = vld [vmem:[#allocation128_spill] sm:$0xff] }
 0xb03   :  { %4266 = vmatprep.mubr.f32.mxu0 %v12996_v6  ;;  %v13024_v6 = vld [vmem:[#allocation129_spill] sm:$0xff] }
 0xb06   :  { %4267 = vmatmul.mubr.f32.gmra.mrb[226].mxu0 %v12997_v58  ;;  %v13025_v58 = vld [vmem:[#allocation130_spill] sm:$0xff] }
 0xb07   :  { %4271 = vmatprep.mubr.f32.mxu0 %v12998_v0  ;;  %v8351_v0 = vld [vmem:[#allocation5] sm:$0xff] }
 0xb0a   :  { %4272 = vmatmul.mubr.f32.gmra.mrb[228].mxu0 %v12999_v7 }
 0xb0b   :  { %4276 = vmatprep.mubr.f32.mxu0 %v13000_v18 }
 0xb0e   :  { %4277 = vmatmul.mubr.f32.gmra.mrb[230].mxu0 %v13001_v44 }
 0xb0f   :  { %4281 = vmatprep.mubr.f32.mxu0 %v13002_v63 }
 0xb12   :  { %4282 = vmatmul.mubr.f32.gmra.mrb[232].mxu0 %v13003_v15 }
 0xb13   :  { %4286 = vmatprep.mubr.f32.mxu0 %v13004_v51 }
 0xb16   :  { %4287 = vmatmul.mubr.f32.gmra.mrb[234].mxu0 %v13005_v53 }
 0xb17   :  { %4291 = vmatprep.mubr.f32.mxu0 %v13006_v2 }
 0xb1a   :  { %4292 = vmatmul.mubr.f32.gmra.mrb[236].mxu0 %v13007_v14 }
 0xb1b   :  { %4296 = vmatprep.mubr.f32.mxu0 %v13008_v11 }
 0xb1e   :  { %4297 = vmatmul.mubr.f32.gmra.mrb[238].mxu0 %v13009_v22 }
 0xb1f   :  { %4301 = vmatprep.mubr.f32.mxu0 %v13010_v41 }
 0xb22   :  { %4302 = vmatmul.mubr.f32.gmra.mrb[240].mxu0 %v13011_v60 }
 0xb23   :  { %4306 = vmatprep.mubr.f32.mxu0 %v13012_v29 }
 0xb26   :  { %4307 = vmatmul.mubr.f32.gmra.mrb[242].mxu0 %v13013_v35 }
 0xb27   :  { %4311 = vmatprep.mubr.f32.mxu0 %v13014_v25 }
 0xb2a   :  { %4312 = vmatmul.mubr.f32.gmra.mrb[244].mxu0 %v13015_v62 }
 0xb2b   :  { %4316 = vmatprep.mubr.f32.mxu0 %v13016_v54 }
 0xb2e   :  { %4317 = vmatmul.mubr.f32.gmra.mrb[246].mxu0 %v13017_v46 }
 0xb2f   :  { %4321 = vmatprep.mubr.f32.mxu0 %v13018_v50 }
 0xb32   :  { %4322 = vmatmul.mubr.f32.gmra.mrb[248].mxu0 %v13019_v28 }
 0xb33   :  { %4326 = vmatprep.mubr.f32.mxu0 %v13020_v49 }
 0xb36   :  { %4327 = vmatmul.mubr.f32.gmra.mrb[250].mxu0 %v13021_v4 }
 0xb37   :  { %4331 = vmatprep.mubr.f32.mxu0 %v13022_v26 }
 0xb3a   :  { %4332 = vmatmul.mubr.f32.gmra.mrb[252].mxu0 %v13023_v39 }
 0xb3b   :  { %4336 = vmatprep.mubr.f32.mxu0 %v13024_v6 }
 0xb3e   :  { %4337 = vmatmul.mubr.f32.gmra.mrb[254].mxu0 %v13025_v58 }
 0xb3f   :  { %6925 = vmatprep.mubr.f32.mxu0 %v8351_v0 }
 0xbd5   :  { %v6477_v7 = vpop.f32.mrb[224].mxu0 }
 0xbd6   :  { %v6478_v18 = vpop.f32.mrb[225].mxu0 }
 0xbd7   :  { %v11199_v44 = vadd.f32 %v6478_v18, %v6477_v7 }
 0xbd9   :  { %v6480_v63 = vpop.f32.mrb[226].mxu0  ;;  %4342 = vmax.xlane.f32.xlu0 %v11199_v44 }
 0xbda   :  { %v6481_v15 = vpop.f32.mrb[227].mxu0 }
 0xbdb   :  { %v11202_v51 = vadd.f32 %v6481_v15, %v6480_v63 }
 0xbdd   :  { %v6483_v53 = vpop.f32.mrb[228].mxu0  ;;  %4344 = vmax.xlane.f32.xlu1 %v11202_v51 }
 0xbde   :  { %v6484_v2 = vpop.f32.mrb[229].mxu0 }
 0xbdf   :  { %v11205_v14 = vadd.f32 %v6484_v2, %v6483_v53 }
 0xbe1   :  { %v6486_v11 = vpop.f32.mrb[230].mxu0  ;;  %4346 = vmax.xlane.f32.xlu0 %v11205_v14 }
 0xbe2   :  { %v6487_v22 = vpop.f32.mrb[231].mxu0 }
 0xbe3   :  { %v11208_v41 = vadd.f32 %v6487_v22, %v6486_v11 }
 0xbe5   :  { %v6489_v60 = vpop.f32.mrb[232].mxu0  ;;  %4348 = vmax.xlane.f32.xlu1 %v11208_v41 }
 0xbe6   :  { %v6490_v29 = vpop.f32.mrb[233].mxu0 }
 0xbe7   :  { %v11211_v35 = vadd.f32 %v6490_v29, %v6489_v60 }
 0xbe9   :  { %v6492_v25 = vpop.f32.mrb[234].mxu0  ;;  %4350 = vmax.xlane.f32.xlu0 %v11211_v35 }
 0xbea   :  { %v6493_v62 = vpop.f32.mrb[235].mxu0 }
 0xbeb   :  { %v11214_v54 = vadd.f32 %v6493_v62, %v6492_v25 }
 0xbed   :  { %v6495_v46 = vpop.f32.mrb[236].mxu0  ;;  %4352 = vmax.xlane.f32.xlu1 %v11214_v54 }
 0xbee   :  { %v6496_v50 = vpop.f32.mrb[237].mxu0 }
 0xbef   :  { %v11217_v28 = vadd.f32 %v6496_v50, %v6495_v46 }
 0xbf1   :  { %v6498_v49 = vpop.f32.mrb[238].mxu0  ;;  %4354 = vmax.xlane.f32.xlu0 %v11217_v28 }
 0xbf2   :  { %v6499_v4 = vpop.f32.mrb[239].mxu0 }
 0xbf3   :  { %v11220_v26 = vadd.f32 %v6499_v4, %v6498_v49 }
 0xbf5   :  { %v6501_v39 = vpop.f32.mrb[240].mxu0  ;;  %4356 = vmax.xlane.f32.xlu1 %v11220_v26 }
 0xbf6   :  { %v6502_v6 = vpop.f32.mrb[241].mxu0 }
 0xbf7   :  { %v11223_v58 = vadd.f32 %v6502_v6, %v6501_v39 }
 0xbf9   :  { %v6504_v0 = vpop.f32.mrb[242].mxu0  ;;  %4358 = vmax.xlane.f32.xlu0 %v11223_v58 }
 0xbfa   :  { %v6505_v7 = vpop.f32.mrb[243].mxu0 }
 0xbfb   :  { %v11226_v18 = vadd.f32 %v6505_v7, %v6504_v0 }
 0xbfd   :  { %v6507_v63 = vpop.f32.mrb[244].mxu0  ;;  %4360 = vmax.xlane.f32.xlu1 %v11226_v18 }
 0xbfe   :  { %v6508_v15 = vpop.f32.mrb[245].mxu0 }
 0xbff   :  { %v11229_v53 = vadd.f32 %v6508_v15, %v6507_v63 }
 0xc01   :  { %v6510_v2 = vpop.f32.mrb[246].mxu0  ;;  %4362 = vmax.xlane.f32.xlu0 %v11229_v53 }
 0xc02   :  { %v6511_v11 = vpop.f32.mrb[247].mxu0 }
 0xc03   :  { %v11232_v22 = vadd.f32 %v6511_v11, %v6510_v2 }
 0xc05   :  { %v6513_v60 = vpop.f32.mrb[248].mxu0  ;;  %4364 = vmax.xlane.f32.xlu1 %v11232_v22 }
 0xc06   :  { %v6514_v29 = vpop.f32.mrb[249].mxu0 }
 0xc07   :  { %v11235_v25 = vadd.f32 %v6514_v29, %v6513_v60 }
 0xc09   :  { %v6516_v62 = vpop.f32.mrb[250].mxu0  ;;  %4366 = vmax.xlane.f32.xlu0 %v11235_v25 }
 0xc0a   :  { %v6517_v46 = vpop.f32.mrb[251].mxu0 }
 0xc0b   :  { %v11238_v50 = vadd.f32 %v6517_v46, %v6516_v62 }
 0xc0d   :  { %v6519_v49 = vpop.f32.mrb[252].mxu0  ;;  %4368 = vmax.xlane.f32.xlu1 %v11238_v50 }
 0xc0e   :  { %v6520_v4 = vpop.f32.mrb[253].mxu0 }
 0xc0f   :  { %v11241_v39 = vadd.f32 %v6520_v4, %v6519_v49 }
 0xc11   :  { %v6522_v6 = vpop.f32.mrb[254].mxu0  ;;  %4370 = vmax.xlane.f32.xlu0 %v11241_v39 }
 0xc12   :  { %v6523_v0 = vpop.f32.mrb[255].mxu0 }
 0xc13   :  { %v11244_v7 = vadd.f32 %v6523_v0, %v6522_v6 }
 0xc15   :  { %4372 = vmax.xlane.f32.xlu1 %v11244_v7 }
 0xc66   :  { %v4343_v63 = vpop.xlane.xlu0 %4342 }
 0xc67   :  { %v4374_v15 = vsub.f32 %v11199_v44, %v4343_v63 }
 0xc69   :  { %v4390_v2 = vmul.f32 1.442695, %v4374_v15 }
 0xc6a   :  { %v4345_v11 = vpop.xlane.xlu1 %4344 }
 0xc6b   :  { %7732 = vpow2.f32 %v4390_v2  ;;  %v4375_v60 = vsub.f32 %v11202_v51, %v4345_v11 }
 0xc6d   :  { %v4392_v29 = vmul.f32 1.442695, %v4375_v60 }
 0xc6e   :  { %v4347_v62 = vpop.xlane.xlu0 %4346 }
 0xc6f   :  { %7734 = vpow2.f32 %v4392_v29  ;;  %v4376_v46 = vsub.f32 %v11205_v14, %v4347_v62 }
 0xc71   :  { %v4394_v49 = vmul.f32 1.442695, %v4376_v46 }
 0xc72   :  { %v4349_v4 = vpop.xlane.xlu1 %4348 }
 0xc73   :  { %7736 = vpow2.f32 %v4394_v49  ;;  %v4377_v6 = vsub.f32 %v11208_v41, %v4349_v4 }
 0xc75   :  { %v11251_v0 = vpop.eup %7732  ;;  %v4396_v47 = vmul.f32 1.442695, %v4377_v6 }
 0xc76   :  { %4422 = vadd.xlane.f32.xlu0 %v11251_v0  ;;  %v4351_v44 = vpop.xlane.xlu0 %4350 }
 0xc77   :  { %7738 = vpow2.f32 %v4396_v47  ;;  %v4378_v63 = vsub.f32 %v11211_v35, %v4351_v44 }
 0xc79   :  { %v11255_v51 = vpop.eup %7734  ;;  %v4398_v15 = vmul.f32 1.442695, %v4378_v63 }
 0xc7a   :  { %4424 = vadd.xlane.f32.xlu1 %v11255_v51  ;;  %v4353_v14 = vpop.xlane.xlu1 %4352 }
 0xc7b   :  { %7740 = vpow2.f32 %v4398_v15  ;;  %v4379_v2 = vsub.f32 %v11214_v54, %v4353_v14 }
 0xc7d   :  { %v11259_v11 = vpop.eup %7736  ;;  %v4400_v41 = vmul.f32 1.442695, %v4379_v2 }
 0xc7e   :  { %4426 = vadd.xlane.f32.xlu0 %v11259_v11  ;;  %v4355_v60 = vpop.xlane.xlu0 %4354 }
 0xc7f   :  { %7742 = vpow2.f32 %v4400_v41  ;;  %v4380_v47 = vsub.f32 %v11217_v28, %v4355_v60 }
 0xc81   :  { %v11263_v29 = vpop.eup %7738  ;;  %v4402_v35 = vmul.f32 1.442695, %v4380_v47 }
 0xc82   :  { %4428 = vadd.xlane.f32.xlu1 %v11263_v29  ;;  %v4357_v62 = vpop.xlane.xlu1 %4356 }
 0xc83   :  { %7744 = vpow2.f32 %v4402_v35  ;;  %v4381_v46 = vsub.f32 %v11220_v26, %v4357_v62 }
 0xc85   :  { %v11267_v49 = vpop.eup %7740  ;;  %v4404_v54 = vmul.f32 1.442695, %v4381_v46 }
 0xc86   :  { %4430 = vadd.xlane.f32.xlu0 %v11267_v49  ;;  %v4359_v4 = vpop.xlane.xlu0 %4358 }
 0xc87   :  { %7746 = vpow2.f32 %v4404_v54  ;;  %v4382_v6 = vsub.f32 %v11223_v58, %v4359_v4 }
 0xc89   :  { %v11271_v44 = vpop.eup %7742  ;;  %v4406_v28 = vmul.f32 1.442695, %v4382_v6 }
 0xc8a   :  { %4432 = vadd.xlane.f32.xlu1 %v11271_v44  ;;  %v4361_v63 = vpop.xlane.xlu1 %4360 }
 0xc8b   :  { %7748 = vpow2.f32 %v4406_v28  ;;  %v4383_v15 = vsub.f32 %v11226_v18, %v4361_v63 }
 0xc8d   :  { %v11275_v14 = vpop.eup %7744  ;;  %v4408_v26 = vmul.f32 1.442695, %v4383_v15 }
 0xc8e   :  { %4434 = vadd.xlane.f32.xlu0 %v11275_v14  ;;  %v4363_v2 = vpop.xlane.xlu0 %4362 }
 0xc8f   :  { %7750 = vpow2.f32 %v4408_v26  ;;  %v4384_v41 = vsub.f32 %v11229_v53, %v4363_v2 }
 0xc91   :  { %v11279_v60 = vpop.eup %7746  ;;  %v4410_v58 = vmul.f32 1.442695, %v4384_v41 }
 0xc92   :  { %4436 = vadd.xlane.f32.xlu1 %v11279_v60  ;;  %v4365_v47 = vpop.xlane.xlu1 %4364 }
 0xc93   :  { %7752 = vpow2.f32 %v4410_v58  ;;  %v4385_v35 = vsub.f32 %v11232_v22, %v4365_v47 }
 0xc95   :  { %v11283_v62 = vpop.eup %7748  ;;  %v4412_v18 = vmul.f32 1.442695, %v4385_v35 }
 0xc96   :  { %4438 = vadd.xlane.f32.xlu0 %v11283_v62  ;;  %v4367_v46 = vpop.xlane.xlu0 %4366 }
 0xc97   :  { %7754 = vpow2.f32 %v4412_v18  ;;  %v4386_v54 = vsub.f32 %v11235_v25, %v4367_v46 }
 0xc99   :  { %v11287_v4 = vpop.eup %7750  ;;  %v4414_v53 = vmul.f32 1.442695, %v4386_v54  ;;  %v11314_v54 = vld [vmem:[#allocation7 + $0x10] sm:$0xff] }
 0xc9a   :  { %4440 = vadd.xlane.f32.xlu1 %v11287_v4  ;;  %v4369_v6 = vpop.xlane.xlu1 %4368 }
 0xc9b   :  { %7756 = vpow2.f32 %v4414_v53  ;;  %v4387_v28 = vsub.f32 %v11238_v50, %v4369_v6 }
 0xc9d   :  { %v11291_v63 = vpop.eup %7752  ;;  %v4416_v22 = vmul.f32 1.442695, %v4387_v28  ;;  %v2947_v28 = vmul.f32 %v11314_v54, %v11314_v54 }
 0xc9e   :  { %4442 = vadd.xlane.f32.xlu0 %v11291_v63  ;;  %v4371_v15 = vpop.xlane.xlu0 %4370 }
 0xc9f   :  { %7758 = vpow2.f32 %v4416_v22  ;;  %v4388_v26 = vsub.f32 %v11241_v39, %v4371_v15  ;;  %v11305_v39 = vld [vmem:[#allocation7] sm:$0xff]  ;;  %v11323_v22 = vld [vmem:[#allocation7 + $0x18] sm:$0xff] }
 0xca0   :  { %v2945_v46 = vmul.f32 %v11305_v39, %v11305_v39  ;;  %v11325_v15 = vld [vmem:[#allocation7 + $0x20] sm:$0xff] }
 0xca1   :  { %v11295_v2 = vpop.eup %7754  ;;  %v4418_v25 = vmul.f32 1.442695, %v4388_v26  ;;  %v2948_v26 = vmul.f32 %v11323_v22, %v11323_v22 }
 0xca2   :  { %4444 = vadd.xlane.f32.xlu1 %v11295_v2  ;;  %v4373_v41 = vpop.xlane.xlu1 %4372 }
 0xca3   :  { %7760 = vpow2.f32 %v4418_v25  ;;  %v4389_v58 = vsub.f32 %v11244_v7, %v4373_v41  ;;  %v11312_v7 = vld [vmem:[#allocation7 + $0x8] sm:$0xff]  ;;  %v2949_v25 = vmul.f32 %v11325_v15, %v11325_v15 }
 0xca4   :  { %v2946_v6 = vmul.f32 %v11312_v7, %v11312_v7  ;;  %v11331_v41 = vld [vmem:[#allocation7 + $0x28] sm:$0xff] }
 0xca5   :  { %v11299_v47 = vpop.eup %7756  ;;  %v4420_v50 = vmul.f32 1.442695, %v4389_v58  ;;  %v11333_v58 = vld [vmem:[#allocation7 + $0x30] sm:$0xff] }
 0xca6   :  { %4446 = vadd.xlane.f32.xlu0 %v11299_v47 }
 0xca7   :  { %7762 = vpow2.f32 %v4420_v50  ;;  %v2950_v50 = vmul.f32 %v11331_v41, %v11331_v41 }
 0xca9   :  { %v11302_v35 = vpop.eup %7758 }
 0xcaa   :  { %4448 = vadd.xlane.f32.xlu1 %v11302_v35 }
 0xcad   :  { %v11307_v18 = vpop.eup %7760 }
 0xcae   :  { %4450 = vadd.xlane.f32.xlu0 %v11307_v18 }
 0xcb1   :  { %v11316_v53 = vpop.eup %7762 }
 0xcb2   :  { %4452 = vadd.xlane.f32.xlu1 %v11316_v53  ;;  %2961 = vadd.xlane.f32.xlu0 %v2945_v46  ;;  %v2951_v46 = vmul.f32 %v11333_v58, %v11333_v58 }
 0xcb6   :  { %2963 = vadd.xlane.f32.xlu1 %v2946_v6  ;;  %2965 = vadd.xlane.f32.xlu0 %v2947_v28  ;;  %v11339_v6 = vld [vmem:[#allocation7 + $0x38] sm:$0xff]  ;;  %v11341_v28 = vld [vmem:[#allocation7 + $0x40] sm:$0xff] }
 0xcb7   :  { %v2952_v8 = vmul.f32 %v11339_v6, %v11339_v6  ;;  %v2953_v59 = vmul.f32 %v11341_v28, %v11341_v28 }
 0xcba   :  { %2967 = vadd.xlane.f32.xlu1 %v2948_v26  ;;  %2969 = vadd.xlane.f32.xlu0 %v2949_v25  ;;  %v11347_v26 = vld [vmem:[#allocation7 + $0x48] sm:$0xff]  ;;  %v11349_v25 = vld [vmem:[#allocation7 + $0x50] sm:$0xff] }
 0xcbb   :  { %v2954_v43 = vmul.f32 %v11347_v26, %v11347_v26  ;;  %v2955_v36 = vmul.f32 %v11349_v25, %v11349_v25 }
 0xcbe   :  { %2971 = vadd.xlane.f32.xlu1 %v2950_v50  ;;  %2973 = vadd.xlane.f32.xlu0 %v2951_v46  ;;  %v11355_v50 = vld [vmem:[#allocation7 + $0x58] sm:$0xff]  ;;  %v11357_v46 = vld [vmem:[#allocation7 + $0x60] sm:$0xff] }
 0xcbf   :  { %v2956_v32 = vmul.f32 %v11355_v50, %v11355_v50  ;;  %v2957_v27 = vmul.f32 %v11357_v46, %v11357_v46 }
 0xcc2   :  { %2975 = vadd.xlane.f32.xlu1 %v2952_v8  ;;  %2977 = vadd.xlane.f32.xlu0 %v2953_v59  ;;  %v11363_v8 = vld [vmem:[#allocation7 + $0x68] sm:$0xff]  ;;  %v11365_v59 = vld [vmem:[#allocation7 + $0x70] sm:$0xff] }
 0xcc3   :  { %v2958_v48 = vmul.f32 %v11363_v8, %v11363_v8  ;;  %v2959_v37 = vmul.f32 %v11365_v59, %v11365_v59 }
 0xcc6   :  { %2979 = vadd.xlane.f32.xlu1 %v2954_v43  ;;  %2981 = vadd.xlane.f32.xlu0 %v2955_v36  ;;  %v11371_v43 = vld [vmem:[#allocation7 + $0x78] sm:$0xff] }
 0xcc7   :  { %v2960_v36 = vmul.f32 %v11371_v43, %v11371_v43 }
 0xcca   :  { %2983 = vadd.xlane.f32.xlu1 %v2956_v32  ;;  %2985 = vadd.xlane.f32.xlu0 %v2957_v27  ;;  %v8353_v27 = vld [vmem:[#allocation26 + $0x8] sm:$0xff] }
 0xccb   :  { %v5064_v32 = vmul.f32 %v8353_v27, %v8353_v27 }
 0xcce   :  { %2987 = vadd.xlane.f32.xlu1 %v2958_v48  ;;  %2989 = vadd.xlane.f32.xlu0 %v2959_v37  ;;  %v8356_v48 = vld [vmem:[#allocation26 + $0x20] sm:$0xff] }
 0xccf   :  { %v5067_v37 = vmul.f32 %v8356_v48, %v8356_v48  ;;  %v8362_v48 = vld [vmem:[#allocation26 + $0x50] sm:$0xff] }
 0xcd2   :  { %2991 = vadd.xlane.f32.xlu1 %v2960_v36  ;;  %5079 = vadd.xlane.f32.xlu0 %v5063_v55  ;;  %v5069_v36 = vmul.f32 %v11379_v23, %v11379_v23  ;;  %v8359_v55 = vld [vmem:[#allocation26 + $0x38] sm:$0xff] }
 0xcd3   :  { %v5070_v27 = vmul.f32 %v8359_v55, %v8359_v55  ;;  %v5077_v55 = vmul.f32 %v8366_v31, %v8366_v31  ;;  %v8373_v31 = vld [vmem:[#allocation27 + $0x28] sm:$0xff] }
 0xcd6   :  { %5081 = vadd.xlane.f32.xlu1 %v5064_v32  ;;  %5083 = vadd.xlane.f32.xlu0 %v5065_v30  ;;  %v5071_v32 = vmul.f32 %v8360_v20, %v8360_v20  ;;  %v5072_v30 = vmul.f32 %v8361_v52, %v8361_v52 }
 0xcda   :  { %5085 = vadd.xlane.f32.xlu1 %v5066_v9  ;;  %5087 = vadd.xlane.f32.xlu0 %v5067_v37  ;;  %v5073_v9 = vmul.f32 %v8362_v48, %v8362_v48  ;;  %v5074_v37 = vmul.f32 %v8363_v16, %v8363_v16 }
 0xcde   :  { %5089 = vadd.xlane.f32.xlu1 %v5068_v12  ;;  %5091 = vadd.xlane.f32.xlu0 %v5069_v36  ;;  %v8365_v12 = vld [vmem:[#allocation26 + $0x68] sm:$0xff] }
 0xcdf   :  { %v5076_v36 = vmul.f32 %v8365_v12, %v8365_v12 }
 0xce2   :  { %5093 = vadd.xlane.f32.xlu1 %v5070_v27  ;;  %5095 = vadd.xlane.f32.xlu0 %v5071_v32  ;;  %v8367_v27 = vld [vmem:[#allocation26 + $0x78] sm:$0xff]  ;;  %v8368_v32 = vld [vmem:[#allocation27] sm:$0xff] }
 0xce3   :  { %v5078_v20 = vmul.f32 %v8367_v27, %v8367_v27  ;;  %v5191_v52 = vmul.f32 %v8368_v32, %v8368_v32 }
 0xce6   :  { %5097 = vadd.xlane.f32.xlu1 %v5072_v30  ;;  %5099 = vadd.xlane.f32.xlu0 %v5073_v9  ;;  %v8369_v30 = vld [vmem:[#allocation27 + $0x8] sm:$0xff]  ;;  %v8370_v9 = vld [vmem:[#allocation27 + $0x10] sm:$0xff] }
 0xce7   :  { %v5192_v48 = vmul.f32 %v8369_v30, %v8369_v30  ;;  %v5193_v16 = vmul.f32 %v8370_v9, %v8370_v9  ;;  %v8377_v9 = vld [vmem:[#allocation27 + $0x48] sm:$0xff] }
 0xcea   :  { %5101 = vadd.xlane.f32.xlu1 %v5074_v37  ;;  %5103 = vadd.xlane.f32.xlu0 %v5075_v42  ;;  %v5194_v42 = vmul.f32 %v8371_v10, %v8371_v10  ;;  %v8372_v37 = vld [vmem:[#allocation27 + $0x20] sm:$0xff]  ;;  %v8378_v10 = vld [vmem:[#allocation27 + $0x50] sm:$0xff] }
 0xceb   :  { %v5195_v12 = vmul.f32 %v8372_v37, %v8372_v37  ;;  %v5201_v17 = vmul.f32 %v8378_v10, %v8378_v10  ;;  %v8379_v37 = vld [vmem:[#allocation27 + $0x58] sm:$0xff] }
 0xcee   :  { %5105 = vadd.xlane.f32.xlu1 %v5076_v36  ;;  %5107 = vadd.xlane.f32.xlu0 %v5077_v55  ;;  %v5196_v36 = vmul.f32 %v8373_v31, %v8373_v31  ;;  %v8374_v55 = vld [vmem:[#allocation27 + $0x30] sm:$0xff]  ;;  %v8380_v31 = vld [vmem:[#allocation27 + $0x60] sm:$0xff] }
 0xcef   :  { %v5197_v27 = vmul.f32 %v8374_v55, %v8374_v55 }
 0xcf2   :  { %5109 = vadd.xlane.f32.xlu1 %v5078_v20  ;;  %5207 = vadd.xlane.f32.xlu0 %v5191_v52  ;;  %v8375_v20 = vld [vmem:[#allocation27 + $0x38] sm:$0xff]  ;;  %v8376_v52 = vld [vmem:[#allocation27 + $0x40] sm:$0xff] }
 0xcf3   :  { %v5198_v32 = vmul.f32 %v8375_v20, %v8375_v20  ;;  %v5199_v30 = vmul.f32 %v8376_v52, %v8376_v52 }
 0xcf6   :  { %5209 = vadd.xlane.f32.xlu1 %v5192_v48  ;;  %5211 = vadd.xlane.f32.xlu0 %v5193_v16  ;;  %v5200_v16 = vmul.f32 %v8377_v9, %v8377_v9  ;;  %v8383_v9 = vld [vmem:[#allocation23] sm:$0xff] }
 0xcfa   :  { %5213 = vadd.xlane.f32.xlu1 %v5194_v42  ;;  %5215 = vadd.xlane.f32.xlu0 %v5195_v12  ;;  %v5202_v12 = vmul.f32 %v8379_v37, %v8379_v37 }
 0xcfe   :  { %5217 = vadd.xlane.f32.xlu1 %v5196_v36  ;;  %5219 = vadd.xlane.f32.xlu0 %v5197_v27  ;;  %v5203_v36 = vmul.f32 %v8380_v31, %v8380_v31  ;;  %v8381_v27 = vld [vmem:[#allocation27 + $0x68] sm:$0xff] }
 0xcff   :  { %v5204_v20 = vmul.f32 %v8381_v27, %v8381_v27  ;;  %v8386_v27 = vld [vmem:[#allocation23 + $0x10] sm:$0xff] }
 0xd02   :  { %5221 = vadd.xlane.f32.xlu1 %v5198_v32  ;;  %5223 = vadd.xlane.f32.xlu0 %v5199_v30  ;;  %v8382_v32 = vld [vmem:[#allocation27 + $0x70] sm:$0xff] }
 0xd03   :  { %v4423_v48 = vpop.xlane.xlu0 %4422  ;;  %v5205_v52 = vmul.f32 %v8382_v32, %v8382_v32 }
 0xd04   :  { %7764 = vrcp.f32 %v4423_v48 }
 0xd06   :  { %5225 = vadd.xlane.f32.xlu1 %v5200_v16  ;;  %5227 = vadd.xlane.f32.xlu0 %v5201_v17  ;;  %v5367_v17 = vmul.f32 %v8383_v9, %v8383_v9  ;;  %v8384_v16 = vld [vmem:[#allocation27 + $0x78] sm:$0xff] }
 0xd07   :  { %v4425_v42 = vpop.xlane.xlu1 %4424  ;;  %v5206_v10 = vmul.f32 %v8384_v16, %v8384_v16  ;;  %v8387_v9 = vld [vmem:[#allocation23 + $0x18] sm:$0xff] }
 0xd08   :  { %7766 = vrcp.f32 %v4425_v42 }
 0xd0a   :  { %5229 = vadd.xlane.f32.xlu1 %v5202_v12  ;;  %5231 = vadd.xlane.f32.xlu0 %v5203_v36  ;;  %v8385_v36 = vld [vmem:[#allocation23 + $0x8] sm:$0xff] }
 0xd0b   :  { %v4427_v55 = vpop.xlane.xlu0 %4426 }
 0xd0c   :  { %7768 = vrcp.f32 %v4427_v55  ;;  %v5368_v55 = vmul.f32 %v8385_v36, %v8385_v36 }
 0xd0e   :  { %5233 = vadd.xlane.f32.xlu1 %v5204_v20  ;;  %5235 = vadd.xlane.f32.xlu0 %v5205_v52  ;;  %v7765_v48 = vpop.eup %7764  ;;  %v5369_v20 = vmul.f32 %v8386_v27, %v8386_v27 }
 0xd0f   :  { %v4429_v30 = vpop.xlane.xlu1 %4428  ;;  %v11384_v12 = vmul.f32 %v7765_v48, %v11251_v0  ;;  %v5370_v0 = vmul.f32 %v8387_v9, %v8387_v9  ;;  %v8388_v48 = vld [vmem:[#allocation23 + $0x20] sm:$0xff]  ;;  %v8391_v9 = vld [vmem:[#allocation23 + $0x38] sm:$0xff] }
 0xd10   :  { %7770 = vrcp.f32 %v4429_v30 }
 0xd12   :  { %v7767_v42 = vpop.eup %7766  ;;  %5237 = vadd.xlane.f32.xlu1 %v5206_v10  ;;  %5399 = vadd.xlane.f32.xlu0 %v5367_v17  ;;  %v5371_v17 = vmul.f32 %v8388_v48, %v8388_v48 }
 0xd13   :  { %v4431_v37 = vpop.xlane.xlu0 %4430  ;;  %v11387_v31 = vmul.f32 %v7767_v42, %v11255_v51 }
 0xd14   :  { %7772 = vrcp.f32 %v4431_v37  ;;  %v8389_v37 = vld [vmem:[#allocation23 + $0x28] sm:$0xff] }
 0xd15   :  { %v7469_v32 = vpack.c.bf16 %v11387_v31, %v11384_v12  ;;  %v5372_v36 = vmul.f32 %v8389_v37, %v8389_v37 }
 0xd16   :  { %5401 = vadd.xlane.f32.xlu1 %v5368_v55  ;;  %5403 = vadd.xlane.f32.xlu0 %v5369_v20  ;;  %v7769_v30 = vpop.eup %7768  ;;  %v8390_v55 = vld [vmem:[#allocation23 + $0x30] sm:$0xff] }
 0xd17   :  { %v4433_v52 = vpop.xlane.xlu1 %4432  ;;  %7470 = vmatprep.subr.bf16.mxu0 %v7469_v32  ;;  %7501 = vmatprep.subr.bf16.mxu1 %v7469_v32  ;;  %v11392_v10 = vmul.f32 %v7769_v30, %v11259_v11  ;;  %v5373_v27 = vmul.f32 %v8390_v55, %v8390_v55  ;;  %v5374_v11 = vmul.f32 %v8391_v9, %v8391_v9  ;;  %v8392_v30 = vld [vmem:[#allocation23 + $0x40] sm:$0xff]  ;;  %v8395_v9 = vld [vmem:[#allocation23 + $0x58] sm:$0xff] }
 0xd18   :  { %7774 = vrcp.f32 %v4433_v52  ;;  %7472 = vmatpush3.bf16.msra.mxu0 %v7469_v32  ;;  %7509 = vmatpush3.bf16.msra.mxu1 %v7469_v32 }
 0xd1a   :  { %v7771_v51 = vpop.eup %7770  ;;  %5405 = vadd.xlane.f32.xlu1 %v5370_v0  ;;  %5407 = vadd.xlane.f32.xlu0 %v5371_v17  ;;  %v5375_v0 = vmul.f32 %v8392_v30, %v8392_v30 }
 0xd1b   :  { %v4435_v16 = vpop.xlane.xlu0 %4434  ;;  %v11395_v42 = vmul.f32 %v7771_v51, %v11263_v29 }
 0xd1c   :  { %7776 = vrcp.f32 %v4435_v16  ;;  %v8393_v16 = vld [vmem:[#allocation23 + $0x48] sm:$0xff] }
 0xd1d   :  { %v7473_v20 = vpack.c.bf16 %v11395_v42, %v11392_v10  ;;  %v5376_v37 = vmul.f32 %v8393_v16, %v8393_v16 }
 0xd1e   :  { %5409 = vadd.xlane.f32.xlu1 %v5372_v36  ;;  %5411 = vadd.xlane.f32.xlu0 %v5373_v27  ;;  %v7773_v52 = vpop.eup %7772  ;;  %v8394_v36 = vld [vmem:[#allocation23 + $0x50] sm:$0xff] }
 0xd1f   :  { %v4437_v32 = vpop.xlane.xlu1 %4436  ;;  %7474 = vmatprep.subr.bf16.mxu0 %v7473_v20  ;;  %7502 = vmatprep.subr.bf16.mxu1 %v7473_v20  ;;  %v11400_v17 = vmul.f32 %v7773_v52, %v11267_v49  ;;  %v5377_v55 = vmul.f32 %v8394_v36, %v8394_v36  ;;  %v5378_v49 = vmul.f32 %v8395_v9, %v8395_v9  ;;  %v8396_v52 = vld [vmem:[#allocation23 + $0x60] sm:$0xff]  ;;  %v8399_v9 = vld [vmem:[#allocation23 + $0x78] sm:$0xff] }
 0xd20   :  { %7778 = vrcp.f32 %v4437_v32  ;;  %7476 = vmatpush3.bf16.msra.mxu0 %v7473_v20  ;;  %7510 = vmatpush3.bf16.msra.mxu1 %v7473_v20 }
 0xd21   :  { %13026 = vst [vmem:[#allocation91_spill] sm:$0xff] %v11400_v17 }
 0xd22   :  { %v7775_v29 = vpop.eup %7774  ;;  %5413 = vadd.xlane.f32.xlu1 %v5374_v11  ;;  %5415 = vadd.xlane.f32.xlu0 %v5375_v0  ;;  %v5379_v11 = vmul.f32 %v8396_v52, %v8396_v52 }
 0xd23   :  { %v4439_v48 = vpop.xlane.xlu0 %4438  ;;  %v11403_v51 = vmul.f32 %v7775_v29, %v11271_v44 }
 0xd24   :  { %7780 = vrcp.f32 %v4439_v48  ;;  %v8397_v48 = vld [vmem:[#allocation23 + $0x68] sm:$0xff] }
 0xd25   :  { %13027 = vst [vmem:[#allocation52_spill] sm:$0xff] %v11403_v51  ;;  %v7477_v27 = vpack.c.bf16 %v11403_v51, %v11400_v17  ;;  %v5380_v16 = vmul.f32 %v8397_v48, %v8397_v48 }
 0xd26   :  { %5417 = vadd.xlane.f32.xlu1 %v5376_v37  ;;  %5419 = vadd.xlane.f32.xlu0 %v5377_v55  ;;  %v7777_v32 = vpop.eup %7776  ;;  %v8398_v37 = vld [vmem:[#allocation23 + $0x70] sm:$0xff] }
 0xd27   :  { %v4441_v20 = vpop.xlane.xlu1 %4440  ;;  %7478 = vmatprep.subr.bf16.mxu0 %v7477_v27  ;;  %7503 = vmatprep.subr.bf16.mxu1 %v7477_v27  ;;  %v11408_v0 = vmul.f32 %v7777_v32, %v11275_v14  ;;  %v5381_v36 = vmul.f32 %v8398_v37, %v8398_v37  ;;  %v5382_v14 = vmul.f32 %v8399_v9, %v8399_v9  ;;  %v8400_v32 = vld [vmem:[#allocation23 + $0x80] sm:$0xff]  ;;  %v8403_v9 = vld [vmem:[#allocation23 + $0x98] sm:$0xff] }
 0xd28   :  { %7782 = vrcp.f32 %v4441_v20  ;;  %7480 = vmatpush3.bf16.msra.mxu0 %v7477_v27  ;;  %7511 = vmatpush3.bf16.msra.mxu1 %v7477_v27 }
 0xd2a   :  { %v7779_v44 = vpop.eup %7778  ;;  %5421 = vadd.xlane.f32.xlu1 %v5378_v49  ;;  %5423 = vadd.xlane.f32.xlu0 %v5379_v11  ;;  %v5383_v49 = vmul.f32 %v8400_v32, %v8400_v32 }
 0xd2b   :  { %v4443_v30 = vpop.xlane.xlu0 %4442  ;;  %v11411_v29 = vmul.f32 %v7779_v44, %v11279_v60 }
 0xd2c   :  { %7784 = vrcp.f32 %v4443_v30  ;;  %v8401_v30 = vld [vmem:[#allocation23 + $0x88] sm:$0xff] }
 0xd2d   :  { %13028 = vst [vmem:[#allocation92_spill] sm:$0xff] %v11411_v29  ;;  %v7481_v55 = vpack.c.bf16 %v11411_v29, %v11408_v0  ;;  %v5384_v48 = vmul.f32 %v8401_v30, %v8401_v30  ;;  %v13046_v29 = vld [vmem:[#allocation71_spill] sm:$0xff] }
 0xd2e   :  { %5425 = vadd.xlane.f32.xlu1 %v5380_v16  ;;  %5427 = vadd.xlane.f32.xlu0 %v5381_v36  ;;  %v7781_v20 = vpop.eup %7780  ;;  %v8402_v16 = vld [vmem:[#allocation23 + $0x90] sm:$0xff] }
 0xd2f   :  { %v4445_v27 = vpop.xlane.xlu1 %4444  ;;  %7482 = vmatprep.subr.bf16.mxu0 %v7481_v55  ;;  %7504 = vmatprep.subr.bf16.mxu1 %v7481_v55  ;;  %v11416_v11 = vmul.f32 %v7781_v20, %v11283_v62  ;;  %v5385_v37 = vmul.f32 %v8402_v16, %v8402_v16  ;;  %v5386_v62 = vmul.f32 %v8403_v9, %v8403_v9  ;;  %v8404_v20 = vld [vmem:[#allocation23 + $0xa0] sm:$0xff] }
 0xd30   :  { %7786 = vrcp.f32 %v4445_v27  ;;  %7484 = vmatpush3.bf16.msra.mxu0 %v7481_v55  ;;  %7512 = vmatpush3.bf16.msra.mxu1 %v7481_v55 }
 0xd32   :  { %v7783_v60 = vpop.eup %7782  ;;  %5429 = vadd.xlane.f32.xlu1 %v5382_v14  ;;  %5431 = vadd.xlane.f32.xlu0 %v5383_v49  ;;  %v5387_v14 = vmul.f32 %v8404_v20, %v8404_v20 }
 0xd33   :  { %v4447_v52 = vpop.xlane.xlu0 %4446  ;;  %v11419_v44 = vmul.f32 %v7783_v60, %v11287_v4 }
 0xd34   :  { %7788 = vrcp.f32 %v4447_v52  ;;  %v8405_v52 = vld [vmem:[#allocation23 + $0xa8] sm:$0xff] }
 0xd35   :  { %v7485_v36 = vpack.c.bf16 %v11419_v44, %v11416_v11  ;;  %v5388_v30 = vmul.f32 %v8405_v52, %v8405_v52 }
 0xd36   :  { %5433 = vadd.xlane.f32.xlu1 %v5384_v48  ;;  %5435 = vadd.xlane.f32.xlu0 %v5385_v37  ;;  %v7785_v27 = vpop.eup %7784  ;;  %v8406_v48 = vld [vmem:[#allocation23 + $0xb0] sm:$0xff] }
 0xd37   :  { %v4449_v55 = vpop.xlane.xlu1 %4448  ;;  %7486 = vmatprep.subr.bf16.mxu0 %v7485_v36  ;;  %7505 = vmatprep.subr.bf16.mxu1 %v7485_v36  ;;  %v11424_v49 = vmul.f32 %v7785_v27, %v11291_v63  ;;  %v5389_v16 = vmul.f32 %v8406_v48, %v8406_v48  ;;  %v8407_v63 = vld [vmem:[#allocation23 + $0xb8] sm:$0xff]  ;;  %v8409_v48 = vld [vmem:[#allocation23 + $0xc8] sm:$0xff] }
 0xd38   :  { %7790 = vrcp.f32 %v4449_v55  ;;  %7488 = vmatpush3.bf16.msra.mxu0 %v7485_v36  ;;  %7513 = vmatpush3.bf16.msra.mxu1 %v7485_v36  ;;  %v5390_v27 = vmul.f32 %v8407_v63, %v8407_v63  ;;  %v8410_v63 = vld [vmem:[#allocation23 + $0xd0] sm:$0xff] }
 0xd39   :  { %v5393_v24 = vmul.f32 %v8410_v63, %v8410_v63 }
 0xd3a   :  { %v7787_v4 = vpop.eup %7786  ;;  %5437 = vadd.xlane.f32.xlu1 %v5386_v62  ;;  %5439 = vadd.xlane.f32.xlu0 %v5387_v14  ;;  %v8408_v62 = vld [vmem:[#allocation23 + $0xc0] sm:$0xff] }
 0xd3b   :  { %v4451_v32 = vpop.xlane.xlu0 %4450  ;;  %v11427_v60 = vmul.f32 %v7787_v4, %v11295_v2  ;;  %v5391_v2 = vmul.f32 %v8408_v62, %v8408_v62 }
 0xd3c   :  { %7792 = vrcp.f32 %v4451_v32 }
 0xd3d   :  { %v7489_v37 = vpack.c.bf16 %v11427_v60, %v11424_v49 }
 0xd3e   :  { %5441 = vadd.xlane.f32.xlu1 %v5388_v30  ;;  %5443 = vadd.xlane.f32.xlu0 %v5389_v16  ;;  %v7789_v9 = vpop.eup %7788  ;;  %v5392_v16 = vmul.f32 %v8409_v48, %v8409_v48 }
 0xd3f   :  { %v4453_v36 = vpop.xlane.xlu1 %4452  ;;  %7490 = vmatprep.subr.bf16.mxu0 %v7489_v37  ;;  %7506 = vmatprep.subr.bf16.mxu1 %v7489_v37  ;;  %v2962_v55 = vpop.xlane.xlu0 %2961  ;;  %v11432_v52 = vmul.f32 %v7789_v9, %v11299_v47 }
 0xd40   :  { %7794 = vrcp.f32 %v4453_v36  ;;  %7492 = vmatpush3.bf16.msra.mxu0 %v7489_v37  ;;  %7514 = vmatpush3.bf16.msra.mxu1 %v7489_v37  ;;  %v2993_v14 = vmax.f32 %v2962_v55, 1e-24 }
 0xd42   :  { %v7791_v20 = vpop.eup %7790  ;;  %5445 = vadd.xlane.f32.xlu1 %v5390_v27  ;;  %5447 = vadd.xlane.f32.xlu0 %v5391_v2  ;;  %7796 = vrsqrt.f32 %v2993_v14  ;;  %v8411_v27 = vld [vmem:[#allocation23 + $0xd8] sm:$0xff]  ;;  %v8412_v2 = vld [vmem:[#allocation23 + $0xe0] sm:$0xff] }
 0xd43   :  { %v2964_v4 = vpop.xlane.xlu1 %2963  ;;  %v2966_v32 = vpop.xlane.xlu0 %2965  ;;  %v11435_v30 = vmul.f32 %v7791_v20, %v11302_v35  ;;  %v5394_v35 = vmul.f32 %v8411_v27, %v8411_v27  ;;  %v5395_v20 = vmul.f32 %v8412_v2, %v8412_v2  ;;  %v8413_v27 = vld [vmem:[#allocation23 + $0xe8] sm:$0xff]  ;;  %v8414_v2 = vld [vmem:[#allocation23 + $0xf0] sm:$0xff] }
 0xd44   :  { %v2994_v62 = vmax.f32 %v2964_v4, 1e-24  ;;  %v2995_v36 = vmax.f32 %v2966_v32, 1e-24  ;;  %v5396_v56 = vmul.f32 %v8413_v27, %v8413_v27 }
 0xd45   :  { %v7493_v37 = vpack.c.bf16 %v11435_v30, %v11432_v52 }
 0xd46   :  { %5449 = vadd.xlane.f32.xlu1 %v5392_v16  ;;  %5451 = vadd.xlane.f32.xlu0 %v5393_v24  ;;  %v7793_v9 = vpop.eup %7792  ;;  %7798 = vrsqrt.f32 %v2994_v62  ;;  %v5397_v62 = vmul.f32 %v8414_v2, %v8414_v2  ;;  %v8418_v2 = vld [vmem:[#allocation5 + $0x48] sm:$0xff] }
 0xd47   :  { %v2968_v55 = vpop.xlane.xlu1 %2967  ;;  %7494 = vmatprep.subr.bf16.mxu0 %v7493_v37  ;;  %7507 = vmatprep.subr.bf16.mxu1 %v7493_v37  ;;  %v2970_v47 = vpop.xlane.xlu0 %2969  ;;  %7800 = vrsqrt.f32 %v2995_v36  ;;  %v11440_v16 = vmul.f32 %v7793_v9, %v11307_v18 }
 0xd48   :  { %7496 = vmatpush3.bf16.msra.mxu0 %v7493_v37  ;;  %7515 = vmatpush3.bf16.msra.mxu1 %v7493_v37  ;;  %v2996_v48 = vmax.f32 %v2968_v55, 1e-24  ;;  %v2997_v14 = vmax.f32 %v2970_v47, 1e-24 }
 0xd4a   :  { %v7795_v4 = vpop.eup %7794  ;;  %5453 = vadd.xlane.f32.xlu1 %v5394_v35  ;;  %5455 = vadd.xlane.f32.xlu0 %v5395_v20  ;;  %7802 = vrsqrt.f32 %v2996_v48  ;;  %v8416_v35 = vld [vmem:[#allocation23 + $0xf8] sm:$0xff] }
 0xd4b   :  { %v2972_v32 = vpop.xlane.xlu1 %2971  ;;  %v2974_v24 = vpop.xlane.xlu0 %2973  ;;  %v11443_v63 = vmul.f32 %v7795_v4, %v11316_v53  ;;  %7804 = vrsqrt.f32 %v2997_v14  ;;  %v8415_v53 = vld [vmem:[#allocation24] sm:$0xff]  ;;  %v5398_v20 = vmul.f32 %v8416_v35, %v8416_v35 }
 0xd4c   :  { %v2998_v5 = vmax.f32 %v2972_v32, 1e-24  ;;  %v2999_v36 = vmax.f32 %v2974_v24, 1e-24  ;;  %v7797_v47 = vpop.eup %7796  ;;  %v5623_v9 = vmul.f32 %v8415_v53, %v8415_v53  ;;  %v8417_v24 = vld [vmem:[#allocation5 + $0x8] sm:$0xff] }
 0xd4d   :  { %13029 = vst [vmem:[#allocation51_spill] sm:$0xff] %v11443_v63  ;;  %v7497_v37 = vpack.c.bf16 %v11443_v63, %v11440_v16  ;;  %v8419_v53 = vld [vmem:[#allocation24 + $0x8] sm:$0xff] }
 0xd4e   :  { %5457 = vadd.xlane.f32.xlu1 %v5396_v56  ;;  %5459 = vadd.xlane.f32.xlu0 %v5397_v62  ;;  %7806 = vrsqrt.f32 %v2998_v5  ;;  %v3025_v56 = vmul.f32 %v7797_v47, %v11305_v39  ;;  %v5624_v35 = vmul.f32 %v8419_v53, %v8419_v53  ;;  %v8420_v5 = vld [vmem:[#allocation24 + $0x10] sm:$0xff] }
 0xd4f   :  { %v2976_v55 = vpop.xlane.xlu1 %2975  ;;  %7498 = vmatprep.subr.bf16.mxu0 %v7497_v37  ;;  %7508 = vmatprep.subr.bf16.mxu1 %v7497_v37  ;;  %v2978_v18 = vpop.xlane.xlu0 %2977  ;;  %7808 = vrsqrt.f32 %v2999_v36  ;;  %v5625_v33 = vmul.f32 %v8420_v5, %v8420_v5  ;;  %v8425_v5 = vld [vmem:[#allocation24 + $0x18] sm:$0xff] }
 0xd50   :  { %7500 = vmatpush3.bf16.msra.mxu0 %v7497_v37  ;;  %7516 = vmatpush3.bf16.msra.mxu1 %v7497_v37  ;;  %v3000_v4 = vmax.f32 %v2976_v55, 1e-24  ;;  %v7799_v32 = vpop.eup %7798  ;;  %v3001_v48 = vmax.f32 %v2978_v18, 1e-24  ;;  %v8421_v37 = vld [vmem:[#allocation5 + $0x10] sm:$0xff] }
 0xd51   :  { %v7801_v62 = vpop.eup %7800  ;;  %v8422_v55 = vld [vmem:[#allocation5 + $0x50] sm:$0xff]  ;;  %v3041_v39 = vmul.f32 0.1, %v3025_v56 }
 0xd52   :  { %5461 = vadd.xlane.f32.xlu1 %v5398_v20  ;;  %5655 = vadd.xlane.f32.xlu0 %v5623_v9  ;;  %v3026_v9 = vmul.f32 %v7799_v32, %v11312_v7  ;;  %7810 = vrsqrt.f32 %v3000_v4  ;;  %v3027_v36 = vmul.f32 %v7801_v62, %v11314_v54  ;;  %v2913_v7 = vld [vmem:[#allocation11] sm:$0xff]  ;;  %v2914_v62 = vld [vmem:[#allocation11 + $0x8] sm:$0xff] }
 0xd53   :  { %v2980_v14 = vpop.xlane.xlu1 %2979  ;;  %6926 = vmatmul.mubr.f32.vlgmr.msra.gmra.mrb[0].mxu0 %v8417_v24  ;;  %v2982_v27 = vpop.xlane.xlu0 %2981  ;;  %6938 = vmatmul.mubr.f32.vlgmr.msra.gmra.mrb[0].mxu1 %v8418_v2  ;;  %7812 = vrsqrt.f32 %v3001_v48  ;;  %v8423_v24 = vld [vmem:[#allocation5 + $0x18] sm:$0xff]  ;;  %v8427_v32 = vld [vmem:[#allocation5 + $0x20] sm:$0xff] }
 0xd54   :  { %6928 = vmatprep.mubr.f32.mxu0 %v8421_v37  ;;  %6940 = vmatprep.mubr.f32.mxu1 %v8422_v55  ;;  %v3002_v18 = vmax.f32 %v2980_v14, 1e-24  ;;  %v8424_v2 = vld [vmem:[#allocation5 + $0x58] sm:$0xff]  ;;  %v7803_v53 = vpop.eup %7802  ;;  %v5626_v37 = vmul.f32 %v8425_v5, %v8425_v5  ;;  %v8426_v55 = vld [vmem:[#allocation24 + $0x20] sm:$0xff]  ;;  %v3003_v4 = vmax.f32 %v2982_v27, 1e-24 }
 0xd55   :  { %v5627_v3 = vmul.f32 %v8426_v55, %v8426_v55  ;;  %v7805_v54 = vpop.eup %7804  ;;  %v3042_v56 = vmul.f32 0.1, %v3026_v9  ;;  %v8429_v55 = vld [vmem:[#allocation5 + $0x28] sm:$0xff]  ;;  %v5629_v9 = vmul.f32 %v8432_v34, %v8432_v34  ;;  %v3028_v40 = vmul.f32 %v7803_v53, %v11323_v22  ;;  %v13031_v53 = vld [vmem:[#allocation67_spill] sm:$0xff] }
 0xd56   :  { %5657 = vadd.xlane.f32.xlu1 %v5624_v35  ;;  %5659 = vadd.xlane.f32.xlu0 %v5625_v33  ;;  %v8428_v33 = vld [vmem:[#allocation5 + $0x60] sm:$0xff]  ;;  %7814 = vrsqrt.f32 %v3002_v18  ;;  %v8430_v27 = vld [vmem:[#allocation5 + $0x68] sm:$0xff]  ;;  %v3029_v18 = vmul.f32 %v7805_v54, %v11325_v15  ;;  %v8436_v15 = vld [vmem:[#allocation5 + $0x38] sm:$0xff] }
 0xd57   :  { %v2984_v47 = vpop.xlane.xlu1 %2983  ;;  %v2986_v20 = vpop.xlane.xlu0 %2985  ;;  %6929 = vmatmul.mubr.f32.gmra.mrb[2].mxu0 %v8423_v24  ;;  %6941 = vmatmul.mubr.f32.gmra.mrb[2].mxu1 %v8424_v2  ;;  %v3057_v24 = vadd.f32 %v3041_v39, %v2913_v7  ;;  %v3043_v2 = vmul.f32 0.1, %v3027_v36  ;;  %7816 = vrsqrt.f32 %v3003_v4  ;;  %v3058_v36 = vadd.f32 %v3042_v56, %v2914_v62  ;;  %v11462_v54 = vld [vmem:[#allocation24 + $0x40] sm:$0xff] }
 0xd58   :  { %6931 = vmatprep.mubr.f32.mxu0 %v8427_v32  ;;  %6943 = vmatprep.mubr.f32.mxu1 %v8428_v33  ;;  %v3004_v48 = vmax.f32 %v2984_v47, 1e-24  ;;  %v7807_v14 = vpop.eup %7806  ;;  %v3005_v35 = vmax.f32 %v2986_v20, 1e-24  ;;  %v8431_v32 = vld [vmem:[#allocation24 + $0x28] sm:$0xff]  ;;  %v2915_v47 = vld [vmem:[#allocation11 + $0x10] sm:$0xff] }
 0xd59   :  { %v5628_v33 = vmul.f32 %v8431_v32, %v8431_v32  ;;  %v8433_v20 = vld [vmem:[#allocation5 + $0x30] sm:$0xff]  ;;  %v7809_v39 = vpop.eup %7808  ;;  %v3731_v4 = vadd.f32 %v13031_v53, %v3057_v24  ;;  %13032 = vst [vmem:[#allocation56_spill] sm:$0xff] %v11462_v54  ;;  %v3044_v62 = vmul.f32 0.1, %v3028_v40  ;;  %v8439_v24 = vld [vmem:[#allocation5 + $0x80] sm:$0xff]  ;;  %v11470_v40 = vld [vmem:[#allocation24 + $0x48] sm:$0xff] }
 0xd5a   :  { %5661 = vadd.xlane.f32.xlu1 %v5626_v37  ;;  %5663 = vadd.xlane.f32.xlu0 %v5627_v3  ;;  %v8434_v3 = vld [vmem:[#allocation5 + $0x70] sm:$0xff]  ;;  %v3030_v37 = vmul.f32 %v7807_v14, %v11331_v41  ;;  %7818 = vrsqrt.f32 %v3004_v48  ;;  %v8437_v41 = vld [vmem:[#allocation5 + $0x78] sm:$0xff]  ;;  %v5631_v48 = vmul.f32 %v11462_v54, %v11462_v54  ;;  %v2917_v53 = vld [vmem:[#allocation11 + $0x20] sm:$0xff]  ;;  %13034 = vst [vmem:[#allocation94_spill] sm:$0xff] %v11470_v40 }
 0xd5b   :  { %v2988_v5 = vpop.xlane.xlu1 %2987  ;;  %v11450_v38 = vpop.xlane.xlu0 %2989  ;;  %6932 = vmatmul.mubr.f32.gmra.mrb[4].mxu0 %v8429_v55  ;;  %6944 = vmatmul.mubr.f32.gmra.mrb[4].mxu1 %v8430_v27  ;;  %7820 = vrsqrt.f32 %v3005_v35  ;;  %v11455_v55 = vld [vmem:[#allocation24 + $0x38] sm:$0xff]  ;;  %v3059_v27 = vadd.f32 %v3043_v2, %v2915_v47  ;;  %v3031_v35 = vmul.f32 %v7809_v39, %v11333_v58  ;;  %v3045_v47 = vmul.f32 0.1, %v3029_v18  ;;  %v11474_v58 = vld [vmem:[#allocation24 + $0x50] sm:$0xff] }
 0xd5c   :  { %6934 = vmatprep.mubr.f32.mxu0 %v8433_v20  ;;  %6946 = vmatprep.mubr.f32.mxu1 %v8434_v3  ;;  %v3006_v7 = vmax.f32 %v2988_v5, 1e-24  ;;  %v7811_v34 = vpop.eup %7810  ;;  %13030 = vst [vmem:[#allocation93_spill] sm:$0xff] %v11455_v55  ;;  %v5630_v22 = vmul.f32 %v11455_v55, %v11455_v55  ;;  %v2916_v14 = vld [vmem:[#allocation11 + $0x18] sm:$0xff]  ;;  %v3007_v5 = vmax.f32 %v11450_v38, 1e-24  ;;  %v5632_v38 = vmul.f32 %v11470_v40, %v11470_v40 }
 0xd5d   :  { %v7813_v2 = vpop.eup %7812  ;;  %v3046_v20 = vmul.f32 0.1, %v3030_v37  ;;  %13035 = vst [vmem:[#allocation55_spill] sm:$0xff] %v11474_v58  ;;  %v5633_v39 = vmul.f32 %v11474_v58, %v11474_v58  ;;  %v13037_v37 = vld [vmem:[#allocation69_spill] sm:$0xff]  ;;  %v3061_v40 = vadd.f32 %v3045_v47, %v2917_v53  ;;  %v11502_v47 = vld [vmem:[#allocation24 + $0x78] sm:$0xff] }
 0xd5e   :  { %5665 = vadd.xlane.f32.xlu1 %v5628_v33  ;;  %5667 = vadd.xlane.f32.xlu0 %v5629_v9  ;;  %v13033_v33 = vld [vmem:[#allocation68_spill] sm:$0xff]  ;;  %7822 = vrsqrt.f32 %v3006_v7  ;;  %13043 = vst [vmem:[#allocation97_spill] sm:$0xff] %v11502_v47 }
 0xd5f   :  { %v2992_v32 = vpop.xlane.xlu1 %2991  ;;  %v11460_v56 = vpop.xlane.xlu0 %5079  ;;  %6935 = vmatmul.mubr.f32.gmra.mrb[6].mxu0 %v8436_v15  ;;  %6947 = vmatmul.mubr.f32.gmra.mrb[6].mxu1 %v8437_v41  ;;  %v3732_v9 = vadd.f32 %v13033_v33, %v3058_v36  ;;  %v2918_v15 = vld [vmem:[#allocation11 + $0x28] sm:$0xff]  ;;  %v3032_v41 = vmul.f32 %v7811_v34, %v11339_v6  ;;  %v13036_v36 = vld [vmem:[#allocation131_spill] sm:$0xff]  ;;  %v3060_v34 = vadd.f32 %v3044_v62, %v2916_v14  ;;  %7824 = vrsqrt.f32 %v3007_v5  ;;  %v8443_v33 = vld [vmem:[#allocation5 + $0x90] sm:$0xff] }
 0xd60   :  { %6949 = vmatprep.mubr.f32.mxu1 %v8439_v24  ;;  %v3008_v3 = vmax.f32 %v2992_v32, 1e-24  ;;  %v4149_v18 = vadd.f32 %v13036_v36, %v3731_v4  ;;  %v3733_v32 = vadd.f32 %v13037_v37, %v3059_v27  ;;  %v8442_v7 = vld [vmem:[#allocation5 + $0x88] sm:$0xff]  ;;  %v7815_v21 = vpop.eup %7814  ;;  %v3062_v4 = vadd.f32 %v3046_v20, %v2918_v15  ;;  %v2919_v36 = vld [vmem:[#allocation11 + $0x30] sm:$0xff]  ;;  %v11486_v37 = vld [vmem:[#allocation24 + $0x58] sm:$0xff] }
 0xd61   :  { %v4150_v58 = vadd.f32 %v13038_v45, %v3732_v9  ;;  %v7817_v27 = vpop.eup %7816  ;;  %13039 = vst [vmem:[#allocation95_spill] sm:$0xff] %v11486_v37  ;;  %v11490_v14 = vld [vmem:[#allocation24 + $0x60] sm:$0xff]  ;;  %v11494_v62 = vld [vmem:[#allocation24 + $0x68] sm:$0xff]  ;;  %v11506_v20 = vmul.f32 %v11502_v47, %v11502_v47  ;;  %v2920_v15 = vld [vmem:[#allocation11 + $0x38] sm:$0xff]  ;;  %v5111_v55 = vmax.f32 %v11460_v56, 1e-24 }
 0xd62   :  { %5669 = vadd.xlane.f32.xlu1 %v5630_v22  ;;  %5671 = vadd.xlane.f32.xlu0 %v5631_v48  ;;  %v3047_v22 = vmul.f32 0.1, %v3031_v35  ;;  %v3033_v48 = vmul.f32 %v7813_v2, %v11341_v28  ;;  %7826 = vrsqrt.f32 %v3008_v3  ;;  %13040 = vst [vmem:[#allocation61_spill] sm:$0xff] %v11490_v14  ;;  %v5635_v28 = vmul.f32 %v11490_v14, %v11490_v14  ;;  %v11498_v2 = vld [vmem:[#allocation24 + $0x70] sm:$0xff]  ;;  %v13045_v14 = vld [vmem:[#allocation70_spill] sm:$0xff]  ;;  %v8450_v47 = vld [vmem:[#allocation5 + $0xa0] sm:$0xff] }
 0xd63   :  { %v11480_v24 = vpop.xlane.xlu1 %5081  ;;  %v11482_v6 = vpop.xlane.xlu0 %5083  ;;  %6950 = vmatmul.mubr.f32.gmra.mrb[8].mxu1 %v8442_v7  ;;  %v5634_v7 = vmul.f32 %v11486_v37, %v11486_v37  ;;  %13041 = vst [vmem:[#allocation96_spill] sm:$0xff] %v11494_v62  ;;  %v5636_v45 = vmul.f32 %v11494_v62, %v11494_v62  ;;  %v3048_v35 = vmul.f32 0.1, %v3032_v41  ;;  %13042 = vst [vmem:[#allocation59_spill] sm:$0xff] %v11498_v2  ;;  %v13044_v3 = vld [vmem:[#allocation133_spill] sm:$0xff]  ;;  %7828 = vrsqrt.f32 %v5111_v55  ;;  %v2924_v55 = vld [vmem:[#allocation11 + $0x58] sm:$0xff] }
 0xd64   :  { %6952 = vmatprep.mubr.f32.mxu1 %v8443_v33  ;;  %v7819_v5 = vpop.eup %7818  ;;  %v5637_v9 = vmul.f32 %v11498_v2, %v11498_v2  ;;  %v4151_v53 = vadd.f32 %v13044_v3, %v3733_v32  ;;  %v4999_v33 = vadd.f32 %v11384_v12, %v4149_v18  ;;  %v3734_v2 = vadd.f32 %v13045_v14, %v3060_v34  ;;  %v13047_v3 = vld [vmem:[#allocation72_spill] sm:$0xff]  ;;  %v2921_v12 = vld [vmem:[#allocation11 + $0x40] sm:$0xff]  ;;  %v8454_v14 = vld [vmem:[#allocation5 + $0xb0] sm:$0xff] }
 0xd65   :  { %v7821_v62 = vpop.eup %7820  ;;  %v3063_v37 = vadd.f32 %v3047_v22, %v2919_v36  ;;  %v3049_v54 = vmul.f32 0.1, %v3033_v48  ;;  %v3735_v32 = vadd.f32 %v13046_v29, %v3061_v40  ;;  %v3736_v51 = vadd.f32 %v13047_v3, %v3062_v4  ;;  %v11522_v22 = vld [vmem:[#allocation24 + $0x80] sm:$0xff]  ;;  %v11526_v29 = vld [vmem:[#allocation24 + $0x88] sm:$0xff]  ;;  %v13050_v48 = vld [vmem:[#allocation134_spill] sm:$0xff] }
 0xd66   :  { %5673 = vadd.xlane.f32.xlu1 %v5632_v38  ;;  %5675 = vadd.xlane.f32.xlu0 %v5633_v39  ;;  %v8449_v39 = vld [vmem:[#allocation5 + $0x98] sm:$0xff]  ;;  %v3034_v18 = vmul.f32 %v7815_v21, %v11347_v26  ;;  %v5000_v17 = vadd.f32 %v11387_v31, %v4150_v58  ;;  %v3064_v63 = vadd.f32 %v3048_v35, %v2920_v15  ;;  %v11533_v26 = vmul.f32 0.25, %v4999_v33  ;;  %v8453_v31 = vld [vmem:[#allocation5 + $0xa8] sm:$0xff]  ;;  %v13051_v36 = vld [vmem:[#allocation73_spill] sm:$0xff] }
 0xd67   :  { %v11510_v41 = vpop.xlane.xlu1 %5085  ;;  %v11512_v38 = vpop.xlane.xlu0 %5087  ;;  %6953 = vmatmul.mubr.f32.gmra.mrb[10].mxu1 %v8449_v39  ;;  %v3035_v39 = vmul.f32 %v7817_v27, %v11349_v25  ;;  %v3036_v34 = vmul.f32 %v7819_v5, %v11355_v50  ;;  %13048 = vst [vmem:[#allocation64_spill] sm:$0xff] %v11522_v22  ;;  %v5639_v56 = vmul.f32 %v11522_v22, %v11522_v22  ;;  %13049 = vst [vmem:[#allocation98_spill] sm:$0xff] %v11526_v29  ;;  %v13053_v33 = vld [vmem:[#allocation136_spill] sm:$0xff] }
 0xd68   :  { %6955 = vmatprep.mubr.f32.mxu1 %v8450_v47  ;;  %v11530_v40 = vmul.f32 %v11526_v29, %v11526_v29  ;;  %v3037_v21 = vmul.f32 %v7821_v62, %v11357_v46  ;;  %v7823_v58 = vpop.eup %7822  ;;  %v4152_v4 = vadd.f32 %v13050_v48, %v3734_v2  ;;  %v3737_v27 = vadd.f32 %v13051_v36, %v3063_v37  ;;  %v2922_v46 = vld [vmem:[#allocation11 + $0x48] sm:$0xff]  ;;  %v13054_v2 = vld [vmem:[#allocation74_spill] sm:$0xff]  ;;  %v2923_v37 = vld [vmem:[#allocation11 + $0x50] sm:$0xff] }
 0xd69   :  { %v3050_v62 = vmul.f32 0.1, %v3034_v18  ;;  %v11542_v5 = vmul.f32 0.25, %v5000_v17  ;;  %v5001_v47 = vadd.f32 %v11392_v10, %v4151_v53  ;;  %v7825_v15 = vpop.eup %7824  ;;  %v11546_v3 = vadd.f32 %v13053_v33, %v3736_v51  ;;  %v8455_v51 = vld [vmem:[#allocation5 + $0xb8] sm:$0xff]  ;;  %v2925_v33 = vld [vmem:[#allocation11 + $0x60] sm:$0xff] }
 0xd6a   :  { %5677 = vadd.xlane.f32.xlu1 %v5634_v7  ;;  %5679 = vadd.xlane.f32.xlu0 %v5635_v28  ;;  %v3065_v7 = vadd.f32 %v3049_v54, %v2921_v12  ;;  %v13052_v28 = vld [vmem:[#allocation135_spill] sm:$0xff]  ;;  %v3051_v54 = vmul.f32 0.1, %v3035_v39  ;;  %v3052_v12 = vmul.f32 0.1, %v3036_v34  ;;  %v3038_v18 = vmul.f32 %v7823_v58, %v11363_v8 }
 0xd6b   :  { %v11535_v25 = vpop.xlane.xlu1 %5089  ;;  %v5092_v50 = vpop.xlane.xlu0 %5091  ;;  %6956 = vmatmul.mubr.f32.gmra.mrb[12].mxu1 %v8453_v31  ;;  %v11540_v35 = vadd.f32 %v13052_v28, %v3735_v32  ;;  %v3738_v31 = vadd.f32 %v13054_v2, %v3064_v63  ;;  %v3053_v48 = vmul.f32 0.1, %v3037_v21  ;;  %v5112_v17 = vmax.f32 %v11480_v24, 1e-24  ;;  %v13056_v28 = vld [vmem:[#allocation75_spill] sm:$0xff] }
 0xd6c   :  { %6958 = vmatprep.mubr.f32.mxu1 %v8454_v14  ;;  %v7827_v32 = vpop.eup %7826  ;;  %v5117_v36 = vmax.f32 %v5092_v50, 1e-24  ;;  %v13055_v14 = vld [vmem:[#allocation137_spill] sm:$0xff]  ;;  %v3739_v39 = vadd.f32 %v13056_v28, %v3065_v7  ;;  %v8456_v34 = vld [vmem:[#allocation5 + $0xc0] sm:$0xff]  ;;  %v3066_v8 = vadd.f32 %v3050_v62, %v2922_v46  ;;  %v3039_v24 = vmul.f32 %v7825_v15, %v11365_v59 }
 0xd6d   :  { %v4155_v63 = vadd.f32 %v13055_v14, %v3737_v27  ;;  %v5114_v21 = vmax.f32 %v11510_v41, 1e-24  ;;  %v3067_v50 = vadd.f32 %v3051_v54, %v2923_v37  ;;  %v3068_v58 = vadd.f32 %v3052_v12, %v2924_v55  ;;  %v8457_v41 = vld [vmem:[#allocation5 + $0xc8] sm:$0xff]  ;;  %v8458_v37 = vld [vmem:[#allocation5 + $0xd0] sm:$0xff]  ;;  %v7829_v55 = vpop.eup %7828  ;;  %v2928_v14 = vld [vmem:[#allocation11 + $0x78] sm:$0xff] }
 0xd6e   :  { %5681 = vadd.xlane.f32.xlu1 %v5636_v45  ;;  %5683 = vadd.xlane.f32.xlu0 %v5637_v9  ;;  %v5113_v45 = vmax.f32 %v11482_v6, 1e-24  ;;  %v5002_v9 = vadd.f32 %v11395_v42, %v4152_v4  ;;  %7830 = vrsqrt.f32 %v5117_v36  ;;  %v3040_v2 = vmul.f32 %v7827_v32, %v11371_v43  ;;  %v13057_v6 = vld [vmem:[#allocation138_spill] sm:$0xff]  ;;  %v2926_v4 = vld [vmem:[#allocation11 + $0x68] sm:$0xff]  ;;  %v13059_v12 = vld [vmem:[#allocation77_spill] sm:$0xff] }
 0xd6f   :  { %v11551_v10 = vpop.xlane.xlu1 %5093  ;;  %v5096_v53 = vpop.xlane.xlu0 %5095  ;;  %6959 = vmatmul.mubr.f32.gmra.mrb[14].mxu1 %v8455_v51  ;;  %v11560_v27 = vmul.f32 0.25, %v5001_v47  ;;  %v11564_v7 = vadd.f32 %v13057_v6, %v3738_v31  ;;  %v3069_v42 = vadd.f32 %v3053_v48, %v2925_v33  ;;  %v3054_v46 = vmul.f32 0.1, %v3038_v18  ;;  %v13060_v48 = vld [vmem:[#allocation78_spill] sm:$0xff]  ;;  %v13063_v6 = vld [vmem:[#allocation140_spill] sm:$0xff] }
 0xd70   :  { %6961 = vmatprep.mubr.f32.mxu1 %v8456_v34  ;;  %7832 = vrsqrt.f32 %v5112_v17  ;;  %v5115_v15 = vmax.f32 %v11512_v38, 1e-24  ;;  %v5119_v43 = vmax.f32 %v5096_v53, 1e-24  ;;  %v3055_v54 = vmul.f32 0.1, %v3039_v24 }
 0xd71   :  { %7834 = vrsqrt.f32 %v5113_v45  ;;  %v11568_v31 = vmul.f32 0.25, %v5002_v9  ;;  %v3741_v32 = vadd.f32 %v13059_v12, %v3067_v50  ;;  %v3742_v18 = vadd.f32 %v13060_v48, %v3068_v58  ;;  %v2927_v17 = vld [vmem:[#allocation11 + $0x70] sm:$0xff]  ;;  %v13061_v38 = vld [vmem:[#allocation79_spill] sm:$0xff]  ;;  %v8459_v9 = vld [vmem:[#allocation5 + $0xd8] sm:$0xff] }
 0xd72   :  { %5685 = vadd.xlane.f32.xlu1 %v11506_v20  ;;  %5687 = vadd.xlane.f32.xlu0 %v5639_v56  ;;  %v13058_v20 = vld [vmem:[#allocation76_spill] sm:$0xff]  ;;  %7836 = vrsqrt.f32 %v5114_v21  ;;  %v3056_v36 = vmul.f32 0.1, %v3040_v2  ;;  %v3743_v53 = vadd.f32 %v13061_v38, %v3069_v42  ;;  %v3070_v51 = vadd.f32 %v3054_v46, %v2926_v4  ;;  %v13062_v34 = vld [vmem:[#allocation139_spill] sm:$0xff]  ;;  %v13064_v4 = vld [vmem:[#allocation141_spill] sm:$0xff] }
 0xd73   :  { %v5098_v59 = vpop.xlane.xlu1 %5097  ;;  %v5100_v62 = vpop.xlane.xlu0 %5099  ;;  %6962 = vmatmul.mubr.f32.gmra.mrb[16].mxu1 %v8457_v41  ;;  %v3740_v56 = vadd.f32 %v13058_v20, %v3066_v8  ;;  %7838 = vrsqrt.f32 %v5119_v43  ;;  %v4157_v8 = vadd.f32 %v13062_v34, %v3739_v39  ;;  %v5116_v24 = vmax.f32 %v11535_v25, 1e-24  ;;  %v8460_v50 = vld [vmem:[#allocation5 + $0xe0] sm:$0xff]  ;;  %v13065_v39 = vld [vmem:[#allocation142_spill] sm:$0xff]  ;;  %v8461_v20 = vld [vmem:[#allocation5 + $0xe8] sm:$0xff] }
 0xd74   :  { %v5120_v47 = vmax.f32 %v5098_v59, 1e-24  ;;  %6964 = vmatprep.mubr.f32.mxu1 %v8458_v37  ;;  %v5121_v28 = vmax.f32 %v5100_v62, 1e-24  ;;  %v3071_v58 = vadd.f32 %v3055_v54, %v2927_v17  ;;  %v5005_v2 = vadd.f32 %v11408_v0, %v4155_v63  ;;  %v8462_v54 = vld [vmem:[#allocation5 + $0xf0] sm:$0xff]  ;;  %v13068_v17 = vld [vmem:[#allocation82_spill] sm:$0xff] }
 0xd75   :  { %v4158_v42 = vadd.f32 %v13063_v6, %v3740_v56  ;;  %v4159_v46 = vadd.f32 %v13064_v4, %v3741_v32  ;;  %v3072_v59 = vadd.f32 %v3056_v36, %v2928_v14  ;;  %v4160_v41 = vadd.f32 %v13065_v39, %v3742_v18  ;;  %v13067_v12 = vld [vmem:[#allocation81_spill] sm:$0xff] }
 0xd76   :  { %5689 = vadd.xlane.f32.xlu1 %v11530_v40  ;;  %7840 = vrsqrt.f32 %v5120_v47  ;;  %v5143_v40 = vmul.f32 %v11375_v57, %v7829_v55  ;;  %v11582_v25 = vadd.f32 %v10911_v61, %v3743_v53  ;;  %v3745_v32 = vadd.f32 %v13067_v12, %v3071_v58  ;;  %v8465_v6 = vld [vmem:[#allocation26 + $0x10] sm:$0xff]  ;;  %v8469_v12 = vld [vmem:[#allocation26 + $0x58] sm:$0xff] }
 0xd77   :  { %v5102_v33 = vpop.xlane.xlu1 %5101  ;;  %v5104_v45 = vpop.xlane.xlu0 %5103  ;;  %6965 = vmatmul.mubr.f32.gmra.mrb[18].mxu1 %v8459_v9  ;;  %7842 = vrsqrt.f32 %v5115_v15  ;;  %v13066_v15 = vld [vmem:[#allocation80_spill] sm:$0xff]  ;;  %v5053_v61 = vmul.f32 0.25, %v5005_v2  ;;  %v3746_v36 = vadd.f32 %v13068_v17, %v3072_v59  ;;  %v5118_v53 = vmax.f32 %v11551_v10, 1e-24  ;;  %v8463_v9 = vld [vmem:[#allocation5 + $0xf8] sm:$0xff] }
 0xd78   :  { %v5122_v21 = vmax.f32 %v5102_v33, 1e-24  ;;  %6967 = vmatprep.mubr.f32.mxu1 %v8460_v50  ;;  %7844 = vrsqrt.f32 %v5121_v28  ;;  %v7831_v62 = vpop.eup %7830  ;;  %v3744_v43 = vadd.f32 %v13066_v15, %v3070_v51  ;;  %v5123_v47 = vmax.f32 %v5104_v45, 1e-24 }
 0xd79   :  { %v5149_v0 = vmul.f32 %v11379_v23, %v7831_v62  ;;  %v11587_v48 = vmul.f32 0.02, %v5143_v40  ;;  %v5007_v14 = vadd.f32 %v11416_v11, %v4157_v8  ;;  %v5008_v28 = vadd.f32 %v11419_v44, %v4158_v42  ;;  %v8466_v44 = vld [vmem:[#allocation26 + $0x40] sm:$0xff]  ;;  %v8467_v62 = vld [vmem:[#allocation26 + $0x48] sm:$0xff] }
 0xd7a   :  { %7846 = vrsqrt.f32 %v5122_v21  ;;  %v7833_v55 = vpop.eup %7832  ;;  %v4162_v23 = vadd.f32 %v10913_v19, %v3744_v43  ;;  %v4163_v19 = vadd.f32 %v10917_v13, %v3745_v32  ;;  %v5009_v42 = vadd.f32 %v11424_v49, %v4159_v46 }
 0xd7b   :  { %v5106_v37 = vpop.xlane.xlu1 %5105  ;;  %v5108_v57 = vpop.xlane.xlu0 %5107  ;;  %6968 = vmatmul.mubr.f32.gmra.mrb[20].mxu1 %v8461_v20  ;;  %7848 = vrsqrt.f32 %v5116_v24  ;;  %v5165_v38 = vmul.f32 0.02, %v5149_v0  ;;  %v8464_v24 = vld [vmem:[#allocation26 + $0x8] sm:$0xff]  ;;  %v4164_v59 = vadd.f32 %v10919_v1, %v3746_v36  ;;  %v5010_v15 = vadd.f32 %v11427_v60, %v4160_v41 }
 0xd7c   :  { %v5124_v63 = vmax.f32 %v5106_v37, 1e-24  ;;  %v5125_v56 = vmax.f32 %v5108_v57, 1e-24  ;;  %6970 = vmatprep.mubr.f32.mxu1 %v8462_v54  ;;  %7850 = vrsqrt.f32 %v5123_v47  ;;  %v7835_v18 = vpop.eup %7834  ;;  %v11596_v21 = vmul.f32 %v8464_v24, %v7833_v55 }
 0xd7d   :  { %v11591_v51 = vpop.eup %7836  ;;  %v11598_v50 = vadd.f32 %v5165_v38, %v5053_v61  ;;  %v11601_v11 = vmul.f32 %v8465_v6, %v7835_v18  ;;  %v5055_v47 = vmul.f32 0.25, %v5007_v14  ;;  %v5056_v13 = vmul.f32 0.25, %v5008_v28 }
 0xd7e   :  { %7852 = vrsqrt.f32 %v5124_v63  ;;  %v7839_v34 = vpop.eup %7838  ;;  %v5057_v1 = vmul.f32 0.25, %v5009_v42  ;;  %v5011_v60 = vadd.f32 %v11432_v52, %v11582_v25  ;;  %v5058_v17 = vmul.f32 0.25, %v5010_v15  ;;  %v8470_v52 = vld [vmem:[#allocation26 + $0x60] sm:$0xff] }
 0xd7f   :  { %7854 = vrsqrt.f32 %v5125_v56  ;;  %v5110_v33 = vpop.xlane.xlu1 %5109  ;;  %v5208_v45 = vpop.xlane.xlu0 %5207  ;;  %6971 = vmatmul.mubr.f32.gmra.mrb[22].mxu1 %v8463_v9  ;;  %v5151_v8 = vmul.f32 %v8466_v44, %v7839_v34  ;;  %v8468_v56 = vld [vmem:[#allocation26 + $0x50] sm:$0xff]  ;;  %v5012_v14 = vadd.f32 %v11435_v30, %v4162_v23  ;;  %v5013_v28 = vadd.f32 %v11440_v16, %v4163_v19  ;;  %v8471_v30 = vld [vmem:[#allocation26 + $0x68] sm:$0xff] }
 0xd80   :  { %v5126_v58 = vmax.f32 %v5110_v33, 1e-24  ;;  %v5239_v40 = vmax.f32 %v5208_v45, 1e-24  ;;  %v7841_v2 = vpop.eup %7840  ;;  %v5059_v6 = vmul.f32 0.25, %v5011_v60  ;;  %v8472_v19 = vld [vmem:[#allocation26 + $0x70] sm:$0xff] }
 0xd81   :  { %v11604_v4 = vpop.eup %7842  ;;  %v5152_v39 = vmul.f32 %v8467_v62, %v7841_v2  ;;  %v5167_v37 = vmul.f32 0.02, %v5151_v8  ;;  %v13069_v8 = vld [vmem:[#allocation51_spill] sm:$0xff]  ;;  %v5060_v62 = vmul.f32 0.25, %v5012_v14  ;;  %v5061_v15 = vmul.f32 0.25, %v5013_v28 }
 0xd82   :  { %7856 = vrsqrt.f32 %v5126_v58  ;;  %v7845_v43 = vpop.eup %7844  ;;  %v5014_v42 = vadd.f32 %v13069_v8, %v4164_v59  ;;  %v8473_v59 = vld [vmem:[#allocation26 + $0x78] sm:$0xff]  ;;  %v8476_v60 = vld [vmem:[#allocation26 + $0x20] sm:$0xff]  ;;  %v5175_v14 = vadd.f32 %v11587_v48, %v11533_v26  ;;  %v8479_v48 = vld [vmem:[#allocation26 + $0x28] sm:$0xff] }
 0xd83   :  { %7858 = vrsqrt.f32 %v5239_v40  ;;  %v5210_v57 = vpop.xlane.xlu1 %5209  ;;  %v5212_v20 = vpop.xlane.xlu0 %5211  ;;  %v5168_v63 = vmul.f32 0.02, %v5152_v39  ;;  %v5153_v49 = vmul.f32 %v8468_v56, %v7845_v43  ;;  %v11608_v55 = vadd.f32 %v5167_v37, %v5055_v47 }
 0xd84   :  { %v7847_v0 = vpop.eup %7846  ;;  %v5240_v46 = vmax.f32 %v5210_v57, 1e-24  ;;  %v5241_v54 = vmax.f32 %v5212_v20, 1e-24 }
 0xd85   :  { %v5154_v32 = vmul.f32 %v8469_v12, %v7847_v0  ;;  %v11612_v41 = vpop.eup %7848  ;;  %v11614_v61 = vadd.f32 %v5168_v63, %v5056_v13  ;;  %v5169_v18 = vmul.f32 0.02, %v5153_v49  ;;  %v5160_v0 = vmul.f32 0.02, %v11596_v21  ;;  %v8475_v12 = vld [vmem:[#allocation27] sm:$0xff] }
 0xd86   :  { %7860 = vrsqrt.f32 %v5240_v46  ;;  %v7851_v36 = vpop.eup %7850  ;;  %v5161_v63 = vmul.f32 0.02, %v11601_v11  ;;  %v8474_v46 = vld [vmem:[#allocation26 + $0x18] sm:$0xff] }
 0xd87   :  { %v5170_v38 = vmul.f32 0.02, %v5154_v32  ;;  %7862 = vrsqrt.f32 %v5241_v54  ;;  %v5214_v33 = vpop.xlane.xlu1 %5213  ;;  %v5216_v45 = vpop.xlane.xlu0 %5215  ;;  %v11618_v34 = vadd.f32 %v5169_v18, %v5057_v1  ;;  %v5155_v25 = vmul.f32 %v8470_v52, %v7851_v36  ;;  %v13070_v52 = vld [vmem:[#allocation91_spill] sm:$0xff] }
 0xd88   :  { %v7853_v9 = vpop.eup %7852  ;;  %v5242_v24 = vmax.f32 %v5214_v33, 1e-24  ;;  %v5243_v58 = vmax.f32 %v5216_v45, 1e-24  ;;  %7864 = vrsqrt.f32 %v5118_v53  ;;  %v5146_v54 = vmul.f32 %v8474_v46, %v11591_v51 }
 0xd89   :  { %v7855_v40 = vpop.eup %7854  ;;  %v11622_v2 = vadd.f32 %v5170_v38, %v5058_v17  ;;  %v5156_v23 = vmul.f32 %v8471_v30, %v7853_v9  ;;  %v5171_v16 = vmul.f32 0.02, %v5155_v25  ;;  %v5147_v18 = vmul.f32 %v8476_v60, %v11604_v4  ;;  %v8477_v4 = vld [vmem:[#allocation27 + $0x8] sm:$0xff]  ;;  %v8478_v30 = vld [vmem:[#allocation27 + $0x10] sm:$0xff] }
 0xd8a   :  { %v5157_v44 = vmul.f32 %v8472_v19, %v7855_v40  ;;  %7866 = vrsqrt.f32 %v5242_v24  ;;  %v5062_v17 = vmul.f32 0.25, %v5014_v42  ;;  %v5176_v9 = vadd.f32 %v5160_v0, %v11542_v5 }
 0xd8b   :  { %v5172_v39 = vmul.f32 0.02, %v5156_v23  ;;  %7868 = vrsqrt.f32 %v5243_v58  ;;  %v5218_v43 = vpop.xlane.xlu1 %5217  ;;  %v5220_v47 = vpop.xlane.xlu0 %5219  ;;  %v11625_v10 = vadd.f32 %v5171_v16, %v5059_v6  ;;  %v5003_v25 = vadd.f32 %v13070_v52, %v11540_v35 }
 0xd8c   :  { %v7857_v37 = vpop.eup %7856  ;;  %v5173_v53 = vmul.f32 0.02, %v5157_v44  ;;  %v5244_v13 = vmax.f32 %v5218_v43, 1e-24  ;;  %v5245_v57 = vmax.f32 %v5220_v47, 1e-24  ;;  %v5148_v19 = vmul.f32 %v8479_v48, %v11612_v41 }
 0xd8d   :  { %v7859_v20 = vpop.eup %7858  ;;  %v11629_v56 = vadd.f32 %v5172_v39, %v5060_v62  ;;  %v5158_v49 = vmul.f32 %v8473_v59, %v7857_v37  ;;  %v5162_v40 = vmul.f32 0.02, %v5146_v54  ;;  %v5163_v26 = vmul.f32 0.02, %v5147_v18  ;;  %v13071_v37 = vld [vmem:[#allocation52_spill] sm:$0xff]  ;;  %v8481_v59 = vld [vmem:[#allocation27 + $0x20] sm:$0xff] }
 0xd8e   :  { %v11632_v1 = vadd.f32 %v5173_v53, %v5061_v15  ;;  %v5271_v32 = vmul.f32 %v8475_v12, %v7859_v20  ;;  %7870 = vrsqrt.f32 %v5244_v13  ;;  %v5177_v35 = vadd.f32 %v5161_v63, %v11560_v27  ;;  %v8482_v27 = vld [vmem:[#allocation26 + $0x38] sm:$0xff] }
 0xd8f   :  { %v5174_v36 = vmul.f32 0.02, %v5158_v49  ;;  %7872 = vrsqrt.f32 %v5245_v57  ;;  %v5222_v21 = vpop.xlane.xlu1 %5221  ;;  %v5224_v11 = vpop.xlane.xlu0 %5223  ;;  %v5051_v47 = vmul.f32 0.25, %v5003_v25  ;;  %v5004_v53 = vadd.f32 %v13071_v37, %v11546_v3  ;;  %v8480_v57 = vld [vmem:[#allocation27 + $0x18] sm:$0xff] }
 0xd90   :  { %v7861_v38 = vpop.eup %7860  ;;  %v5287_v28 = vmul.f32 0.02, %v5271_v32  ;;  %v5246_v33 = vmax.f32 %v5222_v21, 1e-24  ;;  %v5247_v51 = vmax.f32 %v5224_v11, 1e-24  ;;  %v5178_v41 = vadd.f32 %v5162_v40, %v11568_v31 }
 0xd91   :  { %v7863_v45 = vpop.eup %7862  ;;  %v11640_v24 = vadd.f32 %v5174_v36, %v5062_v17  ;;  %v5272_v58 = vmul.f32 %v8477_v4, %v7861_v38  ;;  %v5164_v46 = vmul.f32 0.02, %v5148_v19  ;;  %v5179_v18 = vadd.f32 %v5163_v26, %v5051_v47  ;;  %v13072_v11 = vld [vmem:[#allocation92_spill] sm:$0xff]  ;;  %v8485_v19 = vld [vmem:[#allocation27 + $0x38] sm:$0xff] }
 0xd92   :  { %v5303_v6 = vadd.f32 %v5287_v28, %v5175_v14  ;;  %v5273_v23 = vmul.f32 %v8478_v30, %v7863_v45  ;;  %7874 = vrsqrt.f32 %v5246_v33  ;;  %v7865_v16 = vpop.eup %7864  ;;  %v5052_v31 = vmul.f32 0.25, %v5004_v53  ;;  %v8483_v28 = vld [vmem:[#allocation27 + $0x28] sm:$0xff]  ;;  %v8484_v45 = vld [vmem:[#allocation27 + $0x30] sm:$0xff] }
 0xd93   :  { %v5288_v44 = vmul.f32 0.02, %v5272_v58  ;;  %7876 = vrsqrt.f32 %v5247_v51  ;;  %v5226_v5 = vpop.xlane.xlu1 %5225  ;;  %v5228_v8 = vpop.xlane.xlu0 %5227  ;;  %v5150_v63 = vmul.f32 %v8482_v27, %v7865_v16  ;;  %v5006_v38 = vadd.f32 %v13072_v11, %v11564_v7 }
 0xd94   :  { %v7867_v42 = vpop.eup %7866  ;;  %5319 = vst [vmem:[#allocation20] sm:$0xff] %v5303_v6  ;;  %v5289_v62 = vmul.f32 0.02, %v5273_v23  ;;  %v5248_v39 = vmax.f32 %v5226_v5, 1e-24  ;;  %v5180_v52 = vadd.f32 %v5164_v46, %v5052_v31 }
 0xd95   :  { %v5249_v15 = vmax.f32 %v5228_v8, 1e-24  ;;  %v7869_v43 = vpop.eup %7868  ;;  %v5304_v13 = vadd.f32 %v5288_v44, %v5176_v9  ;;  %v5274_v20 = vmul.f32 %v8480_v57, %v7867_v42  ;;  %v5166_v25 = vmul.f32 0.02, %v5150_v63  ;;  %v8486_v8 = vld [vmem:[#allocation27 + $0x40] sm:$0xff]  ;;  %v8487_v57 = vld [vmem:[#allocation27 + $0x48] sm:$0xff] }
 0xd96   :  { %v5305_v0 = vadd.f32 %v5289_v62, %v5177_v35  ;;  %v5275_v49 = vmul.f32 %v8481_v59, %v7869_v43  ;;  %7878 = vrsqrt.f32 %v5248_v39  ;;  %v5054_v26 = vmul.f32 0.25, %v5006_v38 }
 0xd97   :  { %5320 = vst [vmem:[#allocation20 + $0x8] sm:$0xff] %v5304_v13  ;;  %v5290_v54 = vmul.f32 0.02, %v5274_v20  ;;  %7880 = vrsqrt.f32 %v5249_v15  ;;  %v5230_v12 = vpop.xlane.xlu1 %5229  ;;  %v5232_v32 = vpop.xlane.xlu0 %5231 }
 0xd98   :  { %v7871_v60 = vpop.eup %7870  ;;  %5321 = vst [vmem:[#allocation20 + $0x10] sm:$0xff] %v5305_v0  ;;  %v5291_v3 = vmul.f32 0.02, %v5275_v49  ;;  %v5250_v17 = vmax.f32 %v5230_v12, 1e-24  ;;  %v5182_v35 = vadd.f32 %v5166_v25, %v5054_v26 }
 0xd99   :  { %v5251_v36 = vmax.f32 %v5232_v32, 1e-24  ;;  %v7873_v21 = vpop.eup %7872  ;;  %v5306_v14 = vadd.f32 %v5290_v54, %v5178_v41  ;;  %v5276_v33 = vmul.f32 %v8483_v28, %v7871_v60  ;;  %v8488_v41 = vld [vmem:[#allocation27 + $0x50] sm:$0xff]  ;;  %v8489_v32 = vld [vmem:[#allocation27 + $0x58] sm:$0xff]  ;;  %v8491_v28 = vld [vmem:[#allocation27 + $0x68] sm:$0xff] }
 0xd9a   :  { %v5307_v51 = vadd.f32 %v5291_v3, %v5179_v18  ;;  %v5277_v9 = vmul.f32 %v8484_v45, %v7873_v21  ;;  %7882 = vrsqrt.f32 %v5250_v17 }
 0xd9b   :  { %5322 = vst [vmem:[#allocation20 + $0x18] sm:$0xff] %v5306_v14  ;;  %v5292_v4 = vmul.f32 0.02, %v5276_v33  ;;  %7884 = vrsqrt.f32 %v5251_v36  ;;  %v5234_v58 = vpop.xlane.xlu1 %5233  ;;  %v5236_v40 = vpop.xlane.xlu0 %5235 }
 0xd9c   :  { %v7875_v6 = vpop.eup %7874  ;;  %5323 = vst [vmem:[#allocation20 + $0x20] sm:$0xff] %v5307_v51  ;;  %v5293_v30 = vmul.f32 0.02, %v5277_v9  ;;  %v5252_v23 = vmax.f32 %v5234_v58, 1e-24  ;;  %v8492_v51 = vld [vmem:[#allocation27 + $0x70] sm:$0xff] }
 0xd9d   :  { %v5253_v16 = vmax.f32 %v5236_v40, 1e-24  ;;  %v7877_v7 = vpop.eup %7876  ;;  %v5308_v48 = vadd.f32 %v5292_v4, %v5180_v52  ;;  %v5278_v44 = vmul.f32 %v8485_v19, %v7875_v6  ;;  %v8493_v40 = vld [vmem:[#allocation27 + $0x78] sm:$0xff] }
 0xd9e   :  { %v5309_v5 = vadd.f32 %v5293_v30, %v11598_v50  ;;  %v5279_v42 = vmul.f32 %v8486_v8, %v7877_v7  ;;  %7886 = vrsqrt.f32 %v5252_v23 }
 0xd9f   :  { %5324 = vst [vmem:[#allocation20 + $0x28] sm:$0xff] %v5308_v48  ;;  %v5294_v62 = vmul.f32 0.02, %v5278_v44  ;;  %7888 = vrsqrt.f32 %v5253_v16  ;;  %v5238_v39 = vpop.xlane.xlu1 %5237  ;;  %v11650_v15 = vpop.xlane.xlu0 %5399 }
 0xda0   :  { %v7879_v43 = vpop.eup %7878  ;;  %5325 = vst [vmem:[#allocation20 + $0x30] sm:$0xff] %v5309_v5  ;;  %v5295_v47 = vmul.f32 0.02, %v5279_v42  ;;  %v5254_v37 = vmax.f32 %v5238_v39, 1e-24 }
 0xda1   :  { %v7881_v53 = vpop.eup %7880  ;;  %v5310_v13 = vadd.f32 %v5294_v62, %v5182_v35  ;;  %v5280_v20 = vmul.f32 %v8487_v57, %v7879_v43 }
 0xda2   :  { %v5311_v50 = vadd.f32 %v5295_v47, %v11608_v55  ;;  %v5281_v0 = vmul.f32 %v8488_v41, %v7881_v53  ;;  %7890 = vrsqrt.f32 %v5254_v37  ;;  %v8490_v55 = vld [vmem:[#allocation27 + $0x60] sm:$0xff] }
 0xda3   :  { %5326 = vst [vmem:[#allocation20 + $0x38] sm:$0xff] %v5310_v13  ;;  %v5296_v59 = vmul.f32 0.02, %v5280_v20  ;;  %v11653_v49 = vpop.xlane.xlu1 %5401  ;;  %v11655_v46 = vpop.xlane.xlu0 %5403 }
 0xda4   :  { %v7883_v27 = vpop.eup %7882  ;;  %5327 = vst [vmem:[#allocation20 + $0x40] sm:$0xff] %v5311_v50  ;;  %v5297_v63 = vmul.f32 0.02, %v5281_v0 }
 0xda5   :  { %v7885_v54 = vpop.eup %7884  ;;  %v5312_v12 = vadd.f32 %v5296_v59, %v11614_v61  ;;  %v5282_v60 = vmul.f32 %v8489_v32, %v7883_v27 }
 0xda6   :  { %v5313_v18 = vadd.f32 %v5297_v63, %v11618_v34  ;;  %v5283_v3 = vmul.f32 %v8490_v55, %v7885_v54 }
 0xda7   :  { %5328 = vst [vmem:[#allocation20 + $0x48] sm:$0xff] %v5312_v12  ;;  %v5298_v17 = vmul.f32 0.02, %v5282_v60  ;;  %v11659_v36 = vpop.xlane.xlu1 %5405  ;;  %v11661_v21 = vpop.xlane.xlu0 %5407 }
 0xda8   :  { %v7887_v31 = vpop.eup %7886  ;;  %5329 = vst [vmem:[#allocation20 + $0x50] sm:$0xff] %v5313_v18  ;;  %v5299_v11 = vmul.f32 0.02, %v5283_v3 }
 0xda9   :  { %v7889_v38 = vpop.eup %7888  ;;  %v5314_v14 = vadd.f32 %v5298_v17, %v11622_v2  ;;  %v5284_v61 = vmul.f32 %v8491_v28, %v7887_v31 }
 0xdaa   :  { %v5315_v33 = vadd.f32 %v5299_v11, %v11625_v10  ;;  %v5285_v34 = vmul.f32 %v8492_v51, %v7889_v38  ;;  %v8494_v11 = vld [vmem:[#allocation23 + $0xf0] sm:$0xff] }
 0xdab   :  { %5330 = vst [vmem:[#allocation20 + $0x58] sm:$0xff] %v5314_v14  ;;  %v5300_v45 = vmul.f32 0.02, %v5284_v61  ;;  %v11665_v9 = vpop.xlane.xlu1 %5409  ;;  %v11667_v52 = vpop.xlane.xlu0 %5411 }
 0xdac   :  { %v7891_v25 = vpop.eup %7890  ;;  %5331 = vst [vmem:[#allocation20 + $0x60] sm:$0xff] %v5315_v33  ;;  %v5301_v4 = vmul.f32 0.02, %v5285_v34 }
 0xdad   :  { %v5316_v58 = vadd.f32 %v5300_v45, %v11629_v56  ;;  %v5286_v6 = vmul.f32 %v8493_v40, %v7891_v25  ;;  %v8495_v45 = vld [vmem:[#allocation23 + $0xf8] sm:$0xff] }
 0xdae   :  { %v5317_v2 = vadd.f32 %v5301_v4, %v11632_v1  ;;  %v8496_v4 = vld [vmem:[#allocation24] sm:$0xff] }
 0xdaf   :  { %5332 = vst [vmem:[#allocation20 + $0x68] sm:$0xff] %v5316_v58  ;;  %v5302_v30 = vmul.f32 0.02, %v5286_v6  ;;  %v11671_v10 = vpop.xlane.xlu1 %5413  ;;  %v11673_v23 = vpop.xlane.xlu0 %5415 }
 0xdb0   :  { %5333 = vst [vmem:[#allocation20 + $0x70] sm:$0xff] %v5317_v2 }
 0xdb1   :  { %v5318_v16 = vadd.f32 %v5302_v30, %v11640_v24 }
 0xdb3   :  { %5334 = vst [vmem:[#allocation20 + $0x78] sm:$0xff] %v5318_v16  ;;  %v11676_v7 = vpop.xlane.xlu1 %5417  ;;  %v11678_v26 = vpop.xlane.xlu0 %5419 }
 0xdb7   :  { %v11680_v48 = vpop.xlane.xlu1 %5421  ;;  %v11682_v56 = vpop.xlane.xlu0 %5423 }
 0xdbb   :  { %v11684_v19 = vpop.xlane.xlu1 %5425  ;;  %v11686_v1 = vpop.xlane.xlu0 %5427 }
 0xdbf   :  { %v11688_v44 = vpop.xlane.xlu1 %5429  ;;  %v11690_v5 = vpop.xlane.xlu0 %5431 }
 0xdc3   :  { %v11692_v8 = vpop.xlane.xlu1 %5433  ;;  %v11694_v24 = vpop.xlane.xlu0 %5435 }
 0xdc4   :  { %13073 = vst [vmem:[#allocation62_spill] sm:$0xff] %v11694_v24 }
 0xdc7   :  { %v11696_v42 = vpop.xlane.xlu1 %5437  ;;  %v11698_v35 = vpop.xlane.xlu0 %5439 }
 0xdc8   :  { %13074 = vst [vmem:[#allocation99_spill] sm:$0xff] %v11696_v42  ;;  %13075 = vst [vmem:[#allocation100_spill] sm:$0xff] %v11698_v35 }
 0xdcb   :  { %v11700_v62 = vpop.xlane.xlu1 %5441  ;;  %v11702_v39 = vpop.xlane.xlu0 %5443 }
 0xdcc   :  { %13076 = vst [vmem:[#allocation101_spill] sm:$0xff] %v11700_v62  ;;  %13077 = vst [vmem:[#allocation102_spill] sm:$0xff] %v11702_v39 }
 0xdcf   :  { %v11704_v43 = vpop.xlane.xlu1 %5445  ;;  %v11706_v47 = vpop.xlane.xlu0 %5447 }
 0xdd0   :  { %13078 = vst [vmem:[#allocation103_spill] sm:$0xff] %v11704_v43  ;;  %13079 = vst [vmem:[#allocation104_spill] sm:$0xff] %v11706_v47 }
 0xdd3   :  { %v11708_v37 = vpop.xlane.xlu1 %5449  ;;  %v11710_v53 = vpop.xlane.xlu0 %5451 }
 0xdd4   :  { %13080 = vst [vmem:[#allocation105_spill] sm:$0xff] %v11708_v37  ;;  %13081 = vst [vmem:[#allocation106_spill] sm:$0xff] %v11710_v53  ;;  %v11871_v37 = vld [vmem:[#allocation24 + $0xa0] sm:$0xff] }
 0xdd5   :  { %13115 = vst [vmem:[#allocation67_spill] sm:$0xff] %v11871_v37  ;;  %v5643_v47 = vmul.f32 %v11871_v37, %v11871_v37  ;;  %v11887_v37 = vld [vmem:[#allocation24 + $0xc0] sm:$0xff] }
 0xdd6   :  { %13119 = vst [vmem:[#allocation132_spill] sm:$0xff] %v11887_v37 }
 0xdd7   :  { %v11712_v13 = vpop.xlane.xlu1 %5453  ;;  %v11714_v57 = vpop.xlane.xlu0 %5455 }
 0xdd8   :  { %13082 = vst [vmem:[#allocation107_spill] sm:$0xff] %v11712_v13  ;;  %13083 = vst [vmem:[#allocation108_spill] sm:$0xff] %v11714_v57  ;;  %v11863_v57 = vld [vmem:[#allocation24 + $0x90] sm:$0xff]  ;;  %v11867_v13 = vld [vmem:[#allocation24 + $0xa8] sm:$0xff] }
 0xdd9   :  { %13113 = vst [vmem:[#allocation129_spill] sm:$0xff] %v11863_v57  ;;  %13114 = vst [vmem:[#allocation130_spill] sm:$0xff] %v11867_v13  ;;  %v5644_v53 = vmul.f32 %v11867_v13, %v11867_v13 }
 0xddb   :  { %v11716_v20 = vpop.xlane.xlu1 %5457  ;;  %v5460_v50 = vpop.xlane.xlu0 %5459 }
 0xddc   :  { %13084 = vst [vmem:[#allocation109_spill] sm:$0xff] %v11716_v20  ;;  %v5493_v41 = vmax.f32 %v5460_v50, 1e-24  ;;  %v5641_v20 = vmul.f32 %v11863_v57, %v11863_v57  ;;  %v11879_v57 = vld [vmem:[#allocation24 + $0xb0] sm:$0xff] }
 0xddd   :  { %13117 = vst [vmem:[#allocation131_spill] sm:$0xff] %v11879_v57 }
 0xdde   :  { %7892 = vrsqrt.f32 %v5493_v41  ;;  %v8497_v41 = vld [vmem:[#allocation24 + $0x8] sm:$0xff] }
 0xddf   :  { %v5462_v0 = vpop.xlane.xlu1 %5461  ;;  %v5656_v59 = vpop.xlane.xlu0 %5655 }
 0xde0   :  { %v5494_v27 = vmax.f32 %v5462_v0, 1e-24  ;;  %v5719_v63 = vmax.f32 %v5656_v59, 1e-24  ;;  %v8498_v59 = vld [vmem:[#allocation24 + $0x10] sm:$0xff] }
 0xde2   :  { %7894 = vrsqrt.f32 %v5494_v27 }
 0xde3   :  { %7896 = vrsqrt.f32 %v5719_v63  ;;  %v5658_v54 = vpop.xlane.xlu1 %5657  ;;  %v5660_v12 = vpop.xlane.xlu0 %5659 }
 0xde4   :  { %v5720_v32 = vmax.f32 %v5658_v54, 1e-24  ;;  %v5721_v60 = vmax.f32 %v5660_v12, 1e-24 }
 0xde6   :  { %7898 = vrsqrt.f32 %v5720_v32 }
 0xde7   :  { %7900 = vrsqrt.f32 %v5721_v60  ;;  %v5662_v18 = vpop.xlane.xlu1 %5661  ;;  %v5664_v55 = vpop.xlane.xlu0 %5663 }
 0xde8   :  { %v5722_v3 = vmax.f32 %v5662_v18, 1e-24  ;;  %v5723_v17 = vmax.f32 %v5664_v55, 1e-24  ;;  %v7893_v31 = vpop.eup %7892  ;;  %v8499_v55 = vld [vmem:[#allocation24 + $0x18] sm:$0xff] }
 0xde9   :  { %v11718_v38 = vmul.f32 %v8494_v11, %v7893_v31 }
 0xdea   :  { %7902 = vrsqrt.f32 %v5722_v3 }
 0xdeb   :  { %13085 = vst [vmem:[#allocation110_spill] sm:$0xff] %v11718_v38  ;;  %7904 = vrsqrt.f32 %v5723_v17  ;;  %v5666_v14 = vpop.xlane.xlu1 %5665  ;;  %v5668_v28 = vpop.xlane.xlu0 %5667  ;;  %v8500_v17 = vld [vmem:[#allocation24 + $0x20] sm:$0xff] }
 0xdec   :  { %v7895_v61 = vpop.eup %7894  ;;  %v5724_v33 = vmax.f32 %v5666_v14, 1e-24  ;;  %v5725_v51 = vmax.f32 %v5668_v28, 1e-24 }
 0xded   :  { %v7897_v34 = vpop.eup %7896  ;;  %v11720_v25 = vmul.f32 %v8495_v45, %v7895_v61 }
 0xdee   :  { %v11722_v58 = vmul.f32 %v8496_v4, %v7897_v34  ;;  %7906 = vrsqrt.f32 %v5724_v33  ;;  %v8501_v34 = vld [vmem:[#allocation24 + $0x28] sm:$0xff]  ;;  %v8502_v4 = vld [vmem:[#allocation24 + $0x30] sm:$0xff] }
 0xdef   :  { %13086 = vst [vmem:[#allocation111_spill] sm:$0xff] %v11720_v25  ;;  %7908 = vrsqrt.f32 %v5725_v51  ;;  %v5670_v40 = vpop.xlane.xlu1 %5669  ;;  %v5672_v6 = vpop.xlane.xlu0 %5671 }
 0xdf0   :  { %13087 = vst [vmem:[#allocation112_spill] sm:$0xff] %v11722_v58  ;;  %v7899_v2 = vpop.eup %7898  ;;  %v5726_v30 = vmax.f32 %v5670_v40, 1e-24  ;;  %v5727_v16 = vmax.f32 %v5672_v6, 1e-24 }
 0xdf1   :  { %v7901_v50 = vpop.eup %7900  ;;  %v11724_v0 = vmul.f32 %v8497_v41, %v7899_v2 }
 0xdf2   :  { %v11726_v27 = vmul.f32 %v8498_v59, %v7901_v50  ;;  %7910 = vrsqrt.f32 %v5726_v30  ;;  %v13094_v59 = vld [vmem:[#allocation93_spill] sm:$0xff] }
 0xdf3   :  { %13088 = vst [vmem:[#allocation113_spill] sm:$0xff] %v11724_v0  ;;  %7912 = vrsqrt.f32 %v5727_v16  ;;  %v5674_v63 = vpop.xlane.xlu1 %5673  ;;  %v5676_v54 = vpop.xlane.xlu0 %5675  ;;  %v11859_v0 = vld [vmem:[#allocation24 + $0x98] sm:$0xff] }
 0xdf4   :  { %13089 = vst [vmem:[#allocation114_spill] sm:$0xff] %v11726_v27  ;;  %v7903_v12 = vpop.eup %7902  ;;  %v5728_v32 = vmax.f32 %v5674_v63, 1e-24  ;;  %v5729_v60 = vmax.f32 %v5676_v54, 1e-24  ;;  %v13096_v54 = vld [vmem:[#allocation56_spill] sm:$0xff]  ;;  %v5642_v58 = vmul.f32 %v11859_v0, %v11859_v0 }
 0xdf5   :  { %v7905_v18 = vpop.eup %7904  ;;  %v11728_v3 = vmul.f32 %v8499_v55, %v7903_v12  ;;  %13112 = vst [vmem:[#allocation128_spill] sm:$0xff] %v11859_v0  ;;  %v11875_v0 = vld [vmem:[#allocation24 + $0xb8] sm:$0xff] }
 0xdf6   :  { %v11730_v31 = vmul.f32 %v8500_v17, %v7905_v18  ;;  %7914 = vrsqrt.f32 %v5728_v32  ;;  %v13098_v17 = vld [vmem:[#allocation94_spill] sm:$0xff]  ;;  %13116 = vst [vmem:[#allocation68_spill] sm:$0xff] %v11875_v0  ;;  %v5646_v43 = vmul.f32 %v11875_v0, %v11875_v0 }
 0xdf7   :  { %13090 = vst [vmem:[#allocation115_spill] sm:$0xff] %v11728_v3  ;;  %7916 = vrsqrt.f32 %v5729_v60  ;;  %v5678_v11 = vpop.xlane.xlu1 %5677  ;;  %v5680_v14 = vpop.xlane.xlu0 %5679 }
 0xdf8   :  { %13091 = vst [vmem:[#allocation116_spill] sm:$0xff] %v11730_v31  ;;  %v7907_v28 = vpop.eup %7906  ;;  %v5730_v61 = vmax.f32 %v5678_v11, 1e-24  ;;  %v5731_v33 = vmax.f32 %v5680_v14, 1e-24  ;;  %v13100_v14 = vld [vmem:[#allocation55_spill] sm:$0xff] }
 0xdf9   :  { %v7909_v51 = vpop.eup %7908  ;;  %v11732_v45 = vmul.f32 %v8501_v34, %v7907_v28 }
 0xdfa   :  { %v11734_v40 = vmul.f32 %v8502_v4, %v7909_v51  ;;  %7918 = vrsqrt.f32 %v5730_v61  ;;  %v13102_v51 = vld [vmem:[#allocation95_spill] sm:$0xff]  ;;  %v13104_v4 = vld [vmem:[#allocation61_spill] sm:$0xff] }
 0xdfb   :  { %13092 = vst [vmem:[#allocation117_spill] sm:$0xff] %v11732_v45  ;;  %7920 = vrsqrt.f32 %v5731_v33  ;;  %v5682_v6 = vpop.xlane.xlu1 %5681  ;;  %v5684_v2 = vpop.xlane.xlu0 %5683 }
 0xdfc   :  { %13093 = vst [vmem:[#allocation118_spill] sm:$0xff] %v11734_v40  ;;  %v7911_v30 = vpop.eup %7910  ;;  %v5732_v16 = vmax.f32 %v5682_v6, 1e-24  ;;  %v5733_v50 = vmax.f32 %v5684_v2, 1e-24 }
 0xdfd   :  { %v7913_v41 = vpop.eup %7912  ;;  %v11737_v63 = vmul.f32 %v13094_v59, %v7911_v30 }
 0xdfe   :  { %v11740_v12 = vmul.f32 %v13096_v54, %v7913_v41  ;;  %7922 = vrsqrt.f32 %v5732_v16  ;;  %v13106_v16 = vld [vmem:[#allocation96_spill] sm:$0xff]  ;;  %v13108_v41 = vld [vmem:[#allocation59_spill] sm:$0xff] }
 0xdff   :  { %13095 = vst [vmem:[#allocation119_spill] sm:$0xff] %v11737_v63  ;;  %7924 = vrsqrt.f32 %v5733_v50  ;;  %v5686_v32 = vpop.xlane.xlu1 %5685 }
 0xe00   :  { %13097 = vst [vmem:[#allocation120_spill] sm:$0xff] %v11740_v12  ;;  %v7915_v60 = vpop.eup %7914  ;;  %v5734_v18 = vmax.f32 %v5686_v32, 1e-24  ;;  %v13110_v32 = vld [vmem:[#allocation97_spill] sm:$0xff] }
 0xe01   :  { %v7917_v55 = vpop.eup %7916  ;;  %v11743_v11 = vmul.f32 %v13098_v17, %v7915_v60 }
 0xe02   :  { %v11746_v28 = vmul.f32 %v13100_v14, %v7917_v55  ;;  %7926 = vrsqrt.f32 %v5734_v18 }
 0xe03   :  { %13099 = vst [vmem:[#allocation121_spill] sm:$0xff] %v11743_v11 }
 0xe04   :  { %13101 = vst [vmem:[#allocation122_spill] sm:$0xff] %v11746_v28  ;;  %v7919_v61 = vpop.eup %7918 }
 0xe05   :  { %v7921_v33 = vpop.eup %7920  ;;  %v11749_v34 = vmul.f32 %v13102_v51, %v7919_v61 }
 0xe06   :  { %v11752_v6 = vmul.f32 %v13104_v4, %v7921_v33 }
 0xe07   :  { %13103 = vst [vmem:[#allocation123_spill] sm:$0xff] %v11749_v34 }
 0xe08   :  { %13105 = vst [vmem:[#allocation124_spill] sm:$0xff] %v11752_v6  ;;  %v7923_v2 = vpop.eup %7922 }
 0xe09   :  { %v7925_v30 = vpop.eup %7924  ;;  %v11755_v50 = vmul.f32 %v13106_v16, %v7923_v2 }
 0xe0a   :  { %v11758_v59 = vmul.f32 %v13108_v41, %v7925_v30 }
 0xe0b   :  { %13107 = vst [vmem:[#allocation125_spill] sm:$0xff] %v11755_v50 }
 0xe0c   :  { %13109 = vst [vmem:[#allocation126_spill] sm:$0xff] %v11758_v59  ;;  %v7927_v54 = vpop.eup %7926 }
 0xe0d   :  { %v11761_v60 = vmul.f32 %v13110_v32, %v7927_v54 }
 0xe0f   :  { %13111 = vst [vmem:[#allocation127_spill] sm:$0xff] %v11761_v60 }
 0xe26   :  { %v11763_v18 = vpop.f32.mrb[0].mxu0  ;;  %v11765_v55 = vpop.f32.mrb[0].mxu1 }
 0xe27   :  { %4713 = vmax.xlane.f32.xlu1 %v11763_v18  ;;  %v11768_v17 = vpop.f32.mrb[1].mxu0  ;;  %v11770_v14 = vpop.f32.mrb[1].mxu1 }
 0xe28   :  { %4711 = vmax.xlane.f32.xlu0 %v11768_v17 }
 0xe2a   :  { %v11773_v61 = vpop.f32.mrb[2].mxu0  ;;  %v11775_v33 = vpop.f32.mrb[2].mxu1 }
 0xe2b   :  { %4729 = vmax.xlane.f32.xlu1 %v11765_v55  ;;  %v11778_v51 = vpop.f32.mrb[3].mxu0  ;;  %v11780_v4 = vpop.f32.mrb[3].mxu1 }
 0xe2c   :  { %4727 = vmax.xlane.f32.xlu0 %v11770_v14 }
 0xe2e   :  { %v11783_v2 = vpop.f32.mrb[4].mxu0  ;;  %v11785_v30 = vpop.f32.mrb[4].mxu1 }
 0xe2f   :  { %4717 = vmax.xlane.f32.xlu1 %v11773_v61  ;;  %v11788_v16 = vpop.f32.mrb[5].mxu0  ;;  %v11790_v41 = vpop.f32.mrb[5].mxu1 }
 0xe30   :  { %4715 = vmax.xlane.f32.xlu0 %v11778_v51 }
 0xe32   :  { %v11793_v54 = vpop.f32.mrb[6].mxu0  ;;  %v11795_v32 = vpop.f32.mrb[6].mxu1 }
 0xe33   :  { %4733 = vmax.xlane.f32.xlu1 %v11775_v33  ;;  %v11798_v38 = vpop.f32.mrb[7].mxu0  ;;  %v11800_v25 = vpop.f32.mrb[7].mxu1 }
 0xe34   :  { %4731 = vmax.xlane.f32.xlu0 %v11780_v4 }
 0xe36   :  { %v11803_v29 = vpop.f32.mrb[8].mxu1 }
 0xe37   :  { %4721 = vmax.xlane.f32.xlu1 %v11783_v2  ;;  %v11806_v60 = vpop.f32.mrb[9].mxu1 }
 0xe38   :  { %4719 = vmax.xlane.f32.xlu0 %v11788_v16 }
 0xe3a   :  { %v11809_v22 = vpop.f32.mrb[10].mxu1 }
 0xe3b   :  { %4737 = vmax.xlane.f32.xlu1 %v11785_v30  ;;  %v11812_v59 = vpop.f32.mrb[11].mxu1 }
 0xe3c   :  { %4735 = vmax.xlane.f32.xlu0 %v11790_v41 }
 0xe3e   :  { %v11815_v50 = vpop.f32.mrb[12].mxu1 }
 0xe3f   :  { %4725 = vmax.xlane.f32.xlu1 %v11793_v54  ;;  %v11818_v6 = vpop.f32.mrb[13].mxu1 }
 0xe40   :  { %4723 = vmax.xlane.f32.xlu0 %v11798_v38 }
 0xe42   :  { %v11821_v34 = vpop.f32.mrb[14].mxu1 }
 0xe43   :  { %4741 = vmax.xlane.f32.xlu1 %v11795_v32  ;;  %v11824_v28 = vpop.f32.mrb[15].mxu1 }
 0xe44   :  { %4739 = vmax.xlane.f32.xlu0 %v11800_v25 }
 0xe46   :  { %v11827_v11 = vpop.f32.mrb[16].mxu1 }
 0xe47   :  { %4745 = vmax.xlane.f32.xlu1 %v11803_v29  ;;  %v11830_v12 = vpop.f32.mrb[17].mxu1 }
 0xe48   :  { %4743 = vmax.xlane.f32.xlu0 %v11806_v60 }
 0xe4a   :  { %v11833_v63 = vpop.f32.mrb[18].mxu1 }
 0xe4b   :  { %4749 = vmax.xlane.f32.xlu1 %v11809_v22  ;;  %v11836_v40 = vpop.f32.mrb[19].mxu1 }
 0xe4c   :  { %4747 = vmax.xlane.f32.xlu0 %v11812_v59 }
 0xe4e   :  { %v11839_v45 = vpop.f32.mrb[20].mxu1 }
 0xe4f   :  { %4753 = vmax.xlane.f32.xlu1 %v11815_v50  ;;  %v11842_v31 = vpop.f32.mrb[21].mxu1 }
 0xe50   :  { %4751 = vmax.xlane.f32.xlu0 %v11818_v6 }
 0xe52   :  { %v11845_v3 = vpop.f32.mrb[22].mxu1 }
 0xe53   :  { %4757 = vmax.xlane.f32.xlu1 %v11821_v34  ;;  %v11848_v27 = vpop.f32.mrb[23].mxu1 }
 0xe54   :  { %4755 = vmax.xlane.f32.xlu0 %v11824_v28 }
 0xe57   :  { %4761 = vmax.xlane.f32.xlu1 %v11827_v11 }
 0xe58   :  { %4759 = vmax.xlane.f32.xlu0 %v11830_v12 }
 0xe5b   :  { %4765 = vmax.xlane.f32.xlu1 %v11833_v63 }
 0xe5c   :  { %4763 = vmax.xlane.f32.xlu0 %v11836_v40 }
 0xe5f   :  { %4769 = vmax.xlane.f32.xlu1 %v11839_v45 }
 0xe60   :  { %4767 = vmax.xlane.f32.xlu0 %v11842_v31 }
 0xe63   :  { %4773 = vmax.xlane.f32.xlu1 %v11845_v3 }
 0xe64   :  { %4771 = vmax.xlane.f32.xlu0 %v11848_v27 }
 0xe67   :  { %5693 = vadd.xlane.f32.xlu1 %v5642_v58  ;;  %v11883_v58 = vld [vmem:[#allocation24 + $0xc8] sm:$0xff] }
 0xe68   :  { %5691 = vadd.xlane.f32.xlu0 %v5641_v20  ;;  %v5645_v20 = vmul.f32 %v11879_v57, %v11879_v57  ;;  %13118 = vst [vmem:[#allocation69_spill] sm:$0xff] %v11883_v58  ;;  %v5648_v13 = vmul.f32 %v11883_v58, %v11883_v58  ;;  %v11895_v57 = vld [vmem:[#allocation24 + $0xd0] sm:$0xff] }
 0xe69   :  { %13121 = vst [vmem:[#allocation70_spill] sm:$0xff] %v11895_v57 }
 0xe6b   :  { %5697 = vadd.xlane.f32.xlu1 %v5644_v53  ;;  %v11891_v53 = vld [vmem:[#allocation24 + $0xd8] sm:$0xff] }
 0xe6c   :  { %5695 = vadd.xlane.f32.xlu0 %v5643_v47  ;;  %v5647_v47 = vmul.f32 %v11887_v37, %v11887_v37  ;;  %13120 = vst [vmem:[#allocation133_spill] sm:$0xff] %v11891_v53  ;;  %v5650_v0 = vmul.f32 %v11891_v53, %v11891_v53  ;;  %v11903_v37 = vld [vmem:[#allocation24 + $0xe0] sm:$0xff]  ;;  %v11909_v53 = vpop.xlane.xlu0 %5687 }
 0xe6d   :  { %13123 = vst [vmem:[#allocation72_spill] sm:$0xff] %v11903_v37  ;;  %13125 = vst [vmem:[#allocation73_spill] sm:$0xff] %v11909_v53 }
 0xe6f   :  { %5701 = vadd.xlane.f32.xlu1 %v5646_v43  ;;  %v5649_v43 = vmul.f32 %v11895_v57, %v11895_v57 }
 0xe70   :  { %5699 = vadd.xlane.f32.xlu0 %v5645_v20  ;;  %v11899_v20 = vld [vmem:[#allocation24 + $0xe8] sm:$0xff] }
 0xe71   :  { %13122 = vst [vmem:[#allocation71_spill] sm:$0xff] %v11899_v20  ;;  %v5652_v58 = vmul.f32 %v11899_v20, %v11899_v20 }
 0xe73   :  { %5705 = vadd.xlane.f32.xlu1 %v5648_v13  ;;  %v5651_v13 = vmul.f32 %v11903_v37, %v11903_v37 }
 0xe74   :  { %5703 = vadd.xlane.f32.xlu0 %v5647_v47  ;;  %v11907_v47 = vpop.xlane.xlu1 %5689 }
 0xe75   :  { %13124 = vst [vmem:[#allocation134_spill] sm:$0xff] %v11907_v47 }
 0xe77   :  { %5709 = vadd.xlane.f32.xlu1 %v5650_v0 }
 0xe78   :  { %5707 = vadd.xlane.f32.xlu0 %v5649_v43 }
 0xe7b   :  { %5713 = vadd.xlane.f32.xlu1 %v5652_v58 }
 0xe7c   :  { %5711 = vadd.xlane.f32.xlu0 %v5651_v13 }
 0xeb4   :  { %v4714_v39 = vpop.xlane.xlu1 %4713 }
 0xeb5   :  { %v4776_v0 = vsub.f32 %v11763_v18, %v4714_v39  ;;  %v4712_v43 = vpop.xlane.xlu0 %4711 }
 0xeb6   :  { %v4775_v57 = vsub.f32 %v11768_v17, %v4712_v43 }
 0xeb7   :  { %v4809_v62 = vmul.f32 1.442695, %v4776_v0 }
 0xeb8   :  { %v4807_v35 = vmul.f32 1.442695, %v4775_v57  ;;  %v4730_v20 = vpop.xlane.xlu1 %4729 }
 0xeb9   :  { %7928 = vpow2.f32 %v4809_v62  ;;  %v4784_v42 = vsub.f32 %v11765_v55, %v4730_v20  ;;  %v4728_v24 = vpop.xlane.xlu0 %4727 }
 0xeba   :  { %7930 = vpow2.f32 %v4807_v35  ;;  %v4783_v58 = vsub.f32 %v11770_v14, %v4728_v24 }
 0xebb   :  { %v4825_v13 = vmul.f32 1.442695, %v4784_v42 }
 0xebc   :  { %v4823_v37 = vmul.f32 1.442695, %v4783_v58  ;;  %v4718_v47 = vpop.xlane.xlu1 %4717 }
 0xebd   :  { %7932 = vpow2.f32 %v4825_v13  ;;  %v4778_v53 = vsub.f32 %v11773_v61, %v4718_v47  ;;  %v4716_v39 = vpop.xlane.xlu0 %4715 }
 0xebe   :  { %7934 = vpow2.f32 %v4823_v37  ;;  %v4777_v18 = vsub.f32 %v11778_v51, %v4716_v39 }
 0xebf   :  { %v4813_v17 = vmul.f32 1.442695, %v4778_v53 }
 0xec0   :  { %v4811_v57 = vmul.f32 1.442695, %v4777_v18  ;;  %v4734_v0 = vpop.xlane.xlu1 %4733 }
 0xec1   :  { %7936 = vpow2.f32 %v4813_v17  ;;  %v4786_v62 = vsub.f32 %v11775_v33, %v4734_v0  ;;  %v4732_v55 = vpop.xlane.xlu0 %4731 }
 0xec2   :  { %7938 = vpow2.f32 %v4811_v57  ;;  %v4785_v24 = vsub.f32 %v11780_v4, %v4732_v55 }
 0xec3   :  { %v11919_v42 = vpop.eup %7928  ;;  %v4829_v35 = vmul.f32 1.442695, %v4786_v62 }
 0xec4   :  { %v11921_v14 = vpop.eup %7930  ;;  %v4827_v61 = vmul.f32 1.442695, %v4785_v24  ;;  %v4722_v20 = vpop.xlane.xlu1 %4721  ;;  %4873 = vadd.xlane.f32.xlu1 %v11919_v42 }
 0xec5   :  { %7940 = vpow2.f32 %v4829_v35  ;;  %v4780_v37 = vsub.f32 %v11783_v2, %v4722_v20  ;;  %4871 = vadd.xlane.f32.xlu0 %v11921_v14  ;;  %v4720_v51 = vpop.xlane.xlu0 %4719 }
 0xec6   :  { %7942 = vpow2.f32 %v4827_v61  ;;  %v4779_v33 = vsub.f32 %v11788_v16, %v4720_v51 }
 0xec7   :  { %v11927_v53 = vpop.eup %7932  ;;  %v4817_v4 = vmul.f32 1.442695, %v4780_v37 }
 0xec8   :  { %v11929_v47 = vpop.eup %7934  ;;  %v4815_v43 = vmul.f32 1.442695, %v4779_v33  ;;  %v4738_v58 = vpop.xlane.xlu1 %4737  ;;  %4889 = vadd.xlane.f32.xlu1 %v11927_v53 }
 0xec9   :  { %7944 = vpow2.f32 %v4817_v4  ;;  %v4788_v13 = vsub.f32 %v11785_v30, %v4738_v58  ;;  %4887 = vadd.xlane.f32.xlu0 %v11929_v47  ;;  %v4736_v2 = vpop.xlane.xlu0 %4735 }
 0xeca   :  { %7946 = vpow2.f32 %v4815_v43  ;;  %v4787_v39 = vsub.f32 %v11790_v41, %v4736_v2 }
 0xecb   :  { %v11935_v18 = vpop.eup %7936  ;;  %v4833_v16 = vmul.f32 1.442695, %v4788_v13 }
 0xecc   :  { %v11937_v17 = vpop.eup %7938  ;;  %v4831_v57 = vmul.f32 1.442695, %v4787_v39  ;;  %4877 = vadd.xlane.f32.xlu1 %v11935_v18  ;;  %v4726_v0 = vpop.xlane.xlu1 %4725 }
 0xecd   :  { %7948 = vpow2.f32 %v4833_v16  ;;  %v4782_v62 = vsub.f32 %v11793_v54, %v4726_v0  ;;  %4875 = vadd.xlane.f32.xlu0 %v11937_v17  ;;  %v4724_v30 = vpop.xlane.xlu0 %4723 }
 0xece   :  { %7950 = vpow2.f32 %v4831_v57  ;;  %v4781_v55 = vsub.f32 %v11798_v38, %v4724_v30 }
 0xecf   :  { %v11943_v24 = vpop.eup %7940  ;;  %v4821_v41 = vmul.f32 1.442695, %v4782_v62 }
 0xed0   :  { %v11945_v35 = vpop.eup %7942  ;;  %v4819_v61 = vmul.f32 1.442695, %v4781_v55  ;;  %4893 = vadd.xlane.f32.xlu1 %v11943_v24  ;;  %v4742_v20 = vpop.xlane.xlu1 %4741 }
 0xed1   :  { %7952 = vpow2.f32 %v4821_v41  ;;  %v4790_v37 = vsub.f32 %v11795_v32, %v4742_v20  ;;  %4891 = vadd.xlane.f32.xlu0 %v11945_v35  ;;  %v4740_v54 = vpop.xlane.xlu0 %4739 }
 0xed2   :  { %7954 = vpow2.f32 %v4819_v61  ;;  %v4789_v51 = vsub.f32 %v11800_v25, %v4740_v54 }
 0xed3   :  { %v11951_v33 = vpop.eup %7944  ;;  %v4837_v38 = vmul.f32 1.442695, %v4790_v37 }
 0xed4   :  { %v11953_v4 = vpop.eup %7946  ;;  %v4835_v43 = vmul.f32 1.442695, %v4789_v51  ;;  %4881 = vadd.xlane.f32.xlu1 %v11951_v33  ;;  %v4746_v58 = vpop.xlane.xlu1 %4745 }
 0xed5   :  { %7956 = vpow2.f32 %v4837_v38  ;;  %v4792_v13 = vsub.f32 %v11803_v29, %v4746_v58  ;;  %4879 = vadd.xlane.f32.xlu0 %v11953_v4  ;;  %v4744_v32 = vpop.xlane.xlu0 %4743 }
 0xed6   :  { %7958 = vpow2.f32 %v4835_v43  ;;  %v4791_v2 = vsub.f32 %v11806_v60, %v4744_v32 }
 0xed7   :  { %v11959_v39 = vpop.eup %7948  ;;  %v4841_v25 = vmul.f32 1.442695, %v4792_v13 }
 0xed8   :  { %v11961_v16 = vpop.eup %7950  ;;  %v4839_v57 = vmul.f32 1.442695, %v4791_v2  ;;  %4897 = vadd.xlane.f32.xlu1 %v11959_v39  ;;  %v4750_v0 = vpop.xlane.xlu1 %4749 }
 0xed9   :  { %7960 = vpow2.f32 %v4841_v25  ;;  %v4794_v62 = vsub.f32 %v11809_v22, %v4750_v0  ;;  %4895 = vadd.xlane.f32.xlu0 %v11961_v16  ;;  %v4748_v29 = vpop.xlane.xlu0 %4747 }
 0xeda   :  { %7962 = vpow2.f32 %v4839_v57  ;;  %v4793_v30 = vsub.f32 %v11812_v59, %v4748_v29 }
 0xedb   :  { %v11967_v55 = vpop.eup %7952  ;;  %v4845_v60 = vmul.f32 1.442695, %v4794_v62 }
 0xedc   :  { %v11969_v41 = vpop.eup %7954  ;;  %v4843_v61 = vmul.f32 1.442695, %v4793_v30  ;;  %4885 = vadd.xlane.f32.xlu1 %v11967_v55  ;;  %v4754_v20 = vpop.xlane.xlu1 %4753 }
 0xedd   :  { %7964 = vpow2.f32 %v4845_v60  ;;  %v4796_v37 = vsub.f32 %v11815_v50, %v4754_v20  ;;  %4883 = vadd.xlane.f32.xlu0 %v11969_v41  ;;  %v4752_v22 = vpop.xlane.xlu0 %4751 }
 0xede   :  { %7966 = vpow2.f32 %v4843_v61  ;;  %v4795_v54 = vsub.f32 %v11818_v6, %v4752_v22 }
 0xedf   :  { %v11975_v51 = vpop.eup %7956  ;;  %v4849_v59 = vmul.f32 1.442695, %v4796_v37 }
 0xee0   :  { %13126 = vst [vmem:[#allocation135_spill] sm:$0xff] %v11975_v51  ;;  %v11977_v38 = vpop.eup %7958  ;;  %v4847_v43 = vmul.f32 1.442695, %v4795_v54  ;;  %4901 = vadd.xlane.f32.xlu1 %v11975_v51  ;;  %v4758_v58 = vpop.xlane.xlu1 %4757 }
 0xee1   :  { %13127 = vst [vmem:[#allocation136_spill] sm:$0xff] %v11977_v38  ;;  %7968 = vpow2.f32 %v4849_v59  ;;  %v4798_v13 = vsub.f32 %v11821_v34, %v4758_v58  ;;  %4899 = vadd.xlane.f32.xlu0 %v11977_v38  ;;  %v4756_v50 = vpop.xlane.xlu0 %4755 }
 0xee2   :  { %7970 = vpow2.f32 %v4847_v43  ;;  %v4797_v32 = vsub.f32 %v11824_v28, %v4756_v50 }
 0xee3   :  { %v11983_v2 = vpop.eup %7960  ;;  %v4853_v6 = vmul.f32 1.442695, %v4798_v13 }
 0xee4   :  { %13128 = vst [vmem:[#allocation74_spill] sm:$0xff] %v11983_v2  ;;  %v11985_v25 = vpop.eup %7962  ;;  %v4851_v57 = vmul.f32 1.442695, %v4797_v32  ;;  %4905 = vadd.xlane.f32.xlu1 %v11983_v2  ;;  %v4762_v0 = vpop.xlane.xlu1 %4761 }
 0xee5   :  { %13129 = vst [vmem:[#allocation137_spill] sm:$0xff] %v11985_v25  ;;  %7972 = vpow2.f32 %v4853_v6  ;;  %v4800_v62 = vsub.f32 %v11827_v11, %v4762_v0  ;;  %4903 = vadd.xlane.f32.xlu0 %v11985_v25  ;;  %v4760_v34 = vpop.xlane.xlu0 %4759 }
 0xee6   :  { %7974 = vpow2.f32 %v4851_v57  ;;  %v4799_v29 = vsub.f32 %v11830_v12, %v4760_v34 }
 0xee7   :  { %v11991_v30 = vpop.eup %7964  ;;  %v4857_v28 = vmul.f32 1.442695, %v4800_v62 }
 0xee8   :  { %13130 = vst [vmem:[#allocation75_spill] sm:$0xff] %v11991_v30  ;;  %v11993_v60 = vpop.eup %7966  ;;  %v4855_v61 = vmul.f32 1.442695, %v4799_v29  ;;  %4909 = vadd.xlane.f32.xlu1 %v11991_v30  ;;  %v4766_v20 = vpop.xlane.xlu1 %4765 }
 0xee9   :  { %13131 = vst [vmem:[#allocation138_spill] sm:$0xff] %v11993_v60  ;;  %7976 = vpow2.f32 %v4857_v28  ;;  %v4802_v37 = vsub.f32 %v11833_v63, %v4766_v20  ;;  %4907 = vadd.xlane.f32.xlu0 %v11993_v60  ;;  %v4764_v11 = vpop.xlane.xlu0 %4763 }
 0xeea   :  { %7978 = vpow2.f32 %v4855_v61  ;;  %v4801_v22 = vsub.f32 %v11836_v40, %v4764_v11 }
 0xeeb   :  { %v11999_v54 = vpop.eup %7968  ;;  %v4861_v12 = vmul.f32 1.442695, %v4802_v37 }
 0xeec   :  { %13132 = vst [vmem:[#allocation76_spill] sm:$0xff] %v11999_v54  ;;  %v12001_v59 = vpop.eup %7970  ;;  %v4859_v43 = vmul.f32 1.442695, %v4801_v22  ;;  %4913 = vadd.xlane.f32.xlu1 %v11999_v54  ;;  %v4770_v58 = vpop.xlane.xlu1 %4769 }
 0xeed   :  { %13133 = vst [vmem:[#allocation77_spill] sm:$0xff] %v12001_v59  ;;  %7980 = vpow2.f32 %v4861_v12  ;;  %v4804_v13 = vsub.f32 %v11839_v45, %v4770_v58  ;;  %4911 = vadd.xlane.f32.xlu0 %v12001_v59  ;;  %v4768_v63 = vpop.xlane.xlu0 %4767  ;;  %v12039_v12 = vld [vmem:[#allocation24 + $0xf8] sm:$0xff]  ;;  %v12043_v58 = vld [vmem:[#allocation24 + $0xf0] sm:$0xff] }
 0xeee   :  { %7982 = vpow2.f32 %v4859_v43  ;;  %v4803_v50 = vsub.f32 %v11842_v31, %v4768_v63  ;;  %13144 = vst [vmem:[#allocation91_spill] sm:$0xff] %v12039_v12  ;;  %v5654_v43 = vmul.f32 %v12039_v12, %v12039_v12  ;;  %13145 = vst [vmem:[#allocation52_spill] sm:$0xff] %v12043_v58 }
 0xeef   :  { %v12007_v32 = vpop.eup %7972  ;;  %v4865_v40 = vmul.f32 1.442695, %v4804_v13  ;;  %v5653_v13 = vmul.f32 %v12043_v58, %v12043_v58 }
 0xef0   :  { %13134 = vst [vmem:[#allocation78_spill] sm:$0xff] %v12007_v32  ;;  %v12009_v6 = vpop.eup %7974  ;;  %v4863_v57 = vmul.f32 1.442695, %v4803_v50  ;;  %4917 = vadd.xlane.f32.xlu1 %v12007_v32  ;;  %v4774_v0 = vpop.xlane.xlu1 %4773 }
 0xef1   :  { %13135 = vst [vmem:[#allocation79_spill] sm:$0xff] %v12009_v6  ;;  %7984 = vpow2.f32 %v4865_v40  ;;  %v4806_v62 = vsub.f32 %v11845_v3, %v4774_v0  ;;  %4915 = vadd.xlane.f32.xlu0 %v12009_v6  ;;  %v4772_v45 = vpop.xlane.xlu0 %4771 }
 0xef2   :  { %7986 = vpow2.f32 %v4863_v57  ;;  %v4805_v34 = vsub.f32 %v11848_v27, %v4772_v45 }
 0xef3   :  { %v12015_v29 = vpop.eup %7976  ;;  %v4869_v31 = vmul.f32 1.442695, %v4806_v62 }
 0xef4   :  { %13136 = vst [vmem:[#allocation139_spill] sm:$0xff] %v12015_v29  ;;  %v12017_v28 = vpop.eup %7978  ;;  %v4867_v61 = vmul.f32 1.442695, %v4805_v34  ;;  %4921 = vadd.xlane.f32.xlu1 %v12015_v29 }
 0xef5   :  { %13137 = vst [vmem:[#allocation140_spill] sm:$0xff] %v12017_v28  ;;  %7988 = vpow2.f32 %v4869_v31  ;;  %4919 = vadd.xlane.f32.xlu0 %v12017_v28 }
 0xef6   :  { %7990 = vpow2.f32 %v4867_v61 }
 0xef7   :  { %v12021_v20 = vpop.eup %7980 }
 0xef8   :  { %13138 = vst [vmem:[#allocation141_spill] sm:$0xff] %v12021_v20  ;;  %v12023_v3 = vpop.eup %7982  ;;  %4925 = vadd.xlane.f32.xlu1 %v12021_v20 }
 0xef9   :  { %13139 = vst [vmem:[#allocation142_spill] sm:$0xff] %v12023_v3  ;;  %4923 = vadd.xlane.f32.xlu0 %v12023_v3 }
 0xefb   :  { %v12027_v27 = vpop.eup %7984 }
 0xefc   :  { %13140 = vst [vmem:[#allocation80_spill] sm:$0xff] %v12027_v27  ;;  %v12029_v37 = vpop.eup %7986  ;;  %4929 = vadd.xlane.f32.xlu1 %v12027_v27 }
 0xefd   :  { %13141 = vst [vmem:[#allocation81_spill] sm:$0xff] %v12029_v37  ;;  %4927 = vadd.xlane.f32.xlu0 %v12029_v37 }
 0xeff   :  { %v12033_v11 = vpop.eup %7988 }
 0xf00   :  { %13142 = vst [vmem:[#allocation82_spill] sm:$0xff] %v12033_v11  ;;  %v12035_v22 = vpop.eup %7990  ;;  %4933 = vadd.xlane.f32.xlu1 %v12033_v11 }
 0xf01   :  { %13143 = vst [vmem:[#allocation51_spill] sm:$0xff] %v12035_v22  ;;  %4931 = vadd.xlane.f32.xlu0 %v12035_v22 }
 0xf04   :  { %5717 = vadd.xlane.f32.xlu1 %v5654_v43 }
 0xf05   :  { %5715 = vadd.xlane.f32.xlu0 %v5653_v13 }
 0xf06   :  { %8800 = shalt.err (!%p8797_p8)
}
 0xf07   :  { %s8801_s25 = scalar_lea.hbm %s12479_s16, 4096 }
 0xf08   :  { %p8802_p9 = scmp.ne.s32.totalorder %s12479_s16, %s8801_s25  ;;  %p8805_p10 = scmp.lt.u32.totalorder %s8801_s25, %s12479_s16 }
 0xf0a   :  { %p8807_p11 = pnand %p8805_p10, %p8802_p9 }
 0xf0c   :  { %8810 = shalt.err (!%p8807_p11)
}
 0xf0d   :  { %5958 = dma.vmem_to_hbm [thread:$0]  %s5953_s29, 4096, %s12479_s16, [#allocation25], %s8942_s23, %s8942_s23, %s8943_s24   ;;  %v5463_v63 = vmax.f32 %v11650_v15, 1e-24  ;;  %v5464_v50 = vmax.f32 %v11653_v49, 1e-24 }
 0xf0e   :  { %s8959_s9 = smov [#allocation20]  }
 0xf0f   :  { %s5916_s27 = sshll.u32 %s8959_s9, 4  ;;  %s5917_s27 = int_to_ptr.vmem [resolvable:$true] %s5916_s27 }
 0xf10   :  { %s8811_s7 = scalar_lea.vmem %s5917_s27, 2048  ;;  %p8816_p13 = scmp.lt.s32.totalorder %s5917_s27, %s5917_s27 }
 0xf11   :  { %p8812_p12 = scmp.ne.s32.totalorder %s5917_s27, %s8811_s7  ;;  %p8817_p0 = scmp.lt.s32.totalorder %s8811_s7, %s8811_s7 }
 0xf13   :  { %p8818_p1 = por %p8817_p0, %p8816_p13 }
 0xf15   :  { %p8819_p2 = pnand %p8818_p1, %p8812_p12 }
 0xf17   :  { %8822 = shalt.err (!%p8819_p2)
}
 0xf18   :  { %s8823_s19 = scalar_lea.hbm %s12476_s13, 2048 }
 0xf19   :  { %p8824_p3 = scmp.ne.s32.totalorder %s12476_s13, %s8823_s19  ;;  %p8827_p4 = scmp.lt.u32.totalorder %s8823_s19, %s12476_s13 }
 0xf1b   :  { %p8829_p5 = pnand %p8827_p4, %p8824_p3 }
 0xf1d   :  { %8832 = shalt.err (!%p8829_p5)
}
 0xf1e   :  { %5922 = dma.vmem_to_hbm [thread:$0]  %s5917_s27, 2048, %s12476_s13, [#allocation4], %s8942_s23, %s8942_s23, %s8943_s24   ;;  %v5465_v15 = vmax.f32 %v11655_v46, 1e-24  ;;  %v5466_v49 = vmax.f32 %v11659_v36, 1e-24  ;;  %v12081_v40 = vpop.xlane.xlu1 %5693  ;;  %7992 = vrsqrt.f32 %v5463_v63  ;;  %v12084_v0 = vpop.xlane.xlu0 %5691 }
 0xf1f   :  { %s8960_s10 = smov [#allocation26]   ;;  %v5467_v57 = vmax.f32 %v11661_v21, 1e-24  ;;  %s8961_s12 = smov [#allocation27]   ;;  %7994 = vrsqrt.f32 %v5464_v50  ;;  %v5468_v62 = vmax.f32 %v11665_v9, 1e-24 }
 0xf20   :  { %s5964_s3 = sshll.u32 %s8960_s10, 4  ;;  %s5976_s29 = sshll.u32 %s8961_s12, 4  ;;  %s5965_s3 = int_to_ptr.vmem [resolvable:$true] %s5964_s3  ;;  %s5977_s29 = int_to_ptr.vmem [resolvable:$true] %s5976_s29 }
 0xf21   :  { %s8833_s13 = scalar_lea.vmem %s5965_s3, 2048  ;;  %p8838_p7 = scmp.lt.s32.totalorder %s5965_s3, %s5965_s3 }
 0xf22   :  { %p8834_p6 = scmp.ne.s32.totalorder %s5965_s3, %s8833_s13  ;;  %p8839_p8 = scmp.lt.s32.totalorder %s8833_s13, %s8833_s13 }
 0xf24   :  { %p8840_p9 = por %p8839_p8, %p8838_p7 }
 0xf26   :  { %p8841_p10 = pnand %p8840_p9, %p8834_p6 }
 0xf28   :  { %8844 = shalt.err (!%p8841_p10)
}
 0xf29   :  { %s8845_s30 = scalar_lea.hbm %s12480_s17, 2048 }
 0xf2a   :  { %p8846_p11 = scmp.ne.s32.totalorder %s12480_s17, %s8845_s30  ;;  %p8849_p12 = scmp.lt.u32.totalorder %s8845_s30, %s12480_s17 }
 0xf2c   :  { %p8851_p13 = pnand %p8849_p12, %p8846_p11 }
 0xf2e   :  { %8854 = shalt.err (!%p8851_p13)
}
 0xf2f   :  { %5970 = dma.vmem_to_hbm [thread:$0]  %s5965_s3, 2048, %s12480_s17, [#allocation25], %s8942_s23, %s8942_s23, %s8943_s24   ;;  %7996 = vrsqrt.f32 %v5465_v15  ;;  %v5469_v46 = vmax.f32 %v11667_v52, 1e-24  ;;  %v5470_v36 = vmax.f32 %v11671_v10, 1e-24 }
 0xf30   :  { %7998 = vrsqrt.f32 %v5466_v49  ;;  %s8855_s14 = scalar_lea.vmem %s5977_s29, 2048  ;;  %p8860_p1 = scmp.lt.s32.totalorder %s5977_s29, %s5977_s29 }
 0xf31   :  { %p8856_p0 = scmp.ne.s32.totalorder %s5977_s29, %s8855_s14  ;;  %p8861_p2 = scmp.lt.s32.totalorder %s8855_s14, %s8855_s14 }
 0xf33   :  { %p8862_p3 = por %p8861_p2, %p8860_p1 }
 0xf35   :  { %p8863_p4 = pnand %p8862_p3, %p8856_p0 }
 0xf37   :  { %8866 = shalt.err (!%p8863_p4)
}
 0xf38   :  { %s8867_s7 = scalar_lea.hbm %s12481_s18, 2048 }
 0xf39   :  { %p8868_p5 = scmp.ne.s32.totalorder %s12481_s18, %s8867_s7  ;;  %p8871_p6 = scmp.lt.u32.totalorder %s8867_s7, %s12481_s18 }
 0xf3b   :  { %p8873_p7 = pnand %p8871_p6, %p8868_p5 }
 0xf3d   :  { %8876 = shalt.err (!%p8873_p7)
}
 0xf3e   :  { %5982 = dma.vmem_to_hbm [thread:$0]  %s5977_s29, 2048, %s12481_s18, [#allocation28], %s8942_s23, %s8942_s23, %s8943_s24   ;;  %8000 = vrsqrt.f32 %v5467_v57  ;;  %v5471_v21 = vmax.f32 %v11673_v23, 1e-24  ;;  %v5472_v9 = vmax.f32 %v11676_v7, 1e-24  ;;  %v12121_v52 = vpop.xlane.xlu1 %5697  ;;  %v12124_v45 = vpop.xlane.xlu0 %5695 }
 0xf3f   :  { %8002 = vrsqrt.f32 %v5468_v62  ;;  %v5473_v10 = vmax.f32 %v11678_v26, 1e-24  ;;  %v5474_v34 = vmax.f32 %v11680_v48, 1e-24  ;;  %v5475_v31 = vmax.f32 %v11682_v56, 1e-24  ;;  %v7993_v23 = vpop.eup %7992 }
 0xf40   :  { %8004 = vrsqrt.f32 %v5469_v46  ;;  %v5476_v61 = vmax.f32 %v11684_v19, 1e-24  ;;  %v5477_v7 = vmax.f32 %v11686_v1, 1e-24  ;;  %v7995_v43 = vpop.eup %7994  ;;  %v5478_v13 = vmax.f32 %v11688_v44, 1e-24 }
 0xf41   :  { %8006 = vrsqrt.f32 %v5470_v36  ;;  %v7997_v63 = vpop.eup %7996  ;;  %v5479_v48 = vmax.f32 %v11690_v5, 1e-24  ;;  %v5480_v19 = vmax.f32 %v11692_v8, 1e-24  ;;  %v13146_v49 = vld [vmem:[#allocation62_spill] sm:$0xff]  ;;  %v13147_v62 = vld [vmem:[#allocation99_spill] sm:$0xff] }
 0xf42   :  { %8008 = vrsqrt.f32 %v5471_v21  ;;  %v12131_v26 = vpop.xlane.xlu1 %5701  ;;  %v12134_v50 = vpop.xlane.xlu0 %5699  ;;  %v5481_v1 = vmax.f32 %v13146_v49, 1e-24  ;;  %v5482_v44 = vmax.f32 %v13147_v62, 1e-24  ;;  %v13148_v36 = vld [vmem:[#allocation100_spill] sm:$0xff]  ;;  %v13149_v5 = vld [vmem:[#allocation101_spill] sm:$0xff] }
 0xf43   :  { %8010 = vrsqrt.f32 %v5472_v9  ;;  %v7999_v56 = vpop.eup %7998  ;;  %v5483_v21 = vmax.f32 %v13148_v36, 1e-24  ;;  %v13150_v8 = vld [vmem:[#allocation102_spill] sm:$0xff]  ;;  %v8519_v29 = vld [vmem:[#allocation23 + $0x10] sm:$0xff]  ;;  %v8521_v59 = vld [vmem:[#allocation23 + $0x20] sm:$0xff]  ;;  %s8962_s18 = smov [#allocation21]  }
 0xf44   :  { %8012 = vrsqrt.f32 %v5473_v10  ;;  %v5484_v10 = vmax.f32 %v13149_v5, 1e-24  ;;  %v13155_v11 = vld [vmem:[#allocation106_spill] sm:$0xff]  ;;  %v8525_v25 = vld [vmem:[#allocation23 + $0x40] sm:$0xff]  ;;  %v8539_v51 = vld [vmem:[#allocation23 + $0xb0] sm:$0xff]  ;;  %s5928_s8 = sshll.u32 %s8962_s18, 4  ;;  %s5929_s8 = int_to_ptr.vmem [resolvable:$true] %s5928_s8 }
 0xf45   :  { %8014 = vrsqrt.f32 %v5474_v34  ;;  %v8520_v6 = vld [vmem:[#allocation23 + $0x18] sm:$0xff]  ;;  %s8963_s15 = smov [#allocation23]   ;;  %s8877_s5 = scalar_lea.vmem %s5929_s8, 4096 }
 0xf46   :  { %8016 = vrsqrt.f32 %v5475_v31  ;;  %v12141_v34 = vpop.xlane.xlu1 %5705  ;;  %v5530_v32 = vmul.f32 %v8520_v6, %v7999_v56  ;;  %v8527_v56 = vld [vmem:[#allocation23 + $0x50] sm:$0xff]  ;;  %v8528_v2 = vld [vmem:[#allocation23 + $0x58] sm:$0xff]  ;;  %s5940_s11 = sshll.u32 %s8963_s15, 4  ;;  %p8878_p8 = scmp.ne.s32.totalorder %s5929_s8, %s8877_s5  ;;  %s12426_s11 = int_to_ptr.vmem [resolvable:$true] %s5940_s11 }
 0xf47   :  { %8018 = vrsqrt.f32 %v5476_v61  ;;  %v5485_v61 = vmax.f32 %v13150_v8, 1e-24  ;;  %v13156_v8 = vld [vmem:[#allocation107_spill] sm:$0xff]  ;;  %p8882_p9 = scmp.lt.s32.totalorder %s5929_s8, %s5929_s8  ;;  %p8883_p10 = scmp.lt.s32.totalorder %s8877_s5, %s8877_s5 }
 0xf48   :  { %v8001_v15 = vpop.eup %8000  ;;  %8020 = vrsqrt.f32 %v5477_v7  ;;  %v12144_v7 = vpop.xlane.xlu0 %5703  ;;  %v5490_v27 = vmax.f32 %v13156_v8, 1e-24 }
 0xf49   :  { %v8003_v57 = vpop.eup %8002  ;;  %8022 = vrsqrt.f32 %v5478_v13  ;;  %13151 = vst [vmem:[#allocation92_spill] sm:$0xff] %v12144_v7  ;;  %v13152_v13 = vld [vmem:[#allocation103_spill] sm:$0xff]  ;;  %v5531_v54 = vmul.f32 %v8521_v59, %v8001_v15  ;;  %p8884_p11 = por %p8883_p10, %p8882_p9 }
 0xf4a   :  { %v8005_v46 = vpop.eup %8004  ;;  %8024 = vrsqrt.f32 %v5479_v48  ;;  %v5486_v62 = vmax.f32 %v13152_v13, 1e-24  ;;  %v13153_v48 = vld [vmem:[#allocation104_spill] sm:$0xff]  ;;  %v12151_v3 = vpop.xlane.xlu1 %5709 }
 0xf4b   :  { %v8007_v9 = vpop.eup %8006  ;;  %8026 = vrsqrt.f32 %v5480_v19  ;;  %v5487_v36 = vmax.f32 %v13153_v48, 1e-24  ;;  %v13154_v19 = vld [vmem:[#allocation105_spill] sm:$0xff]  ;;  %13157 = vst [vmem:[#allocation93_spill] sm:$0xff] %v12151_v3  ;;  %v8517_v48 = vld [vmem:[#allocation23] sm:$0xff]  ;;  %p8885_p12 = pnand %p8884_p11, %p8878_p8 }
 0xf4c   :  { %v8009_v31 = vpop.eup %8008  ;;  %8028 = vrsqrt.f32 %v5481_v1  ;;  %v5488_v5 = vmax.f32 %v13154_v19, 1e-24  ;;  %v5489_v1 = vmax.f32 %v13155_v11, 1e-24  ;;  %v12153_v13 = vpop.xlane.xlu0 %5707  ;;  %v5527_v20 = vmul.f32 %v8517_v48, %v7993_v23  ;;  %v8518_v19 = vld [vmem:[#allocation23 + $0x8] sm:$0xff] }
 0xf4d   :  { %v8011_v49 = vpop.eup %8010  ;;  %8030 = vrsqrt.f32 %v5482_v44  ;;  %13158 = vst [vmem:[#allocation56_spill] sm:$0xff] %v12153_v13  ;;  %v8522_v48 = vld [vmem:[#allocation23 + $0x28] sm:$0xff] }
 0xf4e   :  { %v8013_v58 = vpop.eup %8012  ;;  %8032 = vrsqrt.f32 %v5483_v21  ;;  %v5532_v60 = vmul.f32 %v8522_v48, %v8003_v57  ;;  %v8529_v48 = vld [vmem:[#allocation23 + $0x60] sm:$0xff] }
 0xf4f   :  { %v8015_v12 = vpop.eup %8014  ;;  %8034 = vrsqrt.f32 %v5484_v10  ;;  %v5537_v59 = vmul.f32 %v8527_v56, %v8013_v58 }
 0xf50   :  { %v8017_v22 = vpop.eup %8016  ;;  %8036 = vrsqrt.f32 %v5485_v61  ;;  %v5528_v61 = vmul.f32 %v8518_v19, %v7995_v43  ;;  %v8523_v43 = vld [vmem:[#allocation23 + $0x30] sm:$0xff]  ;;  %v8524_v19 = vld [vmem:[#allocation23 + $0x38] sm:$0xff]  ;;  %v12168_v15 = vpop.xlane.xlu0 %5711  ;;  %v5538_v57 = vmul.f32 %v8528_v2, %v8015_v12 }
 0xf51   :  { %v8019_v37 = vpop.eup %8018  ;;  %8038 = vrsqrt.f32 %v5486_v62  ;;  %v13159_v62 = vld [vmem:[#allocation109_spill] sm:$0xff]  ;;  %v5534_v30 = vmul.f32 %v8524_v19, %v8007_v9  ;;  %13161 = vst [vmem:[#allocation55_spill] sm:$0xff] %v12168_v15 }
 0xf52   :  { %v8021_v44 = vpop.eup %8020  ;;  %8040 = vrsqrt.f32 %v5487_v36  ;;  %v5492_v8 = vmax.f32 %v13159_v62, 1e-24  ;;  %v5529_v36 = vmul.f32 %v8519_v29, %v7997_v63  ;;  %v12166_v13 = vmul.f32 0.02, %v5528_v61  ;;  %v8526_v63 = vld [vmem:[#allocation23 + $0x48] sm:$0xff] }
 0xf53   :  { %v8023_v21 = vpop.eup %8022  ;;  %8042 = vrsqrt.f32 %v5488_v5  ;;  %v12162_v5 = vmul.f32 0.02, %v5527_v20  ;;  %v5535_v29 = vmul.f32 %v8525_v25, %v8009_v31  ;;  %v5536_v6 = vmul.f32 %v8526_v63, %v8011_v49  ;;  %v8531_v31 = vld [vmem:[#allocation23 + $0x70] sm:$0xff] }
 0xf54   :  { %v12155_v10 = vpop.eup %8024  ;;  %8044 = vrsqrt.f32 %v5489_v1  ;;  %v5533_v1 = vmul.f32 %v8523_v43, %v8005_v46  ;;  %v5539_v46 = vmul.f32 %v8529_v48, %v8017_v22  ;;  %v8530_v43 = vld [vmem:[#allocation23 + $0x68] sm:$0xff]  ;;  %v12172_v61 = vmul.f32 0.02, %v5530_v32  ;;  %v8532_v22 = vld [vmem:[#allocation23 + $0x78] sm:$0xff] }
 0xf55   :  { %v12157_v11 = vpop.eup %8026  ;;  %8046 = vrsqrt.f32 %v5490_v27  ;;  %v12164_v27 = vpop.xlane.xlu1 %5713  ;;  %v5540_v9 = vmul.f32 %v8530_v43, %v8019_v37  ;;  %v12174_v25 = vmul.f32 0.02, %v5531_v54  ;;  %v5541_v49 = vmul.f32 %v8531_v31, %v8021_v44  ;;  %v8533_v31 = vld [vmem:[#allocation23 + $0x80] sm:$0xff] }
 0xf56   :  { %v12160_v28 = vpop.eup %8028  ;;  %13160 = vst [vmem:[#allocation94_spill] sm:$0xff] %v12164_v27  ;;  %8048 = vrsqrt.f32 %v5492_v8  ;;  %v12170_v27 = vmul.f32 0.02, %v5529_v36  ;;  %v12176_v63 = vmul.f32 0.02, %v5532_v60  ;;  %v5542_v12 = vmul.f32 %v8532_v22, %v8023_v21  ;;  %v4872_v54 = vpop.xlane.xlu0 %4871  ;;  %v8535_v22 = vld [vmem:[#allocation23 + $0x90] sm:$0xff] }
 0xf57   :  { %v8031_v23 = vpop.eup %8030  ;;  %v12178_v56 = vmul.f32 0.02, %v5533_v1  ;;  %v12180_v2 = vmul.f32 0.02, %v5534_v30  ;;  %v12182_v48 = vmul.f32 0.02, %v5535_v29  ;;  %v5543_v29 = vmul.f32 %v8533_v31, %v12155_v10 }
 0xf58   :  { %v8033_v62 = vpop.eup %8032  ;;  %v12184_v36 = vmul.f32 0.02, %v5536_v6  ;;  %v12186_v32 = vmul.f32 0.02, %v5537_v59  ;;  %v12188_v43 = vmul.f32 0.02, %v5538_v57 }
 0xf59   :  { %v8035_v20 = vpop.eup %8034  ;;  %13162 = vst [vmem:[#allocation95_spill] sm:$0xff] %v12178_v56  ;;  %13163 = vst [vmem:[#allocation61_spill] sm:$0xff] %v12180_v2  ;;  %v4874_v37 = vpop.xlane.xlu1 %4873  ;;  %v12190_v60 = vmul.f32 0.02, %v5539_v46  ;;  %v12192_v1 = vmul.f32 0.02, %v5540_v9 }
 0xf5a   :  { %v8037_v19 = vpop.eup %8036  ;;  %8050 = vrcp.f32 %v4874_v37  ;;  %v12194_v21 = vmul.f32 0.02, %v5541_v49  ;;  %v8534_v6 = vld [vmem:[#allocation23 + $0x88] sm:$0xff]  ;;  %v5545_v37 = vmul.f32 %v8535_v22, %v12160_v28  ;;  %v12199_v57 = vmul.f32 0.02, %v5542_v12  ;;  %v8536_v46 = vld [vmem:[#allocation23 + $0x98] sm:$0xff] }
 0xf5b   :  { %v8039_v58 = vpop.eup %8038  ;;  %13164 = vst [vmem:[#allocation96_spill] sm:$0xff] %v12190_v60  ;;  %8052 = vrcp.f32 %v4872_v54  ;;  %v5544_v59 = vmul.f32 %v8534_v6, %v12157_v11  ;;  %v5546_v3 = vmul.f32 %v8536_v46, %v8031_v23  ;;  %v8537_v9 = vld [vmem:[#allocation23 + $0xa0] sm:$0xff]  ;;  %v13167_v54 = vld [vmem:[#allocation108_spill] sm:$0xff]  ;;  %v5549_v10 = vmul.f32 %v8539_v51, %v8037_v19  ;;  %v8540_v31 = vld [vmem:[#allocation23 + $0xb8] sm:$0xff]  ;;  %v4888_v11 = vpop.xlane.xlu0 %4887 }
 0xf5c   :  { %v8041_v8 = vpop.eup %8040  ;;  %13165 = vst [vmem:[#allocation59_spill] sm:$0xff] %v12194_v21  ;;  %13166 = vst [vmem:[#allocation97_spill] sm:$0xff] %v12199_v57  ;;  %v5547_v56 = vmul.f32 %v8537_v9, %v8033_v62  ;;  %v5491_v2 = vmax.f32 %v13167_v54, 1e-24  ;;  %v8538_v21 = vld [vmem:[#allocation23 + $0xa8] sm:$0xff]  ;;  %v5550_v60 = vmul.f32 %v8540_v31, %v8039_v58  ;;  %v8541_v6 = vld [vmem:[#allocation23 + $0xc0] sm:$0xff] }
 0xf5d   :  { %v8043_v44 = vpop.eup %8042  ;;  %v4890_v49 = vpop.xlane.xlu1 %4889  ;;  %v5548_v38 = vmul.f32 %v8538_v21, %v8035_v20  ;;  %v5551_v28 = vmul.f32 %v8541_v6, %v8041_v8  ;;  %v8542_v22 = vld [vmem:[#allocation23 + $0xc8] sm:$0xff]  ;;  %v8543_v57 = vld [vmem:[#allocation23 + $0xd0] sm:$0xff]  ;;  %v12202_v23 = vmul.f32 0.02, %v5543_v29  ;;  %v12204_v62 = vmul.f32 0.02, %v5544_v59 }
 0xf5e   :  { %v8045_v30 = vpop.eup %8044  ;;  %8054 = vrcp.f32 %v4890_v49  ;;  %v5552_v12 = vmul.f32 %v8542_v22, %v8043_v44  ;;  %v12206_v46 = vmul.f32 0.02, %v5545_v37  ;;  %v8544_v20 = vld [vmem:[#allocation23 + $0xd8] sm:$0xff]  ;;  %v12208_v19 = vmul.f32 0.02, %v5546_v3  ;;  %v13171_v8 = vld [vmem:[#allocation73_spill] sm:$0xff] }
 0xf5f   :  { %v8047_v15 = vpop.eup %8046  ;;  %v5553_v7 = vmul.f32 %v8543_v57, %v8045_v30  ;;  %8056 = vrcp.f32 %v4888_v11  ;;  %v12210_v58 = vmul.f32 0.02, %v5547_v56  ;;  %v5735_v9 = vmax.f32 %v13171_v8, 1e-24  ;;  %v4876_v59 = vpop.xlane.xlu0 %4875  ;;  %v8545_v57 = vld [vmem:[#allocation23 + $0xe8] sm:$0xff]  ;;  %v13181_v31 = vld [vmem:[#allocation113_spill] sm:$0xff] }
 0xf60   :  { %13168 = vst [vmem:[#allocation62_spill] sm:$0xff] %v12206_v46  ;;  %v5554_v21 = vmul.f32 %v8544_v20, %v8047_v15  ;;  %v8049_v51 = vpop.eup %8048  ;;  %13169 = vst [vmem:[#allocation99_spill] sm:$0xff] %v12208_v19  ;;  %8058 = vrsqrt.f32 %v5491_v2  ;;  %v12213_v54 = vmul.f32 0.02, %v5548_v38  ;;  %v12215_v30 = vmul.f32 0.02, %v5549_v10 }
 0xf61   :  { %13170 = vst [vmem:[#allocation100_spill] sm:$0xff] %v12210_v58  ;;  %v4878_v44 = vpop.xlane.xlu1 %4877  ;;  %v12217_v29 = vmul.f32 0.02, %v5550_v60  ;;  %v12219_v37 = vmul.f32 0.02, %v5551_v28  ;;  %v12227_v49 = vmul.f32 %v8545_v57, %v8049_v51  ;;  %v13180_v38 = vld [vmem:[#allocation112_spill] sm:$0xff] }
 0xf62   :  { %13172 = vst [vmem:[#allocation101_spill] sm:$0xff] %v12213_v54  ;;  %13173 = vst [vmem:[#allocation102_spill] sm:$0xff] %v12215_v30  ;;  %8060 = vrcp.f32 %v4878_v44  ;;  %v12221_v15 = vmul.f32 0.02, %v5552_v12  ;;  %v12223_v3 = vmul.f32 0.02, %v5553_v7 }
 0xf63   :  { %13174 = vst [vmem:[#allocation103_spill] sm:$0xff] %v12217_v29  ;;  %13175 = vst [vmem:[#allocation104_spill] sm:$0xff] %v12219_v37  ;;  %8062 = vrcp.f32 %v4876_v59  ;;  %v12225_v2 = vmul.f32 0.02, %v5554_v21  ;;  %v5815_v10 = vmul.f32 0.02, %v13180_v38  ;;  %v4892_v57 = vpop.xlane.xlu0 %4891 }
 0xf64   :  { %13176 = vst [vmem:[#allocation105_spill] sm:$0xff] %v12221_v15  ;;  %13177 = vst [vmem:[#allocation106_spill] sm:$0xff] %v12223_v3  ;;  %v8051_v56 = vpop.eup %8050  ;;  %v5816_v60 = vmul.f32 0.02, %v13181_v31  ;;  %v13182_v6 = vld [vmem:[#allocation114_spill] sm:$0xff]  ;;  %8064 = vrsqrt.f32 %v5735_v9  ;;  %v13184_v8 = vld [vmem:[#allocation115_spill] sm:$0xff] }
 0xf65   :  { %13178 = vst [vmem:[#allocation107_spill] sm:$0xff] %v12225_v2  ;;  %13179 = vst [vmem:[#allocation109_spill] sm:$0xff] %v12227_v49  ;;  %v8053_v11 = vpop.eup %8052  ;;  %v12232_v22 = vmul.f32 0.02, %v13182_v6  ;;  %v13183_v28 = vld [vmem:[#allocation134_spill] sm:$0xff]  ;;  %v4968_v7 = vmul.f32 %v8051_v56, %v11919_v42  ;;  %v4894_v20 = vpop.xlane.xlu1 %4893  ;;  %v13185_v44 = vld [vmem:[#allocation116_spill] sm:$0xff] }
 0xf66   :  { %v5736_v12 = vmax.f32 %v13183_v28, 1e-24  ;;  %v12237_v21 = vmul.f32 0.02, %v13184_v8  ;;  %v12240_v51 = vmul.f32 0.02, %v13185_v44  ;;  %v4967_v59 = vmul.f32 %v8053_v11, %v11921_v14 }
 0xf67   :  { %8066 = vrcp.f32 %v4894_v20  ;;  %v13186_v38 = vld [vmem:[#allocation117_spill] sm:$0xff]  ;;  %v13187_v6 = vld [vmem:[#allocation118_spill] sm:$0xff]  ;;  %v13188_v28 = vld [vmem:[#allocation143_spill] sm:$0xff] }
 0xf68   :  { %v12244_v31 = vmul.f32 0.02, %v13186_v38  ;;  %v12247_v9 = vmul.f32 0.02, %v13187_v6  ;;  %v5016_v49 = vadd.f32 %v4968_v7, %v13188_v28  ;;  %8068 = vrcp.f32 %v4892_v57  ;;  %v8055_v42 = vpop.eup %8054  ;;  %v13189_v56 = vld [vmem:[#allocation119_spill] sm:$0xff]  ;;  %v13190_v3 = vld [vmem:[#allocation120_spill] sm:$0xff] }
 0xf69   :  { %v12251_v8 = vmul.f32 0.02, %v13189_v56  ;;  %v5823_v44 = vmul.f32 0.02, %v13190_v3  ;;  %v13191_v2 = vld [vmem:[#allocation121_spill] sm:$0xff]  ;;  %v13192_v14 = vld [vmem:[#allocation144_spill] sm:$0xff]  ;;  %v8057_v20 = vpop.eup %8056  ;;  %8070 = vrsqrt.f32 %v5736_v12  ;;  %v4976_v30 = vmul.f32 %v8055_v42, %v11927_v53  ;;  %v4882_v7 = vpop.xlane.xlu1 %4881 }
 0xf6a   :  { %v5824_v37 = vmul.f32 0.02, %v13191_v2  ;;  %v5015_v11 = vadd.f32 %v4967_v59, %v13192_v14  ;;  %v13193_v15 = vld [vmem:[#allocation122_spill] sm:$0xff]  ;;  %v5336_v6 = vmul.f32 0.25, %v5016_v49  ;;  %v13194_v57 = vld [vmem:[#allocation123_spill] sm:$0xff]  ;;  %v4975_v29 = vmul.f32 %v8057_v20, %v11929_v47  ;;  %v4880_v3 = vpop.xlane.xlu0 %4879  ;;  %v12264_v2 = vpop.eup %8058  ;;  %v13196_v59 = vld [vmem:[#allocation124_spill] sm:$0xff] }
 0xf6b   :  { %v12257_v38 = vmul.f32 0.02, %v13193_v15  ;;  %v12261_v28 = vmul.f32 0.02, %v13194_v57  ;;  %8072 = vrcp.f32 %v4882_v7  ;;  %13195 = vst [vmem:[#allocation108_spill] sm:$0xff] %v12264_v2  ;;  %v13197_v12 = vld [vmem:[#allocation54_spill] sm:$0xff] }
 0xf6c   :  { %v5335_v56 = vmul.f32 0.25, %v5015_v11  ;;  %v12267_v14 = vmul.f32 0.02, %v13196_v59  ;;  %v5592_v15 = vadd.f32 %v12166_v13, %v5336_v6  ;;  %v5024_v49 = vadd.f32 %v4976_v30, %v13197_v12  ;;  %v8061_v53 = vpop.eup %8060  ;;  %v13198_v42 = vld [vmem:[#allocation125_spill] sm:$0xff] }
 0xf6d   :  { %8074 = vrcp.f32 %v4880_v3  ;;  %v12272_v58 = vmul.f32 0.02, %v13198_v42  ;;  %v5738_v11 = vmax.f32 %v12081_v40, 1e-24  ;;  %v13199_v20 = vld [vmem:[#allocation53_spill] sm:$0xff]  ;;  %v8063_v57 = vpop.eup %8062  ;;  %v4970_v13 = vmul.f32 %v8061_v53, %v11935_v18  ;;  %v4898_v6 = vpop.xlane.xlu1 %4897  ;;  %v13200_v40 = vld [vmem:[#allocation126_spill] sm:$0xff] }
 0xf6e   :  { %v5591_v47 = vadd.f32 %v12162_v5, %v5335_v56  ;;  %v5023_v7 = vadd.f32 %v4975_v29, %v13199_v20  ;;  %v5737_v2 = vmax.f32 %v12084_v0, 1e-24  ;;  %v5848_v59 = vadd.f32 %v5816_v60, %v5592_v15  ;;  %v4896_v42 = vpop.xlane.xlu0 %4895  ;;  %v8065_v46 = vpop.eup %8064  ;;  %v13201_v29 = vld [vmem:[#allocation145_spill] sm:$0xff] }
 0xf6f   :  { %v5344_v54 = vmul.f32 0.25, %v5024_v49  ;;  %v4969_v12 = vmul.f32 %v8063_v57, %v11937_v17  ;;  %8076 = vrcp.f32 %v4898_v6  ;;  %v12281_v19 = vmul.f32 0.02, %v13200_v40  ;;  %v13202_v17 = vld [vmem:[#allocation146_spill] sm:$0xff] }
 0xf70   :  { %v5847_v30 = vadd.f32 %v5815_v10, %v5591_v47  ;;  %v5343_v3 = vmul.f32 0.25, %v5023_v7  ;;  %5880 = vst [vmem:[#allocation21 + $0x8] sm:$0xff] %v5848_v59  ;;  %v5018_v0 = vadd.f32 %v4970_v13, %v13201_v29  ;;  %8078 = vrcp.f32 %v4896_v42  ;;  %v13204_v13 = vld [vmem:[#allocation58_spill] sm:$0xff] }
 0xf71   :  { %v5600_v5 = vadd.f32 %v12184_v36, %v5344_v54  ;;  %v8067_v60 = vpop.eup %8066  ;;  %8080 = vrsqrt.f32 %v5738_v11  ;;  %v5740_v18 = vmax.f32 %v12121_v52, 1e-24  ;;  %v5017_v56 = vadd.f32 %v4969_v12, %v13202_v17  ;;  %v4886_v20 = vpop.xlane.xlu1 %4885  ;;  %v13203_v52 = vld [vmem:[#allocation64_spill] sm:$0xff] }
 0xf72   :  { %5879 = vst [vmem:[#allocation21] sm:$0xff] %v5847_v30  ;;  %v5599_v10 = vadd.f32 %v12182_v48, %v5343_v3  ;;  %v8069_v15 = vpop.eup %8068  ;;  %8082 = vrsqrt.f32 %v5737_v2  ;;  %v5338_v53 = vmul.f32 0.25, %v5018_v0  ;;  %v4978_v47 = vmul.f32 %v8067_v60, %v11943_v24  ;;  %v4884_v11 = vpop.xlane.xlu0 %4883  ;;  %v13205_v2 = vld [vmem:[#allocation57_spill] sm:$0xff]  ;;  %v13206_v0 = vld [vmem:[#allocation127_spill] sm:$0xff] }
 0xf73   :  { %v5856_v49 = vadd.f32 %v5824_v37, %v5600_v5  ;;  %v5337_v54 = vmul.f32 0.25, %v5017_v56  ;;  %v4977_v7 = vmul.f32 %v8069_v15, %v11945_v35  ;;  %8084 = vrcp.f32 %v4886_v20  ;;  %v8071_v57 = vpop.eup %8070 }
 0xf74   :  { %v5855_v36 = vadd.f32 %v5823_v44, %v5599_v10  ;;  %v5799_v59 = vmul.f32 %v13203_v52, %v8065_v46  ;;  %v5594_v48 = vadd.f32 %v12172_v61, %v5338_v53  ;;  %v5026_v6 = vadd.f32 %v4978_v47, %v13204_v13  ;;  %v13208_v10 = vld [vmem:[#allocation45_spill] sm:$0xff]  ;;  %v13210_v52 = vld [vmem:[#allocation63_spill] sm:$0xff]  ;;  %v13211_v13 = vld [vmem:[#allocation60_spill] sm:$0xff] }
 0xf75   :  { %5888 = vst [vmem:[#allocation21 + $0x48] sm:$0xff] %v5856_v49  ;;  %8086 = vrcp.f32 %v4884_v11  ;;  %v8073_v37 = vpop.eup %8072  ;;  %v5739_v24 = vmax.f32 %v12124_v45, 1e-24  ;;  %v5593_v44 = vadd.f32 %v12170_v27, %v5337_v54  ;;  %v5025_v35 = vadd.f32 %v4977_v7, %v13205_v2  ;;  %v4902_v42 = vpop.xlane.xlu1 %4901 }
 0xf76   :  { %8088 = vrsqrt.f32 %v5740_v18  ;;  %5887 = vst [vmem:[#allocation21 + $0x40] sm:$0xff] %v5855_v36  ;;  %v5742_v3 = vmax.f32 %v12131_v26, 1e-24  ;;  %v5850_v46 = vadd.f32 %v12237_v21, %v5594_v48  ;;  %v5346_v12 = vmul.f32 0.25, %v5026_v6  ;;  %v4900_v45 = vpop.xlane.xlu0 %4899  ;;  %v13207_v26 = vld [vmem:[#allocation46_spill] sm:$0xff] }
 0xf77   :  { %v8075_v30 = vpop.eup %8074  ;;  %v4972_v61 = vmul.f32 %v8073_v37, %v11951_v33  ;;  %v5849_v40 = vadd.f32 %v12232_v22, %v5593_v44  ;;  %v5345_v5 = vmul.f32 0.25, %v5025_v35  ;;  %8090 = vrcp.f32 %v4902_v42  ;;  %v13214_v42 = vld [vmem:[#allocation92_spill] sm:$0xff] }
 0xf78   :  { %v4971_v29 = vmul.f32 %v8075_v30, %v11953_v4  ;;  %v12302_v27 = vmul.f32 0.02, %v13206_v0  ;;  %5882 = vst [vmem:[#allocation21 + $0x18] sm:$0xff] %v5850_v46  ;;  %v5602_v60 = vadd.f32 %v12188_v43, %v5346_v12  ;;  %8092 = vrcp.f32 %v4900_v45 }
 0xf79   :  { %v5020_v18 = vadd.f32 %v4972_v61, %v13207_v26  ;;  %v8077_v21 = vpop.eup %8076  ;;  %8094 = vrsqrt.f32 %v5739_v24  ;;  %v5741_v33 = vmax.f32 %v12134_v50, 1e-24  ;;  %5881 = vst [vmem:[#allocation21 + $0x10] sm:$0xff] %v5849_v40  ;;  %v5601_v22 = vadd.f32 %v12186_v32, %v5345_v5  ;;  %v4906_v43 = vpop.xlane.xlu1 %4905  ;;  %v13209_v32 = vld [vmem:[#allocation98_spill] sm:$0xff]  ;;  %v13213_v61 = vld [vmem:[#allocation128_spill] sm:$0xff]  ;;  %v13217_v26 = vld [vmem:[#allocation135_spill] sm:$0xff] }
 0xf7a   :  { %v5019_v4 = vadd.f32 %v4971_v29, %v13208_v10  ;;  %v8079_v17 = vpop.eup %8078  ;;  %8096 = vrsqrt.f32 %v5742_v3  ;;  %v5858_v56 = vadd.f32 %v12261_v28, %v5602_v60  ;;  %v4980_v49 = vmul.f32 %v8077_v21, %v11959_v39  ;;  %v4904_v50 = vpop.xlane.xlu0 %4903  ;;  %v13216_v29 = vld [vmem:[#allocation49_spill] sm:$0xff]  ;;  %v13218_v10 = vld [vmem:[#allocation136_spill] sm:$0xff] }
 0xf7b   :  { %v5340_v15 = vmul.f32 0.25, %v5020_v18  ;;  %v8081_v53 = vpop.eup %8080  ;;  %v5857_v47 = vadd.f32 %v12257_v38, %v5601_v22  ;;  %v4979_v36 = vmul.f32 %v8079_v17, %v11961_v16  ;;  %8098 = vrcp.f32 %v4906_v43  ;;  %v13220_v43 = vld [vmem:[#allocation61_spill] sm:$0xff] }
 0xf7c   :  { %v5339_v20 = vmul.f32 0.25, %v5019_v4  ;;  %v8083_v54 = vpop.eup %8082  ;;  %v5800_v7 = vmul.f32 %v13209_v32, %v8071_v57  ;;  %5890 = vst [vmem:[#allocation21 + $0x58] sm:$0xff] %v5858_v56  ;;  %v5028_v28 = vadd.f32 %v4980_v49, %v13210_v52  ;;  %8100 = vrcp.f32 %v4904_v50  ;;  %v13223_v32 = vld [vmem:[#allocation65_spill] sm:$0xff] }
 0xf7d   :  { %v5596_v11 = vadd.f32 %v12176_v63, %v5340_v15  ;;  %v8085_v48 = vpop.eup %8084  ;;  %v12316_v39 = vmul.f32 0.02, %v5799_v59  ;;  %8102 = vrsqrt.f32 %v5741_v33  ;;  %5889 = vst [vmem:[#allocation21 + $0x50] sm:$0xff] %v5857_v47  ;;  %v5027_v16 = vadd.f32 %v4979_v36, %v13211_v13  ;;  %v4910_v44 = vpop.xlane.xlu1 %4909  ;;  %v13219_v15 = vld [vmem:[#allocation129_spill] sm:$0xff] }
 0xf7e   :  { %v5595_v38 = vadd.f32 %v12174_v25, %v5339_v20  ;;  %v5744_v37 = vmax.f32 %v12141_v34, 1e-24  ;;  %v5348_v24 = vmul.f32 0.25, %v5028_v28  ;;  %v4974_v63 = vmul.f32 %v8085_v48, %v11967_v55  ;;  %v4908_v3 = vpop.xlane.xlu0 %4907  ;;  %v13212_v34 = vld [vmem:[#allocation50_spill] sm:$0xff]  ;;  %v13224_v52 = vld [vmem:[#allocation93_spill] sm:$0xff] }
 0xf7f   :  { %v8087_v6 = vpop.eup %8086  ;;  %v5852_v57 = vadd.f32 %v12244_v31, %v5596_v11  ;;  %v5347_v59 = vmul.f32 0.25, %v5027_v16  ;;  %8104 = vrcp.f32 %v4910_v44  ;;  %v12325_v25 = vmul.f32 0.02, %v5800_v7 }
 0xf80   :  { %v8089_v2 = vpop.eup %8088  ;;  %v5851_v35 = vadd.f32 %v12240_v51, %v5595_v38  ;;  %v4973_v30 = vmul.f32 %v8087_v6, %v11969_v41  ;;  %v5604_v46 = vadd.f32 %v12192_v1, %v5348_v24  ;;  %v5022_v12 = vadd.f32 %v4974_v63, %v13212_v34  ;;  %v13215_v51 = vld [vmem:[#allocation96_spill] sm:$0xff]  ;;  %v13225_v38 = vld [vmem:[#allocation74_spill] sm:$0xff]  ;;  %v13226_v24 = vld [vmem:[#allocation137_spill] sm:$0xff] }
 0xf81   :  { %5884 = vst [vmem:[#allocation21 + $0x28] sm:$0xff] %v5852_v57  ;;  %8106 = vrcp.f32 %v4908_v3  ;;  %v8091_v31 = vpop.eup %8090  ;;  %v5802_v55 = vmul.f32 %v13213_v61, %v8081_v53  ;;  %v5743_v40 = vmax.f32 %v13214_v42, 1e-24  ;;  %v5603_v5 = vadd.f32 %v13215_v51, %v5347_v59  ;;  %v4914_v18 = vpop.xlane.xlu1 %4913  ;;  %v13227_v59 = vld [vmem:[#allocation97_spill] sm:$0xff]  ;;  %v13228_v3 = vld [vmem:[#allocation83_spill] sm:$0xff]  ;;  %v13229_v34 = vld [vmem:[#allocation130_spill] sm:$0xff] }
 0xf82   :  { %5883 = vst [vmem:[#allocation21 + $0x20] sm:$0xff] %v5851_v35  ;;  %v5021_v41 = vadd.f32 %v4973_v30, %v13216_v29  ;;  %v8093_v45 = vpop.eup %8092  ;;  %8108 = vrsqrt.f32 %v5744_v37  ;;  %v5860_v0 = vadd.f32 %v12272_v58, %v5604_v46  ;;  %v5342_v60 = vmul.f32 0.25, %v5022_v12  ;;  %v4912_v17 = vpop.xlane.xlu0 %4911  ;;  %v13221_v58 = vld [vmem:[#allocation66_spill] sm:$0xff]  ;;  %v13232_v42 = vld [vmem:[#allocation40_spill] sm:$0xff] }
 0xf83   :  { %v4982_v1 = vmul.f32 %v8091_v31, %v13217_v26  ;;  %v8095_v21 = vpop.eup %8094  ;;  %v5859_v33 = vadd.f32 %v12267_v14, %v5603_v5  ;;  %v4981_v4 = vmul.f32 %v8093_v45, %v13218_v10  ;;  %8110 = vrcp.f32 %v4914_v18  ;;  %v13222_v14 = vld [vmem:[#allocation95_spill] sm:$0xff]  ;;  %v13230_v31 = vld [vmem:[#allocation56_spill] sm:$0xff] }
 0xf84   :  { %v5341_v22 = vmul.f32 0.25, %v5021_v41  ;;  %v12337_v56 = vpop.eup %8096  ;;  %v5801_v49 = vmul.f32 %v13219_v15, %v8083_v54  ;;  %5892 = vst [vmem:[#allocation21 + $0x68] sm:$0xff] %v5860_v0  ;;  %v5598_v53 = vadd.f32 %v13220_v43, %v5342_v60  ;;  %8112 = vrcp.f32 %v4912_v17  ;;  %v13233_v41 = vld [vmem:[#allocation75_spill] sm:$0xff]  ;;  %v13236_v17 = vld [vmem:[#allocation84_spill] sm:$0xff] }
 0xf85   :  { %v5030_v47 = vadd.f32 %v4982_v1, %v13221_v58  ;;  %v8099_v20 = vpop.eup %8098  ;;  %v12342_v36 = vmul.f32 0.02, %v5802_v55  ;;  %8114 = vrsqrt.f32 %v5743_v40  ;;  %5891 = vst [vmem:[#allocation21 + $0x60] sm:$0xff] %v5859_v33  ;;  %v5029_v7 = vadd.f32 %v4981_v4, %v13223_v32  ;;  %v4918_v16 = vpop.xlane.xlu1 %4917  ;;  %v13234_v1 = vld [vmem:[#allocation138_spill] sm:$0xff]  ;;  %v13240_v32 = vld [vmem:[#allocation76_spill] sm:$0xff] }
 0xf86   :  { %v5597_v50 = vadd.f32 %v13222_v14, %v5341_v22  ;;  %v8101_v11 = vpop.eup %8100  ;;  %v5746_v28 = vmax.f32 %v13224_v52, 1e-24  ;;  %v5854_v54 = vadd.f32 %v12251_v8, %v5598_v53  ;;  %v4984_v13 = vmul.f32 %v8099_v20, %v13225_v38  ;;  %v4916_v44 = vpop.xlane.xlu0 %4915  ;;  %v13235_v22 = vld [vmem:[#allocation67_spill] sm:$0xff] }
 0xf87   :  { %v5350_v48 = vmul.f32 0.25, %v5030_v47  ;;  %v12349_v6 = vpop.eup %8102  ;;  %v5349_v57 = vmul.f32 0.25, %v5029_v7  ;;  %v4983_v63 = vmul.f32 %v8101_v11, %v13226_v24  ;;  %8116 = vrcp.f32 %v4918_v16  ;;  %v13238_v53 = vld [vmem:[#allocation39_spill] sm:$0xff] }
 0xf88   :  { %v5853_v37 = vadd.f32 %v12247_v9, %v5597_v50  ;;  %v12353_v35 = vmul.f32 0.02, %v5801_v49  ;;  %5886 = vst [vmem:[#allocation21 + $0x38] sm:$0xff] %v5854_v54  ;;  %v5032_v8 = vadd.f32 %v4984_v13, %v13228_v3  ;;  %8118 = vrcp.f32 %v4916_v44  ;;  %v13231_v9 = vld [vmem:[#allocation59_spill] sm:$0xff]  ;;  %v13237_v49 = vld [vmem:[#allocation94_spill] sm:$0xff]  ;;  %v13241_v54 = vld [vmem:[#allocation77_spill] sm:$0xff] }
 0xf89   :  { %v5606_v30 = vadd.f32 %v13227_v59, %v5350_v48  ;;  %v8105_v46 = vpop.eup %8104  ;;  %v5804_v12 = vmul.f32 %v13229_v34, %v8089_v2  ;;  %v5745_v61 = vmax.f32 %v13230_v31, 1e-24  ;;  %v5605_v55 = vadd.f32 %v13231_v9, %v5349_v57  ;;  %v4922_v0 = vpop.xlane.xlu1 %4921  ;;  %v13239_v20 = vld [vmem:[#allocation55_spill] sm:$0xff]  ;;  %v13245_v59 = vld [vmem:[#allocation42_spill] sm:$0xff] }
 0xf8a   :  { %5885 = vst [vmem:[#allocation21 + $0x30] sm:$0xff] %v5853_v37  ;;  %v5031_v40 = vadd.f32 %v4983_v63, %v13232_v42  ;;  %8120 = vrsqrt.f32 %v5746_v28  ;;  %v5352_v29 = vmul.f32 0.25, %v5032_v8  ;;  %v4986_v45 = vmul.f32 %v8105_v46, %v13233_v41  ;;  %v4920_v18 = vpop.xlane.xlu0 %4919  ;;  %v13242_v13 = vld [vmem:[#allocation99_spill] sm:$0xff]  ;;  %v13243_v37 = vld [vmem:[#allocation85_spill] sm:$0xff]  ;;  %v13244_v63 = vld [vmem:[#allocation62_spill] sm:$0xff] }
 0xf8b   :  { %v8107_v51 = vpop.eup %8106  ;;  %v5862_v5 = vadd.f32 %v12302_v27, %v5606_v30  ;;  %v5861_v60 = vadd.f32 %v12281_v19, %v5605_v55  ;;  %8122 = vrcp.f32 %v4922_v0  ;;  %v5803_v10 = vmul.f32 %v13235_v22, %v8095_v21  ;;  %v13246_v46 = vld [vmem:[#allocation78_spill] sm:$0xff]  ;;  %v13247_v9 = vld [vmem:[#allocation79_spill] sm:$0xff]  ;;  %v13254_v22 = vld [vmem:[#allocation41_spill] sm:$0xff] }
 0xf8c   :  { %v5351_v26 = vmul.f32 0.25, %v5031_v40  ;;  %v4985_v2 = vmul.f32 %v8107_v51, %v13234_v1  ;;  %v8109_v33 = vpop.eup %8108  ;;  %v5608_v4 = vadd.f32 %v12204_v62, %v5352_v29  ;;  %v5034_v15 = vadd.f32 %v4986_v45, %v13236_v17  ;;  %v13248_v51 = vld [vmem:[#allocation68_spill] sm:$0xff]  ;;  %v13249_v29 = vld [vmem:[#allocation101_spill] sm:$0xff]  ;;  %v13250_v45 = vld [vmem:[#allocation86_spill] sm:$0xff] }
 0xf8d   :  { %5894 = vst [vmem:[#allocation21 + $0x78] sm:$0xff] %v5862_v5  ;;  %8124 = vrcp.f32 %v4920_v18  ;;  %v8111_v27 = vpop.eup %8110  ;;  %v5748_v43 = vmax.f32 %v13237_v49, 1e-24  ;;  %5893 = vst [vmem:[#allocation21 + $0x70] sm:$0xff] %v5861_v60  ;;  %v5747_v14 = vmax.f32 %v13239_v20, 1e-24  ;;  %v4926_v7 = vpop.xlane.xlu1 %4925  ;;  %v5806_v5 = vmul.f32 %v13248_v51, %v12337_v56 }
 0xf8e   :  { %8126 = vrsqrt.f32 %v5745_v61  ;;  %v5607_v19 = vadd.f32 %v12202_v23, %v5351_v26  ;;  %v5033_v58 = vadd.f32 %v4985_v2, %v13238_v53  ;;  %v8113_v47 = vpop.eup %8112  ;;  %v5864_v21 = vadd.f32 %v12325_v25, %v5608_v4  ;;  %v4924_v38 = vpop.xlane.xlu0 %4923  ;;  %v13251_v60 = vld [vmem:[#allocation131_spill] sm:$0xff]  ;;  %v13253_v2 = vld [vmem:[#allocation100_spill] sm:$0xff] }
 0xf8f   :  { %v5354_v50 = vmul.f32 0.25, %v5034_v15  ;;  %v4988_v62 = vmul.f32 %v8111_v27, %v13240_v32  ;;  %v8115_v11 = vpop.eup %8114  ;;  %v4987_v48 = vmul.f32 %v8113_v47, %v13241_v54  ;;  %8128 = vrcp.f32 %v4926_v7  ;;  %v13255_v17 = vld [vmem:[#allocation132_spill] sm:$0xff]  ;;  %v13256_v49 = vld [vmem:[#allocation139_spill] sm:$0xff] }
 0xf90   :  { %v5863_v52 = vadd.f32 %v12316_v39, %v5607_v19  ;;  %v5353_v28 = vmul.f32 0.25, %v5033_v58  ;;  %v5836_v23 = vmul.f32 0.02, %v5804_v12  ;;  %5896 = vst [vmem:[#allocation21 + $0x88] sm:$0xff] %v5864_v21  ;;  %8130 = vrcp.f32 %v4924_v38  ;;  %v13257_v20 = vld [vmem:[#allocation140_spill] sm:$0xff]  ;;  %v13258_v21 = vld [vmem:[#allocation103_spill] sm:$0xff] }
 0xf91   :  { %v5610_v16 = vadd.f32 %v13242_v13, %v5354_v50  ;;  %v5036_v57 = vadd.f32 %v4988_v62, %v13243_v37  ;;  %v8117_v25 = vpop.eup %8116  ;;  %v5835_v24 = vmul.f32 0.02, %v5803_v10  ;;  %8132 = vrsqrt.f32 %v5748_v43  ;;  %v4930_v12 = vpop.xlane.xlu1 %4929  ;;  %v13259_v32 = vld [vmem:[#allocation87_spill] sm:$0xff] }
 0xf92   :  { %5895 = vst [vmem:[#allocation21 + $0x80] sm:$0xff] %v5863_v52  ;;  %v5609_v44 = vadd.f32 %v13244_v63, %v5353_v28  ;;  %v5035_v39 = vadd.f32 %v4987_v48, %v13245_v59  ;;  %v8119_v30 = vpop.eup %8118  ;;  %8134 = vrsqrt.f32 %v5747_v14  ;;  %v4990_v34 = vmul.f32 %v8117_v25, %v13246_v46  ;;  %v4928_v42 = vpop.xlane.xlu0 %4927  ;;  %v13260_v28 = vld [vmem:[#allocation102_spill] sm:$0xff]  ;;  %v13261_v48 = vld [vmem:[#allocation44_spill] sm:$0xff] }
 0xf93   :  { %v5866_v3 = vadd.f32 %v12342_v36, %v5610_v16  ;;  %v5356_v8 = vmul.f32 0.25, %v5036_v57  ;;  %v4989_v55 = vmul.f32 %v8119_v30, %v13247_v9  ;;  %8136 = vrcp.f32 %v4930_v12  ;;  %v13262_v57 = vld [vmem:[#allocation141_spill] sm:$0xff]  ;;  %v13266_v9 = vld [vmem:[#allocation88_spill] sm:$0xff] }
 0xf94   :  { %v5865_v31 = vadd.f32 %v12353_v35, %v5609_v44  ;;  %v5355_v61 = vmul.f32 0.25, %v5035_v39  ;;  %v8121_v40 = vpop.eup %8120  ;;  %v5038_v36 = vadd.f32 %v4990_v34, %v13250_v45  ;;  %8138 = vrcp.f32 %v4928_v42  ;;  %v13252_v35 = vld [vmem:[#allocation69_spill] sm:$0xff]  ;;  %v13263_v39 = vld [vmem:[#allocation142_spill] sm:$0xff] }
 0xf95   :  { %5898 = vst [vmem:[#allocation21 + $0x98] sm:$0xff] %v5866_v3  ;;  %v5612_v41 = vadd.f32 %v13249_v29, %v5356_v8  ;;  %v8123_v0 = vpop.eup %8122  ;;  %v5805_v26 = vmul.f32 %v13251_v60, %v12349_v6  ;;  %v5808_v1 = vmul.f32 %v13252_v35, %v8109_v33  ;;  %v5037_v10 = vadd.f32 %v4989_v55, %v13254_v22  ;;  %v4934_v19 = vpop.xlane.xlu1 %4933  ;;  %v13264_v34 = vld [vmem:[#allocation133_spill] sm:$0xff] }
 0xf96   :  { %5897 = vst [vmem:[#allocation21 + $0x90] sm:$0xff] %v5865_v31  ;;  %v5611_v18 = vadd.f32 %v13253_v2, %v5355_v61  ;;  %v5807_v56 = vmul.f32 %v13255_v17, %v8115_v11  ;;  %v5358_v27 = vmul.f32 0.25, %v5038_v36  ;;  %v4992_v43 = vmul.f32 %v8123_v0, %v13256_v49  ;;  %v4932_v33 = vpop.xlane.xlu0 %4931  ;;  %v13265_v31 = vld [vmem:[#allocation105_spill] sm:$0xff]  ;;  %v13269_v36 = vld [vmem:[#allocation43_spill] sm:$0xff] }
 0xf97   :  { %v8125_v4 = vpop.eup %8124  ;;  %v5868_v15 = vadd.f32 %v5836_v23, %v5612_v41  ;;  %v5357_v47 = vmul.f32 0.25, %v5037_v10  ;;  %8140 = vrcp.f32 %v4934_v19  ;;  %v5838_v14 = vmul.f32 0.02, %v5806_v5  ;;  %v13267_v5 = vld [vmem:[#allocation70_spill] sm:$0xff]  ;;  %v13268_v41 = vld [vmem:[#allocation104_spill] sm:$0xff]  ;;  %v8546_v2 = vld [vmem:[#allocation23 + $0xe0] sm:$0xff] }
 0xf98   :  { %v8127_v53 = vpop.eup %8126  ;;  %v5867_v58 = vadd.f32 %v5835_v24, %v5611_v18  ;;  %v4991_v6 = vmul.f32 %v8125_v4, %v13257_v20  ;;  %v5614_v50 = vadd.f32 %v13258_v21, %v5358_v27  ;;  %v5040_v62 = vadd.f32 %v4992_v43, %v13259_v32  ;;  %v13271_v18 = vld [vmem:[#allocation108_spill] sm:$0xff]  ;;  %v13272_v17 = vld [vmem:[#allocation81_spill] sm:$0xff]  ;;  %v13273_v27 = vld [vmem:[#allocation71_spill] sm:$0xff] }
 0xf99   :  { %5900 = vst [vmem:[#allocation21 + $0xa8] sm:$0xff] %v5868_v15  ;;  %8142 = vrcp.f32 %v4932_v33  ;;  %v8129_v7 = vpop.eup %8128  ;;  %v5837_v11 = vmul.f32 0.02, %v5805_v26  ;;  %v5840_v52 = vmul.f32 0.02, %v5808_v1  ;;  %v5613_v54 = vadd.f32 %v13260_v28, %v5357_v47  ;;  %v5718_v24 = vpop.xlane.xlu1 %5717  ;;  %v13270_v1 = vld [vmem:[#allocation80_spill] sm:$0xff] }
 0xf9a   :  { %5899 = vst [vmem:[#allocation21 + $0xa0] sm:$0xff] %v5867_v58  ;;  %v5039_v38 = vadd.f32 %v4991_v6, %v13261_v48  ;;  %v8131_v23 = vpop.eup %8130  ;;  %v5839_v13 = vmul.f32 0.02, %v5807_v56  ;;  %v5870_v16 = vadd.f32 %v5838_v14, %v5614_v50  ;;  %v5360_v37 = vmul.f32 0.25, %v5040_v62  ;;  %v5716_v8 = vpop.xlane.xlu0 %5715  ;;  %v13274_v43 = vld [vmem:[#allocation107_spill] sm:$0xff]  ;;  %v13276_v6 = vld [vmem:[#allocation72_spill] sm:$0xff] }
 0xf9b   :  { %v4994_v25 = vmul.f32 %v8129_v7, %v13262_v57  ;;  %v8133_v63 = vpop.eup %8132  ;;  %v5869_v44 = vadd.f32 %v5837_v11, %v5613_v54  ;;  %v4993_v30 = vmul.f32 %v8131_v23, %v13263_v39  ;;  %v5750_v3 = vmax.f32 %v5718_v24, 1e-24  ;;  %v13277_v14 = vld [vmem:[#allocation106_spill] sm:$0xff]  ;;  %v13278_v50 = vld [vmem:[#allocation48_spill] sm:$0xff]  ;;  %v13279_v7 = vld [vmem:[#allocation109_spill] sm:$0xff] }
 0xf9c   :  { %v5359_v59 = vmul.f32 0.25, %v5039_v38  ;;  %v8135_v46 = vpop.eup %8134  ;;  %v5810_v12 = vmul.f32 %v13264_v34, %v8121_v40  ;;  %5902 = vst [vmem:[#allocation21 + $0xb8] sm:$0xff] %v5870_v16  ;;  %v5616_v61 = vadd.f32 %v13265_v31, %v5360_v37  ;;  %v5749_v42 = vmax.f32 %v5716_v8, 1e-24  ;;  %v13280_v54 = vld [vmem:[#allocation82_spill] sm:$0xff]  ;;  %v13281_v16 = vld [vmem:[#allocation51_spill] sm:$0xff] }
 0xf9d   :  { %v5042_v55 = vadd.f32 %v4994_v25, %v13266_v9  ;;  %v8137_v51 = vpop.eup %8136  ;;  %v5809_v29 = vmul.f32 %v13267_v5, %v8127_v53  ;;  %5901 = vst [vmem:[#allocation21 + $0xb0] sm:$0xff] %v5869_v44  ;;  %v5041_v0 = vadd.f32 %v4993_v30, %v13269_v36  ;;  %8144 = vrsqrt.f32 %v5750_v3  ;;  %v13275_v53 = vld [vmem:[#allocation89_spill] sm:$0xff]  ;;  %v13282_v24 = vld [vmem:[#allocation90_spill] sm:$0xff]  ;;  %v13283_v39 = vld [vmem:[#allocation47_spill] sm:$0xff] }
 0xf9e   :  { %v5615_v45 = vadd.f32 %v13268_v41, %v5359_v59  ;;  %v8139_v60 = vpop.eup %8138  ;;  %v5872_v26 = vadd.f32 %v5840_v52, %v5616_v61  ;;  %v4996_v40 = vmul.f32 %v8137_v51, %v13270_v1  ;;  %8146 = vrsqrt.f32 %v5749_v42  ;;  %v13284_v3 = vld [vmem:[#allocation111_spill] sm:$0xff]  ;;  %v13285_v31 = vld [vmem:[#allocation110_spill] sm:$0xff] }
 0xf9f   :  { %v5362_v35 = vmul.f32 0.25, %v5042_v55  ;;  %v5555_v22 = vmul.f32 %v8546_v2, %v13271_v18  ;;  %v5361_v4 = vmul.f32 0.25, %v5041_v0  ;;  %v4995_v56 = vmul.f32 %v8139_v60, %v13272_v17  ;;  %v13286_v5 = vld [vmem:[#allocation91_spill] sm:$0xff] }
 0xfa0   :  { %v5871_v10 = vadd.f32 %v5839_v13, %v5615_v45  ;;  %v5842_v15 = vmul.f32 0.02, %v5810_v12  ;;  %v5812_v49 = vmul.f32 %v13273_v27, %v8133_v63  ;;  %5904 = vst [vmem:[#allocation21 + $0xc8] sm:$0xff] %v5872_v26  ;;  %v5044_v58 = vadd.f32 %v4996_v40, %v13275_v53  ;;  %v13287_v45 = vld [vmem:[#allocation52_spill] sm:$0xff] }
 0xfa1   :  { %v5618_v19 = vadd.f32 %v13274_v43, %v5362_v35  ;;  %v8141_v47 = vpop.eup %8140  ;;  %v5841_v20 = vmul.f32 0.02, %v5809_v29  ;;  %v5811_v33 = vmul.f32 %v13276_v6, %v8135_v46  ;;  %v5617_v21 = vadd.f32 %v13277_v14, %v5361_v4 }
 0xfa2   :  { %5903 = vst [vmem:[#allocation21 + $0xc0] sm:$0xff] %v5871_v10  ;;  %v5043_v32 = vadd.f32 %v4995_v56, %v13278_v50  ;;  %v5588_v11 = vmul.f32 0.02, %v13279_v7  ;;  %v5364_v28 = vmul.f32 0.25, %v5044_v58  ;;  %v4998_v48 = vmul.f32 %v8141_v47, %v13280_v54 }
 0xfa3   :  { %v8143_v62 = vpop.eup %8142  ;;  %v5874_v52 = vadd.f32 %v5842_v15, %v5618_v19  ;;  %v5587_v38 = vmul.f32 0.02, %v5555_v22  ;;  %v5873_v23 = vadd.f32 %v5841_v20, %v5617_v21  ;;  %v5844_v57 = vmul.f32 0.02, %v5812_v49 }
 0xfa4   :  { %v5363_v13 = vmul.f32 0.25, %v5043_v32  ;;  %v4997_v37 = vmul.f32 %v8143_v62, %v13281_v16  ;;  %v5620_v25 = vadd.f32 %v5588_v11, %v5364_v28  ;;  %v5046_v63 = vadd.f32 %v4998_v48, %v13282_v24 }
 0xfa5   :  { %5906 = vst [vmem:[#allocation21 + $0xd8] sm:$0xff] %v5874_v52  ;;  %v5843_v44 = vmul.f32 0.02, %v5811_v33  ;;  %5905 = vst [vmem:[#allocation21 + $0xd0] sm:$0xff] %v5873_v23  ;;  %v5590_v8 = vmul.f32 0.02, %v13284_v3 }
 0xfa6   :  { %v5619_v59 = vadd.f32 %v5587_v38, %v5363_v13  ;;  %v5045_v30 = vadd.f32 %v4997_v37, %v13283_v39  ;;  %v5876_v46 = vadd.f32 %v5844_v57, %v5620_v25  ;;  %v5366_v34 = vmul.f32 0.25, %v5046_v63 }
 0xfa7   :  { %v8145_v12 = vpop.eup %8144  ;;  %v5589_v61 = vmul.f32 0.02, %v13285_v31 }
 0xfa8   :  { %v5875_v9 = vadd.f32 %v5843_v44, %v5619_v59  ;;  %v5365_v55 = vmul.f32 0.25, %v5045_v30  ;;  %v8147_v42 = vpop.eup %8146  ;;  %5908 = vst [vmem:[#allocation21 + $0xe8] sm:$0xff] %v5876_v46  ;;  %v5622_v51 = vadd.f32 %v5590_v8, %v5366_v34  ;;  %v5814_v29 = vmul.f32 %v13286_v5, %v8145_v12 }
 0xfa9   :  { %v5813_v36 = vmul.f32 %v13287_v45, %v8147_v42 }
 0xfaa   :  { %5907 = vst [vmem:[#allocation21 + $0xe0] sm:$0xff] %v5875_v9  ;;  %v5621_v41 = vadd.f32 %v5589_v61, %v5365_v55  ;;  %v5846_v0 = vmul.f32 0.02, %v5814_v29 }
 0xfab   :  { %v5845_v60 = vmul.f32 0.02, %v5813_v36 }
 0xfac   :  { %v5878_v26 = vadd.f32 %v5846_v0, %v5622_v51 }
 0xfad   :  { %v5877_v35 = vadd.f32 %v5845_v60, %v5621_v41 }
 0xfae   :  { %5910 = vst [vmem:[#allocation21 + $0xf8] sm:$0xff] %v5878_v26 }
 0xfaf   :  { %5909 = vst [vmem:[#allocation21 + $0xf0] sm:$0xff] %v5877_v35 }
 0xfb0   :  { %8888 = shalt.err (!%p8885_p12)
}
 0xfb1   :  { %s13288_s12 = sld [smem:[#allocation150_spill]] }
 0xfb7   :  { %s8889_s29 = scalar_lea.hbm %s13288_s12, 4096 }
 0xfb8   :  { %p8890_p13 = scmp.ne.s32.totalorder %s13288_s12, %s8889_s29  ;;  %p8893_p0 = scmp.lt.u32.totalorder %s8889_s29, %s13288_s12 }
 0xfba   :  { %p8895_p1 = pnand %p8893_p0, %p8890_p13 }
 0xfbc   :  { %8898 = shalt.err (!%p8895_p1)
}
 0xfbd   :  { %5934 = dma.vmem_to_hbm [thread:$0]  %s5929_s8, 4096, %s13288_s12, [#allocation22], %s8942_s23, %s8942_s23, %s8943_s24  }
 0xfbe   :  { %s8899_s1 = scalar_lea.vmem %s12426_s11, 4096  ;;  %p8904_p3 = scmp.lt.s32.totalorder %s12426_s11, %s12426_s11 }
 0xfbf   :  { %p8900_p2 = scmp.ne.s32.totalorder %s12426_s11, %s8899_s1  ;;  %p8905_p4 = scmp.lt.s32.totalorder %s8899_s1, %s8899_s1 }
 0xfc1   :  { %p8906_p5 = por %p8905_p4, %p8904_p3 }
 0xfc3   :  { %p8907_p6 = pnand %p8906_p5, %p8900_p2 }
 0xfc5   :  { %8910 = shalt.err (!%p8907_p6)
}
 0xfc6   :  { %s13289_s22 = sld [smem:[#allocation151_spill]] }
 0xfcc   :  { %s8911_s14 = scalar_lea.hbm %s13289_s22, 4096 }
 0xfcd   :  { %p8912_p7 = scmp.ne.s32.totalorder %s13289_s22, %s8911_s14  ;;  %p8915_p8 = scmp.lt.u32.totalorder %s8911_s14, %s13289_s22 }
 0xfcf   :  { %p8917_p9 = pnand %p8915_p8, %p8912_p7 }
 0xfd1   :  { %8920 = shalt.err (!%p8917_p9)
}
 0xfd2   :  { %5946 = dma.vmem_to_hbm [thread:$0]  %s12426_s11, 4096, %s13289_s22, [#allocation22], %s8942_s23, %s8942_s23, %s8943_s24  }
 0xfd3   :  { %8933 = dma.done.wait [#allocation4], 2048  }
 0xfd4   :  { %8934 = vsyncadd [#allocation4], 4294965248 }
 0xfd5   :  { %8935 = dma.done.wait [#allocation22], 8192  }
 0xfd6   :  { %8936 = vsyncadd [#allocation22], 4294959104 }
 0xfd7   :  { %8937 = dma.done.wait [#allocation25], 6144  }
 0xfd8   :  { %8938 = vsyncadd [#allocation25], 4294961152 }
 0xfd9   :  { %8939 = dma.done.wait [#allocation28], 2048  }
 0xfda   :  { %8940 = vsyncadd [#allocation28], 4294965248 }
 0xfdb   :  { %6001 = vsyncpa [#allocation3], 1 }
 0xfdc   :  { %6002 = vsyncpa [#allocation6], 1 }
 0xfdd   :  { %6003 = vsyncpa [#allocation9], 1 }
 0xfde   :  { %6004 = vsyncpa [#allocation12], 1 }
 0xfdf   :  { %6005 = vsyncpa [#allocation15], 1 }
 0xfe0   :  { %6006 = vsyncpa [#allocation18], 1 }
 0xfe1   :  { %6007 = vsyncpa [#allocation4], 1 }
 0xfe2   :  { %6008 = vsyncpa [#allocation22], 1 }
 0xfe3   :  { %6009 = vsyncpa [#allocation25], 1 }
 0xfe4   :  { %6010 = vsyncpa [#allocation28], 1 }

</bundles_post_ra>
